<compile_context>
chip_gen: v7x
topology: tpu7x:2x2x1
jax: 0.10.0
libtpu: 0.0.40
codegen_flags: <defaults>
</compile_context>

<pallas_src>
import functools

import jax
import jax.numpy as jnp
from jax.experimental import pallas as pl
from jax.experimental.pallas import tpu as pltpu


def _silu(v):
    return v * (1.0 / (1.0 + jnp.exp(-v)))


def _bottleneck_kernel(x_ref, w1_ref, b1_ref, w2_ref, b2_ref, o_ref,
                       xpad_ref, mid_ref, *, H, W, add):
    """Fused Bottleneck for one batch element.

    x_ref   : (1, H, W, C1) f32      input tile (NHWC)
    w1_ref  : (9, C1, Cm)   bf16     cv1 weight, tap-major (kh*3+kw), BN folded
    b1_ref  : (1, Cm)       f32      cv1 folded bias
    w2_ref  : (9, Cm, C2)   bf16     cv2 weight, BN folded
    b2_ref  : (1, C2)       f32      cv2 folded bias
    o_ref   : (1, H*W, C2)  f32      output tile (flattened NHWC, lane-dense C2)
    xpad_ref: (H+2, W+2, C1) bf16    VMEM scratch: zero-padded input
    mid_ref : (H+2, W+2, Cm) bf16    VMEM scratch: zero-padded cv1 activation
    """
    HW = H * W
    c1 = x_ref.shape[-1]
    cm = w1_ref.shape[-1]
    c2 = w2_ref.shape[-1]

    # ---- zero-padded bf16 input tile, built entirely in VMEM ---------------
    xpad_ref[...] = jnp.zeros_like(xpad_ref)
    xpad_ref[pl.ds(1, H), pl.ds(1, W), :] = x_ref[0].astype(jnp.bfloat16)

    # ---- cv1: 3x3 conv (pad 1) + folded BN + SiLU ---------------------------
    b1 = b1_ref[...]
    acc1 = jnp.zeros((HW, cm), jnp.float32)
    for ki in range(3):
        for kj in range(3):
            a = xpad_ref[pl.ds(ki, H), pl.ds(kj, W), :].reshape(HW, c1)
            acc1 = acc1 + jnp.dot(a, w1_ref[ki * 3 + kj],
                                  preferred_element_type=jnp.float32)
    y1 = _silu(acc1 + b1)   # TODO(synk): Unified() undefined -> SiLU

    # ---- zero-padded bf16 intermediate activation (never touches HBM) ------
    mid_ref[...] = jnp.zeros_like(mid_ref)
    mid_ref[pl.ds(1, H), pl.ds(1, W), :] = y1.astype(jnp.bfloat16).reshape(H, W, cm)

    # ---- cv2: 3x3 conv (pad 1) + folded BN + SiLU ---------------------------
    b2 = b2_ref[...]
    acc2 = jnp.zeros((HW, c2), jnp.float32)
    for ki in range(3):
        for kj in range(3):
            a = mid_ref[pl.ds(ki, H), pl.ds(kj, W), :].reshape(HW, cm)
            acc2 = acc2 + jnp.dot(a, w2_ref[ki * 3 + kj],
                                  preferred_element_type=jnp.float32)
    y2 = _silu(acc2 + b2)

    if add:                                        # shortcut and c1 == c2
        y2 = y2 + x_ref[0].reshape(HW, c1)

    o_ref[0] = y2.astype(o_ref.dtype)


# ------------------------------ host-side prep -------------------------------

def _fold_bn(w, bn, eps=1e-5):
    """Fold eval-mode BatchNorm2d into a bias-free conv's weight/bias."""
    gamma, beta, mean, var = bn
    scale = gamma * jax.lax.rsqrt(var + eps)
    return w * scale[:, None, None, None], beta - mean * scale


def _prep_conv(w_torch, bn):
    """(Cout,Cin,3,3) torch-layout weight + BN -> ((9,Cin,Cout) bf16, (1,Cout) f32)."""
    wf, bf = _fold_bn(w_torch, bn)
    cout, cin = wf.shape[0], wf.shape[1]
    wk = jnp.transpose(wf, (2, 3, 1, 0)).reshape(9, cin, cout).astype(jnp.bfloat16)
    return wk, bf.reshape(1, cout).astype(jnp.float32)


def bottleneck_forward(x_nchw, params, shortcut=True):
    B, C1, H, W = x_nchw.shape
    assert W % 8 == 0, "kernel flattens (H,W) -> H*W; needs W % 8 == 0"

    w1, b1 = _prep_conv(params["cv1_w"], params["cv1_bn"])
    w2, b2 = _prep_conv(params["cv2_w"], params["cv2_bn"])
    cm, c2 = w1.shape[-1], w2.shape[-1]
    add = bool(shortcut) and (C1 == c2)

    # layout: NCHW in/out (PyTorch convention); NHWC (channels on lanes) inside.
    x_nhwc = jnp.transpose(x_nchw, (0, 2, 3, 1))

    out_flat = pl.pallas_call(
        functools.partial(_bottleneck_kernel, H=H, W=W, add=add),
        out_shape=jax.ShapeDtypeStruct((B, H * W, c2), jnp.float32),
        grid=(B,),
        in_specs=[
            pl.BlockSpec((1, H, W, C1), lambda b: (b, 0, 0, 0)),
            pl.BlockSpec((9, C1, cm), lambda b: (0, 0, 0)),
            pl.BlockSpec((1, cm), lambda b: (0, 0)),
            pl.BlockSpec((9, cm, c2), lambda b: (0, 0, 0)),
            pl.BlockSpec((1, c2), lambda b: (0, 0)),
        ],
        out_specs=pl.BlockSpec((1, H * W, c2), lambda b: (b, 0, 0)),
        scratch_shapes=[
            pltpu.VMEM((H + 2, W + 2, C1), jnp.bfloat16),
            pltpu.VMEM((H + 2, W + 2, cm), jnp.bfloat16),
        ],
        compiler_params=pltpu.CompilerParams(
            dimension_semantics=("parallel",)),
    )(x_nhwc, w1, b1, w2, b2)

    out = out_flat.reshape(B, H, W, c2)
    return jnp.transpose(out, (0, 3, 1, 2))


# ------------------------------ reference (XLA) -------------------------------

def _ref_forward(x, params, shortcut=True):
    def conv_bn_silu(x, w, bn):
        y = jax.lax.conv_general_dilated(
            x, w, window_strides=(1, 1), padding=((1, 1), (1, 1)),
            dimension_numbers=("NCHW", "OIHW", "NCHW"))
        gamma, beta, mean, var = bn
        scale = gamma * jax.lax.rsqrt(var + 1e-5)
        y = y * scale[None, :, None, None] + (beta - mean * scale)[None, :, None, None]
        return y * jax.nn.sigmoid(y)

    y = conv_bn_silu(x, params["cv1_w"], params["cv1_bn"])
    y = conv_bn_silu(y, params["cv2_w"], params["cv2_bn"])
    add = shortcut and (x.shape[1] == params["cv2_w"].shape[0])
    return x + y if add else y


# --------------------------- deterministic init -------------------------------

def init_params(key, c1, c2, e=0.5):
    c_ = int(c2 * e)
    keys = jax.random.split(key, 4)

    def w(i, cout, cin):
        return (jax.random.normal(keys[i], (cout, cin, 3, 3), jnp.float32)
                / jnp.sqrt(9.0 * cin))

    def bn(i, n):
        k1, k2, k3, k4 = jax.random.split(keys[i], 4)
        gamma = 1.0 + 0.1 * jax.random.normal(k1, (n,), jnp.float32)
        beta = 0.1 * jax.random.normal(k2, (n,), jnp.float32)
        mean = 0.1 * jax.random.normal(k3, (n,), jnp.float32)
        var = jnp.abs(1.0 + 0.1 * jax.random.normal(k4, (n,), jnp.float32))
        return (gamma, beta, mean, var)

    return {
        "cv1_w": w(0, c_, c1), "cv1_bn": bn(1, c_),
        "cv2_w": w(2, c2, c_), "cv2_bn": bn(3, c2),
    }


if __name__ == "__main__":
    key = jax.random.PRNGKey(0)
    kx, kp = jax.random.split(key)
    B, C1, C2, H, W = 2, 128, 128, 16, 16      # shortcut active (c1 == c2)
    x = jax.random.normal(kx, (B, C1, H, W), jnp.float32)
    params = init_params(kp, C1, C2)

    fwd = jax.jit(functools.partial(bottleneck_forward, shortcut=True))
    out = jax.block_until_ready(fwd(x, params))

    assert out.shape == (B, C2, H, W), out.shape
    assert bool(jnp.all(jnp.isfinite(out)))

    ref = jax.jit(functools.partial(_ref_forward, shortcut=True))(x, params)
    max_err = float(jnp.max(jnp.abs(out - ref)))
    assert max_err < 0.1, f"max abs err vs XLA reference: {max_err}"

    print("KERNEL_OK")
</pallas_src>

<mosaic_0001>
module attributes {stable_mosaic.version = 11 : i64} {
  func.func @_bottleneck_kernel(%arg0: i32, %arg1: memref<1x16x16x128xf32, #tpu.memory_space<vmem>>, %arg2: memref<9x128x64xbf16, #tpu.memory_space<vmem>>, %arg3: memref<1x64xf32, #tpu.memory_space<vmem>>, %arg4: memref<9x64x128xbf16, #tpu.memory_space<vmem>>, %arg5: memref<1x128xf32, #tpu.memory_space<vmem>>, %arg6: memref<1x256x128xf32, #tpu.memory_space<vmem>>, %arg7: memref<18x18x128xbf16, #tpu.memory_space<vmem>>, %arg8: memref<18x18x64xbf16, #tpu.memory_space<vmem>>) attributes {dimension_semantics = [#tpu.dimension_semantics<parallel>], iteration_bounds = array<i64: 2>, scalar_prefetch = 0 : i64, scratch_operands = 2 : i64, tpu.core_type = #tpu.core_type<tc>, window_params = [{transform_indices = @transform_0, window_bounds = array<i64: 1, 16, 16, 128>}, {pipeline_mode = #tpu.pipeline_mode<synchronous>, transform_indices = @transform_1, window_bounds = array<i64: 9, 128, 64>}, {pipeline_mode = #tpu.pipeline_mode<synchronous>, transform_indices = @transform_2, window_bounds = array<i64: 1, 64>}, {pipeline_mode = #tpu.pipeline_mode<synchronous>, transform_indices = @transform_3, window_bounds = array<i64: 9, 64, 128>}, {pipeline_mode = #tpu.pipeline_mode<synchronous>, transform_indices = @transform_4, window_bounds = array<i64: 1, 128>}, {transform_indices = @transform_5, window_bounds = array<i64: 1, 256, 128>}]} {
    %cst = arith.constant 0.000000e+00 : bf16
    %0 = vector.broadcast %cst : bf16 to vector<18x18x128xbf16>
    %c0 = arith.constant 0 : index
    %c0_0 = arith.constant 0 : index
    %c0_1 = arith.constant 0 : index
    %1 = vector.load %arg7[%c0, %c0_0, %c0_1] : memref<18x18x128xbf16, #tpu.memory_space<vmem>>, vector<18x18x128xbf16>
    tpu.vector_store %arg7[%c0, %c0_0, %c0_1], %0 {strides = array<i32>} : memref<18x18x128xbf16, #tpu.memory_space<vmem>>, vector<18x18x128xbf16>,
    %c0_2 = arith.constant 0 : index
    %c0_3 = arith.constant 0 : index
    %c0_4 = arith.constant 0 : index
    %c0_5 = arith.constant 0 : index
    %2 = vector.load %arg1[%c0_2, %c0_3, %c0_4, %c0_5] : memref<1x16x16x128xf32, #tpu.memory_space<vmem>>, vector<1x16x16x128xf32>
    %3 = vector.shape_cast %2 : vector<1x16x16x128xf32> to vector<16x16x128xf32>
    %4 = arith.truncf %3 : vector<16x16x128xf32> to vector<16x16x128xbf16>
    %c1 = arith.constant 1 : index
    %c1_6 = arith.constant 1 : index
    %c0_7 = arith.constant 0 : index
    %5 = vector.load %arg7[%c1, %c1_6, %c0_7] : memref<18x18x128xbf16, #tpu.memory_space<vmem>>, vector<16x16x128xbf16>
    tpu.vector_store %arg7[%c1, %c1_6, %c0_7], %4 {strides = array<i32>} : memref<18x18x128xbf16, #tpu.memory_space<vmem>>, vector<16x16x128xbf16>,
    %c0_8 = arith.constant 0 : index
    %c0_9 = arith.constant 0 : index
    %6 = vector.load %arg3[%c0_8, %c0_9] : memref<1x64xf32, #tpu.memory_space<vmem>>, vector<1x64xf32>
    %cst_10 = arith.constant 0.000000e+00 : f32
    %7 = vector.broadcast %cst_10 : f32 to vector<256x64xf32>
    %c0_11 = arith.constant 0 : index
    %c0_12 = arith.constant 0 : index
    %c0_13 = arith.constant 0 : index
    %8 = vector.load %arg7[%c0_11, %c0_12, %c0_13] : memref<18x18x128xbf16, #tpu.memory_space<vmem>>, vector<16x16x128xbf16>
    %9 = vector.shape_cast %8 : vector<16x16x128xbf16> to vector<256x128xbf16>
    %c0_14 = arith.constant 0 : index
    %c0_15 = arith.constant 0 : index
    %c0_16 = arith.constant 0 : index
    %10 = vector.load %arg2[%c0_14, %c0_15, %c0_16] : memref<9x128x64xbf16, #tpu.memory_space<vmem>>, vector<1x128x64xbf16>
    %11 = vector.shape_cast %10 : vector<1x128x64xbf16> to vector<128x64xbf16>
    %cst_17 = arith.constant dense<0.000000e+00> : vector<256x64xf32>
    %12 = tpu.matmul %9, %11, %cst_17 {dimension_numbers = #tpu.dot_dimension_numbers<[1], [0], [0], [1], [0, 0, 1, 1], [], []>} : vector<256x128xbf16>, vector<128x64xbf16>, vector<256x64xf32> -> vector<256x64xf32>
    %13 = arith.addf %7, %12 : vector<256x64xf32>
    %c0_18 = arith.constant 0 : index
    %c1_19 = arith.constant 1 : index
    %c0_20 = arith.constant 0 : index
    %14 = vector.load %arg7[%c0_18, %c1_19, %c0_20] : memref<18x18x128xbf16, #tpu.memory_space<vmem>>, vector<16x16x128xbf16>
    %15 = vector.shape_cast %14 : vector<16x16x128xbf16> to vector<256x128xbf16>
    %c1_21 = arith.constant 1 : index
    %c0_22 = arith.constant 0 : index
    %c0_23 = arith.constant 0 : index
    %16 = vector.load %arg2[%c1_21, %c0_22, %c0_23] : memref<9x128x64xbf16, #tpu.memory_space<vmem>>, vector<1x128x64xbf16>
    %17 = vector.shape_cast %16 : vector<1x128x64xbf16> to vector<128x64xbf16>
    %cst_24 = arith.constant dense<0.000000e+00> : vector<256x64xf32>
    %18 = tpu.matmul %15, %17, %cst_24 {dimension_numbers = #tpu.dot_dimension_numbers<[1], [0], [0], [1], [0, 0, 1, 1], [], []>} : vector<256x128xbf16>, vector<128x64xbf16>, vector<256x64xf32> -> vector<256x64xf32>
    %19 = arith.addf %13, %18 : vector<256x64xf32>
    %c0_25 = arith.constant 0 : index
    %c2 = arith.constant 2 : index
    %c0_26 = arith.constant 0 : index
    %20 = vector.load %arg7[%c0_25, %c2, %c0_26] : memref<18x18x128xbf16, #tpu.memory_space<vmem>>, vector<16x16x128xbf16>
    %21 = vector.shape_cast %20 : vector<16x16x128xbf16> to vector<256x128xbf16>
    %c2_27 = arith.constant 2 : index
    %c0_28 = arith.constant 0 : index
    %c0_29 = arith.constant 0 : index
    %22 = vector.load %arg2[%c2_27, %c0_28, %c0_29] : memref<9x128x64xbf16, #tpu.memory_space<vmem>>, vector<1x128x64xbf16>
    %23 = vector.shape_cast %22 : vector<1x128x64xbf16> to vector<128x64xbf16>
    %cst_30 = arith.constant dense<0.000000e+00> : vector<256x64xf32>
    %24 = tpu.matmul %21, %23, %cst_30 {dimension_numbers = #tpu.dot_dimension_numbers<[1], [0], [0], [1], [0, 0, 1, 1], [], []>} : vector<256x128xbf16>, vector<128x64xbf16>, vector<256x64xf32> -> vector<256x64xf32>
    %25 = arith.addf %19, %24 : vector<256x64xf32>
    %c1_31 = arith.constant 1 : index
    %c0_32 = arith.constant 0 : index
    %c0_33 = arith.constant 0 : index
    %26 = vector.load %arg7[%c1_31, %c0_32, %c0_33] : memref<18x18x128xbf16, #tpu.memory_space<vmem>>, vector<16x16x128xbf16>
    %27 = vector.shape_cast %26 : vector<16x16x128xbf16> to vector<256x128xbf16>
    %c3 = arith.constant 3 : index
    %c0_34 = arith.constant 0 : index
    %c0_35 = arith.constant 0 : index
    %28 = vector.load %arg2[%c3, %c0_34, %c0_35] : memref<9x128x64xbf16, #tpu.memory_space<vmem>>, vector<1x128x64xbf16>
    %29 = vector.shape_cast %28 : vector<1x128x64xbf16> to vector<128x64xbf16>
    %cst_36 = arith.constant dense<0.000000e+00> : vector<256x64xf32>
    %30 = tpu.matmul %27, %29, %cst_36 {dimension_numbers = #tpu.dot_dimension_numbers<[1], [0], [0], [1], [0, 0, 1, 1], [], []>} : vector<256x128xbf16>, vector<128x64xbf16>, vector<256x64xf32> -> vector<256x64xf32>
    %31 = arith.addf %25, %30 : vector<256x64xf32>
    %c1_37 = arith.constant 1 : index
    %c1_38 = arith.constant 1 : index
    %c0_39 = arith.constant 0 : index
    %32 = vector.load %arg7[%c1_37, %c1_38, %c0_39] : memref<18x18x128xbf16, #tpu.memory_space<vmem>>, vector<16x16x128xbf16>
    %33 = vector.shape_cast %32 : vector<16x16x128xbf16> to vector<256x128xbf16>
    %c4 = arith.constant 4 : index
    %c0_40 = arith.constant 0 : index
    %c0_41 = arith.constant 0 : index
    %34 = vector.load %arg2[%c4, %c0_40, %c0_41] : memref<9x128x64xbf16, #tpu.memory_space<vmem>>, vector<1x128x64xbf16>
    %35 = vector.shape_cast %34 : vector<1x128x64xbf16> to vector<128x64xbf16>
    %cst_42 = arith.constant dense<0.000000e+00> : vector<256x64xf32>
    %36 = tpu.matmul %33, %35, %cst_42 {dimension_numbers = #tpu.dot_dimension_numbers<[1], [0], [0], [1], [0, 0, 1, 1], [], []>} : vector<256x128xbf16>, vector<128x64xbf16>, vector<256x64xf32> -> vector<256x64xf32>
    %37 = arith.addf %31, %36 : vector<256x64xf32>
    %c1_43 = arith.constant 1 : index
    %c2_44 = arith.constant 2 : index
    %c0_45 = arith.constant 0 : index
    %38 = vector.load %arg7[%c1_43, %c2_44, %c0_45] : memref<18x18x128xbf16, #tpu.memory_space<vmem>>, vector<16x16x128xbf16>
    %39 = vector.shape_cast %38 : vector<16x16x128xbf16> to vector<256x128xbf16>
    %c5 = arith.constant 5 : index
    %c0_46 = arith.constant 0 : index
    %c0_47 = arith.constant 0 : index
    %40 = vector.load %arg2[%c5, %c0_46, %c0_47] : memref<9x128x64xbf16, #tpu.memory_space<vmem>>, vector<1x128x64xbf16>
    %41 = vector.shape_cast %40 : vector<1x128x64xbf16> to vector<128x64xbf16>
    %cst_48 = arith.constant dense<0.000000e+00> : vector<256x64xf32>
    %42 = tpu.matmul %39, %41, %cst_48 {dimension_numbers = #tpu.dot_dimension_numbers<[1], [0], [0], [1], [0, 0, 1, 1], [], []>} : vector<256x128xbf16>, vector<128x64xbf16>, vector<256x64xf32> -> vector<256x64xf32>
    %43 = arith.addf %37, %42 : vector<256x64xf32>
    %c2_49 = arith.constant 2 : index
    %c0_50 = arith.constant 0 : index
    %c0_51 = arith.constant 0 : index
    %44 = vector.load %arg7[%c2_49, %c0_50, %c0_51] : memref<18x18x128xbf16, #tpu.memory_space<vmem>>, vector<16x16x128xbf16>
    %45 = vector.shape_cast %44 : vector<16x16x128xbf16> to vector<256x128xbf16>
    %c6 = arith.constant 6 : index
    %c0_52 = arith.constant 0 : index
    %c0_53 = arith.constant 0 : index
    %46 = vector.load %arg2[%c6, %c0_52, %c0_53] : memref<9x128x64xbf16, #tpu.memory_space<vmem>>, vector<1x128x64xbf16>
    %47 = vector.shape_cast %46 : vector<1x128x64xbf16> to vector<128x64xbf16>
    %cst_54 = arith.constant dense<0.000000e+00> : vector<256x64xf32>
    %48 = tpu.matmul %45, %47, %cst_54 {dimension_numbers = #tpu.dot_dimension_numbers<[1], [0], [0], [1], [0, 0, 1, 1], [], []>} : vector<256x128xbf16>, vector<128x64xbf16>, vector<256x64xf32> -> vector<256x64xf32>
    %49 = arith.addf %43, %48 : vector<256x64xf32>
    %c2_55 = arith.constant 2 : index
    %c1_56 = arith.constant 1 : index
    %c0_57 = arith.constant 0 : index
    %50 = vector.load %arg7[%c2_55, %c1_56, %c0_57] : memref<18x18x128xbf16, #tpu.memory_space<vmem>>, vector<16x16x128xbf16>
    %51 = vector.shape_cast %50 : vector<16x16x128xbf16> to vector<256x128xbf16>
    %c7 = arith.constant 7 : index
    %c0_58 = arith.constant 0 : index
    %c0_59 = arith.constant 0 : index
    %52 = vector.load %arg2[%c7, %c0_58, %c0_59] : memref<9x128x64xbf16, #tpu.memory_space<vmem>>, vector<1x128x64xbf16>
    %53 = vector.shape_cast %52 : vector<1x128x64xbf16> to vector<128x64xbf16>
    %cst_60 = arith.constant dense<0.000000e+00> : vector<256x64xf32>
    %54 = tpu.matmul %51, %53, %cst_60 {dimension_numbers = #tpu.dot_dimension_numbers<[1], [0], [0], [1], [0, 0, 1, 1], [], []>} : vector<256x128xbf16>, vector<128x64xbf16>, vector<256x64xf32> -> vector<256x64xf32>
    %55 = arith.addf %49, %54 : vector<256x64xf32>
    %c2_61 = arith.constant 2 : index
    %c2_62 = arith.constant 2 : index
    %c0_63 = arith.constant 0 : index
    %56 = vector.load %arg7[%c2_61, %c2_62, %c0_63] : memref<18x18x128xbf16, #tpu.memory_space<vmem>>, vector<16x16x128xbf16>
    %57 = vector.shape_cast %56 : vector<16x16x128xbf16> to vector<256x128xbf16>
    %c8 = arith.constant 8 : index
    %c0_64 = arith.constant 0 : index
    %c0_65 = arith.constant 0 : index
    %58 = vector.load %arg2[%c8, %c0_64, %c0_65] : memref<9x128x64xbf16, #tpu.memory_space<vmem>>, vector<1x128x64xbf16>
    %59 = vector.shape_cast %58 : vector<1x128x64xbf16> to vector<128x64xbf16>
    %cst_66 = arith.constant dense<0.000000e+00> : vector<256x64xf32>
    %60 = tpu.matmul %57, %59, %cst_66 {dimension_numbers = #tpu.dot_dimension_numbers<[1], [0], [0], [1], [0, 0, 1, 1], [], []>} : vector<256x128xbf16>, vector<128x64xbf16>, vector<256x64xf32> -> vector<256x64xf32>
    %61 = arith.addf %55, %60 : vector<256x64xf32>
    %62 = vector.broadcast %6 : vector<1x64xf32> to vector<256x64xf32>
    %63 = arith.addf %61, %62 : vector<256x64xf32>
    %cst_67 = arith.constant 0.000000e+00 : f32
    %64 = vector.broadcast %cst_67 : f32 to vector<256x64xf32>
    %65 = arith.subf %64, %63 : vector<256x64xf32>
    %66 = math.exp %65 : vector<256x64xf32>
    %cst_68 = arith.constant 1.000000e+00 : f32
    %67 = vector.broadcast %cst_68 : f32 to vector<256x64xf32>
    %68 = arith.addf %67, %66 : vector<256x64xf32>
    %cst_69 = arith.constant 1.000000e+00 : f32
    %69 = vector.broadcast %cst_69 : f32 to vector<256x64xf32>
    %70 = arith.divf %69, %68 : vector<256x64xf32>
    %71 = arith.mulf %63, %70 : vector<256x64xf32>
    %cst_70 = arith.constant 0.000000e+00 : bf16
    %72 = vector.broadcast %cst_70 : bf16 to vector<18x18x64xbf16>
    %c0_71 = arith.constant 0 : index
    %c0_72 = arith.constant 0 : index
    %c0_73 = arith.constant 0 : index
    %73 = vector.load %arg8[%c0_71, %c0_72, %c0_73] : memref<18x18x64xbf16, #tpu.memory_space<vmem>>, vector<18x18x64xbf16>
    tpu.vector_store %arg8[%c0_71, %c0_72, %c0_73], %72 {strides = array<i32>} : memref<18x18x64xbf16, #tpu.memory_space<vmem>>, vector<18x18x64xbf16>,
    %74 = arith.truncf %71 : vector<256x64xf32> to vector<256x64xbf16>
    %75 = vector.shape_cast %74 : vector<256x64xbf16> to vector<16x16x64xbf16>
    %c1_74 = arith.constant 1 : index
    %c1_75 = arith.constant 1 : index
    %c0_76 = arith.constant 0 : index
    %76 = vector.load %arg8[%c1_74, %c1_75, %c0_76] : memref<18x18x64xbf16, #tpu.memory_space<vmem>>, vector<16x16x64xbf16>
    tpu.vector_store %arg8[%c1_74, %c1_75, %c0_76], %75 {strides = array<i32>} : memref<18x18x64xbf16, #tpu.memory_space<vmem>>, vector<16x16x64xbf16>,
    %c0_77 = arith.constant 0 : index
    %c0_78 = arith.constant 0 : index
    %77 = vector.load %arg5[%c0_77, %c0_78] : memref<1x128xf32, #tpu.memory_space<vmem>>, vector<1x128xf32>
    %cst_79 = arith.constant 0.000000e+00 : f32
    %78 = vector.broadcast %cst_79 : f32 to vector<256x128xf32>
    %c0_80 = arith.constant 0 : index
    %c0_81 = arith.constant 0 : index
    %c0_82 = arith.constant 0 : index
    %79 = vector.load %arg8[%c0_80, %c0_81, %c0_82] : memref<18x18x64xbf16, #tpu.memory_space<vmem>>, vector<16x16x64xbf16>
    %80 = vector.shape_cast %79 : vector<16x16x64xbf16> to vector<256x64xbf16>
    %c0_83 = arith.constant 0 : index
    %c0_84 = arith.constant 0 : index
    %c0_85 = arith.constant 0 : index
    %81 = vector.load %arg4[%c0_83, %c0_84, %c0_85] : memref<9x64x128xbf16, #tpu.memory_space<vmem>>, vector<1x64x128xbf16>
    %82 = vector.shape_cast %81 : vector<1x64x128xbf16> to vector<64x128xbf16>
    %cst_86 = arith.constant dense<0.000000e+00> : vector<256x128xf32>
    %83 = tpu.matmul %80, %82, %cst_86 {dimension_numbers = #tpu.dot_dimension_numbers<[1], [0], [0], [1], [0, 0, 1, 1], [], []>} : vector<256x64xbf16>, vector<64x128xbf16>, vector<256x128xf32> -> vector<256x128xf32>
    %84 = arith.addf %78, %83 : vector<256x128xf32>
    %c0_87 = arith.constant 0 : index
    %c1_88 = arith.constant 1 : index
    %c0_89 = arith.constant 0 : index
    %85 = vector.load %arg8[%c0_87, %c1_88, %c0_89] : memref<18x18x64xbf16, #tpu.memory_space<vmem>>, vector<16x16x64xbf16>
    %86 = vector.shape_cast %85 : vector<16x16x64xbf16> to vector<256x64xbf16>
    %c1_90 = arith.constant 1 : index
    %c0_91 = arith.constant 0 : index
    %c0_92 = arith.constant 0 : index
    %87 = vector.load %arg4[%c1_90, %c0_91, %c0_92] : memref<9x64x128xbf16, #tpu.memory_space<vmem>>, vector<1x64x128xbf16>
    %88 = vector.shape_cast %87 : vector<1x64x128xbf16> to vector<64x128xbf16>
    %cst_93 = arith.constant dense<0.000000e+00> : vector<256x128xf32>
    %89 = tpu.matmul %86, %88, %cst_93 {dimension_numbers = #tpu.dot_dimension_numbers<[1], [0], [0], [1], [0, 0, 1, 1], [], []>} : vector<256x64xbf16>, vector<64x128xbf16>, vector<256x128xf32> -> vector<256x128xf32>
    %90 = arith.addf %84, %89 : vector<256x128xf32>
    %c0_94 = arith.constant 0 : index
    %c2_95 = arith.constant 2 : index
    %c0_96 = arith.constant 0 : index
    %91 = vector.load %arg8[%c0_94, %c2_95, %c0_96] : memref<18x18x64xbf16, #tpu.memory_space<vmem>>, vector<16x16x64xbf16>
    %92 = vector.shape_cast %91 : vector<16x16x64xbf16> to vector<256x64xbf16>
    %c2_97 = arith.constant 2 : index
    %c0_98 = arith.constant 0 : index
    %c0_99 = arith.constant 0 : index
    %93 = vector.load %arg4[%c2_97, %c0_98, %c0_99] : memref<9x64x128xbf16, #tpu.memory_space<vmem>>, vector<1x64x128xbf16>
    %94 = vector.shape_cast %93 : vector<1x64x128xbf16> to vector<64x128xbf16>
    %cst_100 = arith.constant dense<0.000000e+00> : vector<256x128xf32>
    %95 = tpu.matmul %92, %94, %cst_100 {dimension_numbers = #tpu.dot_dimension_numbers<[1], [0], [0], [1], [0, 0, 1, 1], [], []>} : vector<256x64xbf16>, vector<64x128xbf16>, vector<256x128xf32> -> vector<256x128xf32>
    %96 = arith.addf %90, %95 : vector<256x128xf32>
    %c1_101 = arith.constant 1 : index
    %c0_102 = arith.constant 0 : index
    %c0_103 = arith.constant 0 : index
    %97 = vector.load %arg8[%c1_101, %c0_102, %c0_103] : memref<18x18x64xbf16, #tpu.memory_space<vmem>>, vector<16x16x64xbf16>
    %98 = vector.shape_cast %97 : vector<16x16x64xbf16> to vector<256x64xbf16>
    %c3_104 = arith.constant 3 : index
    %c0_105 = arith.constant 0 : index
    %c0_106 = arith.constant 0 : index
    %99 = vector.load %arg4[%c3_104, %c0_105, %c0_106] : memref<9x64x128xbf16, #tpu.memory_space<vmem>>, vector<1x64x128xbf16>
    %100 = vector.shape_cast %99 : vector<1x64x128xbf16> to vector<64x128xbf16>
    %cst_107 = arith.constant dense<0.000000e+00> : vector<256x128xf32>
    %101 = tpu.matmul %98, %100, %cst_107 {dimension_numbers = #tpu.dot_dimension_numbers<[1], [0], [0], [1], [0, 0, 1, 1], [], []>} : vector<256x64xbf16>, vector<64x128xbf16>, vector<256x128xf32> -> vector<256x128xf32>
    %102 = arith.addf %96, %101 : vector<256x128xf32>
    %c1_108 = arith.constant 1 : index
    %c1_109 = arith.constant 1 : index
    %c0_110 = arith.constant 0 : index
    %103 = vector.load %arg8[%c1_108, %c1_109, %c0_110] : memref<18x18x64xbf16, #tpu.memory_space<vmem>>, vector<16x16x64xbf16>
    %104 = vector.shape_cast %103 : vector<16x16x64xbf16> to vector<256x64xbf16>
    %c4_111 = arith.constant 4 : index
    %c0_112 = arith.constant 0 : index
    %c0_113 = arith.constant 0 : index
    %105 = vector.load %arg4[%c4_111, %c0_112, %c0_113] : memref<9x64x128xbf16, #tpu.memory_space<vmem>>, vector<1x64x128xbf16>
    %106 = vector.shape_cast %105 : vector<1x64x128xbf16> to vector<64x128xbf16>
    %cst_114 = arith.constant dense<0.000000e+00> : vector<256x128xf32>
    %107 = tpu.matmul %104, %106, %cst_114 {dimension_numbers = #tpu.dot_dimension_numbers<[1], [0], [0], [1], [0, 0, 1, 1], [], []>} : vector<256x64xbf16>, vector<64x128xbf16>, vector<256x128xf32> -> vector<256x128xf32>
    %108 = arith.addf %102, %107 : vector<256x128xf32>
    %c1_115 = arith.constant 1 : index
    %c2_116 = arith.constant 2 : index
    %c0_117 = arith.constant 0 : index
    %109 = vector.load %arg8[%c1_115, %c2_116, %c0_117] : memref<18x18x64xbf16, #tpu.memory_space<vmem>>, vector<16x16x64xbf16>
    %110 = vector.shape_cast %109 : vector<16x16x64xbf16> to vector<256x64xbf16>
    %c5_118 = arith.constant 5 : index
    %c0_119 = arith.constant 0 : index
    %c0_120 = arith.constant 0 : index
    %111 = vector.load %arg4[%c5_118, %c0_119, %c0_120] : memref<9x64x128xbf16, #tpu.memory_space<vmem>>, vector<1x64x128xbf16>
    %112 = vector.shape_cast %111 : vector<1x64x128xbf16> to vector<64x128xbf16>
    %cst_121 = arith.constant dense<0.000000e+00> : vector<256x128xf32>
    %113 = tpu.matmul %110, %112, %cst_121 {dimension_numbers = #tpu.dot_dimension_numbers<[1], [0], [0], [1], [0, 0, 1, 1], [], []>} : vector<256x64xbf16>, vector<64x128xbf16>, vector<256x128xf32> -> vector<256x128xf32>
    %114 = arith.addf %108, %113 : vector<256x128xf32>
    %c2_122 = arith.constant 2 : index
    %c0_123 = arith.constant 0 : index
    %c0_124 = arith.constant 0 : index
    %115 = vector.load %arg8[%c2_122, %c0_123, %c0_124] : memref<18x18x64xbf16, #tpu.memory_space<vmem>>, vector<16x16x64xbf16>
    %116 = vector.shape_cast %115 : vector<16x16x64xbf16> to vector<256x64xbf16>
    %c6_125 = arith.constant 6 : index
    %c0_126 = arith.constant 0 : index
    %c0_127 = arith.constant 0 : index
    %117 = vector.load %arg4[%c6_125, %c0_126, %c0_127] : memref<9x64x128xbf16, #tpu.memory_space<vmem>>, vector<1x64x128xbf16>
    %118 = vector.shape_cast %117 : vector<1x64x128xbf16> to vector<64x128xbf16>
    %cst_128 = arith.constant dense<0.000000e+00> : vector<256x128xf32>
    %119 = tpu.matmul %116, %118, %cst_128 {dimension_numbers = #tpu.dot_dimension_numbers<[1], [0], [0], [1], [0, 0, 1, 1], [], []>} : vector<256x64xbf16>, vector<64x128xbf16>, vector<256x128xf32> -> vector<256x128xf32>
    %120 = arith.addf %114, %119 : vector<256x128xf32>
    %c2_129 = arith.constant 2 : index
    %c1_130 = arith.constant 1 : index
    %c0_131 = arith.constant 0 : index
    %121 = vector.load %arg8[%c2_129, %c1_130, %c0_131] : memref<18x18x64xbf16, #tpu.memory_space<vmem>>, vector<16x16x64xbf16>
    %122 = vector.shape_cast %121 : vector<16x16x64xbf16> to vector<256x64xbf16>
    %c7_132 = arith.constant 7 : index
    %c0_133 = arith.constant 0 : index
    %c0_134 = arith.constant 0 : index
    %123 = vector.load %arg4[%c7_132, %c0_133, %c0_134] : memref<9x64x128xbf16, #tpu.memory_space<vmem>>, vector<1x64x128xbf16>
    %124 = vector.shape_cast %123 : vector<1x64x128xbf16> to vector<64x128xbf16>
    %cst_135 = arith.constant dense<0.000000e+00> : vector<256x128xf32>
    %125 = tpu.matmul %122, %124, %cst_135 {dimension_numbers = #tpu.dot_dimension_numbers<[1], [0], [0], [1], [0, 0, 1, 1], [], []>} : vector<256x64xbf16>, vector<64x128xbf16>, vector<256x128xf32> -> vector<256x128xf32>
    %126 = arith.addf %120, %125 : vector<256x128xf32>
    %c2_136 = arith.constant 2 : index
    %c2_137 = arith.constant 2 : index
    %c0_138 = arith.constant 0 : index
    %127 = vector.load %arg8[%c2_136, %c2_137, %c0_138] : memref<18x18x64xbf16, #tpu.memory_space<vmem>>, vector<16x16x64xbf16>
    %128 = vector.shape_cast %127 : vector<16x16x64xbf16> to vector<256x64xbf16>
    %c8_139 = arith.constant 8 : index
    %c0_140 = arith.constant 0 : index
    %c0_141 = arith.constant 0 : index
    %129 = vector.load %arg4[%c8_139, %c0_140, %c0_141] : memref<9x64x128xbf16, #tpu.memory_space<vmem>>, vector<1x64x128xbf16>
    %130 = vector.shape_cast %129 : vector<1x64x128xbf16> to vector<64x128xbf16>
    %cst_142 = arith.constant dense<0.000000e+00> : vector<256x128xf32>
    %131 = tpu.matmul %128, %130, %cst_142 {dimension_numbers = #tpu.dot_dimension_numbers<[1], [0], [0], [1], [0, 0, 1, 1], [], []>} : vector<256x64xbf16>, vector<64x128xbf16>, vector<256x128xf32> -> vector<256x128xf32>
    %132 = arith.addf %126, %131 : vector<256x128xf32>
    %133 = vector.broadcast %77 : vector<1x128xf32> to vector<256x128xf32>
    %134 = arith.addf %132, %133 : vector<256x128xf32>
    %cst_143 = arith.constant 0.000000e+00 : f32
    %135 = vector.broadcast %cst_143 : f32 to vector<256x128xf32>
    %136 = arith.subf %135, %134 : vector<256x128xf32>
    %137 = math.exp %136 : vector<256x128xf32>
    %cst_144 = arith.constant 1.000000e+00 : f32
    %138 = vector.broadcast %cst_144 : f32 to vector<256x128xf32>
    %139 = arith.addf %138, %137 : vector<256x128xf32>
    %cst_145 = arith.constant 1.000000e+00 : f32
    %140 = vector.broadcast %cst_145 : f32 to vector<256x128xf32>
    %141 = arith.divf %140, %139 : vector<256x128xf32>
    %142 = arith.mulf %134, %141 : vector<256x128xf32>
    %c0_146 = arith.constant 0 : index
    %c0_147 = arith.constant 0 : index
    %c0_148 = arith.constant 0 : index
    %c0_149 = arith.constant 0 : index
    %143 = vector.load %arg1[%c0_146, %c0_147, %c0_148, %c0_149] : memref<1x16x16x128xf32, #tpu.memory_space<vmem>>, vector<1x16x16x128xf32>
    %144 = vector.shape_cast %143 : vector<1x16x16x128xf32> to vector<16x16x128xf32>
    %145 = vector.shape_cast %144 : vector<16x16x128xf32> to vector<256x128xf32>
    %146 = arith.addf %142, %145 : vector<256x128xf32>
    %c0_150 = arith.constant 0 : index
    %c0_151 = arith.constant 0 : index
    %c0_152 = arith.constant 0 : index
    %147 = vector.load %arg6[%c0_150, %c0_151, %c0_152] : memref<1x256x128xf32, #tpu.memory_space<vmem>>, vector<1x256x128xf32>
    %148 = vector.shape_cast %147 : vector<1x256x128xf32> to vector<256x128xf32>
    %149 = vector.shape_cast %146 : vector<256x128xf32> to vector<1x256x128xf32>
    tpu.vector_store %arg6[%c0_150, %c0_151, %c0_152], %149 {strides = array<i32>} : memref<1x256x128xf32, #tpu.memory_space<vmem>>, vector<1x256x128xf32>,
    return
  }
  func.func @transform_0(%arg0: i32) -> (i32, i32, i32, i32) {
    %c0_i32 = arith.constant 0 : i32
    %c0_i32_0 = arith.constant 0 : i32
    %c0_i32_1 = arith.constant 0 : i32
    %c0_i32_2 = arith.constant 0 : i32
    return %arg0, %c0_i32, %c0_i32_0, %c0_i32_1 : i32, i32, i32, i32
  }
  func.func @transform_1(%arg0: i32) -> (i32, i32, i32) {
    %c0_i32 = arith.constant 0 : i32
    %c0_i32_0 = arith.constant 0 : i32
    %c0_i32_1 = arith.constant 0 : i32
    %c0_i32_2 = arith.constant 0 : i32
    return %c0_i32, %c0_i32_0, %c0_i32_1 : i32, i32, i32
  }
  func.func @transform_2(%arg0: i32) -> (i32, i32) {
    %c0_i32 = arith.constant 0 : i32
    %c0_i32_0 = arith.constant 0 : i32
    %c0_i32_1 = arith.constant 0 : i32
    return %c0_i32, %c0_i32_0 : i32, i32
  }
  func.func @transform_3(%arg0: i32) -> (i32, i32, i32) {
    %c0_i32 = arith.constant 0 : i32
    %c0_i32_0 = arith.constant 0 : i32
    %c0_i32_1 = arith.constant 0 : i32
    %c0_i32_2 = arith.constant 0 : i32
    return %c0_i32, %c0_i32_0, %c0_i32_1 : i32, i32, i32
  }
  func.func @transform_4(%arg0: i32) -> (i32, i32) {
    %c0_i32 = arith.constant 0 : i32
    %c0_i32_0 = arith.constant 0 : i32
    %c0_i32_1 = arith.constant 0 : i32
    return %c0_i32, %c0_i32_0 : i32, i32
  }
  func.func @transform_5(%arg0: i32) -> (i32, i32, i32) {
    %c0_i32 = arith.constant 0 : i32
    %c0_i32_0 = arith.constant 0 : i32
    %c0_i32_1 = arith.constant 0 : i32
    return %arg0, %c0_i32, %c0_i32_0 : i32, i32, i32
  }
}

</mosaic_0001>

<bundles_post_ra>
// kernel: bottleneck_forward.1
= control target key start
LH: loop header
LB: loop body
LE: loop exit
PB: predicated region body
PF: predicated region fallthrough
CT: control target
= control target key end

     0   :  { %10 = vsyncpa [#allocation5], 0  ;;  %s19367_s0 = inlined_call_operand.vmem [shape: f32[2,16,16,128], index: 0, kind: input, shape index: {}]   ;;  %s19368_s1 = inlined_call_operand.vmem [shape: bf16[9,128,64], index: 1, kind: input, shape index: {}]   ;;  %s19369_s2 = inlined_call_operand.vmem [shape: f32[1,64], index: 2, kind: input, shape index: {}]   ;;  %s19370_s3 = inlined_call_operand.vmem [shape: bf16[9,64,128], index: 3, kind: input, shape index: {}]   ;;  %s19371_s4 = inlined_call_operand.vmem [shape: f32[1,128], index: 4, kind: input, shape index: {}]   ;;  %s19372_s5 = inlined_call_operand.hbm [shape: f32[2,256,128], index: 5, kind: output, shape index: {}]  }
   0x1   :  { %12 = vsyncpa [#allocation5 + $0x1], 0  ;;  %s15070_s18 = smov 0   ;;  %s15072_s19 = smov 0  }
   0x2   :  { %s15074_s20 = smov 0   ;;  %s15076_s21 = smov 0  }
   0x3 LB: > { %s15091_s22 = sadd.s32 4294967295, %s15034_s21   ;;  %s11745_s23 = sadd.s32 4294967294, %s15034_s21   ;;  %s15034_s21 = sphi %s15076_s21, %s19799_s21   ;;  %s15030_s20 = sphi %s15074_s20, %s19798_s20   ;;  %s15026_s19 = sphi %s15072_s19, %s19797_s19   ;;  %s15022_s18 = sphi %s15070_s18, %s19796_s18  }
   0x4   : > { %s15095_s24 = sadd.s32 1, %s15034_s21   ;;  %s135_s25 = sadd.s32 1, %s15030_s20 }
   0x5   : > { %s132_s26 = ssub.s32 %s15034_s21, %s15095_s24  ;;  %p145_p0 = scmp.ne.s32.totalorder %s15030_s20, %s15026_s19 }
   0x6   : > { %p133_p1 = scmp.eq.s32.totalorder %s132_s26, 0  ;;  %p146_p2 = scmp.eq.s32.totalorder %s15091_s22, 1 }
   0x7   : > { %p151_p3 = scmp.ne.s32.totalorder %s15026_s19, %s15022_s18  ;;  %p152_p4 = scmp.eq.s32.totalorder %s11745_s23, 1 }
   0x8   : > { %s15106_s27 = scalar_select %p133_p1, %s15030_s20, %s135_s25  }
   0x9   : > { %p15108_p5 = por %p146_p2, %p145_p0  ;;  %p15112_p6 = por %p152_p4, %p151_p3 }
   0xa   : > { %p11748_p7 = scmp.ge.s32.totalorder %s15034_s21, 1  ;;  %p190_p8 = scmp.lt.s32.totalorder %s15034_s21, 3 }
   0xc   : > { %p191_p9 = pnand %p11748_p7, %p190_p8 }
   0xe   : > { %194 = sbr.rel (%p191_p9) target bundleno = 1827 (0x723), region = 40 }
  0x15   : > { %v14459_v0 = vld [vmem:[%s19368_s1 + $0x40] sm:$0xff]   ;;  %v14460_v1 = vld [vmem:[%s19368_s1 + $0x48] sm:$0xff]   ;;  %v19373_v2 = vmov 0   ;;  %p218_p10 = scmp.lt.s32.totalorder %s15091_s22, 1  ;;  %v14461_v3 = vld [vmem:[%s19368_s1 + $0x50] sm:$0xff]   ;;  %vm730_vm0 = vcmask 1043456  }
  0x16   : > { %224 = vst [vmem:[#allocation2] sm:$0xf] %v19373_v2  ;;  %225 = vst [vmem:[#allocation2 + $0x4] sm:$0xf] %v19373_v2  ;;  %13113 = vmatprep.subr.bf16.mxu0 %v14459_v0  ;;  %v14462_v4 = vld [vmem:[%s19368_s1 + $0x58] sm:$0xff]   ;;  %vm737_vm3 = vcmask 1040384  }
  0x17   : > { %226 = vst [vmem:[#allocation2 + $0x8] sm:$0x1] %v19373_v2  ;;  %227 = vst [vmem:[#allocation2 + $0xc] sm:$0xf] %v19373_v2  ;;  %13114 = vmatpush3.bf16.msra.mxu0 %v14459_v0  ;;  %s219_s9 = scalar_select %p218_p10, %s15091_s22, 1  ;;  %v14463_v19 = vld [vmem:[%s19368_s1 + $0x60] sm:$0xff]  }
  0x18   : > { %228 = vst [vmem:[#allocation2 + $0x10] sm:$0xf] %v19373_v2  ;;  %229 = vst [vmem:[#allocation2 + $0x14] sm:$0x1] %v19373_v2  ;;  %13115 = vmatprep.subr.bf16.mxu0 %v14460_v1  ;;  %vm912_vm1 = vsmask.f32 3328 }
  0x19   : > { %230 = vst [vmem:[#allocation2 + $0x18] sm:$0xf] %v19373_v2  ;;  %231 = vst [vmem:[#allocation2 + $0x1c] sm:$0xf] %v19373_v2  ;;  %s12651_s12 = sshll.u32 %s219_s9, 8  ;;  %v14464_v35 = vld [vmem:[%s19368_s1 + $0x68] sm:$0xff]  }
  0x1a   : > { %232 = vst [vmem:[#allocation2 + $0x20] sm:$0x1] %v19373_v2  ;;  %233 = vst [vmem:[#allocation2 + $0x24] sm:$0xf] %v19373_v2  ;;  %s15189_s17 = scalar_lea.vmem %s19367_s0, %s12651_s12  ;;  %vm913_vm2 = vsmask.f32 7440 }
  0x1b   : > { %234 = vst [vmem:[#allocation2 + $0x28] sm:$0xf] %v19373_v2  ;;  %235 = vst [vmem:[#allocation2 + $0x2c] sm:$0x1] %v19373_v2  ;;  %13116 = vmatpush3.bf16.msra.mxu0 %v14460_v1  ;;  %v278_v13 = vld [vmem:[%s15189_s17] sm:$0xff]  ;;  %v279_v14 = vld [vmem:[%s15189_s17 + $0x8] sm:$0xff] }
  0x1c   : > { %236 = vst [vmem:[#allocation2 + $0x30] sm:$0xf] %v19373_v2  ;;  %237 = vst [vmem:[#allocation2 + $0x34] sm:$0xf] %v19373_v2  ;;  %13117 = vmatprep.subr.bf16.mxu0 %v14461_v3  ;;  %v12652_v17 = vpack.c.bf16 %v278_v13, %v278_v13  ;;  %v12653_v18 = vpack.c.bf16 %v279_v14, %v279_v14  ;;  %vm406_vm4 = vsmask.f32 256 }
  0x1d   : > { %238 = vst [vmem:[#allocation2 + $0x38] sm:$0x1] %v19373_v2  ;;  %239 = vst [vmem:[#allocation2 + $0x3c] sm:$0xf] %v19373_v2  ;;  %v848_v5 = vld [vmem:[#allocation2] sm:$0xf] }
  0x1e   : > { %240 = vst [vmem:[#allocation2 + $0x40] sm:$0xf] %v19373_v2  ;;  %241 = vst [vmem:[#allocation2 + $0x44] sm:$0x1] %v19373_v2  ;;  %v849_v6 = vld [vmem:[#allocation2 + $0x4] sm:$0xf] }
  0x1f   : > { %242 = vst [vmem:[#allocation2 + $0x48] sm:$0xf] %v19373_v2  ;;  %243 = vst [vmem:[#allocation2 + $0x4c] sm:$0xf] %v19373_v2  ;;  %v896_v7 = vld [vmem:[#allocation2 + $0x8] sm:$0x1]  ;;  %13118 = vmatpush3.bf16.msra.mxu0 %v14461_v3 }
  0x20   : > { %244 = vst [vmem:[#allocation2 + $0x50] sm:$0x1] %v19373_v2  ;;  %245 = vst [vmem:[#allocation2 + $0x54] sm:$0xf] %v19373_v2  ;;  %v916_v8 = vshrl.u32 %v848_v5, 16  ;;  %v919_v9 = vshll.u32 %v848_v5, 16  ;;  %13119 = vmatprep.subr.bf16.mxu0 %v14462_v4 }
  0x21   : > { %246 = vst [vmem:[#allocation2 + $0x58] sm:$0xf] %v19373_v2  ;;  %247 = vst [vmem:[#allocation2 + $0x5c] sm:$0x1] %v19373_v2  ;;  %v925_v10 = vshll.u32 %v849_v6, 16  ;;  %v929_v11 = vshrl.u32 %v849_v6, 16 }
  0x22   : > { %248 = vst [vmem:[#allocation2 + $0x60] sm:$0xf] %v19373_v2  ;;  %249 = vst [vmem:[#allocation2 + $0x64] sm:$0xf] %v19373_v2  ;;  %v935_v12 = vshll.u32 %v896_v7, 16  ;;  %v918_v15 = vrot.slane %v916_v8, 4 }
  0x23   : > { %250 = vst [vmem:[#allocation2 + $0x68] sm:$0x1] %v19373_v2  ;;  %251 = vst [vmem:[#allocation2 + $0x6c] sm:$0xf] %v19373_v2  ;;  %v921_v16 = vrot.slane %v919_v9, 5  ;;  %v927_v20 = vrot.slane %v925_v10, 5  ;;  %13120 = vmatpush3.bf16.msra.mxu0 %v14462_v4 }
  0x24   : > { %252 = vst [vmem:[#allocation2 + $0x70] sm:$0xf] %v19373_v2  ;;  %253 = vst [vmem:[#allocation2 + $0x74] sm:$0x1] %v19373_v2  ;;  %v931_v21 = vrot.slane %v929_v11, 4  ;;  %v937_v22 = vrot.slane %v935_v12, 5  ;;  %13121 = vmatprep.subr.bf16.mxu0 %v14463_v19 }
  0x25   : > { %254 = vst [vmem:[#allocation2 + $0x78] sm:$0xf] %v19373_v2  ;;  %255 = vst [vmem:[#allocation2 + $0x7c] sm:$0xf] %v19373_v2  ;;  %v922_v23 = vor.u32 %v921_v16, %v918_v15  ;;  %vm407_vm5 = vsmask.f32 4368 }
  0x26   : > { %256 = vst [vmem:[#allocation2 + $0x80] sm:$0x1] %v19373_v2  ;;  %257 = vst [vmem:[#allocation2 + $0x84] sm:$0xf] %v19373_v2  ;;  %v410_v24 = vshrl.u32 %v12652_v17, 16  ;;  %v413_v25 = vshll.u32 %v12652_v17, 16  ;;  %v932_v27 = vor.u32 %v931_v21, %v927_v20 }
  0x27   : > { %258 = vst [vmem:[#allocation2 + $0x88] sm:$0xf] %v19373_v2  ;;  %259 = vst [vmem:[#allocation2 + $0x8c] sm:$0x1] %v19373_v2  ;;  %v418_v28 = vshrl.u32 %v12653_v18, 16  ;;  %v421_v29 = vshll.u32 %v12653_v18, 16  ;;  %13122 = vmatpush3.bf16.msra.mxu0 %v14463_v19 }
  0x28   : > { %260 = vst [vmem:[#allocation2 + $0x90] sm:$0xf] %v19373_v2  ;;  %261 = vst [vmem:[#allocation2 + $0x94] sm:$0xf] %v19373_v2  ;;  %vm731_vm7 = vsmask.f32 7938  ;;  %13123 = vmatprep.subr.bf16.mxu0 %v14464_v35 }
  0x29   : > { %262 = vst [vmem:[#allocation2 + $0x98] sm:$0x1] %v19373_v2  ;;  %263 = vst [vmem:[#allocation2 + $0x9c] sm:$0xf] %v19373_v2  ;;  %v923_v30 = vrot.slane %v922_v23, 4  ;;  %v412_v31 = vrot.slane %v410_v24, 7 }
  0x2a   : > { %264 = vst [vmem:[#allocation2 + $0xa0] sm:$0xf] %v19373_v2  ;;  %265 = vst [vmem:[#allocation2 + $0xa4] sm:$0x1] %v19373_v2  ;;  %v280_v33 = vld [vmem:[%s15189_s17 + $0x10] sm:$0xff]  ;;  %v281_v34 = vld [vmem:[%s15189_s17 + $0x18] sm:$0xff] }
  0x2b   : > { %266 = vst [vmem:[#allocation2 + $0xa8] sm:$0xf] %v19373_v2  ;;  %267 = vst [vmem:[#allocation2 + $0xac] sm:$0xf] %v19373_v2  ;;  %v933_v36 = vrot.slane %v932_v27, 4  ;;  %v420_v37 = vrot.slane %v418_v28, 7  ;;  %v12654_v40 = vpack.c.bf16 %v280_v33, %v280_v33  ;;  %v12655_v41 = vpack.c.bf16 %v281_v34, %v281_v34  ;;  %13124 = vmatpush3.bf16.msra.mxu0 %v14464_v35 }
  0x2c   : > { %268 = vst [vmem:[#allocation2 + $0xb0] sm:$0x1] %v19373_v2  ;;  %269 = vst [vmem:[#allocation2 + $0xb4] sm:$0xf] %v19373_v2  ;;  %v733_v39 = vld [vmem:[#allocation2 + $0xc] sm:$0xf]  ;;  %v415_v44 = vor.u32 %v413_v25, %v412_v31 }
  0x2d   : > { %270 = vst [vmem:[#allocation2 + $0xb8] sm:$0xf] %v19373_v2  ;;  %271 = vst [vmem:[#allocation2 + $0xbc] sm:$0x1] %v19373_v2  ;;  %v19500_v43 = vmov 0  ;;  %v416_v45 = vrot.slane %v412_v31, 4  ;;  %v423_v48 = vor.u32 %v421_v29, %v420_v37 }
  0x2e   : > { %272 = vst [vmem:[#allocation2 + $0xc0] sm:$0xf] %v19373_v2  ;;  %273 = vst [vmem:[#allocation2 + $0xc4] sm:$0xf] %v19373_v2  ;;  %v739_v46 = vld [vmem:[#allocation2 + $0x14] sm:$0x1] }
  0x2f   : > { %274 = vst [vmem:[#allocation2 + $0xc8] sm:$0x1] %v19373_v2  ;;  %275 = vst [vmem:[#allocation2 + $0xcc] sm:$0xf] %v19373_v2  ;;  %v425_v49 = vrot.slane %v420_v37, 4  ;;  %v427_v50 = vshrl.u32 %v12654_v40, 16 }
  0x30   : > { %276 = vst [vmem:[#allocation2 + $0xd0] sm:$0xf] %v19373_v2  ;;  %277 = vst [vmem:[#allocation2 + $0xd4] sm:$0x1] %v19373_v2  ;;  %v282_v51 = vld [vmem:[%s15189_s17 + $0x20] sm:$0xff]  ;;  %v283_v52 = vld [vmem:[%s15189_s17 + $0x28] sm:$0xff] }
  0x31   : > { %vm15198_vm6 = vmor %vm912_vm1, %vm913_vm2  ;;  %v430_v55 = vshll.u32 %v12654_v40, 16  ;;  %v435_v56 = vshrl.u32 %v12655_v41, 16  ;;  %v284_v57 = vld [vmem:[%s15189_s17 + $0x30] sm:$0xff]  ;;  %v429_v61 = vrot.slane %v427_v50, 7  ;;  %v438_v62 = vshll.u32 %v12655_v41, 16  ;;  %v285_v63 = vld [vmem:[%s15189_s17 + $0x38] sm:$0xff] }
  0x32   : > { %vm15204_vm8 = vmand %vm737_vm3, %vm406_vm4  ;;  %v928_v42 = vsel %vm15198_vm6, %v923_v30, %v927_v20  ;;  %v938_v47 = vsel %vm15198_vm6, %v933_v36, %v937_v22  ;;  %v14465_v58 = vld [vmem:[%s19368_s1 + $0x70] sm:$0xff]   ;;  %v286_v0 = vld [vmem:[%s15189_s17 + $0x40] sm:$0xff]  ;;  %v12656_v4 = vpack.c.bf16 %v282_v51, %v282_v51  ;;  %v12657_v5 = vpack.c.bf16 %v283_v52, %v283_v52  ;;  %s215_s8 = sand.u32 1, %s15026_s19   ;;  %s12716_s11 = sshll.u32 %s15091_s22, 12 }
  0x33   : > { %vm15215_vm9 = vmand %vm730_vm0, %vm731_vm7  ;;  %v11800_v53 = vcombine.low %v928_v42, %v938_v47  ;;  %v740_v60 = vsel %vm15204_vm8, %v425_v49, %v739_v46  ;;  %v437_v1 = vrot.slane %v435_v56, 7  ;;  %v742_v3 = vld [vmem:[#allocation2 + $0x18] sm:$0xf]  ;;  %v12658_v6 = vpack.c.bf16 %v284_v57, %v284_v57  ;;  %v746_v9 = vld [vmem:[#allocation2 + $0x20] sm:$0x1]  ;;  %13125 = vmatprep.subr.bf16.mxu0 %v14465_v58  ;;  %s19148_s9 = sshll.u32 %s215_s8, 8  ;;  %s19317_s15 = scalar_lea.hbm %s19372_s5, %s12716_s11 }
  0x34   : > { %vm15223_vm10 = vmor %vm406_vm4, %vm407_vm5  ;;  %v734_v54 = vsel %vm15215_vm9, %v415_v44, %v733_v39  ;;  %741 = vst [vmem:[#allocation2 + $0x14] sm:$0x1] %v740_v60  ;;  %v432_v7 = vor.u32 %v430_v55, %v429_v61  ;;  %v433_v8 = vrot.slane %v429_v61, 4  ;;  %v15243_v10 = vpack.c.bf16 %v285_v63, %v285_v63  ;;  %v14466_v16 = vld [vmem:[%s19368_s1 + $0x78] sm:$0xff]   ;;  %v287_v25 = vld [vmem:[%s15189_s17 + $0x48] sm:$0xff]  ;;  %13126 = vmatpush3.bf16.msra.mxu0 %v14465_v58  ;;  %s19167_s10 = scalar_lea.vmem [#allocation4], %s19148_s9 }
  0x35   : > { %v19501_v43 = vsel %vm15223_vm10, 4294967295, %v19500_v43  ;;  %v424_v59 = vsel %vm15223_vm10, %v416_v45, %v423_v48  ;;  %735 = vst [vmem:[#allocation2 + $0xc] sm:$0xf] %v734_v54  ;;  %13129 = vmatprep.mubr.bf16.mxu0 %v11800_v53  ;;  %v15245_v11 = vpack.c.bf16 %v286_v0, %v286_v0  ;;  %v440_v12 = vor.u32 %v438_v62, %v437_v1  ;;  %v749_v28 = vld [vmem:[#allocation2 + $0x24] sm:$0xf]  ;;  %v14515_v32 = vld [vmem:[%s19368_s1 + $0x110] sm:$0xff]  }
  0x36   : > { %19502 = vst [vmem:[#allocation7_spill] sm:$0xff] %v19501_v43  ;;  %736 = vst [vmem:[#allocation2 + $0x10] sm:$0xf] %v424_v59  ;;  %v442_v13 = vrot.slane %v437_v1, 4  ;;  %v444_v14 = vshrl.u32 %v12656_v4, 16  ;;  %v447_v15 = vshll.u32 %v12656_v4, 16  ;;  %v743_v17 = vsel %vm15215_vm9, %v432_v7, %v742_v3  ;;  %13127 = vmatprep.subr.bf16.mxu0 %v14466_v16 }
  0x37   : > { %v452_v18 = vshrl.u32 %v12657_v5, 16  ;;  %v455_v19 = vshll.u32 %v12657_v5, 16  ;;  %v461_v20 = vshrl.u32 %v12658_v6, 16  ;;  %v441_v21 = vsel %vm15223_vm10, %v433_v8, %v440_v12  ;;  %744 = vst [vmem:[#allocation2 + $0x18] sm:$0xf] %v743_v17  ;;  %v15263_v33 = vld [vmem:[%s19368_s1] sm:$0xff]  }
  0x38   : > { %v747_v22 = vsel %vm15204_vm8, %v442_v13, %v746_v9  ;;  %v446_v23 = vrot.slane %v444_v14, 7  ;;  %v464_v24 = vshll.u32 %v12658_v6, 16  ;;  %745 = vst [vmem:[#allocation2 + $0x1c] sm:$0xf] %v441_v21  ;;  %v469_v30 = vshrl.u32 %v15243_v10, 16  ;;  %13128 = vmatpush3.bf16.msra.mxu0 %v14466_v16  ;;  %s11683_s12 = sshll.u32 %s19167_s10, 4  ;;  %s19319_s12 = int_to_ptr.vmem [resolvable:$true] %s11683_s12 }
  0x39   : > { %748 = vst [vmem:[#allocation2 + $0x20] sm:$0x1] %v747_v22  ;;  %v454_v27 = vrot.slane %v452_v18, 7  ;;  %v15257_v29 = vrot.slane %v461_v20, 7  ;;  %v753_v36 = vld [vmem:[#allocation2 + $0x2c] sm:$0x1]  ;;  %v15267_v47 = vpack.c.bf16 %v287_v25, %v287_v25  ;;  %13161 = vmatprep.subr.bf16.mxu0 %v15263_v33 }
  0x3a   : > { %v449_v34 = vor.u32 %v447_v15, %v446_v23  ;;  %v450_v35 = vrot.slane %v446_v23, 4  ;;  %v472_v37 = vshll.u32 %v15243_v10, 16  ;;  %v478_v39 = vshrl.u32 %v15245_v11, 16  ;;  %v756_v46 = vld [vmem:[#allocation2 + $0x30] sm:$0xf]  ;;  %s19326_s22 = scalar_lea.sflag [#allocation5], %s215_s8 }
  0x3b   : > { %v897_v41 = vld [vmem:[#allocation2 + $0x14] sm:$0x1]  ;;  %v457_v45 = vor.u32 %v455_v19, %v454_v27  ;;  %v466_v51 = vor.u32 %v464_v24, %v15257_v29  ;;  %v459_v55 = vrot.slane %v454_v27, 4  ;;  %v467_v63 = vrot.slane %v15257_v29, 4  ;;  %v760_v21 = vld [vmem:[#allocation2 + $0x38] sm:$0x1] }
  0x3c   : > { %v850_v31 = vld [vmem:[#allocation2 + $0xc] sm:$0xf]  ;;  %v959_v50 = vshll.u32 %v897_v41, 16  ;;  %v750_v59 = vsel %vm15215_vm9, %v449_v34, %v749_v28  ;;  %v471_v0 = vrot.slane %v469_v30, 7  ;;  %v481_v34 = vshll.u32 %v15245_v11, 16  ;;  %s15037_s16 = smov [#allocation4]  }
  0x3d   : > { %v851_v40 = vld [vmem:[#allocation2 + $0x10] sm:$0xf]  ;;  %v940_v42 = vshrl.u32 %v850_v31, 16  ;;  %v943_v44 = vshll.u32 %v850_v31, 16  ;;  %v458_v54 = vsel %vm15223_vm10, %v450_v35, %v457_v45  ;;  %751 = vst [vmem:[#allocation2 + $0x24] sm:$0xf] %v750_v59  ;;  %v754_v62 = vsel %vm15204_vm8, %v459_v55, %v753_v36 }
  0x3e   : > { %v949_v48 = vshll.u32 %v851_v40, 16  ;;  %v953_v49 = vshrl.u32 %v851_v40, 16  ;;  %v961_v58 = vrot.slane %v959_v50, 5  ;;  %752 = vst [vmem:[#allocation2 + $0x28] sm:$0xf] %v458_v54  ;;  %v757_v7 = vsel %vm15215_vm9, %v466_v51, %v756_v46  ;;  %v14468_v30 = vld [vmem:[%s19368_s1 + $0x8] sm:$0xff]  }
  0x3f   : > { %v942_v52 = vrot.slane %v940_v42, 4  ;;  %v945_v53 = vrot.slane %v943_v44, 5  ;;  %v852_v61 = vld [vmem:[#allocation2 + $0x18] sm:$0xf]  ;;  %v853_v3 = vld [vmem:[#allocation2 + $0x1c] sm:$0xf]  ;;  %v474_v16 = vor.u32 %v472_v37, %v471_v0 }
  0x40   : > { %v951_v56 = vrot.slane %v949_v48, 5  ;;  %v955_v57 = vrot.slane %v953_v49, 4  ;;  %v898_v4 = vld [vmem:[#allocation2 + $0x20] sm:$0x1]  ;;  %v964_v5 = vshrl.u32 %v852_v61, 16  ;;  %v967_v6 = vshll.u32 %v852_v61, 16 }
  0x41   : > { %v946_v60 = vor.u32 %v945_v53, %v942_v52  ;;  %755 = vst [vmem:[#allocation2 + $0x2c] sm:$0x1] %v754_v62  ;;  %v973_v9 = vshll.u32 %v853_v3, 16  ;;  %v977_v10 = vshrl.u32 %v853_v3, 16  ;;  %v983_v12 = vshll.u32 %v898_v4, 16  ;;  %v289_v3 = vld [vmem:[%s15189_s17 + $0x58] sm:$0xff] }
  0x42   : > { %v956_v1 = vor.u32 %v955_v57, %v951_v56  ;;  %758 = vst [vmem:[#allocation2 + $0x30] sm:$0xf] %v757_v7  ;;  %v966_v14 = vrot.slane %v964_v5, 4  ;;  %v969_v15 = vrot.slane %v967_v6, 5  ;;  %v475_v24 = vsel %vm15223_vm10, %v467_v63, %v474_v16  ;;  %s14976_s23 = sshll.u32 %s15037_s16, 4  ;;  %s14977_s23 = int_to_ptr.vmem [resolvable:$false] %s14976_s23 }
  0x43   : > { %v947_v8 = vrot.slane %v946_v60, 4  ;;  %v975_v18 = vrot.slane %v973_v9, 5  ;;  %v979_v19 = vrot.slane %v977_v10, 4  ;;  %v985_v20 = vrot.slane %v983_v12, 5  ;;  %759 = vst [vmem:[#allocation2 + $0x34] sm:$0xf] %v475_v24  ;;  %p14979_p0 = scmp.lt.s32.totalorder %s19319_s12, %s14977_s23 }
  0x44   : > { %v957_v13 = vrot.slane %v956_v1, 4  ;;  %v970_v23 = vor.u32 %v969_v15, %v966_v14  ;;  %v476_v25 = vrot.slane %v471_v0, 4  ;;  %v15289_v31 = vrot.slane %v478_v39, 7  ;;  %v854_v36 = vld [vmem:[#allocation2 + $0x24] sm:$0xf]  ;;  %v288_v1 = vld [vmem:[%s15189_s17 + $0x50] sm:$0xff] }
  0x45   : > { %v952_v17 = vsel %vm15198_vm6, %v947_v8, %v951_v56  ;;  %v980_v28 = vor.u32 %v979_v19, %v975_v18  ;;  %v855_v29 = vld [vmem:[#allocation2 + $0x28] sm:$0xf]  ;;  %v988_v45 = vshrl.u32 %v854_v36, 16  ;;  %v991_v46 = vshll.u32 %v854_v36, 16  ;;  %v763_v56 = vld [vmem:[#allocation2 + $0x3c] sm:$0xf] }
  0x46   : > { %v962_v22 = vsel %vm15198_vm6, %v957_v13, %v961_v58  ;;  %v971_v35 = vrot.slane %v970_v23, 4  ;;  %v997_v37 = vshll.u32 %v855_v29, 16  ;;  %v1001_v40 = vshrl.u32 %v855_v29, 16  ;;  %v14470_v9 = vld [vmem:[%s19368_s1 + $0x18] sm:$0xff]   ;;  %v767_v23 = vld [vmem:[#allocation2 + $0x44] sm:$0x1] }
  0x47   : > { %v11801_v27 = vcombine.low %v952_v17, %v962_v22  ;;  %v761_v41 = vsel %vm15204_vm8, %v476_v25, %v760_v21  ;;  %v981_v42 = vrot.slane %v980_v28, 4  ;;  %v483_v48 = vor.u32 %v481_v34, %v15289_v31  ;;  %v290_v24 = vld [vmem:[%s15189_s17 + $0x60] sm:$0xff]  ;;  %v293_v34 = vld [vmem:[%s15189_s17 + $0x78] sm:$0xff]  ;;  %s14978_s25 = scalar_lea.vmem %s14977_s23, 8192 }
  0x48   : > { %v899_v44 = vld [vmem:[#allocation2 + $0x2c] sm:$0x1]  ;;  %762 = vst [vmem:[#allocation2 + $0x38] sm:$0x1] %v761_v41  ;;  %v976_v11 = vsel %vm15198_vm6, %v971_v35, %v975_v18  ;;  %v999_v39 = vrot.slane %v997_v37, 5  ;;  %v1003_v49 = vrot.slane %v1001_v40, 4  ;;  %v12662_v17 = vpack.c.bf16 %v288_v1, %v288_v1 }
  0x49   : > { %13130 = vmatmul.mubr.bf16.vlgmr.msra.gmra.mrb[0].mxu0 %v11801_v27  ;;  %v1007_v50 = vshll.u32 %v899_v44, 16  ;;  %v856_v51 = vld [vmem:[#allocation2 + $0x30] sm:$0xf]  ;;  %v986_v52 = vsel %vm15198_vm6, %v981_v42, %v985_v20  ;;  %v990_v53 = vrot.slane %v988_v45, 4  ;;  %v993_v54 = vrot.slane %v991_v46, 5  ;;  %v14471_v41 = vld [vmem:[%s19368_s1 + $0x20] sm:$0xff]  }
  0x4a   : > { %13162 = vmatpush3.bf16.msra.mxu0 %v15263_v33  ;;  %v1012_v55 = vshrl.u32 %v856_v51, 16  ;;  %v14469_v33 = vld [vmem:[%s19368_s1 + $0x10] sm:$0xff]   ;;  %v11802_v57 = vcombine.low %v976_v11, %v986_v52  ;;  %v1004_v58 = vor.u32 %v1003_v49, %v999_v39  ;;  %v1015_v60 = vshll.u32 %v856_v51, 16  ;;  %v770_v49 = vld [vmem:[#allocation2 + $0x48] sm:$0xf]  ;;  %v294_v1 = vld [vmem:[%s15189_s17 + $0x80] sm:$0xff] }
  0x4b   : > { %13163 = vmatprep.subr.bf16.mxu0 %v14468_v30  ;;  %v1009_v59 = vrot.slane %v1007_v50, 5  ;;  %v994_v61 = vor.u32 %v993_v54, %v990_v53  ;;  %v484_v63 = vrot.slane %v15289_v31, 4  ;;  %v486_v0 = vshrl.u32 %v15267_v47, 16  ;;  %v857_v5 = vld [vmem:[#allocation2 + $0x34] sm:$0xf] }
  0x4c   : > { %v1014_v62 = vrot.slane %v1012_v55, 4  ;;  %13133 = vmatprep.mubr.bf16.mxu0 %v11802_v57  ;;  %v1005_v4 = vrot.slane %v1004_v58, 4  ;;  %v1017_v6 = vrot.slane %v1015_v60, 5  ;;  %v489_v7 = vshll.u32 %v15267_v47, 16  ;;  %v292_v31 = vld [vmem:[%s15189_s17 + $0x70] sm:$0xff]  ;;  %v14472_v60 = vld [vmem:[%s19368_s1 + $0x28] sm:$0xff]  }
  0x4d   : > { %v764_v8 = vsel %vm15215_vm9, %v483_v48, %v763_v56  ;;  %v995_v10 = vrot.slane %v994_v61, 4  ;;  %v1021_v12 = vshll.u32 %v857_v5, 16  ;;  %v1025_v13 = vshrl.u32 %v857_v5, 16  ;;  %v774_v53 = vld [vmem:[#allocation2 + $0x50] sm:$0x1] }
  0x4e   : > { %13164 = vmatpush3.bf16.msra.mxu0 %v14468_v30  ;;  %v488_v14 = vrot.slane %v486_v0, 7  ;;  %765 = vst [vmem:[#allocation2 + $0x3c] sm:$0xf] %v764_v8  ;;  %v1010_v15 = vsel %vm15198_vm6, %v1005_v4, %v1009_v59  ;;  %v1018_v47 = vor.u32 %v1017_v6, %v1014_v62  ;;  %v12663_v18 = vpack.c.bf16 %v289_v3, %v289_v3  ;;  %v291_v30 = vld [vmem:[%s15189_s17 + $0x68] sm:$0xff] }
  0x4f   : > { %13165 = vmatprep.subr.bf16.mxu0 %v14469_v33  ;;  %v900_v16 = vld [vmem:[#allocation2 + $0x38] sm:$0x1]  ;;  %v1000_v19 = vsel %vm15198_vm6, %v995_v10, %v999_v39  ;;  %v1023_v20 = vrot.slane %v1021_v12, 5  ;;  %v1027_v21 = vrot.slane %v1025_v13, 4  ;;  %v495_v37 = vshrl.u32 %v12662_v17, 16 }
  0x50   : > { %v1031_v22 = vshll.u32 %v900_v16, 16  ;;  %v11803_v25 = vcombine.low %v1000_v19, %v1010_v15  ;;  %v1019_v27 = vrot.slane %v1018_v47, 4  ;;  %v491_v28 = vor.u32 %v489_v7, %v488_v14  ;;  %v295_v7 = vld [vmem:[%s15189_s17 + $0x88] sm:$0xff]  ;;  %v777_v16 = vld [vmem:[#allocation2 + $0x54] sm:$0xf] }
  0x51   : > { %v493_v29 = vrot.slane %v488_v14, 4  ;;  %v1028_v35 = vor.u32 %v1027_v21, %v1023_v20  ;;  %v498_v40 = vshll.u32 %v12662_v17, 16  ;;  %v503_v46 = vshrl.u32 %v12663_v18, 16  ;;  %v781_v47 = vld [vmem:[#allocation2 + $0x5c] sm:$0x1] }
  0x52   : > { %13166 = vmatpush3.bf16.msra.mxu0 %v14469_v33  ;;  %v1033_v36 = vrot.slane %v1031_v22, 5  ;;  %v1024_v42 = vsel %vm15198_vm6, %v1019_v27, %v1023_v20  ;;  %v492_v44 = vsel %vm15223_vm10, %v484_v63, %v491_v28  ;;  %v497_v11 = vrot.slane %v495_v37, 7 }
  0x53   : > { %13167 = vmatprep.subr.bf16.mxu0 %v14470_v9  ;;  %13134 = vmatmul.mubr.bf16.gmra.mrb[4].mxu0 %v11803_v25  ;;  %v768_v45 = vsel %vm15204_vm8, %v493_v29, %v767_v23  ;;  %v1029_v48 = vrot.slane %v1028_v35, 4  ;;  %766 = vst [vmem:[#allocation2 + $0x40] sm:$0xf] %v492_v44  ;;  %v506_v39 = vshll.u32 %v12663_v18, 16  ;;  %v12664_v50 = vpack.c.bf16 %v290_v24, %v290_v24  ;;  %v14473_v18 = vld [vmem:[%s19368_s1 + $0x30] sm:$0xff]  }
  0x54   : > { %769 = vst [vmem:[#allocation2 + $0x44] sm:$0x1] %v768_v45  ;;  %v505_v52 = vrot.slane %v503_v46, 7  ;;  %v12665_v54 = vpack.c.bf16 %v291_v30, %v291_v30  ;;  %v15330_v55 = vpack.c.bf16 %v292_v31, %v292_v31  ;;  %v15332_v56 = vpack.c.bf16 %v293_v34, %v293_v34  ;;  %v296_v30 = vld [vmem:[%s15189_s17 + $0x90] sm:$0xff]  ;;  %v297_v31 = vld [vmem:[%s15189_s17 + $0x98] sm:$0xff] }
  0x55   : > { %v858_v51 = vld [vmem:[#allocation2 + $0x3c] sm:$0xf]  ;;  %v1034_v33 = vsel %vm15198_vm6, %v1029_v48, %v1033_v36  ;;  %v500_v59 = vor.u32 %v498_v40, %v497_v11  ;;  %v501_v62 = vrot.slane %v497_v11, 4  ;;  %v512_v6 = vshrl.u32 %v12664_v50, 16 }
  0x56   : > { %13168 = vmatpush3.bf16.msra.mxu0 %v14470_v9  ;;  %v1036_v57 = vshrl.u32 %v858_v51, 16  ;;  %v1039_v58 = vshll.u32 %v858_v51, 16  ;;  %v11804_v61 = vcombine.low %v1024_v42, %v1034_v33  ;;  %v508_v63 = vor.u32 %v506_v39, %v505_v52  ;;  %v14474_v34 = vld [vmem:[%s19368_s1 + $0x38] sm:$0xff]  }
  0x57   : > { %13169 = vmatprep.subr.bf16.mxu0 %v14471_v41  ;;  %v510_v0 = vrot.slane %v505_v52, 4  ;;  %v771_v5 = vsel %vm15215_vm9, %v500_v59, %v770_v49  ;;  %v515_v10 = vshll.u32 %v12664_v50, 16  ;;  %v520_v12 = vshrl.u32 %v12665_v54, 16  ;;  %v784_v59 = vld [vmem:[#allocation2 + $0x60] sm:$0xf] }
  0x58   : > { %v1038_v3 = vrot.slane %v1036_v57, 4  ;;  %v1041_v4 = vrot.slane %v1039_v58, 5  ;;  %13137 = vmatprep.mubr.bf16.mxu0 %v11804_v61  ;;  %v509_v8 = vsel %vm15223_vm10, %v501_v62, %v508_v63  ;;  %772 = vst [vmem:[#allocation2 + $0x48] sm:$0xf] %v771_v5  ;;  %v514_v14 = vrot.slane %v512_v6, 7 }
  0x59   : > { %v775_v9 = vsel %vm15204_vm8, %v510_v0, %v774_v53  ;;  %773 = vst [vmem:[#allocation2 + $0x4c] sm:$0xf] %v509_v8  ;;  %v523_v15 = vshll.u32 %v12665_v54, 16  ;;  %v529_v17 = vshrl.u32 %v15330_v55, 16  ;;  %v522_v21 = vrot.slane %v520_v12, 7  ;;  %v15373_v54 = vld [vmem:[%s19368_s1 + $0x80] sm:$0xff]  }
  0x5a   : > { %13170 = vmatpush3.bf16.msra.mxu0 %v14471_v41  ;;  %v1042_v13 = vor.u32 %v1041_v4, %v1038_v3  ;;  %776 = vst [vmem:[#allocation2 + $0x50] sm:$0x1] %v775_v9  ;;  %v859_v19 = vld [vmem:[#allocation2 + $0x40] sm:$0xf]  ;;  %v532_v22 = vshll.u32 %v15330_v55, 16  ;;  %v15352_v23 = vpack.c.bf16 %v294_v1, %v294_v1  ;;  %v15354_v24 = vpack.c.bf16 %v295_v7, %v295_v7 }
  0x5b   : > { %13171 = vmatprep.subr.bf16.mxu0 %v14472_v60  ;;  %v901_v20 = vld [vmem:[#allocation2 + $0x44] sm:$0x1]  ;;  %v1045_v27 = vshll.u32 %v859_v19, 16  ;;  %v1049_v28 = vshrl.u32 %v859_v19, 16  ;;  %v517_v35 = vor.u32 %v515_v10, %v514_v14  ;;  %v518_v36 = vrot.slane %v514_v14, 4 }
  0x5c   : > { %v1043_v25 = vrot.slane %v1042_v13, 4  ;;  %v1055_v29 = vshll.u32 %v901_v20, 16  ;;  %v525_v37 = vor.u32 %v523_v15, %v522_v21  ;;  %v527_v40 = vrot.slane %v522_v21, 4  ;;  %v788_v3 = vld [vmem:[#allocation2 + $0x68] sm:$0x1] }
  0x5d   : > { %v1047_v41 = vrot.slane %v1045_v27, 5  ;;  %v1051_v42 = vrot.slane %v1049_v28, 4  ;;  %v531_v45 = vrot.slane %v529_v17, 7  ;;  %v778_v48 = vsel %vm15215_vm9, %v517_v35, %v777_v16 }
  0x5e   : > { %13172 = vmatpush3.bf16.msra.mxu0 %v14472_v60  ;;  %v1057_v44 = vrot.slane %v1055_v29, 5  ;;  %v526_v46 = vsel %vm15223_vm10, %v518_v36, %v525_v37  ;;  %v782_v11 = vsel %vm15204_vm8, %v527_v40, %v781_v47  ;;  %v537_v39 = vshrl.u32 %v15332_v56, 16  ;;  %779 = vst [vmem:[#allocation2 + $0x54] sm:$0xf] %v778_v48 }
  0x5f   : > { %13173 = vmatprep.subr.bf16.mxu0 %v14473_v18  ;;  %v1048_v49 = vsel %vm15198_vm6, %v1043_v25, %v1047_v41  ;;  %v1052_v50 = vor.u32 %v1051_v42, %v1047_v41  ;;  %v860_v51 = vld [vmem:[#allocation2 + $0x48] sm:$0xf]  ;;  %780 = vst [vmem:[#allocation2 + $0x58] sm:$0xf] %v526_v46  ;;  %783 = vst [vmem:[#allocation2 + $0x5c] sm:$0x1] %v782_v11  ;;  %v534_v52 = vor.u32 %v532_v22, %v531_v45 }
  0x60   : > { %v535_v53 = vrot.slane %v531_v45, 4  ;;  %v861_v55 = vld [vmem:[#allocation2 + $0x4c] sm:$0xf]  ;;  %v1060_v57 = vshrl.u32 %v860_v51, 16  ;;  %v1063_v58 = vshll.u32 %v860_v51, 16  ;;  %v15375_v60 = vpack.c.bf16 %v296_v30, %v296_v30  ;;  %v298_v46 = vld [vmem:[%s15189_s17 + $0xa0] sm:$0xff] }
  0x61   : > { %v902_v33 = vld [vmem:[#allocation2 + $0x50] sm:$0x1]  ;;  %v15377_v61 = vpack.c.bf16 %v297_v31, %v297_v31  ;;  %v1053_v62 = vrot.slane %v1052_v50, 4  ;;  %v1069_v63 = vshll.u32 %v861_v55, 16  ;;  %v1073_v0 = vshrl.u32 %v861_v55, 16  ;;  %v299_v55 = vld [vmem:[%s15189_s17 + $0xa8] sm:$0xff] }
  0x62   : > { %13174 = vmatpush3.bf16.msra.mxu0 %v14473_v18  ;;  %v1079_v1 = vshll.u32 %v902_v33, 16  ;;  %v1062_v4 = vrot.slane %v1060_v57, 4  ;;  %v1065_v5 = vrot.slane %v1063_v58, 5  ;;  %v539_v6 = vrot.slane %v537_v39, 7 }
  0x63   : > { %13175 = vmatprep.subr.bf16.mxu0 %v14474_v34  ;;  %v540_v7 = vshll.u32 %v15332_v56, 16  ;;  %v1058_v8 = vsel %vm15198_vm6, %v1053_v62, %v1057_v44  ;;  %v1071_v9 = vrot.slane %v1069_v63, 5  ;;  %v1075_v10 = vrot.slane %v1073_v0, 4 }
  0x64   : > { %v1081_v12 = vrot.slane %v1079_v1, 5  ;;  %v11805_v13 = vcombine.low %v1048_v49, %v1058_v8  ;;  %v1066_v14 = vor.u32 %v1065_v5, %v1062_v4  ;;  %v544_v16 = vrot.slane %v539_v6, 4 }
  0x65   : > { %v542_v15 = vor.u32 %v540_v7, %v539_v6  ;;  %v1076_v47 = vor.u32 %v1075_v10, %v1071_v9  ;;  %v785_v17 = vsel %vm15215_vm9, %v534_v52, %v784_v59  ;;  %v546_v18 = vshrl.u32 %v15352_v23, 16  ;;  %v862_v20 = vld [vmem:[#allocation2 + $0x54] sm:$0xf] }
  0x66   : > { %13176 = vmatpush3.bf16.msra.mxu0 %v14474_v34  ;;  %v549_v19 = vshll.u32 %v15352_v23, 16  ;;  %v1067_v56 = vrot.slane %v1066_v14, 4  ;;  %v863_v21 = vld [vmem:[#allocation2 + $0x58] sm:$0xf]  ;;  %786 = vst [vmem:[#allocation2 + $0x60] sm:$0xf] %v785_v17  ;;  %v789_v25 = vsel %vm15204_vm8, %v544_v16, %v788_v3  ;;  %v12672_v8 = vpack.c.bf16 %v298_v46, %v298_v46 }
  0x67   : > { %13209 = vmatprep.subr.bf16.mxu0 %v15373_v54  ;;  %13138 = vmatmul.mubr.bf16.gmra.mrb[8].mxu0 %v11805_v13  ;;  %v543_v22 = vsel %vm15223_vm10, %v535_v53, %v542_v15  ;;  %v554_v27 = vshrl.u32 %v15354_v24, 16  ;;  %v1077_v28 = vrot.slane %v1076_v47, 4  ;;  %v903_v29 = vld [vmem:[#allocation2 + $0x5c] sm:$0x1]  ;;  %v1084_v30 = vshrl.u32 %v862_v20, 16 }
  0x68   : > { %v1087_v23 = vshll.u32 %v862_v20, 16  ;;  %v1093_v31 = vshll.u32 %v863_v21, 16  ;;  %787 = vst [vmem:[#allocation2 + $0x64] sm:$0xf] %v543_v22  ;;  %790 = vst [vmem:[#allocation2 + $0x68] sm:$0x1] %v789_v25  ;;  %v1072_v35 = vsel %vm15198_vm6, %v1067_v56, %v1071_v9  ;;  %v15404_v9 = vpack.c.bf16 %v299_v55, %v299_v55 }
  0x69   : > { %v791_v34 = vld [vmem:[#allocation2 + $0x6c] sm:$0xf]  ;;  %v1097_v36 = vshrl.u32 %v863_v21, 16  ;;  %v1103_v37 = vshll.u32 %v903_v29, 16  ;;  %v548_v40 = vrot.slane %v546_v18, 7  ;;  %v1082_v41 = vsel %vm15198_vm6, %v1077_v28, %v1081_v12 }
  0x6a   : > { %v1086_v42 = vrot.slane %v1084_v30, 4  ;;  %v1089_v44 = vrot.slane %v1087_v23, 5  ;;  %v1095_v45 = vrot.slane %v1093_v31, 5  ;;  %v11806_v48 = vcombine.low %v1072_v35, %v1082_v41  ;;  %v795_v3 = vld [vmem:[#allocation2 + $0x74] sm:$0x1] }
  0x6b   : > { %v1099_v11 = vrot.slane %v1097_v36, 4  ;;  %v1105_v39 = vrot.slane %v1103_v37, 5  ;;  %v551_v49 = vor.u32 %v549_v19, %v548_v40  ;;  %v552_v51 = vrot.slane %v548_v40, 4  ;;  %v798_v30 = vld [vmem:[#allocation2 + $0x78] sm:$0xf] }
  0x6c   : > { %v1090_v50 = vor.u32 %v1089_v44, %v1086_v42  ;;  %v556_v52 = vrot.slane %v554_v27, 7  ;;  %v557_v53 = vshll.u32 %v15354_v24, 16  ;;  %13141 = vmatprep.mubr.bf16.mxu0 %v11806_v48  ;;  %v563_v58 = vshrl.u32 %v15375_v60, 16  ;;  %v802_v23 = vld [vmem:[#allocation2 + $0x80] sm:$0x1]  ;;  %v300_v48 = vld [vmem:[%s15189_s17 + $0xb0] sm:$0xff] }
  0x6d   : > { %v1100_v33 = vor.u32 %v1099_v11, %v1095_v45  ;;  %v792_v57 = vsel %vm15215_vm9, %v551_v49, %v791_v34  ;;  %v566_v59 = vshll.u32 %v15375_v60, 16  ;;  %v864_v63 = vld [vmem:[#allocation2 + $0x60] sm:$0xf]  ;;  %v571_v4 = vshrl.u32 %v15377_v61, 16  ;;  %v805_v46 = vld [vmem:[#allocation2 + $0x84] sm:$0xf] }
  0x6e   : > { %v1091_v62 = vrot.slane %v1090_v50, 4  ;;  %v559_v0 = vor.u32 %v557_v53, %v556_v52  ;;  %v561_v1 = vrot.slane %v556_v52, 4  ;;  %793 = vst [vmem:[#allocation2 + $0x6c] sm:$0xf] %v792_v57  ;;  %v1108_v7 = vshrl.u32 %v864_v63, 16  ;;  %v301_v50 = vld [vmem:[%s15189_s17 + $0xb8] sm:$0xff] }
  0x6f   : > { %v1101_v5 = vrot.slane %v1100_v33, 4  ;;  %v865_v24 = vld [vmem:[#allocation2 + $0x64] sm:$0xf]  ;;  %v904_v6 = vld [vmem:[#allocation2 + $0x68] sm:$0x1]  ;;  %v1111_v12 = vshll.u32 %v864_v63, 16 }
  0x70   : > { %v1096_v10 = vsel %vm15198_vm6, %v1091_v62, %v1095_v45  ;;  %v1117_v60 = vshll.u32 %v865_v24, 16  ;;  %v1121_v13 = vshrl.u32 %v865_v24, 16  ;;  %v1110_v15 = vrot.slane %v1108_v7, 4  ;;  %v14933_v2 = vld [vmem:[#allocation2 + $0x54] sm:$0xf] }
  0x71   : > { %v1106_v14 = vsel %vm15198_vm6, %v1101_v5, %v1105_v39  ;;  %v1127_v16 = vshll.u32 %v904_v6, 16  ;;  %v560_v47 = vsel %vm15223_vm10, %v552_v51, %v559_v0  ;;  %v1113_v18 = vrot.slane %v1111_v12, 5 }
  0x72   : > { %v11807_v17 = vcombine.low %v1096_v10, %v1106_v14  ;;  %v1119_v19 = vrot.slane %v1117_v60, 5  ;;  %v1123_v56 = vrot.slane %v1121_v13, 4  ;;  %794 = vst [vmem:[#allocation2 + $0x70] sm:$0xf] %v560_v47  ;;  %v796_v21 = vsel %vm15204_vm8, %v561_v1, %v795_v3  ;;  %v302_v13 = vld [vmem:[%s15189_s17 + $0xc0] sm:$0xff] }
  0x73   : > { %v1129_v20 = vrot.slane %v1127_v16, 5  ;;  %v565_v22 = vrot.slane %v563_v58, 7  ;;  %v573_v25 = vrot.slane %v571_v4, 7  ;;  %v1114_v27 = vor.u32 %v1113_v18, %v1110_v15  ;;  %797 = vst [vmem:[#allocation2 + $0x74] sm:$0x1] %v796_v21 }
  0x74   : > { %13142 = vmatmul.mubr.bf16.gmra.mrb[12].mxu0 %v11807_v17  ;;  %v1124_v28 = vor.u32 %v1123_v56, %v1119_v19  ;;  %v574_v29 = vshll.u32 %v15377_v61, 16  ;;  %v580_v31 = vshrl.u32 %v12672_v8, 16  ;;  %v583_v40 = vshll.u32 %v12672_v8, 16 }
  0x75   : > { %v15415_v34 = vld [vmem:[#allocation2 + $0x6c] sm:$0xf]  ;;  %v568_v35 = vor.u32 %v566_v59, %v565_v22  ;;  %v569_v36 = vrot.slane %v565_v22, 4  ;;  %v578_v37 = vrot.slane %v573_v25, 4  ;;  %v1115_v41 = vrot.slane %v1114_v27, 4 }
  0x76   : > { %v1125_v42 = vrot.slane %v1124_v28, 4  ;;  %v1132_v44 = vshrl.u32 %v15415_v34, 16  ;;  %v1135_v45 = vshll.u32 %v15415_v34, 16  ;;  %v576_v11 = vor.u32 %v574_v29, %v573_v25 }
  0x77   : > { %v799_v61 = vsel %vm15215_vm9, %v568_v35, %v798_v30  ;;  %v803_v39 = vsel %vm15204_vm8, %v578_v37, %v802_v23  ;;  %v582_v49 = vrot.slane %v580_v31, 7  ;;  %v1120_v51 = vsel %vm15198_vm6, %v1115_v41, %v1119_v19  ;;  %v809_v19 = vld [vmem:[#allocation2 + $0x8c] sm:$0x1]  ;;  %v812_v35 = vld [vmem:[#allocation2 + $0x90] sm:$0xf] }
  0x78   : > { %v1130_v52 = vsel %vm15198_vm6, %v1125_v42, %v1129_v20  ;;  %v1134_v53 = vrot.slane %v1132_v44, 4  ;;  %v1137_v55 = vrot.slane %v1135_v45, 5  ;;  %800 = vst [vmem:[#allocation2 + $0x78] sm:$0xf] %v799_v61  ;;  %804 = vst [vmem:[#allocation2 + $0x80] sm:$0x1] %v803_v39  ;;  %v577_v58 = vsel %vm15223_vm10, %v569_v36, %v576_v11 }
  0x79   : > { %v11808_v33 = vcombine.low %v1120_v51, %v1130_v52  ;;  %v15429_v57 = vld [vmem:[#allocation2 + $0x70] sm:$0xf]  ;;  %v585_v59 = vor.u32 %v583_v40, %v582_v49  ;;  %v586_v62 = vrot.slane %v582_v49, 4  ;;  %801 = vst [vmem:[#allocation2 + $0x7c] sm:$0xf] %v577_v58  ;;  %v588_v3 = vshrl.u32 %v15404_v9, 16 }
  0x7a   : > { %v1138_v63 = vor.u32 %v1137_v55, %v1134_v53  ;;  %v1141_v0 = vshll.u32 %v15429_v57, 16  ;;  %v1145_v1 = vshrl.u32 %v15429_v57, 16  ;;  %v15436_v4 = vld [vmem:[#allocation2 + $0x74] sm:$0x1]  ;;  %v591_v5 = vshll.u32 %v15404_v9, 16  ;;  %v303_v51 = vld [vmem:[%s15189_s17 + $0xc8] sm:$0xff] }
  0x7b   : > { %13145 = vmatprep.mubr.bf16.mxu0 %v11808_v33  ;;  %v806_v24 = vsel %vm15215_vm9, %v585_v59, %v805_v46  ;;  %v12674_v6 = vpack.c.bf16 %v300_v48, %v300_v48  ;;  %v12675_v7 = vpack.c.bf16 %v301_v50, %v301_v50  ;;  %v1151_v60 = vshll.u32 %v15436_v4, 16  ;;  %v816_v58 = vld [vmem:[#allocation2 + $0x98] sm:$0x1] }
  0x7c   : > { %v1139_v8 = vrot.slane %v1138_v63, 4  ;;  %v1143_v10 = vrot.slane %v1141_v0, 5  ;;  %v1147_v12 = vrot.slane %v1145_v1, 4  ;;  %807 = vst [vmem:[#allocation2 + $0x84] sm:$0xf] %v806_v24  ;;  %v590_v14 = vrot.slane %v588_v3, 7 }
  0x7d   : > { %v597_v15 = vshrl.u32 %v12674_v6, 16  ;;  %v600_v16 = vshll.u32 %v12674_v6, 16  ;;  %v605_v47 = vshrl.u32 %v12675_v7, 16  ;;  %v1153_v18 = vrot.slane %v1151_v60, 5  ;;  %v304_v1 = vld [vmem:[%s15189_s17 + $0xd0] sm:$0xff] }
  0x7e   : > { %v1144_v17 = vsel %vm15198_vm6, %v1139_v8, %v1143_v10  ;;  %v1148_v9 = vor.u32 %v1147_v12, %v1143_v10  ;;  %v608_v56 = vshll.u32 %v12675_v7, 16  ;;  %v593_v22 = vor.u32 %v591_v5, %v590_v14  ;;  %v305_v7 = vld [vmem:[%s15189_s17 + $0xd8] sm:$0xff] }
  0x7f   : > { %v15445_v20 = vld [vmem:[#allocation2 + $0x78] sm:$0xf]  ;;  %v15447_v21 = vld [vmem:[#allocation2 + $0x80] sm:$0x1]  ;;  %v595_v25 = vrot.slane %v590_v14, 4  ;;  %v599_v27 = vrot.slane %v597_v15, 7  ;;  %v15449_v28 = vpack.c.bf16 %v302_v13, %v302_v13  ;;  %v12677_v6 = vpack.c.bf16 %v303_v51, %v303_v51 }
  0x80   : > { %v1149_v29 = vrot.slane %v1148_v9, 4  ;;  %v1156_v30 = vshrl.u32 %v15445_v20, 16  ;;  %v1159_v23 = vshll.u32 %v15445_v20, 16  ;;  %v1175_v31 = vshll.u32 %v15447_v21, 16  ;;  %v15454_v36 = vld [vmem:[#allocation2 + $0x7c] sm:$0xf] }
  0x81   : > { %v594_v37 = vsel %vm15223_vm10, %v586_v62, %v593_v22  ;;  %v810_v40 = vsel %vm15204_vm8, %v595_v25, %v809_v19  ;;  %v602_v41 = vor.u32 %v600_v16, %v599_v27  ;;  %v603_v42 = vrot.slane %v599_v27, 4 }
  0x82   : > { %v1154_v44 = vsel %vm15198_vm6, %v1149_v29, %v1153_v18  ;;  %v1158_v45 = vrot.slane %v1156_v30, 4  ;;  %v1161_v46 = vrot.slane %v1159_v23, 5  ;;  %v1165_v48 = vshll.u32 %v15454_v36, 16  ;;  %808 = vst [vmem:[#allocation2 + $0x88] sm:$0xf] %v594_v37 }
  0x83   : > { %811 = vst [vmem:[#allocation2 + $0x8c] sm:$0x1] %v810_v40  ;;  %v11809_v11 = vcombine.low %v1144_v17, %v1154_v44  ;;  %v1169_v61 = vshrl.u32 %v15454_v36, 16  ;;  %v1177_v39 = vrot.slane %v1175_v31, 5  ;;  %v15464_v49 = vld [vmem:[#allocation2 + $0x84] sm:$0xf]  ;;  %v813_v0 = vsel %vm15215_vm9, %v602_v41, %v812_v35 }
  0x84   : > { %v607_v50 = vrot.slane %v605_v47, 7  ;;  %v1162_v52 = vor.u32 %v1161_v46, %v1158_v45  ;;  %v1167_v53 = vrot.slane %v1165_v48, 5  ;;  %v1180_v55 = vshrl.u32 %v15464_v49, 16  ;;  %814 = vst [vmem:[#allocation2 + $0x90] sm:$0xf] %v813_v0  ;;  %v306_v0 = vld [vmem:[%s15189_s17 + $0xe0] sm:$0xff] }
  0x85   : > { %v1183_v33 = vshll.u32 %v15464_v49, 16  ;;  %13146 = vmatmul.mubr.bf16.gmra.mrb[16].mxu0 %v11809_v11  ;;  %v1171_v59 = vrot.slane %v1169_v61, 4  ;;  %v614_v60 = vshrl.u32 %v15449_v28, 16  ;;  %v617_v15 = vshll.u32 %v15449_v28, 16  ;;  %v819_v47 = vld [vmem:[#allocation2 + $0x9c] sm:$0xf] }
  0x86   : > { %v610_v62 = vor.u32 %v608_v56, %v607_v50  ;;  %v612_v63 = vrot.slane %v607_v50, 4  ;;  %v1163_v3 = vrot.slane %v1162_v52, 4  ;;  %v1182_v5 = vrot.slane %v1180_v55, 4  ;;  %v823_v44 = vld [vmem:[#allocation2 + $0xa4] sm:$0x1] }
  0x87   : > { %v1185_v24 = vrot.slane %v1183_v33, 5  ;;  %v1172_v8 = vor.u32 %v1171_v59, %v1167_v53  ;;  %v622_v16 = vshrl.u32 %v12677_v6, 16  ;;  %v616_v19 = vrot.slane %v614_v60, 7 }
  0x88   : > { %v611_v10 = vsel %vm15223_vm10, %v603_v42, %v610_v62  ;;  %v817_v12 = vsel %vm15204_vm8, %v612_v63, %v816_v58  ;;  %v1168_v13 = vsel %vm15198_vm6, %v1163_v3, %v1167_v53  ;;  %v12678_v56 = vpack.c.bf16 %v304_v1, %v304_v1  ;;  %v826_v63 = vld [vmem:[#allocation2 + $0xa8] sm:$0xf] }
  0x89   : > { %v1186_v14 = vor.u32 %v1185_v24, %v1182_v5  ;;  %815 = vst [vmem:[#allocation2 + $0x94] sm:$0xf] %v611_v10  ;;  %818 = vst [vmem:[#allocation2 + $0x98] sm:$0x1] %v817_v12  ;;  %v1173_v17 = vrot.slane %v1172_v8, 4  ;;  %v15485_v22 = vpack.c.bf16 %v305_v7, %v305_v7  ;;  %v619_v23 = vor.u32 %v617_v15, %v616_v19 }
  0x8a   : > { %v15481_v9 = vld [vmem:[#allocation2 + $0x88] sm:$0xf]  ;;  %v15483_v18 = vld [vmem:[#allocation2 + $0x8c] sm:$0x1]  ;;  %v620_v31 = vrot.slane %v616_v19, 4  ;;  %v624_v35 = vrot.slane %v622_v16, 7 }
  0x8b   : > { %v1187_v25 = vrot.slane %v1186_v14, 4  ;;  %v1189_v27 = vshll.u32 %v15481_v9, 16  ;;  %v1193_v29 = vshrl.u32 %v15481_v9, 16  ;;  %v1199_v30 = vshll.u32 %v15483_v18, 16  ;;  %v15492_v45 = vld [vmem:[#allocation2 + $0x90] sm:$0xf] }
  0x8c   : > { %v1178_v28 = vsel %vm15198_vm6, %v1173_v17, %v1177_v39  ;;  %v625_v46 = vshll.u32 %v12677_v6, 16  ;;  %v629_v48 = vrot.slane %v624_v35, 4  ;;  %v820_v11 = vsel %vm15215_vm9, %v619_v23, %v819_v47  ;;  %v307_v14 = vld [vmem:[%s15189_s17 + $0xe8] sm:$0xff] }
  0x8d   : > { %v11810_v37 = vcombine.low %v1168_v13, %v1178_v28  ;;  %v1191_v40 = vrot.slane %v1189_v27, 5  ;;  %v1195_v41 = vrot.slane %v1193_v29, 4  ;;  %v1201_v42 = vrot.slane %v1199_v30, 5  ;;  %821 = vst [vmem:[#allocation2 + $0x9c] sm:$0xf] %v820_v11 }
  0x8e   : > { %v631_v61 = vshrl.u32 %v12678_v56, 16  ;;  %v1204_v51 = vshrl.u32 %v15492_v45, 16  ;;  %v1207_v52 = vshll.u32 %v15492_v45, 16  ;;  %v627_v33 = vor.u32 %v625_v46, %v624_v35 }
  0x8f   : > { %13149 = vmatprep.mubr.bf16.mxu0 %v11810_v37  ;;  %v1192_v39 = vsel %vm15198_vm6, %v1187_v25, %v1191_v40  ;;  %v1196_v50 = vor.u32 %v1195_v41, %v1191_v40  ;;  %v824_v58 = vsel %vm15204_vm8, %v629_v48, %v823_v44  ;;  %v634_v62 = vshll.u32 %v12678_v56, 16 }
  0x90   : > { %v15500_v53 = vld [vmem:[#allocation2 + $0x94] sm:$0xf]  ;;  %v15502_v55 = vld [vmem:[#allocation2 + $0x98] sm:$0x1]  ;;  %v633_v59 = vrot.slane %v631_v61, 7  ;;  %v1206_v3 = vrot.slane %v1204_v51, 4  ;;  %v628_v8 = vsel %vm15223_vm10, %v620_v31, %v627_v33  ;;  %v12680_v27 = vpack.c.bf16 %v306_v0, %v306_v0 }
  0x91   : > { %v1197_v1 = vrot.slane %v1196_v50, 4  ;;  %v1209_v5 = vrot.slane %v1207_v52, 5  ;;  %v1213_v24 = vshll.u32 %v15500_v53, 16  ;;  %825 = vst [vmem:[#allocation2 + $0xa4] sm:$0x1] %v824_v58  ;;  %v1217_v6 = vshrl.u32 %v15500_v53, 16 }
  0x92   : > { %v1223_v7 = vshll.u32 %v15502_v55, 16  ;;  %v636_v10 = vor.u32 %v634_v62, %v633_v59  ;;  %822 = vst [vmem:[#allocation2 + $0xa0] sm:$0xf] %v628_v8  ;;  %v637_v47 = vrot.slane %v633_v59, 4  ;;  %v639_v17 = vshrl.u32 %v15485_v22, 16 }
  0x93   : > { %v1202_v12 = vsel %vm15198_vm6, %v1197_v1, %v1201_v42  ;;  %v1210_v60 = vor.u32 %v1209_v5, %v1206_v3  ;;  %v1215_v13 = vrot.slane %v1213_v24, 5  ;;  %v1219_v16 = vrot.slane %v1217_v6, 4  ;;  %v830_v31 = vld [vmem:[#allocation2 + $0xb0] sm:$0x1]  ;;  %v833_v52 = vld [vmem:[#allocation2 + $0xb4] sm:$0xf] }
  0x94   : > { %v11811_v15 = vcombine.low %v1192_v39, %v1202_v12  ;;  %v642_v56 = vshll.u32 %v15485_v22, 16  ;;  %v827_v25 = vsel %vm15215_vm9, %v636_v10, %v826_v63  ;;  %v1225_v30 = vrot.slane %v1223_v7, 5  ;;  %v15519_v28 = vld [vmem:[#allocation2 + $0x9c] sm:$0xf] }
  0x95   : > { %v1211_v19 = vrot.slane %v1210_v60, 4  ;;  %v1220_v29 = vor.u32 %v1219_v16, %v1215_v13  ;;  %v641_v23 = vrot.slane %v639_v17, 7  ;;  %828 = vst [vmem:[#allocation2 + $0xa8] sm:$0xf] %v827_v25  ;;  %v12681_v35 = vpack.c.bf16 %v307_v14, %v307_v14  ;;  %v837_v8 = vld [vmem:[#allocation2 + $0xbc] sm:$0x1] }
  0x96   : > { %13150 = vmatmul.mubr.bf16.gmra.mrb[20].mxu0 %v11811_v15  ;;  %v1228_v40 = vshrl.u32 %v15519_v28, 16  ;;  %v1231_v22 = vshll.u32 %v15519_v28, 16  ;;  %v648_v41 = vshrl.u32 %v12680_v27, 16  ;;  %v651_v11 = vshll.u32 %v12680_v27, 16 }
  0x97   : > { %v1216_v37 = vsel %vm15198_vm6, %v1211_v19, %v1215_v13  ;;  %v1221_v42 = vrot.slane %v1220_v29, 4  ;;  %v644_v46 = vor.u32 %v642_v56, %v641_v23  ;;  %v646_v48 = vrot.slane %v641_v23, 4 }
  0x98   : > { %v15525_v44 = vld [vmem:[#allocation2 + $0xa4] sm:$0x1]  ;;  %v1230_v61 = vrot.slane %v1228_v40, 4  ;;  %v1233_v39 = vrot.slane %v1231_v22, 5  ;;  %v650_v51 = vrot.slane %v648_v41, 7  ;;  %v656_v63 = vshrl.u32 %v12681_v35, 16 }
  0x99   : > { %v1247_v50 = vshll.u32 %v15525_v44, 16  ;;  %v1226_v33 = vsel %vm15198_vm6, %v1221_v42, %v1225_v30  ;;  %v15530_v58 = vld [vmem:[#allocation2 + $0xa0] sm:$0xf]  ;;  %v645_v59 = vsel %vm15223_vm10, %v637_v47, %v644_v46  ;;  %v831_v62 = vsel %vm15204_vm8, %v646_v48, %v830_v31 }
  0x9a   : > { %v11812_v0 = vcombine.low %v1216_v37, %v1226_v33  ;;  %v1234_v1 = vor.u32 %v1233_v39, %v1230_v61  ;;  %v1237_v3 = vshll.u32 %v15530_v58, 16  ;;  %v1241_v5 = vshrl.u32 %v15530_v58, 16  ;;  %829 = vst [vmem:[#allocation2 + $0xac] sm:$0xf] %v645_v59  ;;  %832 = vst [vmem:[#allocation2 + $0xb0] sm:$0x1] %v831_v62 }
  0x9b   : > { %v653_v24 = vor.u32 %v651_v11, %v650_v51  ;;  %v654_v6 = vrot.slane %v650_v51, 4  ;;  %v658_v7 = vrot.slane %v656_v63, 7  ;;  %v659_v14 = vshll.u32 %v12681_v35, 16 }
  0x9c   : > { %13153 = vmatprep.mubr.bf16.mxu0 %v11812_v0  ;;  %v1235_v10 = vrot.slane %v1234_v1, 4  ;;  %v1239_v12 = vrot.slane %v1237_v3, 5  ;;  %v1243_v60 = vrot.slane %v1241_v5, 4  ;;  %v15538_v13 = vld [vmem:[#allocation2 + $0xa8] sm:$0xf]  ;;  %v1249_v56 = vrot.slane %v1247_v50, 5 }
  0x9d   : > { %v1252_v15 = vshrl.u32 %v15538_v13, 16  ;;  %v1255_v16 = vshll.u32 %v15538_v13, 16  ;;  %v663_v47 = vrot.slane %v658_v7, 4  ;;  %v834_v17 = vsel %vm15215_vm9, %v653_v24, %v833_v52 }
  0x9e   : > { %v1244_v19 = vor.u32 %v1243_v60, %v1239_v12  ;;  %v661_v25 = vor.u32 %v659_v14, %v658_v7  ;;  %835 = vst [vmem:[#allocation2 + $0xb4] sm:$0xf] %v834_v17  ;;  %v1240_v23 = vsel %vm15198_vm6, %v1235_v10, %v1239_v12  ;;  %v11833_v39 = vcombine.low %v15415_v34, %v15429_v57 }
  0x9f   : > { %v1254_v27 = vrot.slane %v1252_v15, 4  ;;  %v1257_v29 = vrot.slane %v1255_v16, 5  ;;  %v838_v30 = vsel %vm15204_vm8, %v663_v47, %v837_v8  ;;  %v11834_v33 = vcombine.low %v15445_v20, %v15454_v36 }
  0xa0   : > { %v1245_v31 = vrot.slane %v1244_v19, 4  ;;  %v662_v35 = vsel %vm15223_vm10, %v654_v6, %v661_v25  ;;  %839 = vst [vmem:[#allocation2 + $0xbc] sm:$0x1] %v838_v30  ;;  %v11835_v62 = vcombine.low %v15464_v49, %v15481_v9  ;;  %v11836_v63 = vcombine.low %v15492_v45, %v15500_v53  ;;  %v1895_v45 = vld [vmem:[#allocation2 + $0xc] sm:$0xe] }
  0xa1   : > { %v15550_v37 = vld [vmem:[#allocation2 + $0xac] sm:$0xf]  ;;  %v15552_v40 = vld [vmem:[#allocation2 + $0xb0] sm:$0x1]  ;;  %v1258_v22 = vor.u32 %v1257_v29, %v1254_v27  ;;  %836 = vst [vmem:[#allocation2 + $0xb8] sm:$0xf] %v662_v35  ;;  %v11837_v0 = vcombine.low %v15519_v28, %v15530_v58 }
  0xa2   : > { %v1250_v41 = vsel %vm15198_vm6, %v1245_v31, %v1249_v56  ;;  %v1261_v42 = vshll.u32 %v15550_v37, 16  ;;  %v1265_v46 = vshrl.u32 %v15550_v37, 16  ;;  %v1271_v48 = vshll.u32 %v15552_v40, 16 }
  0xa3   : > { %v11813_v11 = vcombine.low %v1240_v23, %v1250_v41  ;;  %v1259_v61 = vrot.slane %v1258_v22, 4  ;;  %v11838_v1 = vcombine.low %v15538_v13, %v15550_v37  ;;  %v14919_v41 = vld [vmem:[#allocation2] sm:$0xf]  ;;  %vm1942_vm11 = vcmask 1042432  }
  0xa4   : > { %v1263_v50 = vrot.slane %v1261_v42, 5  ;;  %v1267_v51 = vrot.slane %v1265_v46, 4  ;;  %v1273_v52 = vrot.slane %v1271_v48, 5  ;;  %v15592_v42 = vld [vmem:[#allocation2 + $0x4] sm:$0xf]  ;;  %vm1943_vm12 = vcmask 1046532  }
  0xa5   : > { %13154 = vmatmul.mubr.bf16.gmra.mrb[24].mxu0 %v11813_v11  ;;  %v15563_v59 = vld [vmem:[#allocation2 + $0xb4] sm:$0xf]  ;;  %v11824_v46 = vcombine.low %v14919_v41, %v15592_v42  ;;  %v1903_v11 = vld [vmem:[#allocation2 + $0x6c] sm:$0xe]  ;;  %vm15605_vm13 = vmor %vm1942_vm11, %vm1943_vm12  ;;  %vm5918_vm14 = vcmask 519168   ;;  %vm5921_vm15 = vcmask 516096  }
  0xa6   : > { %v1268_v3 = vor.u32 %v1267_v51, %v1263_v50  ;;  %v1276_v5 = vshrl.u32 %v15563_v59, 16  ;;  %v1279_v24 = vshll.u32 %v15563_v59, 16  ;;  %v1264_v6 = vsel %vm15198_vm6, %v1259_v61, %v1263_v50  ;;  %v1904_v61 = vld [vmem:[#allocation2 + $0x78] sm:$0xe]  ;;  %v14921_v50 = vld [vmem:[#allocation2 + $0xc] sm:$0xf]  ;;  %vm17101_vm1 = vmand %vm5918_vm14, %vm731_vm7 }
  0xa7   : > { %v15577_v7 = vld [vmem:[#allocation2 + $0xbc] sm:$0x1]  ;;  %v15595_v51 = vld [vmem:[#allocation2 + $0x10] sm:$0xf]  ;;  %vm7029_vm0 = vcmask 523264   ;;  %vm17108_vm2 = vmand %vm5921_vm15, %vm406_vm4 }
  0xa8   : > { %v1269_v8 = vrot.slane %v1268_v3, 4  ;;  %v15579_v10 = vld [vmem:[#allocation2 + $0xb8] sm:$0xf]  ;;  %v1278_v12 = vrot.slane %v1276_v5, 4  ;;  %v1281_v60 = vrot.slane %v1279_v24, 5  ;;  %v1295_v14 = vshll.u32 %v15577_v7, 16 }
  0xa9   : > { %v1285_v15 = vshll.u32 %v15579_v10, 16  ;;  %v1289_v16 = vshrl.u32 %v15579_v10, 16  ;;  %v11839_v47 = vcombine.low %v15563_v59, %v15579_v10  ;;  %v14480_v3 = vld [vmem:[%s19368_s1 + $0x88] sm:$0xff]   ;;  %v14923_v5 = vld [vmem:[#allocation2 + $0x18] sm:$0xf] }
  0xaa   : > { %v1274_v17 = vsel %vm15198_vm6, %v1269_v8, %v1273_v52  ;;  %v1282_v19 = vor.u32 %v1281_v60, %v1278_v12  ;;  %v1297_v23 = vrot.slane %v1295_v14, 5  ;;  %v11825_v52 = vcombine.low %v14921_v50, %v15595_v51  ;;  %v15601_v24 = vld [vmem:[#allocation2 + $0x1c] sm:$0xf]  ;;  %v1905_v8 = vld [vmem:[#allocation2 + $0x84] sm:$0xe] }
  0xab   : > { %v11814_v56 = vcombine.low %v1264_v6, %v1274_v17  ;;  %v1287_v25 = vrot.slane %v1285_v15, 5  ;;  %v1291_v27 = vrot.slane %v1289_v16, 4  ;;  %v11826_v6 = vcombine.low %v14923_v5, %v15601_v24  ;;  %v1906_v14 = vld [vmem:[#allocation2 + $0x90] sm:$0xe] }
  0xac   : > { %v1283_v29 = vrot.slane %v1282_v19, 4  ;;  %v11857_v12 = vrot.slane %v1903_v11, 9  ;;  %v2010_v60 = vrot.slane %v15429_v57, 5  ;;  %v2013_v16 = vrot.slane %v15436_v4, 5  ;;  %v15619_v4 = vld [vmem:[#allocation2 + $0x34] sm:$0xf] }
  0xad   : > { %13157 = vmatprep.mubr.bf16.mxu0 %v11814_v56  ;;  %v1292_v30 = vor.u32 %v1291_v27, %v1287_v25  ;;  %v11858_v17 = vrot.slane %v1904_v61, 9  ;;  %v2017_v19 = vrot.slane %v15454_v36, 5  ;;  %v15611_v56 = vld [vmem:[#allocation2 + $0x28] sm:$0xf]  ;;  %v14483_v11 = vld [vmem:[%s19368_s1 + $0x90] sm:$0xff]   ;;  %v11859_v61 = vrot.slane %v1905_v8, 9 }
  0xae   : > { %v1288_v31 = vsel %vm15198_vm6, %v1283_v29, %v1287_v25  ;;  %v14926_v25 = vld [vmem:[#allocation2 + $0x24] sm:$0xf]  ;;  %v15616_v29 = vsel %vm15605_vm13, %v11857_v12, %v2010_v60  ;;  %v2024_v50 = vrot.slane %v15481_v9, 5  ;;  %v2031_v12 = vrot.slane %v15500_v53, 5  ;;  %v1896_v53 = vld [vmem:[#allocation2 + $0x18] sm:$0xe] }
  0xaf   : > { %v1293_v35 = vrot.slane %v1292_v30, 4  ;;  %v11827_v27 = vcombine.low %v14926_v25, %v15611_v56  ;;  %v2012_v30 = vrot.slane %v2010_v60, 4  ;;  %v2019_v41 = vrot.slane %v2017_v19, 4 }
  0xb0   : > { %v15647_v8 = vsel %vm15605_vm13, %v11859_v61, %v2024_v50  ;;  %v2033_v25 = vrot.slane %v2031_v12, 4  ;;  %v1975_v59 = vrot.slane %v15619_v4, 5 }
  0xb1   : > { %v1298_v22 = vsel %vm15198_vm6, %v1293_v35, %v1297_v23  ;;  %v1907_v23 = vld [vmem:[#allocation2 + $0x9c] sm:$0xe] }
  0xb2   : > { %v11815_v48 = vcombine.low %v1288_v31, %v1298_v22  ;;  %v14927_v31 = vld [vmem:[#allocation2 + $0x30] sm:$0xf]  ;;  %v15624_v22 = vsel %vm15605_vm13, %v11858_v17, %v2017_v19  ;;  %v1909_v17 = vld [vmem:[#allocation2 + $0xb4] sm:$0xe] }
  0xb3   : > { %v11828_v35 = vcombine.low %v14927_v31, %v15619_v4  ;;  %v14486_v31 = vld [vmem:[%s19368_s1 + $0x98] sm:$0xff]  }
  0xb4   : > { %13158 = vmatmul.mubr.bf16.gmra.mrb[28].mxu0 %v11815_v48  ;;  %v1908_v48 = vld [vmem:[#allocation2 + $0xa8] sm:$0xe] }
  0xb5   : > { %13177 = vmatprep.mubr.bf16.mxu0 %v11824_v46  ;;  %v2020_v46 = vrot.slane %v15447_v21, 5 }
  0xb7   : > { %v15640_v21 = vsel %vm15605_vm13, %v2019_v41, %v2020_v46  ;;  %v2045_v46 = vrot.slane %v15550_v37, 5  ;;  %v1897_v37 = vld [vmem:[#allocation2 + $0x24] sm:$0xe] }
  0xb8   : > { %v11890_v60 = vcombine.low %v15624_v22, %v15640_v21  ;;  %v14508_v21 = vld [vmem:[#allocation2 + $0x18] sm:$0xff]  }
  0xbc   : > { %13178 = vmatmul.mubr.bf16.vlgmr.msra.gmra.mrb[0].mxu0 %v11825_v52  ;;  %v2027_v52 = vrot.slane %v15483_v18, 5  ;;  %v2034_v18 = vrot.slane %v15502_v55, 5  ;;  %v2041_v55 = vrot.slane %v15525_v44, 5 }
  0xbd   : > { %13210 = vmatpush3.bf16.msra.mxu0 %v15373_v54  ;;  %13181 = vmatprep.mubr.bf16.mxu0 %v11826_v6  ;;  %v15632_v54 = vsel %vm15605_vm13, %v2012_v30, %v2013_v16  ;;  %v11860_v6 = vrot.slane %v1906_v14, 9  ;;  %v2026_v16 = vrot.slane %v2024_v50, 4  ;;  %v11861_v14 = vrot.slane %v1907_v23, 9 }
  0xbe   : > { %13211 = vmatprep.subr.bf16.mxu0 %v14480_v3  ;;  %v11889_v5 = vcombine.low %v15616_v29, %v15632_v54  ;;  %v2038_v30 = vrot.slane %v15530_v58, 5  ;;  %v15668_v23 = vsel %vm15605_vm13, %v2033_v25, %v2034_v18  ;;  %v2052_v25 = vrot.slane %v15579_v10, 5  ;;  %v14507_v54 = vld [vmem:[#allocation2 + $0xc] sm:$0xff]  }
  0xbf   : > { %v15652_v19 = vsel %vm15605_vm13, %v11860_v6, %v2031_v12  ;;  %v15660_v41 = vsel %vm15605_vm13, %v2026_v16, %v2027_v52  ;;  %v2048_v12 = vrot.slane %v15552_v40, 5  ;;  %v14489_v16 = vld [vmem:[%s19368_s1 + $0xa0] sm:$0xff]   ;;  %v11849_v58 = vrot.slane %v1895_v45, 9 }
  0xc0   : > { %v11891_v61 = vcombine.low %v15647_v8, %v15660_v41  ;;  %v15672_v50 = vsel %vm15605_vm13, %v11861_v14, %v2038_v30  ;;  %v2040_v6 = vrot.slane %v2038_v30, 4  ;;  %v11892_v52 = vcombine.low %v15652_v19, %v15668_v23  ;;  %v14512_v8 = vld [vmem:[%s19368_s1 + $0x108] sm:$0xff]   ;;  %v14511_v19 = vld [vmem:[#allocation2 + $0x30] sm:$0xff]   ;;  %v14513_v41 = vld [vmem:[#allocation2 + $0x3c] sm:$0xff]  }
  0xc1   : > { %13212 = vmatpush3.bf16.msra.mxu0 %v14480_v3  ;;  %v11862_v3 = vrot.slane %v1908_v48, 9  ;;  %v2047_v48 = vrot.slane %v2045_v46, 4  ;;  %v2055_v14 = vrot.slane %v15577_v7, 5  ;;  %v15868_v23 = vld [vmem:[#allocation2 + $0x4c] sm:$0xf] }
  0xc2   : > { %13213 = vmatprep.subr.bf16.mxu0 %v14483_v11  ;;  %v15686_v18 = vsel %vm15605_vm13, %v2040_v6, %v2041_v55  ;;  %v14929_v55 = vld [vmem:[#allocation2 + $0x3c] sm:$0xf]  ;;  %v14931_v6 = vld [vmem:[#allocation2 + $0x48] sm:$0xf] }
  0xc3   : > { %v15678_v44 = vsel %vm15605_vm13, %v11862_v3, %v2045_v46  ;;  %v11893_v30 = vcombine.low %v15672_v50, %v15686_v18  ;;  %v15694_v40 = vsel %vm15605_vm13, %v2047_v48, %v2048_v12  ;;  %v15702_v3 = vld [vmem:[#allocation2 + $0x40] sm:$0xf]  ;;  %v14492_v46 = vld [vmem:[%s19368_s1 + $0xa8] sm:$0xff]   ;;  %v15870_v50 = vld [vmem:[#allocation2 + $0x50] sm:$0x1] }
  0xc4   : > { %13182 = vmatmul.mubr.bf16.gmra.mrb[4].mxu0 %v11827_v27  ;;  %v11863_v27 = vrot.slane %v1909_v17, 9  ;;  %v2054_v17 = vrot.slane %v2052_v25, 4  ;;  %v11829_v7 = vcombine.low %v14929_v55, %v15702_v3  ;;  %v15708_v48 = vld [vmem:[#allocation2 + $0x4c] sm:$0xf]  ;;  %v14495_v55 = vld [vmem:[%s19368_s1 + $0xb0] sm:$0xff]   ;;  %v19505_v29 = vcombine.low %v15678_v44, %v15694_v40 }
  0xc5   : > { %13185 = vmatprep.mubr.bf16.mxu0 %v11828_v35  ;;  %13214 = vmatpush3.bf16.msra.mxu0 %v14483_v11  ;;  %v11830_v12 = vcombine.low %v14931_v6, %v15708_v48  ;;  %v15720_v35 = vld [vmem:[#allocation2 + $0x58] sm:$0xf]  ;;  %v308_v6 = vld [vmem:[%s15189_s17 + $0xf0] sm:$0xff]  ;;  %v3620_v44 = vrot.slane %v15868_v23, 5  ;;  %v3623_v18 = vrot.slane %v15870_v50, 5 }
  0xc6   : > { %13215 = vmatprep.subr.bf16.mxu0 %v14486_v31  ;;  %v15700_v11 = vsel %vm15605_vm13, %v11863_v27, %v2052_v25  ;;  %v15713_v27 = vsel %vm15605_vm13, %v2054_v17, %v2055_v14  ;;  %v14498_v14 = vld [vmem:[%s19368_s1 + $0xb8] sm:$0xff]   ;;  %v14935_v17 = vld [vmem:[#allocation2 + $0x60] sm:$0xf]  ;;  %v14937_v25 = vld [vmem:[#allocation2 + $0x8] sm:$0x1] }
  0xc7   : > { %v1950_v34 = vrot.slane %v14937_v25, 5 }
  0xc9   : > { %13216 = vmatpush3.bf16.msra.mxu0 %v14486_v31  ;;  %v11831_v31 = vcombine.low %v14933_v2, %v15720_v35  ;;  %v15732_v2 = vld [vmem:[%s19368_s1 + $0xc0] sm:$0xff]  }
  0xca   : > { %13217 = vmatprep.subr.bf16.mxu0 %v14489_v16 }
  0xcc   : > { %13186 = vmatmul.mubr.bf16.gmra.mrb[8].mxu0 %v11829_v7  ;;  %v15726_v7 = vld [vmem:[#allocation2 + $0x64] sm:$0xf] }
  0xcd   : > { %13189 = vmatprep.mubr.bf16.mxu0 %v11830_v12  ;;  %13218 = vmatpush3.bf16.msra.mxu0 %v14489_v16  ;;  %v11832_v16 = vcombine.low %v14935_v17, %v15726_v7  ;;  %v309_v12 = vld [vmem:[%s15189_s17 + $0xf8] sm:$0xff] }
  0xce   : > { %13219 = vmatprep.subr.bf16.mxu0 %v14492_v46 }
  0xd1   : > { %13220 = vmatpush3.bf16.msra.mxu0 %v14492_v46  ;;  %v1894_v46 = vld [vmem:[#allocation2] sm:$0xe] }
  0xd2   : > { %13221 = vmatprep.subr.bf16.mxu0 %v14495_v55  ;;  %v11848_v57 = vrot.slane %v1894_v46, 9  ;;  %v1961_v46 = vrot.slane %v15601_v24, 5 }
  0xd4   : > { %13190 = vmatmul.mubr.bf16.gmra.mrb[12].mxu0 %v11831_v31  ;;  %v12683_v31 = vpack.c.bf16 %v309_v12, %v309_v12 }
  0xd5   : > { %13193 = vmatprep.mubr.bf16.mxu0 %v11832_v16  ;;  %13222 = vmatpush3.bf16.msra.mxu0 %v14495_v55  ;;  %v12682_v55 = vpack.c.bf16 %v308_v6, %v308_v6 }
  0xd6   : > { %13223 = vmatprep.subr.bf16.mxu0 %v14498_v14  ;;  %v673_v16 = vshrl.u32 %v12683_v31, 16 }
  0xd7   : > { %v665_v17 = vshrl.u32 %v12682_v55, 16  ;;  %v668_v36 = vshll.u32 %v12682_v55, 16 }
  0xd9   : > { %13224 = vmatpush3.bf16.msra.mxu0 %v14498_v14  ;;  %v1947_v14 = vrot.slane %v15592_v42, 5  ;;  %v667_v20 = vrot.slane %v665_v17, 7 }
  0xda   : > { %13257 = vmatprep.subr.bf16.mxu0 %v15732_v2 }
  0xdb   : > { %v1949_v6 = vrot.slane %v1947_v14, 4  ;;  %v670_v12 = vor.u32 %v668_v36, %v667_v20  ;;  %v671_v49 = vrot.slane %v667_v20, 4  ;;  %v1948_v38 = vsel %vm15605_vm13, %v11848_v57, %v1947_v14  ;;  %v14939_v36 = vld [vmem:[#allocation2 + $0x20] sm:$0x1] }
  0xdc   : > { %13194 = vmatmul.mubr.bf16.gmra.mrb[16].mxu0 %v11833_v39  ;;  %v15750_v39 = vrot.slane %v673_v16, 7  ;;  %v11850_v16 = vrot.slane %v1896_v53, 9  ;;  %v1963_v20 = vrot.slane %v1961_v46, 4  ;;  %v1964_v13 = vrot.slane %v14939_v36, 5 }
  0xdd   : > { %13197 = vmatprep.mubr.bf16.mxu0 %v11834_v33  ;;  %v676_v33 = vshll.u32 %v12683_v31, 16  ;;  %v1951_v55 = vsel %vm15605_vm13, %v1949_v6, %v1950_v34  ;;  %v14938_v31 = vld [vmem:[#allocation2 + $0x14] sm:$0x1]  ;;  %v1968_v14 = vrot.slane %v15611_v56, 5  ;;  %v1977_v56 = vrot.slane %v1975_v59, 4 }
  0xde   : > { %v1957_v17 = vrot.slane %v14938_v31, 5  ;;  %v11880_v28 = vcombine.low %v1948_v38, %v1951_v55  ;;  %v1962_v34 = vsel %vm15605_vm13, %v11850_v16, %v1961_v46  ;;  %v1965_v57 = vsel %vm15605_vm13, %v1963_v20, %v1964_v13  ;;  %v1899_v38 = vld [vmem:[#allocation2 + $0x3c] sm:$0xe]  ;;  %v1900_v31 = vld [vmem:[#allocation2 + $0x48] sm:$0xe] }
  0xdf   : > { %v678_v9 = vor.u32 %v676_v33, %v15750_v39  ;;  %v11882_v33 = vcombine.low %v1962_v34, %v1965_v57  ;;  %v1970_v6 = vrot.slane %v1968_v14, 4  ;;  %v1982_v53 = vrot.slane %v15702_v3, 5  ;;  %v14943_v13 = vld [vmem:[#allocation2 + $0x50] sm:$0x1] }
  0xe0   : > { %v1989_v55 = vrot.slane %v15708_v48, 5  ;;  %v11854_v20 = vrot.slane %v1900_v31, 9  ;;  %v14509_v31 = vld [vmem:[%s19368_s1 + $0x100] sm:$0xff]  }
  0xe1   : > { %v679_v42 = vsel %vm15223_vm10, %v671_v49, %v678_v9  ;;  %v14500_v9 = vld [vmem:[%s19368_s1 + $0xc8] sm:$0xff]   ;;  %v1984_v3 = vrot.slane %v1982_v53, 4 }
  0xe2   : > { %843 = vst [vmem:[#allocation2 + $0xc4] sm:$0xf] %v679_v42  ;;  %v14941_v42 = vld [vmem:[#allocation2 + $0x38] sm:$0x1]  ;;  %v1991_v36 = vrot.slane %v1989_v55, 4  ;;  %v1990_v34 = vsel %vm15605_vm13, %v11854_v20, %v1989_v55 }
  0xe3   : > { %v14506_v55 = vld [vmem:[%s19368_s1 + $0xf8] sm:$0xff]  }
  0xe4   : > { %13198 = vmatmul.mubr.bf16.gmra.mrb[20].mxu0 %v11835_v62  ;;  %v840_v62 = vld [vmem:[#allocation2 + $0xc0] sm:$0xf] }
  0xe5   : > { %13201 = vmatprep.mubr.bf16.mxu0 %v11836_v63  ;;  %v841_v25 = vsel %vm15215_vm9, %v670_v12, %v840_v62  ;;  %v1954_v63 = vrot.slane %v15595_v51, 5  ;;  %v14940_v12 = vld [vmem:[#allocation2 + $0x2c] sm:$0x1] }
  0xe6   : > { %842 = vst [vmem:[#allocation2 + $0xc0] sm:$0xf] %v841_v25  ;;  %v1971_v49 = vrot.slane %v14940_v12, 5  ;;  %v1978_v25 = vrot.slane %v14941_v42, 5  ;;  %v14945_v42 = vld [vmem:[#allocation2 + $0x68] sm:$0x1] }
  0xe7   : > { %v1955_v51 = vsel %vm15605_vm13, %v11849_v58, %v1954_v63  ;;  %v11853_v58 = vrot.slane %v1899_v38, 9 }
  0xe8   : > { %v1972_v45 = vsel %vm15605_vm13, %v1970_v6, %v1971_v49  ;;  %v1979_v46 = vsel %vm15605_vm13, %v1977_v56, %v1978_v25  ;;  %v2006_v25 = vrot.slane %v14945_v42, 5 }
  0xe9   : > { %v1983_v48 = vsel %vm15605_vm13, %v11853_v58, %v1982_v53  ;;  %v14516_v58 = vld [vmem:[#allocation2 + $0x54] sm:$0xff]  }
  0xec   : > { %13202 = vmatmul.mubr.bf16.gmra.mrb[24].mxu0 %v11837_v0  ;;  %v1956_v0 = vrot.slane %v1954_v63, 4 }
  0xed   : > { %13205 = vmatprep.mubr.bf16.mxu0 %v11838_v1  ;;  %v1898_v1 = vld [vmem:[#allocation2 + $0x30] sm:$0xe] }
  0xee   : > { %v1958_v24 = vsel %vm15605_vm13, %v1956_v0, %v1957_v17  ;;  %v11852_v62 = vrot.slane %v1898_v1, 9  ;;  %v14942_v0 = vld [vmem:[#allocation2 + $0x44] sm:$0x1]  ;;  %v14502_v1 = vld [vmem:[%s19368_s1 + $0xd8] sm:$0xff]  }
  0xef   : > { %v11881_v10 = vcombine.low %v1955_v51, %v1958_v24  ;;  %v1985_v16 = vrot.slane %v14942_v0, 5  ;;  %v1901_v24 = vld [vmem:[#allocation2 + $0x54] sm:$0xe]  ;;  %v14524_v0 = vld [vmem:[%s19368_s1 + $0x128] sm:$0xff]  }
  0xf0   : > { %v1976_v63 = vsel %vm15605_vm13, %v11852_v62, %v1975_v59  ;;  %v2003_v59 = vrot.slane %v15726_v7, 5  ;;  %v11855_v12 = vrot.slane %v1901_v24, 9  ;;  %v14504_v7 = vld [vmem:[%s19368_s1 + $0xe8] sm:$0xff]  }
  0xf1   : > { %v1986_v51 = vsel %vm15605_vm13, %v1984_v3, %v1985_v16  ;;  %v2765_v16 = vld [vmem:[#allocation2 + $0xc] sm:$0xf] }
  0xf2   : > { %v2005_v56 = vrot.slane %v2003_v59, 4 }
  0xf4   : > { %13206 = vmatmul.mubr.bf16.gmra.mrb[28].mxu0 %v11839_v47  ;;  %v11851_v47 = vrot.slane %v1897_v37, 9  ;;  %v1992_v37 = vrot.slane %v14943_v13, 5  ;;  %v2768_v13 = vld [vmem:[#allocation2 + $0x18] sm:$0xf] }
  0xf5   : > { %13225 = vmatprep.mubr.bf16.mxu0 %v11880_v28  ;;  %v11884_v28 = vcombine.low %v1976_v63, %v1979_v46  ;;  %v2007_v63 = vsel %vm15605_vm13, %v2005_v56, %v2006_v25  ;;  %v14505_v46 = vld [vmem:[%s19368_s1 + $0xf0] sm:$0xff]  }
  0xf6   : > { %v1969_v4 = vsel %vm15605_vm13, %v11851_v47, %v1968_v14  ;;  %v1996_v14 = vrot.slane %v15720_v35, 5  ;;  %v1993_v57 = vsel %vm15605_vm13, %v1991_v36, %v1992_v37  ;;  %v1902_v47 = vld [vmem:[#allocation2 + $0x60] sm:$0xe]  ;;  %v15890_v36 = vld [vmem:[#allocation2 + $0x10] sm:$0xf] }
  0xf7   : > { %v11883_v17 = vcombine.low %v1969_v4, %v1972_v45  ;;  %v11886_v6 = vcombine.low %v1990_v34, %v1993_v57  ;;  %v11856_v62 = vrot.slane %v1902_v47, 9  ;;  %v15892_v37 = vld [vmem:[#allocation2 + $0x64] sm:$0xf]  ;;  %v14527_v34 = vld [vmem:[%s19368_s1 + $0x130] sm:$0xff]   ;;  %v2817_v57 = vshll.u32 %v2765_v16, 16 }
  0xf8   : > { %v1998_v49 = vrot.slane %v1996_v14, 4  ;;  %v1997_v4 = vsel %vm15605_vm13, %v11855_v12, %v1996_v14  ;;  %v3634_v24 = vrot.slane %v15892_v37, 5  ;;  %v2827_v47 = vshrl.u32 %v15890_v36, 16  ;;  %v15909_v56 = vld [vmem:[#allocation2 + $0x14] sm:$0x1] }
  0xf9   : > { %v2004_v53 = vsel %vm15605_vm13, %v11856_v62, %v2003_v59  ;;  %v14519_v62 = vld [vmem:[#allocation2 + $0x6c] sm:$0xff]  }
  0xfa   : > { %v3636_v12 = vrot.slane %v3634_v24, 4 }
  0xfc   : > { %13226 = vmatmul.mubr.bf16.vlgmr.msra.gmra.mrb[0].mxu0 %v11881_v10  ;;  %v14503_v10 = vld [vmem:[%s19368_s1 + $0xe0] sm:$0xff]  }
  0xfd   : > { %13258 = vmatpush3.bf16.msra.mxu0 %v15732_v2  ;;  %13229 = vmatprep.mubr.bf16.mxu0 %v11882_v33  ;;  %v14501_v2 = vld [vmem:[%s19368_s1 + $0xd0] sm:$0xff]   ;;  %v11885_v33 = vcombine.low %v1983_v48, %v1986_v51  ;;  %v2814_v48 = vshrl.u32 %v2765_v16, 16  ;;  %v3526_v51 = vld [vmem:[#allocation2 + $0x60] sm:$0xe] }
  0xfe   : > { %13259 = vmatprep.subr.bf16.mxu0 %v14500_v9  ;;  %v11991_v59 = vrot.slane %v3526_v51, 9 }
  0xff   : > { %v2816_v42 = vrot.slane %v2814_v48, 4 }
 0x101   : > { %13260 = vmatpush3.bf16.msra.mxu0 %v14500_v9  ;;  %v14944_v9 = vld [vmem:[#allocation2 + $0x5c] sm:$0x1] }
 0x102   : > { %13261 = vmatprep.subr.bf16.mxu0 %v14501_v2  ;;  %v1999_v35 = vrot.slane %v14944_v9, 5  ;;  %v2841_v9 = vshll.u32 %v2768_v13, 16 }
 0x104   : > { %13230 = vmatmul.mubr.bf16.gmra.mrb[4].mxu0 %v11883_v17  ;;  %v2000_v45 = vsel %vm15605_vm13, %v1998_v49, %v1999_v35  ;;  %v680_v17 = vrot.slane %v15750_v39, 4  ;;  %v14517_v49 = vld [vmem:[#allocation2 + $0x60] sm:$0xff]   ;;  %v15907_v35 = vsel %vm15605_vm13, %v11991_v59, %v3634_v24 }
 0x105   : > { %13233 = vmatprep.mubr.bf16.mxu0 %v11884_v28  ;;  %13262 = vmatpush3.bf16.msra.mxu0 %v14501_v2  ;;  %v11887_v38 = vcombine.low %v1997_v4, %v2000_v45  ;;  %v11888_v2 = vcombine.low %v2004_v53, %v2007_v63  ;;  %v844_v28 = vld [vmem:[#allocation2 + $0xc8] sm:$0x1]  ;;  %19509 = vst [vmem:[#allocation10_spill] sm:$0xff] %v15907_v35  ;;  %v2819_v4 = vrot.slane %v2817_v57, 5  ;;  %v2771_v63 = vld [vmem:[#allocation2 + $0x24] sm:$0xf] }
 0x106   : > { %13263 = vmatprep.subr.bf16.mxu0 %v14502_v1  ;;  %v845_v22 = vsel %vm15204_vm8, %v680_v17, %v844_v28  ;;  %v2833_v17 = vshll.u32 %v15909_v56, 16  ;;  %v2843_v28 = vrot.slane %v2841_v9, 5  ;;  %v15970_v9 = vld [vmem:[#allocation2 + $0x94] sm:$0xf]  ;;  %v14529_v35 = vld [vmem:[#allocation2 + $0xc0] sm:$0xff]  }
 0x107   : > { %846 = vst [vmem:[#allocation2 + $0xc8] sm:$0x1] %v845_v22  ;;  %v15929_v22 = vld [vmem:[#allocation2 + $0x80] sm:$0x1] }
 0x109   : > { %13264 = vmatpush3.bf16.msra.mxu0 %v14502_v1  ;;  %v15894_v1 = vld [vmem:[#allocation2 + $0x68] sm:$0x1] }
 0x10a   : > { %13265 = vmatprep.subr.bf16.mxu0 %v14503_v10  ;;  %v3637_v14 = vrot.slane %v15894_v1, 5 }
 0x10c   : > { %13234 = vmatmul.mubr.bf16.gmra.mrb[8].mxu0 %v11885_v33  ;;  %v15903_v33 = vld [vmem:[#allocation2 + $0x1c] sm:$0xf]  ;;  %v15913_v25 = vsel %vm15605_vm13, %v3636_v12, %v3637_v14 }
 0x10d   : > { %13237 = vmatprep.mubr.bf16.mxu0 %v11886_v6  ;;  %13266 = vmatpush3.bf16.msra.mxu0 %v14503_v10  ;;  %v2823_v10 = vshll.u32 %v15890_v36, 16  ;;  %v2838_v6 = vshrl.u32 %v2768_v13, 16  ;;  %19510 = vst [vmem:[#allocation11_spill] sm:$0xff] %v15913_v25  ;;  %v2847_v45 = vshll.u32 %v15903_v33, 16  ;;  %v2851_v53 = vshrl.u32 %v15903_v33, 16 }
 0x10e   : > { %13267 = vmatprep.subr.bf16.mxu0 %v14504_v7  ;;  %v2780_v25 = vld [vmem:[#allocation2 + $0x48] sm:$0xf] }
 0x111   : > { %13268 = vmatpush3.bf16.msra.mxu0 %v14504_v7  ;;  %v14530_v7 = vld [vmem:[%s19368_s1 + $0x138] sm:$0xff]  }
 0x112   : > { %13269 = vmatprep.subr.bf16.mxu0 %v14505_v46 }
 0x114   : > { %13238 = vmatmul.mubr.bf16.gmra.mrb[12].mxu0 %v11887_v38  ;;  %v15922_v38 = vrot.slane %v2823_v10, 5  ;;  %v15962_v10 = vld [vmem:[#allocation2 + $0x2c] sm:$0x1] }
 0x115   : > { %13241 = vmatprep.mubr.bf16.mxu0 %v11888_v2  ;;  %13270 = vmatpush3.bf16.msra.mxu0 %v14505_v46  ;;  %v2829_v2 = vrot.slane %v2827_v47, 4 }
 0x116   : > { %13271 = vmatprep.subr.bf16.mxu0 %v14506_v55 }
 0x119   : > { %13272 = vmatpush3.bf16.msra.mxu0 %v14506_v55  ;;  %v15924_v55 = vld [vmem:[#allocation2 + $0x20] sm:$0x1] }
 0x11a   : > { %13305 = vmatprep.subr.bf16.mxu0 %v14509_v31 }
 0x11c   : > { %13242 = vmatmul.mubr.bf16.gmra.mrb[16].mxu0 %v11889_v5  ;;  %v19506_v5 = vcombine.low %v15700_v11, %v15713_v27  ;;  %v3622_v11 = vrot.slane %v3620_v44, 4  ;;  %v14514_v27 = vld [vmem:[#allocation2 + $0x48] sm:$0xff]  }
 0x11d   : > { %13245 = vmatprep.mubr.bf16.mxu0 %v11890_v60  ;;  %v14510_v60 = vld [vmem:[#allocation2 + $0x24] sm:$0xff]  }
 0x11e   : > { %v15883_v3 = vsel %vm15605_vm13, %v3622_v11, %v3623_v18  ;;  %v15942_v11 = vld [vmem:[#allocation2 + $0x28] sm:$0xf] }
 0x11f   : > { %19508 = vst [vmem:[#allocation9_spill] sm:$0xff] %v15883_v3  ;;  %v2871_v47 = vshll.u32 %v15942_v11, 16  ;;  %v2943_v3 = vshll.u32 %v15868_v23, 16 }
 0x124   : > { %13246 = vmatmul.mubr.bf16.gmra.mrb[20].mxu0 %v11891_v61  ;;  %v14518_v61 = vld [vmem:[%s19368_s1 + $0x118] sm:$0xff]  }
 0x125   : > { %13249 = vmatprep.mubr.bf16.mxu0 %v11892_v52  ;;  %v3524_v52 = vld [vmem:[#allocation2 + $0x48] sm:$0xe] }
 0x126   : > { %v11989_v40 = vrot.slane %v3524_v52, 9 }
 0x128   : > { %v15879_v39 = vsel %vm15605_vm13, %v11989_v40, %v3620_v44  ;;  %v2830_v44 = vor.u32 %v2829_v2, %v15922_v38  ;;  %v2857_v40 = vshll.u32 %v15924_v55, 16 }
 0x129   : > { %19507 = vst [vmem:[#allocation8_spill] sm:$0xff] %v15879_v39 }
 0x12a   : > { %v15960_v59 = vrot.slane %v2830_v44, 4  ;;  %v15967_v12 = vrot.slane %v2857_v40, 5  ;;  %v14525_v44 = vld [vmem:[#allocation2 + $0x9c] sm:$0xff]  }
 0x12c   : > { %13250 = vmatmul.mubr.bf16.gmra.mrb[24].mxu0 %v11893_v30  ;;  %v14521_v30 = vld [vmem:[%s19368_s1 + $0x120] sm:$0xff]  }
 0x12d   : > { %13253 = vmatprep.mubr.bf16.mxu0 %v19505_v29  ;;  %v15927_v29 = vld [vmem:[#allocation2 + $0x7c] sm:$0xf] }
 0x134   : > { %13254 = vmatmul.mubr.bf16.gmra.mrb[28].mxu0 %v19506_v5  ;;  %v2865_v5 = vshll.u32 %v2771_v63, 16 }
 0x135   : > { %13273 = vmatprep.mubr.bf16.mxu0 %v14507_v54  ;;  %v2862_v54 = vshrl.u32 %v2771_v63, 16 }
 0x136   : > { %v2867_v13 = vrot.slane %v2865_v5, 5  ;;  %v2777_v5 = vld [vmem:[#allocation2 + $0x3c] sm:$0xf] }
 0x137   : > { %v2864_v16 = vrot.slane %v2862_v54, 4  ;;  %v15983_v54 = vld [vmem:[#allocation2 + $0x38] sm:$0x1] }
 0x13c   : > { %13274 = vmatmul.mubr.bf16.vlgmr.msra.gmra.mrb[0].mxu0 %v14508_v21  ;;  %v3528_v21 = vld [vmem:[#allocation2 + $0x78] sm:$0xe] }
 0x13d   : > { %13306 = vmatpush3.bf16.msra.mxu0 %v14509_v31  ;;  %13277 = vmatprep.mubr.bf16.mxu0 %v14510_v60  ;;  %v2840_v31 = vrot.slane %v2838_v6, 4  ;;  %v3648_v60 = vrot.slane %v15927_v29, 5  ;;  %v11993_v52 = vrot.slane %v3528_v21, 9  ;;  %v15965_v6 = vld [vmem:[#allocation2 + $0x34] sm:$0xf] }
 0x13e   : > { %13307 = vmatprep.subr.bf16.mxu0 %v14512_v8  ;;  %v2899_v40 = vshrl.u32 %v15965_v6, 16 }
 0x13f   : > { %v3650_v18 = vrot.slane %v3648_v60, 4  ;;  %v2844_v24 = vor.u32 %v2843_v28, %v2840_v31  ;;  %v2881_v31 = vshll.u32 %v15962_v10, 16  ;;  %v15981_v28 = vrot.slane %v2871_v47, 5 }
 0x141   : > { %13308 = vmatpush3.bf16.msra.mxu0 %v14512_v8  ;;  %v3651_v8 = vrot.slane %v15929_v22, 5  ;;  %v15976_v63 = vrot.slane %v2844_v24, 4  ;;  %v16002_v24 = vld [vmem:[#allocation2 + $0x40] sm:$0xf] }
 0x142   : > { %13309 = vmatprep.subr.bf16.mxu0 %v14515_v32  ;;  %v2919_v46 = vshll.u32 %v16002_v24, 16 }
 0x143   : > { %v15952_v48 = vsel %vm15605_vm13, %v3650_v18, %v3651_v8 }
 0x144   : > { %13278 = vmatmul.mubr.bf16.gmra.mrb[4].mxu0 %v14511_v19  ;;  %v15933_v19 = vrot.slane %v2847_v45, 5  ;;  %19512 = vst [vmem:[#allocation13_spill] sm:$0xff] %v15952_v48  ;;  %v3662_v45 = vrot.slane %v15970_v9, 5 }
 0x145   : > { %13281 = vmatprep.mubr.bf16.mxu0 %v14513_v41  ;;  %13310 = vmatpush3.bf16.msra.mxu0 %v14515_v32  ;;  %v2820_v32 = vor.u32 %v2819_v4, %v2816_v42  ;;  %v2853_v41 = vrot.slane %v2851_v53, 4  ;;  %v2868_v42 = vor.u32 %v2867_v13, %v2864_v16  ;;  %v3530_v4 = vld [vmem:[#allocation2 + $0x90] sm:$0xe]  ;;  %v15999_v16 = vrot.slane %v2881_v31, 5  ;;  %v3531_v31 = vld [vmem:[#allocation2 + $0x9c] sm:$0xe] }
 0x146   : > { %13311 = vmatprep.subr.bf16.mxu0 %v14518_v61  ;;  %v3664_v21 = vrot.slane %v3662_v45, 4  ;;  %v2905_v13 = vshll.u32 %v15983_v54, 16 }
 0x147   : > { %v15954_v51 = vrot.slane %v2820_v32, 4  ;;  %v2854_v14 = vor.u32 %v2853_v41, %v15933_v19  ;;  %v2895_v41 = vshll.u32 %v15965_v6, 16  ;;  %v15990_v18 = vrot.slane %v2868_v42, 4  ;;  %v16012_v42 = vld [vmem:[#allocation2 + $0xa4] sm:$0x1] }
 0x149   : > { %13312 = vmatpush3.bf16.msra.mxu0 %v14518_v61  ;;  %v15938_v61 = vld [vmem:[%s19368_s1 + $0x140] sm:$0xff]   ;;  %v15978_v2 = vrot.slane %v2854_v14, 4  ;;  %v2910_v14 = vshrl.u32 %v2777_v5, 16  ;;  %v2826_v47 = vsel %vm15198_vm6, %v15954_v51, %v15922_v38  ;;  %v3672_v38 = vrot.slane %v16012_v42, 5 }
 0x14a   : > { %13313 = vmatprep.subr.bf16.mxu0 %v14521_v30  ;;  %v2913_v51 = vshll.u32 %v2777_v5, 16  ;;  %v16029_v43 = vrot.slane %v2895_v41, 5  ;;  %v16045_v41 = vrot.slane %v2905_v13, 5 }
 0x14c   : > { %13282 = vmatmul.mubr.bf16.gmra.mrb[8].mxu0 %v14514_v27  ;;  %v15946_v27 = vsel %vm15605_vm13, %v11993_v52, %v3648_v60  ;;  %v14523_v60 = vld [vmem:[#allocation2 + $0x90] sm:$0xff]  }
 0x14d   : > { %13285 = vmatprep.mubr.bf16.mxu0 %v14516_v58  ;;  %13314 = vmatpush3.bf16.msra.mxu0 %v14521_v30  ;;  %v14520_v30 = vld [vmem:[#allocation2 + $0x78] sm:$0xff]   ;;  %19511 = vst [vmem:[#allocation12_spill] sm:$0xff] %v15946_v27  ;;  %v14522_v58 = vld [vmem:[#allocation2 + $0x84] sm:$0xff]  }
 0x14e   : > { %13315 = vmatprep.subr.bf16.mxu0 %v14524_v0 }
 0x151   : > { %13316 = vmatpush3.bf16.msra.mxu0 %v14524_v0  ;;  %v15948_v0 = vrot.slane %v2833_v17, 5  ;;  %v11995_v17 = vrot.slane %v3530_v4, 9 }
 0x152   : > { %13317 = vmatprep.subr.bf16.mxu0 %v14527_v34 }
 0x153   : > { %v15988_v52 = vsel %vm15605_vm13, %v11995_v17, %v3662_v45  ;;  %v2836_v4 = vsel %vm15198_vm6, %v15960_v59, %v15948_v0  ;;  %v2923_v0 = vshrl.u32 %v16002_v24, 16 }
 0x154   : > { %13286 = vmatmul.mubr.bf16.gmra.mrb[12].mxu0 %v14517_v49  ;;  %v2875_v49 = vshrl.u32 %v15942_v11, 16  ;;  %19513 = vst [vmem:[#allocation14_spill] sm:$0xff] %v15988_v52  ;;  %v2901_v52 = vrot.slane %v2899_v40, 4  ;;  %v16053_v40 = vld [vmem:[#allocation2 + $0x44] sm:$0x1]  ;;  %v11960_v13 = vcombine.low %v2826_v47, %v2836_v4 }
 0x155   : > { %13289 = vmatprep.mubr.bf16.mxu0 %v14519_v62  ;;  %13318 = vmatpush3.bf16.msra.mxu0 %v14527_v34  ;;  %v2774_v34 = vld [vmem:[#allocation2 + $0x30] sm:$0xf]  ;;  %v15972_v62 = vld [vmem:[#allocation2 + $0x98] sm:$0x1]  ;;  %19519 = vst [vmem:[#allocation20_spill] sm:$0xff] %v16053_v40 }
 0x156   : > { %13319 = vmatprep.subr.bf16.mxu0 %v14530_v7  ;;  %v3665_v53 = vrot.slane %v15972_v62, 5  ;;  %v2877_v8 = vrot.slane %v2875_v49, 4  ;;  %v2889_v32 = vshll.u32 %v2774_v34, 16  ;;  %v16010_v49 = vld [vmem:[#allocation2 + $0xa0] sm:$0xf] }
 0x157   : > { %v3669_v17 = vrot.slane %v16010_v49, 5  ;;  %v16075_v47 = vld [vmem:[#allocation2 + $0xc4] sm:$0xf] }
 0x158   : > { %v2878_v45 = vor.u32 %v2877_v8, %v15981_v28  ;;  %v2891_v20 = vrot.slane %v2889_v32, 5  ;;  %v14528_v32 = vld [vmem:[#allocation2 + $0xb4] sm:$0xff]  }
 0x159   : > { %13320 = vmatpush3.bf16.msra.mxu0 %v14530_v7  ;;  %v2886_v7 = vshrl.u32 %v2774_v34, 16  ;;  %v3532_v34 = vld [vmem:[#allocation2 + $0xa8] sm:$0xe]  ;;  %v3671_v59 = vrot.slane %v3669_v17, 4 }
 0x15a   : > { %13353 = vmatprep.subr.bf16.mxu0 %v15938_v61  ;;  %v11997_v8 = vrot.slane %v3532_v34, 9  ;;  %v2912_v34 = vrot.slane %v2910_v14, 4  ;;  %v2850_v14 = vsel %vm15198_vm6, %v15976_v63, %v15933_v19  ;;  %v2902_v19 = vor.u32 %v2901_v52, %v16029_v43  ;;  %v16079_v63 = vld [vmem:[#allocation2 + $0xc8] sm:$0x1] }
 0x15b   : > { %v16039_v48 = vsel %vm15605_vm13, %v3671_v59, %v3672_v38  ;;  %v2915_v38 = vrot.slane %v2913_v51, 5  ;;  %v2925_v59 = vrot.slane %v2923_v0, 4  ;;  %v16071_v51 = vld [vmem:[#allocation2 + $0xb8] sm:$0xf]  ;;  %v16073_v0 = vld [vmem:[#allocation2 + $0xbc] sm:$0x1] }
 0x15c   : > { %13290 = vmatmul.mubr.bf16.gmra.mrb[16].mxu0 %v14520_v30  ;;  %v15992_v30 = vrot.slane %v2886_v7, 4  ;;  %v16014_v7 = vld [vmem:[#allocation2 + $0xac] sm:$0xf]  ;;  %19516 = vst [vmem:[#allocation17_spill] sm:$0xff] %v16039_v48  ;;  %v2937_v48 = vshll.u32 %v2780_v25, 16 }
 0x15d   : > { %13293 = vmatprep.mubr.bf16.mxu0 %v14522_v58  ;;  %v15997_v58 = vsel %vm15605_vm13, %v3664_v21, %v3665_v53  ;;  %v16021_v53 = vld [vmem:[#allocation2 + $0xb0] sm:$0x1]  ;;  %v11996_v21 = vrot.slane %v3531_v31, 9  ;;  %v16035_v31 = vrot.slane %v2878_v45, 4 }
 0x15e   : > { %19514 = vst [vmem:[#allocation15_spill] sm:$0xff] %v15997_v58  ;;  %v3679_v57 = vrot.slane %v16021_v53, 5  ;;  %v2892_v4 = vor.u32 %v2891_v20, %v15992_v30  ;;  %v2929_v20 = vshll.u32 %v16053_v40, 16  ;;  %v2783_v30 = vld [vmem:[#allocation2 + $0x54] sm:$0xf] }
 0x15f   : > { %v16033_v58 = vsel %vm15605_vm13, %v11996_v21, %v3669_v17  ;;  %v16055_v21 = vrot.slane %v2919_v46, 5  ;;  %v2874_v46 = vsel %vm15198_vm6, %v15990_v18, %v15981_v28  ;;  %v2934_v28 = vshrl.u32 %v2780_v25, 16 }
 0x160   : > { %19515 = vst [vmem:[#allocation16_spill] sm:$0xff] %v16033_v58  ;;  %v3693_v17 = vrot.slane %v16079_v63, 5  ;;  %v16087_v58 = vld [vmem:[#allocation2 + $0x58] sm:$0xf]  ;;  %v2958_v25 = vshrl.u32 %v2783_v30, 16  ;;  %v16109_v39 = vrot.slane %v2892_v4, 4 }
 0x161   : > { %19520 = vst [vmem:[#allocation21_spill] sm:$0xff] %v16087_v58  ;;  %v2931_v4 = vrot.slane %v2929_v20, 5  ;;  %v2995_v20 = vshrl.u32 %v15892_v37, 16 }
 0x164   : > { %13294 = vmatmul.mubr.bf16.gmra.mrb[20].mxu0 %v14523_v60  ;;  %v3676_v60 = vrot.slane %v16014_v7, 5 }
 0x165   : > { %13297 = vmatprep.mubr.bf16.mxu0 %v14525_v44  ;;  %v14526_v44 = vld [vmem:[#allocation2 + $0xa8] sm:$0xff]  }
 0x166   : > { %v3678_v5 = vrot.slane %v3676_v60, 4  ;;  %v16043_v27 = vsel %vm15605_vm13, %v11997_v8, %v3676_v60  ;;  %v3533_v8 = vld [vmem:[#allocation2 + $0xb4] sm:$0xe]  ;;  %v3690_v60 = vrot.slane %v16075_v47, 5 }
 0x167   : > { %19517 = vst [vmem:[#allocation18_spill] sm:$0xff] %v16043_v27  ;;  %v11998_v18 = vrot.slane %v3533_v8, 9  ;;  %v2926_v27 = vor.u32 %v2925_v59, %v16055_v21 }
 0x168   : > { %v16051_v45 = vsel %vm15605_vm13, %v3678_v5, %v3679_v57  ;;  %v2860_v57 = vsel %vm15198_vm6, %v15978_v2, %v15967_v12  ;;  %v3683_v12 = vrot.slane %v16071_v51, 5  ;;  %v3686_v2 = vrot.slane %v16073_v0, 5  ;;  %v3534_v5 = vld [vmem:[#allocation2 + $0xc0] sm:$0xe] }
 0x169   : > { %19518 = vst [vmem:[#allocation19_spill] sm:$0xff] %v16051_v45  ;;  %v11999_v45 = vrot.slane %v3534_v5, 9  ;;  %v3692_v8 = vrot.slane %v3690_v60, 4  ;;  %v2961_v5 = vshll.u32 %v2783_v30, 16  ;;  %v11961_v40 = vcombine.low %v2850_v14, %v2860_v57 }
 0x16a   : > { %v3685_v52 = vrot.slane %v3683_v12, 4 }
 0x16b   : > { %v16101_v59 = vsel %vm15605_vm13, %v11999_v45, %v3690_v60  ;;  %v2884_v45 = vsel %vm15198_vm6, %v16035_v31, %v15999_v16  ;;  %v16119_v60 = vrot.slane %v2902_v19, 4  ;;  %v16126_v31 = vld [vmem:[#allocation2 + $0x5c] sm:$0x1] }
 0x16c   : > { %13298 = vmatmul.mubr.bf16.gmra.mrb[24].mxu0 %v14526_v44  ;;  %v2916_v44 = vor.u32 %v2915_v38, %v2912_v34  ;;  %v2947_v34 = vshrl.u32 %v15868_v23, 16  ;;  %v16097_v38 = vsel %vm15605_vm13, %v3685_v52, %v3686_v2  ;;  %19523 = vst [vmem:[#allocation24_spill] sm:$0xff] %v16101_v59  ;;  %v2967_v23 = vshll.u32 %v16087_v58, 16 }
 0x16d   : > { %13301 = vmatprep.mubr.bf16.mxu0 %v14528_v32  ;;  %v16091_v32 = vsel %vm15605_vm13, %v11998_v18, %v3683_v12  ;;  %19522 = vst [vmem:[#allocation23_spill] sm:$0xff] %v16097_v38  ;;  %v16107_v18 = vsel %vm15605_vm13, %v3692_v8, %v3693_v17  ;;  %v2971_v2 = vshrl.u32 %v16087_v58, 16  ;;  %v2936_v17 = vrot.slane %v2934_v28, 4 }
 0x16e   : > { %19521 = vst [vmem:[#allocation22_spill] sm:$0xff] %v16091_v32  ;;  %19524 = vst [vmem:[#allocation25_spill] sm:$0xff] %v16107_v18  ;;  %v16121_v30 = vrot.slane %v2916_v44, 4  ;;  %v2939_v8 = vrot.slane %v2937_v48, 5  ;;  %v16123_v12 = vrot.slane %v2943_v3, 5  ;;  %v2949_v38 = vrot.slane %v2947_v34, 4 }
 0x16f   : > { %v2786_v32 = vld [vmem:[#allocation2 + $0x60] sm:$0xf]  ;;  %v2927_v58 = vrot.slane %v2926_v27, 4  ;;  %v2953_v52 = vshll.u32 %v15870_v50, 16  ;;  %v2960_v18 = vrot.slane %v2958_v25, 4  ;;  %v2963_v59 = vrot.slane %v2961_v5, 5 }
 0x170   : > { %v11962_v16 = vcombine.low %v2874_v46, %v2884_v45  ;;  %v16128_v19 = vrot.slane %v2967_v23, 5  ;;  %v2973_v28 = vrot.slane %v2971_v2, 4  ;;  %v2982_v44 = vshrl.u32 %v2786_v32, 16  ;;  %v14532_v25 = vld [vmem:[%s19368_s1 + $0x148] sm:$0xff]   ;;  %v2792_v2 = vld [vmem:[#allocation2 + $0x78] sm:$0xf] }
 0x171   : > { %v2985_v48 = vshll.u32 %v2786_v32, 16  ;;  %v2991_v3 = vshll.u32 %v15892_v37, 16  ;;  %v2898_v50 = vsel %vm15198_vm6, %v16109_v39, %v16029_v43  ;;  %v2908_v27 = vsel %vm15198_vm6, %v16119_v60, %v16045_v41  ;;  %v16142_v32 = vld [vmem:[#allocation2 + $0x70] sm:$0xf] }
 0x172   : > { %v2950_v14 = vor.u32 %v2949_v38, %v16123_v12  ;;  %v2964_v57 = vor.u32 %v2963_v59, %v2960_v18  ;;  %v2977_v46 = vshll.u32 %v16126_v31, 16  ;;  %v2922_v43 = vsel %vm15198_vm6, %v16121_v30, %v16055_v21 }
 0x173   : > { %v2932_v39 = vsel %vm15198_vm6, %v2927_v58, %v2931_v4  ;;  %v16153_v41 = vrot.slane %v2953_v52, 5  ;;  %v2974_v38 = vor.u32 %v2973_v28, %v16128_v19  ;;  %v2984_v59 = vrot.slane %v2982_v44, 4 }
 0x174   : > { %13302 = vmatmul.mubr.bf16.gmra.mrb[28].mxu0 %v14529_v35  ;;  %v2789_v35 = vld [vmem:[#allocation2 + $0x6c] sm:$0xf]  ;;  %v2987_v5 = vrot.slane %v2985_v48, 5  ;;  %v16156_v18 = vrot.slane %v2991_v3, 5  ;;  %v2997_v23 = vrot.slane %v2995_v20, 4  ;;  %v2951_v60 = vrot.slane %v2950_v14, 4 }
 0x175   : > { %13321 = vmatprep.mubr.bf16.mxu0 %v11960_v13  ;;  %v2940_v13 = vor.u32 %v2939_v8, %v2936_v17  ;;  %v3006_v34 = vshrl.u32 %v2789_v35, 16  ;;  %v3009_v37 = vshll.u32 %v2789_v35, 16  ;;  %v3015_v17 = vshll.u32 %v16142_v32, 16  ;;  %v14533_v8 = vld [vmem:[%s19368_s1 + $0x150] sm:$0xff]  }
 0x176   : > { %v3019_v21 = vshrl.u32 %v16142_v32, 16  ;;  %v2965_v58 = vrot.slane %v2964_v57, 4  ;;  %v2979_v52 = vrot.slane %v2977_v46, 5  ;;  %v3030_v28 = vshrl.u32 %v2792_v2, 16 }
 0x177   : > { %v2941_v45 = vrot.slane %v2940_v13, 4  ;;  %v3008_v30 = vrot.slane %v3006_v34, 4  ;;  %v3011_v4 = vrot.slane %v3009_v37, 5  ;;  %v3039_v35 = vshll.u32 %v15927_v29, 16  ;;  %v2795_v37 = vld [vmem:[#allocation2 + $0x84] sm:$0xf] }
 0x178   : > { %v3043_v44 = vshrl.u32 %v15927_v29, 16  ;;  %v2975_v48 = vrot.slane %v2974_v38, 4  ;;  %v2988_v3 = vor.u32 %v2987_v5, %v2984_v59  ;;  %v11963_v20 = vcombine.low %v2898_v50, %v2908_v27  ;;  %v16182_v50 = vld [vmem:[#allocation2 + $0x74] sm:$0x1]  ;;  %v16186_v38 = vld [vmem:[#allocation2 + $0x88] sm:$0xf] }
 0x179   : > { %v11964_v13 = vcombine.low %v2922_v43, %v2932_v39  ;;  %v16168_v14 = vrot.slane %v3015_v17, 5  ;;  %v3021_v57 = vrot.slane %v3019_v21, 4  ;;  %v2946_v46 = vsel %vm15198_vm6, %v2941_v45, %v16123_v12 }
 0x17a   : > { %v2956_v29 = vsel %vm15198_vm6, %v2951_v60, %v16153_v41  ;;  %v2970_v34 = vsel %vm15198_vm6, %v2965_v58, %v16128_v19  ;;  %v3012_v27 = vor.u32 %v3011_v4, %v3008_v30  ;;  %v16184_v12 = vrot.slane %v3039_v35, 5 }
 0x17b   : > { %v3045_v39 = vrot.slane %v3043_v44, 4  ;;  %v2980_v41 = vsel %vm15198_vm6, %v2975_v48, %v2979_v52  ;;  %v2989_v19 = vrot.slane %v2988_v3, 4  ;;  %v3054_v45 = vshrl.u32 %v2795_v37, 16 }
 0x17c   : > { %13322 = vmatmul.mubr.bf16.vlgmr.msra.gmra.mrb[0].mxu0 %v11961_v40  ;;  %v3033_v40 = vshll.u32 %v2792_v2, 16  ;;  %v3025_v2 = vshll.u32 %v16182_v50, 16  ;;  %v3057_v60 = vshll.u32 %v2795_v37, 16  ;;  %v3063_v17 = vshll.u32 %v16186_v38, 16 }
 0x17d   : > { %13354 = vmatpush3.bf16.msra.mxu0 %v15938_v61  ;;  %13325 = vmatprep.mubr.bf16.mxu0 %v11962_v16  ;;  %v2998_v61 = vor.u32 %v2997_v23, %v16156_v18  ;;  %v3001_v16 = vshll.u32 %v15894_v1, 16  ;;  %v14534_v1 = vld [vmem:[%s19368_s1 + $0x158] sm:$0xff]   ;;  %v3022_v23 = vor.u32 %v3021_v57, %v16168_v14  ;;  %v3067_v21 = vshrl.u32 %v16186_v38, 16 }
 0x17e   : > { %13355 = vmatprep.subr.bf16.mxu0 %v14532_v25  ;;  %v3035_v43 = vrot.slane %v3033_v40, 5  ;;  %v3013_v58 = vrot.slane %v3012_v27, 4  ;;  %v3046_v52 = vor.u32 %v3045_v39, %v16184_v12  ;;  %v3049_v4 = vshll.u32 %v15929_v22, 16  ;;  %v2798_v40 = vld [vmem:[#allocation2 + $0x90] sm:$0xf] }
 0x17f   : > { %v2999_v59 = vrot.slane %v2998_v61, 4  ;;  %v3003_v5 = vrot.slane %v3001_v16, 5  ;;  %v11965_v35 = vcombine.low %v2946_v46, %v2956_v29  ;;  %v11966_v44 = vcombine.low %v2970_v34, %v2980_v41  ;;  %v16204_v22 = vld [vmem:[#allocation2 + $0x8c] sm:$0x1] }
 0x180   : > { %v3023_v3 = vrot.slane %v3022_v23, 4  ;;  %v3027_v61 = vrot.slane %v3025_v2, 5  ;;  %v3056_v16 = vrot.slane %v3054_v45, 4  ;;  %v16206_v57 = vrot.slane %v3063_v17, 5 }
 0x181   : > { %13356 = vmatpush3.bf16.msra.mxu0 %v14532_v25  ;;  %v3032_v25 = vrot.slane %v3030_v28, 4  ;;  %v14535_v28 = vld [vmem:[%s19368_s1 + $0x160] sm:$0xff]   ;;  %v3004_v48 = vsel %vm15198_vm6, %v2999_v59, %v3003_v5  ;;  %v3069_v27 = vrot.slane %v3067_v21, 4  ;;  %v3078_v46 = vshrl.u32 %v2798_v40, 16 }
 0x182   : > { %13357 = vmatprep.subr.bf16.mxu0 %v14533_v8  ;;  %v3081_v29 = vshll.u32 %v2798_v40, 16  ;;  %v3047_v37 = vrot.slane %v3046_v52, 4  ;;  %v3091_v39 = vshrl.u32 %v15970_v9, 16  ;;  %v3028_v59 = vsel %vm15198_vm6, %v3023_v3, %v3027_v61 }
 0x183   : > { %v3036_v30 = vor.u32 %v3035_v43, %v3032_v25  ;;  %v3051_v25 = vrot.slane %v3049_v4, 5  ;;  %v14536_v43 = vld [vmem:[%s19368_s1 + $0x168] sm:$0xff]   ;;  %v3111_v5 = vshll.u32 %v16010_v49, 16  ;;  %v3115_v23 = vshrl.u32 %v16010_v49, 16  ;;  %v14537_v49 = vld [vmem:[%s19368_s1 + $0x170] sm:$0xff]  }
 0x184   : > { %13326 = vmatmul.mubr.bf16.gmra.mrb[4].mxu0 %v11963_v20  ;;  %v3059_v20 = vrot.slane %v3057_v60, 5  ;;  %v3070_v45 = vor.u32 %v3069_v27, %v16206_v57  ;;  %v3080_v60 = vrot.slane %v3078_v46, 4  ;;  %v3083_v17 = vrot.slane %v3081_v29, 5 }
 0x185   : > { %13329 = vmatprep.mubr.bf16.mxu0 %v11964_v13  ;;  %13358 = vmatpush3.bf16.msra.mxu0 %v14533_v8  ;;  %v2994_v8 = vsel %vm15198_vm6, %v2989_v19, %v16156_v18  ;;  %v2801_v13 = vld [vmem:[#allocation2 + $0x9c] sm:$0xf]  ;;  %v3018_v18 = vsel %vm15198_vm6, %v3013_v58, %v16168_v14  ;;  %v3037_v34 = vrot.slane %v3036_v30, 4  ;;  %v3073_v14 = vshll.u32 %v16204_v22, 16 }
 0x186   : > { %13359 = vmatprep.subr.bf16.mxu0 %v14534_v1  ;;  %v3102_v41 = vshrl.u32 %v2801_v13, 16  ;;  %v3105_v19 = vshll.u32 %v2801_v13, 16  ;;  %v3060_v2 = vor.u32 %v3059_v20, %v3056_v16  ;;  %v3052_v58 = vsel %vm15198_vm6, %v3047_v37, %v3051_v25  ;;  %v14538_v13 = vld [vmem:[%s19368_s1 + $0x178] sm:$0xff]  }
 0x187   : > { %v3042_v21 = vsel %vm15198_vm6, %v3037_v34, %v16184_v12  ;;  %v3093_v52 = vrot.slane %v3091_v39, 4  ;;  %v11968_v40 = vcombine.low %v3018_v18, %v3028_v59  ;;  %v3071_v3 = vrot.slane %v3070_v45, 4  ;;  %v2807_v34 = vld [vmem:[#allocation2 + $0xb4] sm:$0xf] }
 0x188   : > { %v3104_v4 = vrot.slane %v3102_v41, 4  ;;  %v3061_v12 = vrot.slane %v3060_v2, 4  ;;  %v3084_v61 = vor.u32 %v3083_v17, %v3080_v60  ;;  %v3097_v16 = vshll.u32 %v15972_v62, 16 }
 0x189   : > { %13360 = vmatpush3.bf16.msra.mxu0 %v14534_v1  ;;  %v3087_v1 = vshll.u32 %v15970_v9, 16  ;;  %v11967_v9 = vcombine.low %v2994_v8, %v3004_v48  ;;  %v3117_v8 = vrot.slane %v3115_v23, 4  ;;  %v2804_v48 = vld [vmem:[#allocation2 + $0xa8] sm:$0xf]  ;;  %v11969_v20 = vcombine.low %v3042_v21, %v3052_v58 }
 0x18a   : > { %13361 = vmatprep.subr.bf16.mxu0 %v14535_v28  ;;  %v3121_v29 = vshll.u32 %v16012_v42, 16  ;;  %v3126_v18 = vshrl.u32 %v2804_v48, 16  ;;  %v3129_v25 = vshll.u32 %v2804_v48, 16  ;;  %v3135_v62 = vshll.u32 %v16014_v7, 16 }
 0x18b   : > { %v16230_v30 = vrot.slane %v3087_v1, 5  ;;  %v3066_v1 = vsel %vm15198_vm6, %v3061_v12, %v16206_v57  ;;  %v3085_v41 = vrot.slane %v3084_v61, 4  ;;  %v3099_v42 = vrot.slane %v3097_v16, 5 }
 0x18c   : > { %13330 = vmatmul.mubr.bf16.gmra.mrb[8].mxu0 %v11965_v35  ;;  %v3075_v35 = vrot.slane %v3073_v14, 5  ;;  %v3153_v59 = vshll.u32 %v2807_v34, 16  ;;  %v3159_v14 = vshll.u32 %v16071_v51, 16  ;;  %v3123_v2 = vrot.slane %v3121_v29, 5 }
 0x18d   : > { %13333 = vmatprep.mubr.bf16.mxu0 %v11966_v44  ;;  %13362 = vmatpush3.bf16.msra.mxu0 %v14535_v28  ;;  %v3107_v28 = vrot.slane %v3105_v19, 5  ;;  %v16232_v44 = vrot.slane %v3111_v5, 5  ;;  %v3094_v27 = vor.u32 %v3093_v52, %v16230_v30  ;;  %v3150_v19 = vshrl.u32 %v2807_v34, 16 }
 0x18e   : > { %13363 = vmatprep.subr.bf16.mxu0 %v14536_v43  ;;  %v3076_v39 = vsel %vm15198_vm6, %v3071_v3, %v3075_v35  ;;  %v3163_v5 = vshrl.u32 %v16071_v51, 16  ;;  %v3128_v45 = vrot.slane %v3126_v18, 4  ;;  %v3131_v17 = vrot.slane %v3129_v25, 5 }
 0x18f   : > { %v3108_v46 = vor.u32 %v3107_v28, %v3104_v4  ;;  %v3118_v37 = vor.u32 %v3117_v8, %v16232_v44  ;;  %v3095_v23 = vrot.slane %v3094_v27, 4  ;;  %v11970_v58 = vcombine.low %v3066_v1, %v3076_v39  ;;  %v2810_v28 = vld [vmem:[#allocation2 + $0xc0] sm:$0xf] }
 0x190   : > { %v3155_v52 = vrot.slane %v3153_v59, 5  ;;  %v3161_v4 = vrot.slane %v3159_v14, 5  ;;  %v3165_v51 = vrot.slane %v3163_v5, 4  ;;  %v3145_v8 = vshll.u32 %v16021_v53, 16 }
 0x191   : > { %13364 = vmatpush3.bf16.msra.mxu0 %v14536_v43  ;;  %v3139_v43 = vshrl.u32 %v16014_v7, 16  ;;  %v16253_v7 = vld [vmem:[%s19368_s1 + $0x180] sm:$0xff]   ;;  %v3109_v57 = vrot.slane %v3108_v46, 4  ;;  %v3119_v60 = vrot.slane %v3118_v37, 4  ;;  %v3100_v35 = vsel %vm15198_vm6, %v3095_v23, %v3099_v42 }
 0x192   : > { %13365 = vmatprep.subr.bf16.mxu0 %v14537_v49  ;;  %v3132_v3 = vor.u32 %v3131_v17, %v3128_v45  ;;  %v3174_v16 = vshrl.u32 %v2810_v28, 16  ;;  %v3187_v27 = vshrl.u32 %v16075_v47, 16  ;;  %v3166_v29 = vor.u32 %v3165_v51, %v3161_v4 }
 0x193   : > { %v3141_v21 = vrot.slane %v3139_v43, 4  ;;  %v3114_v48 = vsel %vm15198_vm6, %v3109_v57, %v16232_v44  ;;  %v3124_v12 = vsel %vm15198_vm6, %v3119_v60, %v3123_v2  ;;  %v3169_v53 = vshll.u32 %v16073_v0, 16  ;;  %v3519_v2 = vld [vmem:[#allocation2 + $0xc] sm:$0xe] }
 0x194   : > { %13334 = vmatmul.mubr.bf16.gmra.mrb[12].mxu0 %v11967_v9  ;;  %v3137_v9 = vrot.slane %v3135_v62, 5  ;;  %v11972_v18 = vcombine.low %v3114_v48, %v3124_v12  ;;  %v3133_v34 = vrot.slane %v3132_v3, 4  ;;  %v3147_v37 = vrot.slane %v3145_v8, 5 }
 0x195   : > { %13337 = vmatprep.mubr.bf16.mxu0 %v11968_v40  ;;  %13366 = vmatpush3.bf16.msra.mxu0 %v14537_v49  ;;  %v3152_v49 = vrot.slane %v3150_v19, 4  ;;  %v3090_v40 = vsel %vm15198_vm6, %v3085_v41, %v16230_v30  ;;  %v3183_v30 = vshll.u32 %v16075_v47, 16  ;;  %v3176_v25 = vrot.slane %v3174_v16, 4 }
 0x196   : > { %13367 = vmatprep.subr.bf16.mxu0 %v14538_v13  ;;  %v3142_v61 = vor.u32 %v3141_v21, %v3137_v9  ;;  %v3189_v1 = vrot.slane %v3187_v27, 4  ;;  %v3167_v41 = vrot.slane %v3166_v29, 4  ;;  %v3171_v42 = vrot.slane %v3169_v53, 5  ;;  %v3522_v29 = vld [vmem:[#allocation2 + $0x30] sm:$0xe] }
 0x197   : > { %v3156_v46 = vor.u32 %v3155_v52, %v3152_v49  ;;  %v3185_v43 = vrot.slane %v3183_v30, 5  ;;  %v3138_v47 = vsel %vm15198_vm6, %v3133_v34, %v3137_v9  ;;  %v3193_v14 = vshll.u32 %v16079_v63, 16 }
 0x198   : > { %v3143_v44 = vrot.slane %v3142_v61, 4  ;;  %v3172_v23 = vsel %vm15198_vm6, %v3167_v41, %v3171_v42  ;;  %v3585_v57 = vrot.slane %v15890_v36, 5  ;;  %v3588_v52 = vrot.slane %v15909_v56, 5  ;;  %v3521_v56 = vld [vmem:[#allocation2 + $0x24] sm:$0xe]  ;;  %v14541_v42 = vld [vmem:[%s19368_s1 + $0x190] sm:$0xff]  }
 0x199   : > { %13368 = vmatpush3.bf16.msra.mxu0 %v14538_v13  ;;  %v3177_v13 = vshll.u32 %v2810_v28, 16  ;;  %v3157_v39 = vrot.slane %v3156_v46, 4  ;;  %v3190_v59 = vor.u32 %v3189_v1, %v3185_v43  ;;  %v3195_v21 = vrot.slane %v3193_v14, 5 }
 0x19a   : > { %13401 = vmatprep.subr.bf16.mxu0 %v16253_v7  ;;  %v3148_v0 = vsel %vm15198_vm6, %v3143_v44, %v3147_v37  ;;  %v3587_v49 = vrot.slane %v3585_v57, 4  ;;  %v3592_v36 = vrot.slane %v15903_v33, 5  ;;  %v3595_v61 = vrot.slane %v15924_v55, 5 }
 0x19b   : > { %v3179_v62 = vrot.slane %v3177_v13, 5  ;;  %v3162_v5 = vsel %vm15198_vm6, %v3157_v39, %v3161_v4  ;;  %v11973_v45 = vcombine.low %v3138_v47, %v3148_v0  ;;  %v3191_v9 = vrot.slane %v3190_v59, 4  ;;  %v19526_v47 = vld [vmem:[#allocation21_spill] sm:$0xff]  ;;  %v3525_v0 = vld [vmem:[#allocation2 + $0x54] sm:$0xe] }
 0x19c   : > { %13338 = vmatmul.mubr.bf16.gmra.mrb[16].mxu0 %v11969_v20  ;;  %v11971_v20 = vcombine.low %v3090_v40, %v3100_v35  ;;  %v11974_v60 = vcombine.low %v3162_v5, %v3172_v23  ;;  %v3589_v28 = vsel %vm15605_vm13, %v3587_v49, %v3588_v52  ;;  %v3520_v40 = vld [vmem:[#allocation2 + $0x18] sm:$0xe]  ;;  %v3599_v35 = vrot.slane %v15942_v11, 5  ;;  %v14544_v52 = vld [vmem:[%s19368_s1 + $0x1a8] sm:$0xff]  }
 0x19d   : > { %13341 = vmatprep.mubr.bf16.mxu0 %v11970_v58  ;;  %v3180_v19 = vor.u32 %v3179_v62, %v3176_v25  ;;  %v11984_v58 = vrot.slane %v3519_v2, 9  ;;  %v3196_v4 = vsel %vm15198_vm6, %v3191_v9, %v3195_v21  ;;  %v11985_v12 = vrot.slane %v3520_v40, 9  ;;  %v3529_v40 = vld [vmem:[#allocation2 + $0x84] sm:$0xe] }
 0x19e   : > { %v3594_v3 = vrot.slane %v3592_v36, 4  ;;  %v11986_v16 = vrot.slane %v3521_v56, 9  ;;  %v3601_v13 = vrot.slane %v3599_v35, 4  ;;  %v3602_v33 = vrot.slane %v15962_v10, 5  ;;  %v3523_v10 = vld [vmem:[#allocation2 + $0x3c] sm:$0xe] }
 0x19f   : > { %v3181_v17 = vrot.slane %v3180_v19, 4  ;;  %v3586_v51 = vsel %vm15605_vm13, %v11984_v58, %v3585_v57  ;;  %v3593_v30 = vsel %vm15605_vm13, %v11985_v12, %v3592_v36  ;;  %v3606_v11 = vrot.slane %v15965_v6, 5  ;;  %v14540_v6 = vld [vmem:[%s19368_s1 + $0x188] sm:$0xff]   ;;  %v14542_v57 = vld [vmem:[%s19368_s1 + $0x198] sm:$0xff]  }
 0x1a0   : > { %v12016_v48 = vcombine.low %v3586_v51, %v3589_v28  ;;  %v3596_v27 = vsel %vm15605_vm13, %v3594_v3, %v3595_v61  ;;  %v3600_v46 = vsel %vm15605_vm13, %v11986_v16, %v3599_v35  ;;  %v3603_v55 = vsel %vm15605_vm13, %v3601_v13, %v3602_v33  ;;  %v14546_v12 = vld [vmem:[%s19368_s1 + $0x1b8] sm:$0xff]   ;;  %v19530_v3 = vld [vmem:[#allocation10_spill] sm:$0xff]  ;;  %v19531_v61 = vld [vmem:[#allocation11_spill] sm:$0xff] }
 0x1a1   : > { %v3186_v63 = vsel %vm15198_vm6, %v3181_v17, %v3185_v43  ;;  %v3613_v53 = vrot.slane %v16002_v24, 5  ;;  %v11987_v34 = vrot.slane %v3522_v29, 9  ;;  %v3608_v44 = vrot.slane %v3606_v11, 4  ;;  %v19525_v43 = vld [vmem:[#allocation20_spill] sm:$0xff]  ;;  %v3527_v17 = vld [vmem:[#allocation2 + $0x6c] sm:$0xe] }
 0x1a2   : > { %v11975_v8 = vcombine.low %v3186_v63, %v3196_v4  ;;  %v3609_v37 = vrot.slane %v15983_v54, 5  ;;  %v11988_v25 = vrot.slane %v3523_v10, 9  ;;  %v3616_v1 = vrot.slane %v19525_v43, 5  ;;  %v19527_v63 = vld [vmem:[#allocation8_spill] sm:$0xff]  ;;  %v19528_v4 = vld [vmem:[#allocation9_spill] sm:$0xff] }
 0x1a3   : > { %v3615_v62 = vrot.slane %v3613_v53, 4  ;;  %v3607_v24 = vsel %vm15605_vm13, %v11987_v34, %v3606_v11  ;;  %v11990_v14 = vrot.slane %v3525_v0, 9  ;;  %v3630_v23 = vrot.slane %v16126_v31, 5  ;;  %v14543_v31 = vld [vmem:[%s19368_s1 + $0x1a0] sm:$0xff]   ;;  %v19543_v34 = vld [vmem:[#allocation19_spill] sm:$0xff]  ;;  %v19548_v43 = vld [vmem:[#allocation24_spill] sm:$0xff] }
 0x1a4   : > { %13342 = vmatmul.mubr.bf16.gmra.mrb[20].mxu0 %v11971_v20  ;;  %v12017_v20 = vcombine.low %v3593_v30, %v3596_v27  ;;  %v3610_v39 = vsel %vm15605_vm13, %v3608_v44, %v3609_v37  ;;  %v3614_v54 = vsel %vm15605_vm13, %v11988_v25, %v3613_v53  ;;  %v11992_v21 = vrot.slane %v3527_v17, 9  ;;  %v19533_v30 = vld [vmem:[#allocation12_spill] sm:$0xff]  ;;  %v19534_v27 = vld [vmem:[#allocation13_spill] sm:$0xff]  ;;  %v19545_v37 = vld [vmem:[#allocation22_spill] sm:$0xff] }
 0x1a5   : > { %13345 = vmatprep.mubr.bf16.mxu0 %v11972_v18  ;;  %v12018_v18 = vcombine.low %v3600_v46, %v3603_v55  ;;  %v3617_v41 = vsel %vm15605_vm13, %v3615_v62, %v3616_v1  ;;  %v12019_v19 = vcombine.low %v3607_v24, %v3610_v39  ;;  %v3644_v49 = vrot.slane %v16182_v50, 5  ;;  %v14545_v50 = vld [vmem:[%s19368_s1 + $0x1b0] sm:$0xff]   ;;  %v19536_v46 = vld [vmem:[#allocation14_spill] sm:$0xff]  ;;  %v19539_v53 = vld [vmem:[#allocation16_spill] sm:$0xff] }
 0x1a6   : > { %v12020_v59 = vcombine.low %v3614_v54, %v3617_v41  ;;  %v19529_v36 = vcombine.low %v19527_v63, %v19528_v4  ;;  %v3655_v28 = vrot.slane %v16186_v38, 5  ;;  %v11994_v56 = vrot.slane %v3529_v40, 9  ;;  %v19537_v55 = vld [vmem:[#allocation15_spill] sm:$0xff]  ;;  %v19540_v10 = vld [vmem:[#allocation17_spill] sm:$0xff]  ;;  %v14547_v62 = vld [vmem:[#allocation2 + $0x18] sm:$0xff]  }
 0x1a7   : > { %v19532_v38 = vcombine.low %v19530_v3, %v19531_v61  ;;  %v19535_v11 = vcombine.low %v19533_v30, %v19534_v27  ;;  %v19538_v29 = vcombine.low %v19536_v46, %v19537_v55  ;;  %v19549_v1 = vld [vmem:[#allocation25_spill] sm:$0xff]  ;;  %v14550_v54 = vld [vmem:[#allocation2 + $0x30] sm:$0xff]   ;;  %v14552_v41 = vld [vmem:[%s19368_s1 + $0x1c8] sm:$0xff]  }
 0x1a8   : > { %v3656_v16 = vsel %vm15605_vm13, %v11994_v56, %v3655_v28  ;;  %v19550_v24 = vcombine.low %v19548_v43, %v19549_v1  ;;  %v14548_v39 = vld [vmem:[#allocation2 + $0x24] sm:$0xff]   ;;  %v14558_v0 = vld [vmem:[%s19368_s1 + $0x1d8] sm:$0xff]   ;;  %v16419_v56 = vld [vmem:[#allocation2 + $0x74] sm:$0x1] }
 0x1a9   : > { %v16398_v17 = vld [vmem:[#allocation2 + $0x1c] sm:$0xf]  ;;  %v16411_v4 = vld [vmem:[#allocation2 + $0x28] sm:$0xf]  ;;  %v5276_v61 = vrot.slane %v16419_v56, 5 }
 0x1aa   : > { %v16430_v46 = vld [vmem:[#allocation2 + $0x20] sm:$0x1] }
 0x1ab   : > { %v4472_v1 = vshll.u32 %v16430_v46, 16 }
 0x1ac   : > { %13346 = vmatmul.mubr.bf16.gmra.mrb[24].mxu0 %v11973_v45 }
 0x1ad   : > { %13349 = vmatprep.mubr.bf16.mxu0 %v11974_v60  ;;  %v3641_v60 = vrot.slane %v16142_v32, 5 }
 0x1af   : > { %v3643_v58 = vrot.slane %v3641_v60, 4  ;;  %v3642_v32 = vsel %vm15605_vm13, %v11992_v21, %v3641_v60  ;;  %v14556_v21 = vld [vmem:[#allocation2 + $0x60] sm:$0xff]  }
 0x1b1   : > { %v3645_v51 = vsel %vm15605_vm13, %v3643_v58, %v3644_v49  ;;  %v4407_v58 = vld [vmem:[#allocation2 + $0x24] sm:$0xf] }
 0x1b2   : > { %v12024_v35 = vcombine.low %v3642_v32, %v3645_v51  ;;  %v4462_v51 = vshll.u32 %v16398_v17, 16  ;;  %v4480_v40 = vshll.u32 %v4407_v58, 16 }
 0x1b4   : > { %13350 = vmatmul.mubr.bf16.gmra.mrb[28].mxu0 %v11975_v8  ;;  %v3657_v8 = vrot.slane %v3655_v28, 4  ;;  %v4466_v28 = vshrl.u32 %v16398_v17, 16 }
 0x1b5   : > { %13369 = vmatprep.mubr.bf16.mxu0 %v12016_v48  ;;  %v3658_v48 = vrot.slane %v16204_v22, 5  ;;  %v14549_v22 = vld [vmem:[%s19368_s1 + $0x1c0] sm:$0xff]  }
 0x1b6   : > { %v4468_v30 = vrot.slane %v4466_v28, 4  ;;  %v14562_v28 = vld [vmem:[#allocation2 + $0x90] sm:$0xff]  }
 0x1b7   : > { %v3659_v13 = vsel %vm15605_vm13, %v3657_v8, %v3658_v48  ;;  %v4486_v8 = vshll.u32 %v16411_v4, 16  ;;  %v4490_v48 = vshrl.u32 %v16411_v4, 16 }
 0x1b8   : > { %v12026_v33 = vcombine.low %v3656_v16, %v3659_v13 }
 0x1bc   : > { %13370 = vmatmul.mubr.bf16.vlgmr.msra.gmra.mrb[0].mxu0 %v12017_v20  ;;  %v19541_v20 = vcombine.low %v19539_v53, %v19540_v10  ;;  %v14559_v10 = vld [vmem:[#allocation2 + $0x78] sm:$0xff]  }
 0x1bd   : > { %13402 = vmatpush3.bf16.msra.mxu0 %v16253_v7  ;;  %13373 = vmatprep.mubr.bf16.mxu0 %v12018_v18  ;;  %v3627_v7 = vrot.slane %v19526_v47, 5  ;;  %v19542_v18 = vld [vmem:[#allocation18_spill] sm:$0xff]  ;;  %v14551_v47 = vld [vmem:[#allocation2 + $0x3c] sm:$0xff]  }
 0x1be   : > { %13403 = vmatprep.subr.bf16.mxu0 %v14540_v6  ;;  %v19544_v44 = vcombine.low %v19542_v18, %v19543_v34  ;;  %v16438_v18 = vrot.slane %v4486_v8, 5  ;;  %v4492_v34 = vrot.slane %v4490_v48, 4 }
 0x1bf   : > { %v3629_v5 = vrot.slane %v3627_v7, 4  ;;  %v3628_v2 = vsel %vm15605_vm13, %v11990_v14, %v3627_v7  ;;  %v14553_v7 = vld [vmem:[#allocation2 + $0x48] sm:$0xff]   ;;  %v5163_v14 = vld [vmem:[#allocation2 + $0x54] sm:$0xe] }
 0x1c1   : > { %13404 = vmatpush3.bf16.msra.mxu0 %v14540_v6  ;;  %v3631_v45 = vsel %vm15605_vm13, %v3629_v5, %v3630_v23  ;;  %v19546_v6 = vld [vmem:[#allocation23_spill] sm:$0xff] }
 0x1c2   : > { %13405 = vmatprep.subr.bf16.mxu0 %v14541_v42  ;;  %v12022_v9 = vcombine.low %v3628_v2, %v3631_v45  ;;  %v19547_v25 = vcombine.low %v19545_v37, %v19546_v6  ;;  %v12125_v2 = vrot.slane %v5163_v14, 9  ;;  %v4404_v45 = vld [vmem:[#allocation2 + $0x18] sm:$0xf]  ;;  %v4410_v6 = vld [vmem:[#allocation2 + $0x30] sm:$0xf] }
 0x1c3   : > { %v4453_v63 = vshrl.u32 %v4404_v45, 16  ;;  %v4456_v32 = vshll.u32 %v4404_v45, 16  ;;  %v14570_v37 = vld [vmem:[%s19368_s1 + $0x1f8] sm:$0xff]  }
 0x1c4   : > { %13374 = vmatmul.mubr.bf16.gmra.mrb[4].mxu0 %v12019_v19  ;;  %v16389_v19 = vld [vmem:[#allocation2 + $0x58] sm:$0xf] }
 0x1c5   : > { %13377 = vmatprep.mubr.bf16.mxu0 %v12020_v59  ;;  %13406 = vmatpush3.bf16.msra.mxu0 %v14541_v42  ;;  %v14555_v42 = vld [vmem:[%s19368_s1 + $0x1d0] sm:$0xff]   ;;  %v16391_v59 = vld [vmem:[#allocation2 + $0x5c] sm:$0x1]  ;;  %v5259_v5 = vrot.slane %v16389_v19, 5  ;;  %v4455_v16 = vrot.slane %v4453_v63, 4 }
 0x1c6   : > { %13407 = vmatprep.subr.bf16.mxu0 %v14542_v57  ;;  %v5262_v23 = vrot.slane %v16391_v59, 5 }
 0x1c7   : > { %v5261_v60 = vrot.slane %v5259_v5, 4 }
 0x1c9   : > { %13408 = vmatpush3.bf16.msra.mxu0 %v14542_v57  ;;  %v14561_v57 = vld [vmem:[%s19368_s1 + $0x1e0] sm:$0xff]   ;;  %v16406_v49 = vsel %vm15605_vm13, %v5261_v60, %v5262_v23  ;;  %v16464_v23 = vld [vmem:[#allocation2 + $0x34] sm:$0xf]  ;;  %v16470_v60 = vrot.slane %v4472_v1, 5 }
 0x1ca   : > { %13409 = vmatprep.subr.bf16.mxu0 %v14543_v31  ;;  %19552 = vst [vmem:[#allocation21_spill] sm:$0xff] %v16406_v49  ;;  %v4510_v8 = vshll.u32 %v16464_v23, 16  ;;  %v4419_v49 = vld [vmem:[#allocation2 + $0x54] sm:$0xf] }
 0x1cc   : > { %13378 = vmatmul.mubr.bf16.gmra.mrb[8].mxu0 %v19529_v36  ;;  %v5171_v36 = vld [vmem:[#allocation2 + $0xb4] sm:$0xe] }
 0x1cd   : > { %13381 = vmatprep.mubr.bf16.mxu0 %v12022_v9  ;;  %13410 = vmatpush3.bf16.msra.mxu0 %v14543_v31  ;;  %v14554_v31 = vld [vmem:[#allocation2 + $0x54] sm:$0xff]   ;;  %v16402_v9 = vsel %vm15605_vm13, %v12125_v2, %v5259_v5  ;;  %v16462_v5 = vld [vmem:[%s19368_s1 + $0x200] sm:$0xff]  }
 0x1ce   : > { %13411 = vmatprep.subr.bf16.mxu0 %v14544_v52  ;;  %19551 = vst [vmem:[#allocation20_spill] sm:$0xff] %v16402_v9  ;;  %v14569_v9 = vld [vmem:[#allocation2 + $0xcc] sm:$0xff]  }
 0x1d1   : > { %13412 = vmatpush3.bf16.msra.mxu0 %v14544_v52  ;;  %v14564_v52 = vld [vmem:[%s19368_s1 + $0x1e8] sm:$0xff]  }
 0x1d2   : > { %13413 = vmatprep.subr.bf16.mxu0 %v14545_v50 }
 0x1d4   : > { %13382 = vmatmul.mubr.bf16.gmra.mrb[12].mxu0 %v19532_v38  ;;  %v14567_v38 = vld [vmem:[%s19368_s1 + $0x1f0] sm:$0xff]  }
 0x1d5   : > { %13385 = vmatprep.mubr.bf16.mxu0 %v12024_v35  ;;  %13414 = vmatpush3.bf16.msra.mxu0 %v14545_v50  ;;  %v4477_v50 = vshrl.u32 %v4407_v58, 16  ;;  %v16417_v35 = vld [vmem:[#allocation2 + $0x70] sm:$0xf]  ;;  %v14560_v58 = vld [vmem:[#allocation2 + $0x84] sm:$0xff]  }
 0x1d6   : > { %13415 = vmatprep.subr.bf16.mxu0 %v14546_v12  ;;  %v5273_v3 = vrot.slane %v16417_v35, 5 }
 0x1d7   : > { %v4479_v55 = vrot.slane %v4477_v50, 4 }
 0x1d8   : > { %v5275_v27 = vrot.slane %v5273_v3, 4 }
 0x1d9   : > { %13416 = vmatpush3.bf16.msra.mxu0 %v14546_v12  ;;  %v5165_v12 = vld [vmem:[#allocation2 + $0x6c] sm:$0xe] }
 0x1da   : > { %13449 = vmatprep.subr.bf16.mxu0 %v14549_v22  ;;  %v12127_v13 = vrot.slane %v5165_v12, 9  ;;  %v4514_v12 = vshrl.u32 %v16464_v23, 16 }
 0x1dc   : > { %13386 = vmatmul.mubr.bf16.gmra.mrb[16].mxu0 %v19535_v11  ;;  %v14557_v11 = vld [vmem:[#allocation2 + $0x6c] sm:$0xff]   ;;  %v16434_v53 = vsel %vm15605_vm13, %v12127_v13, %v5273_v3  ;;  %v16491_v3 = vld [vmem:[#allocation2 + $0x40] sm:$0xf]  ;;  %v16495_v13 = vld [vmem:[#allocation2 + $0x38] sm:$0x1] }
 0x1dd   : > { %13389 = vmatprep.mubr.bf16.mxu0 %v12026_v33  ;;  %v16428_v33 = vrot.slane %v4462_v51, 5  ;;  %19553 = vst [vmem:[#allocation8_spill] sm:$0xff] %v16434_v53 }
 0x1df   : > { %v4469_v43 = vor.u32 %v4468_v30, %v16428_v33  ;;  %v16499_v30 = vld [vmem:[#allocation2 + $0x98] sm:$0x1] }
 0x1e1   : > { %v16468_v45 = vrot.slane %v4469_v43, 4 }
 0x1e4   : > { %13390 = vmatmul.mubr.bf16.gmra.mrb[20].mxu0 %v19538_v29  ;;  %v4482_v29 = vrot.slane %v4480_v40, 5 }
 0x1e5   : > { %13393 = vmatprep.mubr.bf16.mxu0 %v19541_v20  ;;  %v16436_v20 = vld [vmem:[#allocation2 + $0x2c] sm:$0x1] }
 0x1ec   : > { %13394 = vmatmul.mubr.bf16.gmra.mrb[24].mxu0 %v19544_v44  ;;  %v16442_v44 = vsel %vm15605_vm13, %v5275_v27, %v5276_v61  ;;  %v16501_v27 = vld [vmem:[#allocation2 + $0xa0] sm:$0xf] }
 0x1ed   : > { %13397 = vmatprep.mubr.bf16.mxu0 %v19547_v25  ;;  %19554 = vst [vmem:[#allocation9_spill] sm:$0xff] %v16442_v44  ;;  %v5170_v25 = vld [vmem:[#allocation2 + $0xa8] sm:$0xe] }
 0x1f4   : > { %13398 = vmatmul.mubr.bf16.gmra.mrb[28].mxu0 %v19550_v24  ;;  %v4483_v24 = vor.u32 %v4482_v29, %v4479_v55  ;;  %v5168_v55 = vld [vmem:[#allocation2 + $0x90] sm:$0xe] }
 0x1f5   : > { %13417 = vmatprep.mubr.bf16.mxu0 %v14547_v62 }
 0x1fc   : > { %13418 = vmatmul.mubr.bf16.vlgmr.msra.gmra.mrb[0].mxu0 %v14548_v39  ;;  %v4496_v39 = vshll.u32 %v16436_v20, 16 }
 0x1fd   : > { %13450 = vmatpush3.bf16.msra.mxu0 %v14549_v22  ;;  %13421 = vmatprep.mubr.bf16.mxu0 %v14550_v54  ;;  %v4458_v22 = vrot.slane %v4456_v32, 5  ;;  %v16452_v54 = vld [vmem:[#allocation2 + $0x88] sm:$0xf]  ;;  %v4504_v32 = vshll.u32 %v4410_v6, 16 }
 0x1fe   : > { %13451 = vmatprep.subr.bf16.mxu0 %v14552_v41  ;;  %v16474_v63 = vrot.slane %v4496_v39, 5 }
 0x1ff   : > { %v4459_v62 = vor.u32 %v4458_v22, %v4455_v16  ;;  %v16497_v22 = vld [vmem:[#allocation2 + $0x94] sm:$0xf]  ;;  %v4506_v1 = vrot.slane %v4504_v32, 5  ;;  %v16561_v16 = vld [vmem:[#allocation2 + $0xbc] sm:$0x1] }
 0x200   : > { %v5294_v29 = vrot.slane %v16497_v22, 5 }
 0x201   : > { %13452 = vmatpush3.bf16.msra.mxu0 %v14552_v41  ;;  %v16454_v41 = vld [vmem:[#allocation2 + $0x8c] sm:$0x1]  ;;  %v16466_v2 = vrot.slane %v4459_v62, 4  ;;  %v5301_v62 = vrot.slane %v16501_v27, 5 }
 0x202   : > { %13453 = vmatprep.subr.bf16.mxu0 %v14555_v42  ;;  %v5290_v14 = vrot.slane %v16454_v41, 5  ;;  %v5296_v39 = vrot.slane %v5294_v29, 4 }
 0x204   : > { %13422 = vmatmul.mubr.bf16.gmra.mrb[4].mxu0 %v14551_v47  ;;  %v4501_v47 = vshrl.u32 %v4410_v6, 16  ;;  %v5169_v6 = vld [vmem:[#allocation2 + $0x9c] sm:$0xe] }
 0x205   : > { %13425 = vmatprep.mubr.bf16.mxu0 %v14553_v7  ;;  %13454 = vmatpush3.bf16.msra.mxu0 %v14555_v42  ;;  %v4493_v42 = vor.u32 %v4492_v34, %v16438_v18  ;;  %v5167_v7 = vld [vmem:[#allocation2 + $0x84] sm:$0xe]  ;;  %v4534_v34 = vshll.u32 %v16491_v3, 16 }
 0x206   : > { %13455 = vmatprep.subr.bf16.mxu0 %v14558_v0  ;;  %v16482_v40 = vrot.slane %v4501_v47, 4  ;;  %v4516_v47 = vrot.slane %v4514_v12, 4 }
 0x207   : > { %v16480_v50 = vrot.slane %v4493_v42, 4  ;;  %v12131_v42 = vrot.slane %v5169_v6, 9  ;;  %v16541_v6 = vld [vmem:[#allocation2 + $0x4c] sm:$0xf] }
 0x208   : > { %19562 = vst [vmem:[#allocation17_spill] sm:$0xff] %v16541_v6 }
 0x209   : > { %13456 = vmatpush3.bf16.msra.mxu0 %v14558_v0  ;;  %v5287_v0 = vrot.slane %v16452_v54, 5 }
 0x20a   : > { %13457 = vmatprep.subr.bf16.mxu0 %v14561_v57 }
 0x20c   : > { %13426 = vmatmul.mubr.bf16.gmra.mrb[8].mxu0 %v14554_v31  ;;  %v4413_v31 = vld [vmem:[#allocation2 + $0x3c] sm:$0xf] }
 0x20d   : > { %13429 = vmatprep.mubr.bf16.mxu0 %v14556_v21  ;;  %13458 = vmatpush3.bf16.msra.mxu0 %v14561_v57  ;;  %v12129_v57 = vrot.slane %v5167_v7, 9  ;;  %v5289_v21 = vrot.slane %v5287_v0, 4  ;;  %v4525_v61 = vshrl.u32 %v4413_v31, 16  ;;  %v16512_v7 = vld [vmem:[#allocation2 + $0x44] sm:$0x1] }
 0x20e   : > { %13459 = vmatprep.subr.bf16.mxu0 %v14564_v52  ;;  %19557 = vst [vmem:[#allocation12_spill] sm:$0xff] %v16512_v7 }
 0x20f   : > { %v16478_v51 = vsel %vm15605_vm13, %v12129_v57, %v5287_v0  ;;  %v16487_v48 = vsel %vm15605_vm13, %v5289_v21, %v5290_v14  ;;  %v4416_v0 = vld [vmem:[#allocation2 + $0x48] sm:$0xf]  ;;  %v5303_v57 = vrot.slane %v5301_v62, 4  ;;  %v4520_v21 = vshll.u32 %v16495_v13, 16 }
 0x210   : > { %19555 = vst [vmem:[#allocation10_spill] sm:$0xff] %v16478_v51  ;;  %19556 = vst [vmem:[#allocation11_spill] sm:$0xff] %v16487_v48 }
 0x211   : > { %13460 = vmatpush3.bf16.msra.mxu0 %v14564_v52  ;;  %v16472_v52 = vrot.slane %v4483_v24, 4  ;;  %v16510_v24 = vrot.slane %v4510_v8, 5  ;;  %v14565_v8 = vld [vmem:[#allocation2 + $0xa8] sm:$0xff]  }
 0x212   : > { %13461 = vmatprep.subr.bf16.mxu0 %v14567_v38 }
 0x214   : > { %13430 = vmatmul.mubr.bf16.gmra.mrb[12].mxu0 %v14557_v11  ;;  %v16503_v11 = vld [vmem:[#allocation2 + $0xa4] sm:$0x1] }
 0x215   : > { %13433 = vmatprep.mubr.bf16.mxu0 %v14559_v10  ;;  %13462 = vmatpush3.bf16.msra.mxu0 %v14567_v38  ;;  %v4528_v38 = vshll.u32 %v4413_v31, 16  ;;  %v5297_v10 = vrot.slane %v16499_v30, 5  ;;  %v5304_v43 = vrot.slane %v16503_v11, 5  ;;  %v14563_v31 = vld [vmem:[#allocation2 + $0x9c] sm:$0xff]  }
 0x216   : > { %13463 = vmatprep.subr.bf16.mxu0 %v14570_v37 }
 0x217   : > { %v16523_v32 = vsel %vm15605_vm13, %v5296_v39, %v5297_v10  ;;  %v16529_v12 = vrot.slane %v4528_v38, 5  ;;  %v4544_v10 = vshll.u32 %v16512_v7, 16  ;;  %v4507_v39 = vor.u32 %v4506_v1, %v16482_v40 }
 0x218   : > { %19559 = vst [vmem:[#allocation14_spill] sm:$0xff] %v16523_v32  ;;  %v4517_v38 = vor.u32 %v4516_v47, %v16510_v24  ;;  %v4552_v40 = vshll.u32 %v4416_v0, 16  ;;  %v12132_v1 = vrot.slane %v5170_v25, 9  ;;  %v12133_v47 = vrot.slane %v5171_v36, 9 }
 0x219   : > { %13464 = vmatpush3.bf16.msra.mxu0 %v14570_v37  ;;  %v12130_v37 = vrot.slane %v5168_v55, 9  ;;  %v16531_v55 = vrot.slane %v4534_v34, 5  ;;  %v4465_v34 = vsel %vm15198_vm6, %v16466_v2, %v16428_v33  ;;  %v16569_v32 = vrot.slane %v4507_v39, 4  ;;  %v14568_v39 = vld [vmem:[#allocation2 + $0xc0] sm:$0xff]  }
 0x21a   : > { %13497 = vmatprep.subr.bf16.mxu0 %v16462_v5  ;;  %v16577_v48 = vrot.slane %v4517_v38, 4  ;;  %v4582_v7 = vshll.u32 %v16389_v19, 16 }
 0x21b   : > { %v16516_v14 = vsel %vm15605_vm13, %v12130_v37, %v5294_v29  ;;  %v4538_v37 = vshrl.u32 %v16491_v3, 16  ;;  %v4475_v29 = vsel %vm15198_vm6, %v16468_v45, %v16470_v60  ;;  %v4562_v45 = vshrl.u32 %v16541_v6, 16 }
 0x21c   : > { %13434 = vmatmul.mubr.bf16.gmra.mrb[16].mxu0 %v14560_v58  ;;  %19558 = vst [vmem:[#allocation13_spill] sm:$0xff] %v16516_v14  ;;  %v16519_v58 = vrot.slane %v4525_v61, 4  ;;  %v16537_v61 = vsel %vm15605_vm13, %v5303_v57, %v5304_v43  ;;  %v16552_v43 = vld [vmem:[#allocation2 + $0xb0] sm:$0x1]  ;;  %v16554_v57 = vld [vmem:[#allocation2 + $0xb8] sm:$0xf] }
 0x21d   : > { %13437 = vmatprep.mubr.bf16.mxu0 %v14562_v28  ;;  %v16527_v28 = vsel %vm15605_vm13, %v12131_v42, %v5301_v62  ;;  %19561 = vst [vmem:[#allocation16_spill] sm:$0xff] %v16537_v61  ;;  %v4549_v62 = vshrl.u32 %v4416_v0, 16  ;;  %v16550_v42 = vld [vmem:[#allocation2 + $0xac] sm:$0xf]  ;;  %v5311_v2 = vrot.slane %v16552_v43, 5  ;;  %v5318_v61 = vrot.slane %v16561_v16, 5 }
 0x21e   : > { %19560 = vst [vmem:[#allocation15_spill] sm:$0xff] %v16527_v28  ;;  %v5308_v33 = vrot.slane %v16550_v42, 5  ;;  %v4558_v28 = vshll.u32 %v16541_v6, 16  ;;  %v16571_v14 = vrot.slane %v4520_v21, 5  ;;  %v14566_v0 = vld [vmem:[#allocation2 + $0xb4] sm:$0xff]   ;;  %v4540_v51 = vrot.slane %v4538_v37, 4 }
 0x21f   : > { %v16587_v21 = vrot.slane %v4544_v10, 5  ;;  %v4551_v53 = vrot.slane %v4549_v62, 4  ;;  %v16595_v37 = vld [vmem:[#allocation2 + $0x50] sm:$0x1]  ;;  %v12096_v10 = vcombine.low %v4465_v34, %v4475_v29  ;;  %v4489_v62 = vsel %vm15198_vm6, %v16472_v52, %v16438_v18  ;;  %v16622_v29 = vld [vmem:[#allocation2 + $0xd4] sm:$0x1] }
 0x220   : > { %v5310_v60 = vrot.slane %v5308_v33, 4  ;;  %19567 = vst [vmem:[#allocation24_spill] sm:$0xff] %v16595_v37  ;;  %v4513_v18 = vsel %vm15198_vm6, %v16569_v32, %v16510_v24  ;;  %v4541_v52 = vor.u32 %v4540_v51, %v16531_v55  ;;  %v4568_v24 = vshll.u32 %v16595_v37, 16  ;;  %v4422_v32 = vld [vmem:[#allocation2 + $0x60] sm:$0xf] }
 0x221   : > { %v16666_v37 = vrot.slane %v4582_v7, 5  ;;  %v4634_v7 = vshrl.u32 %v16417_v35, 16 }
 0x222   : > { %v16581_v44 = vsel %vm15605_vm13, %v5310_v60, %v5311_v2  ;;  %v4554_v2 = vrot.slane %v4552_v40, 5  ;;  %v4564_v60 = vrot.slane %v4562_v45, 4  ;;  %v4531_v40 = vor.u32 %v16529_v12, %v16519_v58  ;;  %v16613_v45 = vld [vmem:[#allocation2 + $0xc8] sm:$0x1] }
 0x223   : > { %19564 = vst [vmem:[#allocation19_spill] sm:$0xff] %v16581_v44  ;;  %v5325_v58 = vrot.slane %v16613_v45, 5  ;;  %v4573_v12 = vshrl.u32 %v4419_v49, 16  ;;  %v4576_v44 = vshll.u32 %v4419_v49, 16  ;;  %v4597_v49 = vshrl.u32 %v4422_v32, 16 }
 0x224   : > { %13438 = vmatmul.mubr.bf16.gmra.mrb[20].mxu0 %v14563_v31  ;;  %v5315_v31 = vrot.slane %v16554_v57, 5 }
 0x225   : > { %13441 = vmatprep.mubr.bf16.mxu0 %v14565_v8  ;;  %v16575_v8 = vsel %vm15605_vm13, %v12132_v1, %v5308_v33  ;;  %v16597_v1 = vrot.slane %v4558_v28, 5  ;;  %v16611_v28 = vld [vmem:[#allocation2 + $0xc4] sm:$0xf]  ;;  %v4555_v33 = vor.u32 %v4554_v2, %v4551_v53  ;;  %v4586_v53 = vshrl.u32 %v16389_v19, 16 }
 0x226   : > { %19563 = vst [vmem:[#allocation18_spill] sm:$0xff] %v16575_v8  ;;  %v5317_v25 = vrot.slane %v5315_v31, 4  ;;  %v16585_v36 = vsel %vm15605_vm13, %v12133_v47, %v5315_v31  ;;  %v16615_v47 = vld [vmem:[#allocation2 + $0xd0] sm:$0xf]  ;;  %v5332_v31 = vrot.slane %v16622_v29, 5  ;;  %v4523_v19 = vsel %vm15198_vm6, %v16577_v48, %v16571_v14 }
 0x227   : > { %19565 = vst [vmem:[#allocation22_spill] sm:$0xff] %v16585_v36  ;;  %v4565_v36 = vor.u32 %v4564_v60, %v16597_v1  ;;  %v16630_v8 = vld [vmem:[#allocation2 + $0x64] sm:$0xf]  ;;  %v4588_v48 = vrot.slane %v4586_v53, 4  ;;  %v4599_v6 = vrot.slane %v4597_v49, 4 }
 0x228   : > { %v16593_v38 = vsel %vm15605_vm13, %v5317_v25, %v5318_v61  ;;  %v4499_v61 = vsel %vm15198_vm6, %v16480_v50, %v16474_v63  ;;  %v5172_v63 = vld [vmem:[#allocation2 + $0xc0] sm:$0xe]  ;;  %v5322_v50 = vrot.slane %v16611_v28, 5  ;;  %v5173_v25 = vld [vmem:[#allocation2 + $0xcc] sm:$0xe]  ;;  %19568 = vst [vmem:[#allocation25_spill] sm:$0xff] %v16630_v8 }
 0x229   : > { %19566 = vst [vmem:[#allocation23_spill] sm:$0xff] %v16593_v38  ;;  %v12134_v34 = vrot.slane %v5172_v63, 9  ;;  %v12135_v38 = vrot.slane %v5173_v25, 9  ;;  %v4600_v25 = vshll.u32 %v4422_v32, 16  ;;  %v16663_v32 = vrot.slane %v4568_v24, 5 }
 0x22a   : > { %v5324_v51 = vrot.slane %v5322_v50, 4  ;;  %v4566_v14 = vrot.slane %v4565_v36, 4  ;;  %v16669_v24 = vld [vmem:[#allocation2 + $0x68] sm:$0x1]  ;;  %v16685_v53 = vld [vmem:[#allocation2 + $0x7c] sm:$0xf] }
 0x22c   : > { %13442 = vmatmul.mubr.bf16.gmra.mrb[24].mxu0 %v14566_v0  ;;  %v5329_v0 = vrot.slane %v16615_v47, 5  ;;  %v16640_v2 = vsel %vm15605_vm13, %v5324_v51, %v5325_v58  ;;  %v16656_v58 = vrot.slane %v4531_v40, 4  ;;  %v4606_v51 = vshll.u32 %v16630_v8, 16 }
 0x22d   : > { %13445 = vmatprep.mubr.bf16.mxu0 %v14568_v39  ;;  %v16634_v39 = vsel %vm15605_vm13, %v12134_v34, %v5322_v50  ;;  %19570 = vst [vmem:[#allocation27_spill] sm:$0xff] %v16640_v2  ;;  %v4575_v50 = vrot.slane %v4573_v12, 4  ;;  %v4556_v2 = vrot.slane %v4555_v33, 4  ;;  %v4592_v40 = vshll.u32 %v16391_v59, 16 }
 0x22e   : > { %19569 = vst [vmem:[#allocation26_spill] sm:$0xff] %v16634_v39  ;;  %v5331_v63 = vrot.slane %v5329_v0, 4  ;;  %v16644_v60 = vsel %vm15605_vm13, %v12135_v38, %v5329_v0  ;;  %v16661_v0 = vrot.slane %v4541_v52, 4  ;;  %v4578_v39 = vrot.slane %v4576_v44, 5 }
 0x22f   : > { %19571 = vst [vmem:[#allocation28_spill] sm:$0xff] %v16644_v60  ;;  %v4602_v38 = vrot.slane %v4600_v25, 5  ;;  %v12097_v52 = vcombine.low %v4489_v62, %v4499_v61  ;;  %v16671_v12 = vrot.slane %v4606_v51, 5  ;;  %v4630_v44 = vshll.u32 %v16417_v35, 16  ;;  %v14572_v25 = vld [vmem:[%s19368_s1 + $0x208] sm:$0xff]  }
 0x230   : > { %v16650_v34 = vsel %vm15605_vm13, %v5331_v63, %v5332_v31  ;;  %v4610_v31 = vshrl.u32 %v16630_v8, 16  ;;  %v4425_v63 = vld [vmem:[#allocation2 + $0x6c] sm:$0xf]  ;;  %v4428_v8 = vld [vmem:[#allocation2 + $0x78] sm:$0xf]  ;;  %v4537_v59 = vsel %vm15198_vm6, %v16656_v58, %v16531_v55  ;;  %v4547_v36 = vsel %vm15198_vm6, %v16661_v0, %v16587_v21 }
 0x231   : > { %19572 = vst [vmem:[#allocation29_spill] sm:$0xff] %v16650_v34  ;;  %v12098_v34 = vcombine.low %v4513_v18, %v4523_v19  ;;  %v4621_v60 = vshrl.u32 %v4425_v63, 16  ;;  %v4624_v33 = vshll.u32 %v4425_v63, 16  ;;  %v4589_v62 = vor.u32 %v4588_v48, %v16666_v37  ;;  %v4431_v51 = vld [vmem:[#allocation2 + $0x84] sm:$0xf]  ;;  %v14573_v48 = vld [vmem:[%s19368_s1 + $0x210] sm:$0xff]  }
 0x232   : > { %v4603_v61 = vor.u32 %v4602_v38, %v4599_v6  ;;  %v4616_v18 = vshll.u32 %v16669_v24, 16  ;;  %v4645_v49 = vshrl.u32 %v4428_v8, 16  ;;  %v4648_v35 = vshll.u32 %v4428_v8, 16 }
 0x233   : > { %v4561_v55 = vsel %vm15198_vm6, %v4556_v2, %v16597_v1  ;;  %v4571_v21 = vsel %vm15198_vm6, %v4566_v14, %v16663_v32  ;;  %v4623_v6 = vrot.slane %v4621_v60, 4  ;;  %v4626_v19 = vrot.slane %v4624_v33, 5 }
 0x234   : > { %13446 = vmatmul.mubr.bf16.gmra.mrb[28].mxu0 %v14569_v9  ;;  %v4612_v9 = vrot.slane %v4610_v31, 4  ;;  %v16699_v58 = vrot.slane %v4630_v44, 5  ;;  %v4636_v8 = vrot.slane %v4634_v7, 4  ;;  %v4590_v0 = vrot.slane %v4589_v62, 4 }
 0x235   : > { %13465 = vmatprep.mubr.bf16.mxu0 %v12096_v10  ;;  %v4579_v10 = vor.u32 %v4578_v39, %v4575_v50  ;;  %v16696_v39 = vrot.slane %v4592_v40, 5  ;;  %v4654_v31 = vshll.u32 %v16685_v53, 16  ;;  %v4658_v1 = vshrl.u32 %v16685_v53, 16 }
 0x236   : > { %v4613_v50 = vor.u32 %v4612_v9, %v16671_v12  ;;  %v4604_v2 = vrot.slane %v4603_v61, 4  ;;  %v4618_v32 = vrot.slane %v4616_v18, 5  ;;  %v4647_v60 = vrot.slane %v4645_v49, 4 }
 0x237   : > { %v4580_v38 = vrot.slane %v4579_v10, 4  ;;  %v4650_v63 = vrot.slane %v4648_v35, 5  ;;  %v4669_v14 = vshrl.u32 %v4431_v51, 16  ;;  %v4672_v40 = vshll.u32 %v4431_v51, 16  ;;  %v16722_v35 = vld [vmem:[#allocation2 + $0x80] sm:$0x1] }
 0x238   : > { %v4682_v9 = vshrl.u32 %v16452_v54, 16  ;;  %v4614_v33 = vrot.slane %v4613_v50, 4  ;;  %v4627_v44 = vor.u32 %v4626_v19, %v4623_v6  ;;  %v12099_v7 = vcombine.low %v4537_v59, %v4547_v36  ;;  %v4434_v59 = vld [vmem:[#allocation2 + $0x90] sm:$0xf]  ;;  %v14574_v36 = vld [vmem:[%s19368_s1 + $0x218] sm:$0xff]  }
 0x239   : > { %v12100_v10 = vcombine.low %v4561_v55, %v4571_v21  ;;  %v16711_v62 = vrot.slane %v4654_v31, 5  ;;  %v4660_v61 = vrot.slane %v4658_v1, 4  ;;  %v4585_v18 = vsel %vm15198_vm6, %v4580_v38, %v16666_v37 }
 0x23a   : > { %v4609_v49 = vsel %vm15198_vm6, %v4604_v2, %v16671_v12  ;;  %v4674_v55 = vrot.slane %v4672_v40, 5  ;;  %v4684_v21 = vrot.slane %v4682_v9, 4  ;;  %v4628_v6 = vrot.slane %v4627_v44, 4 }
 0x23b   : > { %v4661_v19 = vor.u32 %v4660_v61, %v16711_v62  ;;  %v4693_v51 = vshrl.u32 %v4434_v59, 16  ;;  %v4696_v38 = vshll.u32 %v4434_v59, 16  ;;  %v4706_v31 = vshrl.u32 %v16497_v22, 16 }
 0x23c   : > { %13466 = vmatmul.mubr.bf16.vlgmr.msra.gmra.mrb[0].mxu0 %v12097_v52  ;;  %v4678_v52 = vshll.u32 %v16452_v54, 16  ;;  %v4595_v54 = vsel %vm15198_vm6, %v4590_v0, %v16696_v39  ;;  %v4619_v39 = vsel %vm15198_vm6, %v4614_v33, %v4618_v32  ;;  %v4702_v0 = vshll.u32 %v16497_v22, 16 }
 0x23d   : > { %13498 = vmatpush3.bf16.msra.mxu0 %v16462_v5  ;;  %13469 = vmatprep.mubr.bf16.mxu0 %v12098_v34  ;;  %v4637_v5 = vor.u32 %v4636_v8, %v16699_v58  ;;  %v4640_v34 = vshll.u32 %v16419_v56, 16  ;;  %v4651_v56 = vor.u32 %v4650_v63, %v4647_v60  ;;  %v4664_v8 = vshll.u32 %v16722_v35, 16  ;;  %v14575_v63 = vld [vmem:[%s19368_s1 + $0x220] sm:$0xff]  }
 0x23e   : > { %13499 = vmatprep.subr.bf16.mxu0 %v14572_v25  ;;  %v16727_v37 = vrot.slane %v4678_v52, 5  ;;  %v4688_v60 = vshll.u32 %v16454_v41, 16  ;;  %v12101_v40 = vcombine.low %v4585_v18, %v4595_v54  ;;  %v12102_v52 = vcombine.low %v4609_v49, %v4619_v39 }
 0x23f   : > { %v4638_v50 = vrot.slane %v4637_v5, 4  ;;  %v4642_v12 = vrot.slane %v4640_v34, 5  ;;  %v4652_v1 = vrot.slane %v4651_v56, 4  ;;  %v4662_v9 = vrot.slane %v4661_v19, 4  ;;  %v4440_v34 = vld [vmem:[#allocation2 + $0xa8] sm:$0xf] }
 0x240   : > { %v4685_v32 = vor.u32 %v4684_v21, %v16727_v37  ;;  %v4666_v33 = vrot.slane %v4664_v8, 5  ;;  %v4695_v44 = vrot.slane %v4693_v51, 4  ;;  %v4698_v5 = vrot.slane %v4696_v38, 5  ;;  %v14576_v56 = vld [vmem:[%s19368_s1 + $0x228] sm:$0xff]  }
 0x241   : > { %13500 = vmatpush3.bf16.msra.mxu0 %v14572_v25  ;;  %v4671_v25 = vrot.slane %v4669_v14, 4  ;;  %v4437_v14 = vld [vmem:[#allocation2 + $0x9c] sm:$0xf]  ;;  %v4643_v22 = vsel %vm15198_vm6, %v4638_v50, %v4642_v12  ;;  %v16745_v41 = vrot.slane %v4702_v0, 5  ;;  %v4657_v18 = vsel %vm15198_vm6, %v4652_v1, %v16711_v62 }
 0x242   : > { %13501 = vmatprep.subr.bf16.mxu0 %v14573_v48  ;;  %v4720_v61 = vshll.u32 %v4437_v14, 16  ;;  %v4690_v49 = vrot.slane %v4688_v60, 5  ;;  %v4726_v59 = vshll.u32 %v16501_v27, 16  ;;  %v4667_v21 = vsel %vm15198_vm6, %v4662_v9, %v4666_v33  ;;  %v14578_v9 = vld [vmem:[%s19368_s1 + $0x238] sm:$0xff]  }
 0x243   : > { %v4675_v2 = vor.u32 %v4674_v55, %v4671_v25  ;;  %v4741_v25 = vshrl.u32 %v4440_v34, 16  ;;  %v4744_v55 = vshll.u32 %v4440_v34, 16  ;;  %v4712_v62 = vshll.u32 %v16499_v30, 16  ;;  %v14577_v30 = vld [vmem:[%s19368_s1 + $0x230] sm:$0xff]  }
 0x244   : > { %13470 = vmatmul.mubr.bf16.gmra.mrb[4].mxu0 %v12099_v7  ;;  %v4708_v7 = vrot.slane %v4706_v31, 4  ;;  %v4750_v39 = vshll.u32 %v16550_v42, 16  ;;  %v4699_v50 = vor.u32 %v4698_v5, %v4695_v44  ;;  %v4722_v8 = vrot.slane %v4720_v61, 5 }
 0x245   : > { %13473 = vmatprep.mubr.bf16.mxu0 %v12100_v10  ;;  %13502 = vmatpush3.bf16.msra.mxu0 %v14573_v48  ;;  %v4633_v48 = vsel %vm15198_vm6, %v4628_v6, %v16699_v58  ;;  %v4717_v10 = vshrl.u32 %v4437_v14, 16  ;;  %v4676_v54 = vrot.slane %v4675_v2, 4  ;;  %v4686_v58 = vrot.slane %v4685_v32, 4  ;;  %v4443_v14 = vld [vmem:[#allocation2 + $0xb4] sm:$0xf] }
 0x246   : > { %13503 = vmatprep.subr.bf16.mxu0 %v14574_v36  ;;  %v4754_v6 = vshrl.u32 %v16550_v42, 16  ;;  %v4709_v12 = vor.u32 %v4708_v7, %v16745_v41  ;;  %v16769_v42 = vrot.slane %v4726_v59, 5  ;;  %v4743_v31 = vrot.slane %v4741_v25, 4  ;;  %v4446_v7 = vld [vmem:[#allocation2 + $0xc0] sm:$0xf] }
 0x247   : > { %v4719_v19 = vrot.slane %v4717_v10, 4  ;;  %v4681_v51 = vsel %vm15198_vm6, %v4676_v54, %v16727_v37  ;;  %v4691_v38 = vsel %vm15198_vm6, %v4686_v58, %v4690_v49  ;;  %v4746_v1 = vrot.slane %v4744_v55, 5 }
 0x248   : > { %v12104_v2 = vcombine.low %v4657_v18, %v4667_v21  ;;  %v4714_v32 = vrot.slane %v4712_v62, 5  ;;  %v16771_v60 = vrot.slane %v4750_v39, 5  ;;  %v4700_v37 = vrot.slane %v4699_v50, 4 }
 0x249   : > { %13504 = vmatpush3.bf16.msra.mxu0 %v14574_v36  ;;  %v4730_v36 = vshrl.u32 %v16501_v27, 16  ;;  %v12103_v27 = vcombine.low %v4633_v48, %v4643_v22  ;;  %v4736_v48 = vshll.u32 %v16503_v11, 16  ;;  %v12105_v22 = vcombine.low %v4681_v51, %v4691_v38  ;;  %v4449_v38 = vld [vmem:[#allocation2 + $0xcc] sm:$0xf] }
 0x24a   : > { %13505 = vmatprep.subr.bf16.mxu0 %v14575_v63  ;;  %v4747_v44 = vor.u32 %v4746_v1, %v4743_v31  ;;  %v4760_v5 = vshll.u32 %v16552_v43, 16  ;;  %v4765_v34 = vshrl.u32 %v4443_v14, 16  ;;  %v4768_v61 = vshll.u32 %v4443_v14, 16 }
 0x24b   : > { %v4732_v0 = vrot.slane %v4730_v36, 4  ;;  %v4774_v11 = vshll.u32 %v16554_v57, 16  ;;  %v4778_v18 = vshrl.u32 %v16554_v57, 16  ;;  %v4705_v54 = vsel %vm15198_vm6, %v4700_v37, %v16745_v41 }
 0x24c   : > { %13474 = vmatmul.mubr.bf16.gmra.mrb[8].mxu0 %v12101_v40  ;;  %v4710_v40 = vrot.slane %v4709_v12, 4  ;;  %v4738_v43 = vrot.slane %v4736_v48, 5  ;;  %v4792_v59 = vshll.u32 %v4446_v7, 16  ;;  %v4798_v36 = vshll.u32 %v16611_v28, 16 }
 0x24d   : > { %13477 = vmatprep.mubr.bf16.mxu0 %v12102_v52  ;;  %13506 = vmatpush3.bf16.msra.mxu0 %v14575_v63  ;;  %v4756_v63 = vrot.slane %v4754_v6, 4  ;;  %v4723_v52 = vor.u32 %v4722_v8, %v4719_v19  ;;  %v4733_v33 = vor.u32 %v4732_v0, %v16769_v42  ;;  %v4802_v25 = vshrl.u32 %v16611_v28, 16 }
 0x24e   : > { %13507 = vmatprep.subr.bf16.mxu0 %v14576_v56  ;;  %v4715_v58 = vsel %vm15198_vm6, %v4710_v40, %v4714_v32  ;;  %v4748_v57 = vrot.slane %v4747_v44, 4  ;;  %v4762_v21 = vrot.slane %v4760_v5, 5  ;;  %v4767_v62 = vrot.slane %v4765_v34, 4 }
 0x24f   : > { %v4757_v10 = vor.u32 %v4756_v63, %v16771_v60  ;;  %v4724_v49 = vrot.slane %v4723_v52, 4  ;;  %v4734_v55 = vrot.slane %v4733_v33, 4  ;;  %v4770_v6 = vrot.slane %v4768_v61, 5 }
 0x250   : > { %v4776_v41 = vrot.slane %v4774_v11, 5  ;;  %v4780_v50 = vrot.slane %v4778_v18, 4  ;;  %v12106_v12 = vcombine.low %v4705_v54, %v4715_v58  ;;  %v4794_v8 = vrot.slane %v4792_v59, 5  ;;  %v5158_v59 = vld [vmem:[#allocation2 + $0x18] sm:$0xe] }
 0x251   : > { %13508 = vmatpush3.bf16.msra.mxu0 %v14576_v56  ;;  %v4789_v56 = vshrl.u32 %v4446_v7, 16  ;;  %v4758_v39 = vrot.slane %v4757_v10, 4  ;;  %v4804_v51 = vrot.slane %v4802_v25, 4  ;;  %v4729_v28 = vsel %vm15198_vm6, %v4724_v49, %v16769_v42 }
 0x252   : > { %13509 = vmatprep.subr.bf16.mxu0 %v14577_v30  ;;  %v4784_v0 = vshll.u32 %v16561_v16, 16  ;;  %v4753_v31 = vsel %vm15198_vm6, %v4748_v57, %v16771_v60  ;;  %v4781_v32 = vor.u32 %v4780_v50, %v4776_v41  ;;  %v4813_v63 = vshrl.u32 %v4449_v38, 16 }
 0x253   : > { %v4791_v19 = vrot.slane %v4789_v56, 4  ;;  %v4763_v1 = vsel %vm15198_vm6, %v4758_v39, %v4762_v21  ;;  %v4816_v14 = vshll.u32 %v4449_v38, 16  ;;  %v4822_v42 = vshll.u32 %v16615_v47, 16 }
 0x254   : > { %13478 = vmatmul.mubr.bf16.gmra.mrb[12].mxu0 %v12103_v27  ;;  %v4800_v27 = vrot.slane %v4798_v36, 5  ;;  %v4826_v37 = vshrl.u32 %v16615_v47, 16  ;;  %v4808_v16 = vshll.u32 %v16613_v45, 16  ;;  %v4782_v60 = vrot.slane %v4781_v32, 4 }
 0x255   : > { %13481 = vmatprep.mubr.bf16.mxu0 %v12104_v2  ;;  %13510 = vmatpush3.bf16.msra.mxu0 %v14577_v30  ;;  %v4739_v30 = vsel %vm15198_vm6, %v4734_v55, %v4738_v43  ;;  %v4771_v2 = vor.u32 %v4770_v6, %v4767_v62  ;;  %v4795_v40 = vor.u32 %v4794_v8, %v4791_v19  ;;  %v4786_v33 = vrot.slane %v4784_v0, 5  ;;  %v5159_v19 = vld [vmem:[#allocation2 + $0x24] sm:$0xe] }
 0x256   : > { %13511 = vmatprep.subr.bf16.mxu0 %v14578_v9  ;;  %v4805_v52 = vor.u32 %v4804_v51, %v4800_v27  ;;  %v12107_v48 = vcombine.low %v4729_v28, %v4739_v30  ;;  %v4815_v44 = vrot.slane %v4813_v63, 4  ;;  %v4818_v5 = vrot.slane %v4816_v14, 5  ;;  %v5161_v63 = vld [vmem:[#allocation2 + $0x3c] sm:$0xe]  ;;  %v19573_v14 = vld [vmem:[#allocation17_spill] sm:$0xff] }
 0x257   : > { %v4824_v34 = vrot.slane %v4822_v42, 5  ;;  %v4828_v7 = vrot.slane %v4826_v37, 4  ;;  %v4796_v10 = vrot.slane %v4795_v40, 4  ;;  %v4810_v11 = vrot.slane %v4808_v16, 5 }
 0x258   : > { %v4806_v61 = vrot.slane %v4805_v52, 4  ;;  %v4787_v45 = vsel %vm15198_vm6, %v4782_v60, %v4786_v33  ;;  %v4819_v18 = vor.u32 %v4818_v5, %v4815_v44  ;;  %v4832_v58 = vshll.u32 %v16622_v29, 16  ;;  %v19575_v33 = vld [vmem:[#allocation24_spill] sm:$0xff] }
 0x259   : > { %13512 = vmatpush3.bf16.msra.mxu0 %v14578_v9  ;;  %v4772_v9 = vrot.slane %v4771_v2, 4  ;;  %v4829_v54 = vor.u32 %v4828_v7, %v4824_v34  ;;  %v4801_v49 = vsel %vm15198_vm6, %v4796_v10, %v4800_v27  ;;  %v5224_v56 = vrot.slane %v16398_v17, 5  ;;  %v19576_v10 = vld [vmem:[#allocation25_spill] sm:$0xff] }
 0x25a   : > { %v4811_v43 = vsel %vm15198_vm6, %v4806_v61, %v4810_v11  ;;  %v4820_v55 = vrot.slane %v4819_v18, 4  ;;  %v4834_v21 = vrot.slane %v4832_v58, 5  ;;  %v12120_v62 = vrot.slane %v5158_v59, 9  ;;  %v5164_v11 = vld [vmem:[#allocation2 + $0x60] sm:$0xe] }
 0x25b   : > { %v4777_v47 = vsel %vm15198_vm6, %v4772_v9, %v4776_v41  ;;  %v12110_v25 = vcombine.low %v4801_v49, %v4811_v43  ;;  %v4830_v57 = vrot.slane %v4829_v54, 4  ;;  %v5226_v39 = vrot.slane %v5224_v56, 4  ;;  %v5166_v59 = vld [vmem:[#allocation2 + $0x78] sm:$0xe] }
 0x25c   : > { %13482 = vmatmul.mubr.bf16.gmra.mrb[16].mxu0 %v12105_v22  ;;  %v12108_v22 = vcombine.low %v4753_v31, %v4763_v1  ;;  %v12109_v36 = vcombine.low %v4777_v47, %v4787_v45  ;;  %v5227_v6 = vrot.slane %v16430_v46, 5  ;;  %v4825_v29 = vsel %vm15198_vm6, %v4820_v55, %v4824_v34  ;;  %v5160_v46 = vld [vmem:[#allocation2 + $0x30] sm:$0xe] }
 0x25d   : > { %13485 = vmatprep.mubr.bf16.mxu0 %v12106_v12  ;;  %v4835_v41 = vsel %vm15198_vm6, %v4830_v57, %v4834_v21  ;;  %v5231_v17 = vrot.slane %v16411_v4, 5  ;;  %v5225_v50 = vsel %vm15605_vm13, %v12120_v62, %v5224_v56  ;;  %v5238_v8 = vrot.slane %v16464_v23, 5  ;;  %v19577_v21 = vld [vmem:[#allocation20_spill] sm:$0xff]  ;;  %v19578_v62 = vld [vmem:[#allocation21_spill] sm:$0xff] }
 0x25e   : > { %v5228_v12 = vsel %vm15605_vm13, %v5226_v39, %v5227_v6  ;;  %v12111_v27 = vcombine.low %v4825_v29, %v4835_v41  ;;  %v12121_v38 = vrot.slane %v5159_v19, 9  ;;  %v5234_v30 = vrot.slane %v16436_v20, 5  ;;  %v19580_v41 = vld [vmem:[#allocation8_spill] sm:$0xff]  ;;  %v19586_v19 = vld [vmem:[#allocation13_spill] sm:$0xff] }
 0x25f   : > { %v12152_v51 = vcombine.low %v5225_v50, %v5228_v12  ;;  %v5233_v28 = vrot.slane %v5231_v17, 4  ;;  %v12122_v0 = vrot.slane %v5160_v46, 9  ;;  %v5240_v31 = vrot.slane %v5238_v8, 4  ;;  %v19583_v50 = vld [vmem:[#allocation10_spill] sm:$0xff]  ;;  %v19584_v12 = vld [vmem:[#allocation11_spill] sm:$0xff] }
 0x260   : > { %v5241_v4 = vrot.slane %v16495_v13, 5  ;;  %v5232_v1 = vsel %vm15605_vm13, %v12121_v38, %v5231_v17  ;;  %v5245_v23 = vrot.slane %v16491_v3, 5  ;;  %v5252_v42 = vrot.slane %v19573_v14, 5  ;;  %v5162_v13 = vld [vmem:[#allocation2 + $0x48] sm:$0xe] }
 0x261   : > { %v5235_v2 = vsel %vm15605_vm13, %v5233_v28, %v5234_v30  ;;  %v5239_v32 = vsel %vm15605_vm13, %v12122_v0, %v5238_v8  ;;  %v12123_v52 = vrot.slane %v5161_v63, 9  ;;  %v12124_v9 = vrot.slane %v5162_v13, 9  ;;  %v19587_v8 = vld [vmem:[#allocation14_spill] sm:$0xff]  ;;  %v19593_v30 = vld [vmem:[#allocation19_spill] sm:$0xff]  ;;  %v19602_v63 = vld [vmem:[#allocation29_spill] sm:$0xff] }
 0x262   : > { %v5242_v20 = vsel %vm15605_vm13, %v5240_v31, %v5241_v4  ;;  %v12153_v37 = vcombine.low %v5232_v1, %v5235_v2  ;;  %v5247_v16 = vrot.slane %v5245_v23, 4  ;;  %v5254_v60 = vrot.slane %v5252_v42, 4  ;;  %v19592_v28 = vld [vmem:[#allocation18_spill] sm:$0xff]  ;;  %v19596_v4 = vld [vmem:[#allocation23_spill] sm:$0xff]  ;;  %v14579_v13 = vld [vmem:[%s19370_s3 + $0x20] sm:$0xff]  }
 0x263   : > { %v12154_v40 = vcombine.low %v5239_v32, %v5242_v20  ;;  %v5255_v3 = vrot.slane %v19575_v33, 5  ;;  %v5246_v44 = vsel %vm15605_vm13, %v12123_v52, %v5245_v23  ;;  %v5253_v34 = vsel %vm15605_vm13, %v12124_v9, %v5252_v42  ;;  %v19595_v31 = vld [vmem:[#allocation22_spill] sm:$0xff]  ;;  %v19599_v23 = vld [vmem:[#allocation27_spill] sm:$0xff]  ;;  %v19601_v20 = vld [vmem:[#allocation28_spill] sm:$0xff]  ;;  %13545 = vmatprep.subr.bf16.mxu1 %v14579_v13 }
 0x264   : > { %13486 = vmatmul.mubr.bf16.gmra.mrb[20].mxu0 %v12107_v48  ;;  %v19574_v48 = vld [vmem:[#allocation12_spill] sm:$0xff]  ;;  %v5266_v61 = vrot.slane %v19576_v10, 5  ;;  %v12126_v18 = vrot.slane %v5164_v11, 9  ;;  %v5269_v58 = vrot.slane %v16669_v24, 5  ;;  %v5280_v56 = vrot.slane %v16685_v53, 5  ;;  %v19581_v53 = vld [vmem:[#allocation9_spill] sm:$0xff]  ;;  %13546 = vmatpush3.bf16.msra.mxu1 %v14579_v13 }
 0x265   : > { %13489 = vmatprep.mubr.bf16.mxu0 %v12108_v22  ;;  %v5248_v22 = vrot.slane %v19574_v48, 5  ;;  %v5256_v7 = vsel %vm15605_vm13, %v5254_v60, %v5255_v3  ;;  %v5283_v57 = vrot.slane %v16722_v35, 5  ;;  %v19579_v39 = vcombine.low %v19577_v21, %v19578_v62  ;;  %v19598_v2 = vld [vmem:[#allocation26_spill] sm:$0xff]  ;;  %v14582_v11 = vld [vmem:[%s19370_s3 + $0x38] sm:$0xff]  }
 0x266   : > { %v12156_v45 = vcombine.low %v5253_v34, %v5256_v7  ;;  %v5268_v54 = vrot.slane %v5266_v61, 4  ;;  %v5267_v49 = vsel %vm15605_vm13, %v12126_v18, %v5266_v61  ;;  %v5282_v55 = vrot.slane %v5280_v56, 4 }
 0x267   : > { %v5249_v5 = vsel %vm15605_vm13, %v5247_v16, %v5248_v22  ;;  %v19582_v17 = vcombine.low %v19580_v41, %v19581_v53  ;;  %v19585_v35 = vcombine.low %v19583_v50, %v19584_v12  ;;  %v19588_v46 = vcombine.low %v19586_v19, %v19587_v8 }
 0x268   : > { %v12155_v47 = vcombine.low %v5246_v44, %v5249_v5  ;;  %v5270_v43 = vsel %vm15605_vm13, %v5268_v54, %v5269_v58  ;;  %v5284_v6 = vsel %vm15605_vm13, %v5282_v55, %v5283_v57  ;;  %v19594_v0 = vcombine.low %v19592_v28, %v19593_v30 }
 0x269   : > { %v19597_v1 = vcombine.low %v19595_v31, %v19596_v4  ;;  %v19600_v32 = vcombine.low %v19598_v2, %v19599_v23  ;;  %v19603_v14 = vcombine.low %v19601_v20, %v19602_v63  ;;  %v19604_v42 = vmov 0  }
 0x26a   : > { %5926 = vst.msk [vmem:[#allocation3 + $0x18] sm:$0xf] %vm5918_vm14, %v19604_v42  ;;  %5919 = vst.msk [vmem:[#allocation3] sm:$0xf] %vm5918_vm14, %v19604_v42 }
 0x26b   : > { %5920 = vst.msk [vmem:[#allocation3 + $0x4] sm:$0xf] %vm5918_vm14, %v19604_v42  ;;  %5923 = vst.msk [vmem:[#allocation3 + $0xc] sm:$0xf] %vm5918_vm14, %v19604_v42 }
 0x26c   : > { %13490 = vmatmul.mubr.bf16.gmra.mrb[24].mxu0 %v12109_v36  ;;  %v12158_v36 = vcombine.low %v5267_v49, %v5270_v43  ;;  %5924 = vst.msk [vmem:[#allocation3 + $0x10] sm:$0xf] %vm5918_vm14, %v19604_v42  ;;  %5927 = vst.msk [vmem:[#allocation3 + $0x1c] sm:$0xf] %vm5918_vm14, %v19604_v42  ;;  %v17013_v43 = vld [vmem:[%s19369_s2] ss:$0 sm:$0xff] }
 0x26d   : > { %13493 = vmatprep.mubr.bf16.mxu0 %v12110_v25  ;;  %v12128_v25 = vrot.slane %v5166_v59, 9  ;;  %5929 = vst.msk [vmem:[#allocation3 + $0x24] sm:$0xf] %vm5918_vm14, %v19604_v42  ;;  %5930 = vst.msk [vmem:[#allocation3 + $0x28] sm:$0xf] %vm5918_vm14, %v19604_v42 }
 0x26e   : > { %5932 = vst.msk [vmem:[#allocation3 + $0x30] sm:$0xf] %vm5918_vm14, %v19604_v42  ;;  %5933 = vst.msk [vmem:[#allocation3 + $0x34] sm:$0xf] %vm5918_vm14, %v19604_v42 }
 0x26f   : > { %v5281_v24 = vsel %vm15605_vm13, %v12128_v25, %v5280_v56  ;;  %5935 = vst.msk [vmem:[#allocation3 + $0x3c] sm:$0xf] %vm5918_vm14, %v19604_v42  ;;  %5936 = vst.msk [vmem:[#allocation3 + $0x40] sm:$0xf] %vm5918_vm14, %v19604_v42 }
 0x270   : > { %v12160_v29 = vcombine.low %v5281_v24, %v5284_v6  ;;  %5938 = vst.msk [vmem:[#allocation3 + $0x48] sm:$0xf] %vm5918_vm14, %v19604_v42  ;;  %5939 = vst.msk [vmem:[#allocation3 + $0x4c] sm:$0xf] %vm5918_vm14, %v19604_v42 }
 0x271   : > { %5941 = vst.msk [vmem:[#allocation3 + $0x54] sm:$0xf] %vm5918_vm14, %v19604_v42  ;;  %5942 = vst.msk [vmem:[#allocation3 + $0x58] sm:$0xf] %vm5918_vm14, %v19604_v42  ;;  %v6508_v52 = vld [vmem:[#allocation3] sm:$0xf] }
 0x272   : > { %5944 = vst.msk [vmem:[#allocation3 + $0x60] sm:$0xf] %vm5918_vm14, %v19604_v42  ;;  %5945 = vst.msk [vmem:[#allocation3 + $0x64] sm:$0xf] %vm5918_vm14, %v19604_v42  ;;  %v6509_v16 = vld [vmem:[#allocation3 + $0x4] sm:$0xf] }
 0x273   : > { %5947 = vst.msk [vmem:[#allocation3 + $0x6c] sm:$0xf] %vm5918_vm14, %v19604_v42  ;;  %5948 = vst.msk [vmem:[#allocation3 + $0x70] sm:$0xf] %vm5918_vm14, %v19604_v42  ;;  %v6565_v48 = vshrl.u32 %v6508_v52, 16  ;;  %v6568_v22 = vshll.u32 %v6508_v52, 16 }
 0x274   : > { %13494 = vmatmul.mubr.bf16.gmra.mrb[28].mxu0 %v12111_v27  ;;  %v19589_v27 = vld [vmem:[#allocation15_spill] sm:$0xff]  ;;  %5950 = vst.msk [vmem:[#allocation3 + $0x78] sm:$0xf] %vm5918_vm14, %v19604_v42  ;;  %5951 = vst.msk [vmem:[#allocation3 + $0x7c] sm:$0xf] %vm5918_vm14, %v19604_v42  ;;  %v6574_v9 = vshll.u32 %v6509_v16, 16 }
 0x275   : > { %13513 = vmatprep.mubr.bf16.mxu0 %v12152_v51  ;;  %v19590_v51 = vld [vmem:[#allocation16_spill] sm:$0xff]  ;;  %5953 = vst.msk [vmem:[#allocation3 + $0x84] sm:$0xf] %vm5918_vm14, %v19604_v42  ;;  %5954 = vst.msk [vmem:[#allocation3 + $0x88] sm:$0xf] %vm5918_vm14, %v19604_v42  ;;  %v6578_v60 = vshrl.u32 %v6509_v16, 16 }
 0x276   : > { %v19591_v38 = vcombine.low %v19589_v27, %v19590_v51  ;;  %5956 = vst.msk [vmem:[#allocation3 + $0x90] sm:$0xf] %vm5918_vm14, %v19604_v42  ;;  %5957 = vst.msk [vmem:[#allocation3 + $0x94] sm:$0xf] %vm5918_vm14, %v19604_v42  ;;  %v6567_v33 = vrot.slane %v6565_v48, 4  ;;  %v6570_v3 = vrot.slane %v6568_v22, 5 }
 0x277   : > { %5959 = vst.msk [vmem:[#allocation3 + $0x9c] sm:$0xf] %vm5918_vm14, %v19604_v42  ;;  %5960 = vst.msk [vmem:[#allocation3 + $0xa0] sm:$0xf] %vm5918_vm14, %v19604_v42  ;;  %v6576_v44 = vrot.slane %v6574_v9, 5  ;;  %v6580_v5 = vrot.slane %v6578_v60, 4 }
 0x278   : > { %5962 = vst.msk [vmem:[#allocation3 + $0xa8] sm:$0xf] %vm5918_vm14, %v19604_v42  ;;  %5963 = vst.msk [vmem:[#allocation3 + $0xac] sm:$0xf] %vm5918_vm14, %v19604_v42  ;;  %v6571_v7 = vor.u32 %v6570_v3, %v6567_v33 }
 0x279   : > { %5965 = vst.msk [vmem:[#allocation3 + $0xb4] sm:$0xf] %vm5918_vm14, %v19604_v42  ;;  %5966 = vst.msk [vmem:[#allocation3 + $0xb8] sm:$0xf] %vm5918_vm14, %v19604_v42  ;;  %v6581_v10 = vor.u32 %v6580_v5, %v6576_v44 }
 0x27a   : > { %5968 = vst.msk [vmem:[#allocation3 + $0xc0] sm:$0xf] %vm5918_vm14, %v19604_v42  ;;  %5969 = vst.msk [vmem:[#allocation3 + $0xc4] sm:$0xf] %vm5918_vm14, %v19604_v42 }
 0x27b   : > { %5971 = vst.msk [vmem:[#allocation3 + $0xcc] sm:$0xf] %vm5918_vm14, %v19604_v42  ;;  %5972 = vst.msk [vmem:[#allocation3 + $0xd0] sm:$0xf] %vm5918_vm14, %v19604_v42 }
 0x27c   : > { %13514 = vmatmul.mubr.bf16.vlgmr.msra.gmra.mrb[0].mxu0 %v12153_v37  ;;  %5928 = vst.msk [vmem:[#allocation3 + $0x20] sm:$0x1] %vm5921_vm15, %v19604_v42  ;;  %5922 = vst.msk [vmem:[#allocation3 + $0x8] sm:$0x1] %vm5921_vm15, %v19604_v42  ;;  %v14580_v37 = vld [vmem:[%s19370_s3 + $0x28] sm:$0xff]  }
 0x27d   : > { %13517 = vmatprep.mubr.bf16.mxu0 %v12154_v40  ;;  %5925 = vst.msk [vmem:[#allocation3 + $0x14] sm:$0x1] %vm5921_vm15, %v19604_v42  ;;  %5931 = vst.msk [vmem:[#allocation3 + $0x2c] sm:$0x1] %vm5921_vm15, %v19604_v42  ;;  %13547 = vmatprep.subr.bf16.mxu1 %v14580_v37  ;;  %v14581_v40 = vld [vmem:[%s19370_s3 + $0x30] sm:$0xff]  }
 0x27e   : > { %5934 = vst.msk [vmem:[#allocation3 + $0x38] sm:$0x1] %vm5921_vm15, %v19604_v42  ;;  %5937 = vst.msk [vmem:[#allocation3 + $0x44] sm:$0x1] %vm5921_vm15, %v19604_v42  ;;  %13548 = vmatpush3.bf16.msra.mxu1 %v14580_v37 }
 0x27f   : > { %5940 = vst.msk [vmem:[#allocation3 + $0x50] sm:$0x1] %vm5921_vm15, %v19604_v42  ;;  %5943 = vst.msk [vmem:[#allocation3 + $0x5c] sm:$0x1] %vm5921_vm15, %v19604_v42  ;;  %13549 = vmatprep.subr.bf16.mxu1 %v14581_v40 }
 0x280   : > { %5946 = vst.msk [vmem:[#allocation3 + $0x68] sm:$0x1] %vm5921_vm15, %v19604_v42  ;;  %5949 = vst.msk [vmem:[#allocation3 + $0x74] sm:$0x1] %vm5921_vm15, %v19604_v42 }
 0x281   : > { %5952 = vst.msk [vmem:[#allocation3 + $0x80] sm:$0x1] %vm5921_vm15, %v19604_v42  ;;  %5955 = vst.msk [vmem:[#allocation3 + $0x8c] sm:$0x1] %vm5921_vm15, %v19604_v42 }
 0x282   : > { %5958 = vst.msk [vmem:[#allocation3 + $0x98] sm:$0x1] %vm5921_vm15, %v19604_v42  ;;  %5961 = vst.msk [vmem:[#allocation3 + $0xa4] sm:$0x1] %vm5921_vm15, %v19604_v42  ;;  %13550 = vmatpush3.bf16.msra.mxu1 %v14581_v40 }
 0x283   : > { %5964 = vst.msk [vmem:[#allocation3 + $0xb0] sm:$0x1] %vm5921_vm15, %v19604_v42  ;;  %5967 = vst.msk [vmem:[#allocation3 + $0xbc] sm:$0x1] %vm5921_vm15, %v19604_v42  ;;  %v6548_v34 = vld [vmem:[#allocation3 + $0x8] sm:$0x1]  ;;  %13551 = vmatprep.subr.bf16.mxu1 %v14582_v11 }
 0x284   : > { %13518 = vmatmul.mubr.bf16.gmra.mrb[4].mxu0 %v12155_v47  ;;  %5970 = vst.msk [vmem:[#allocation3 + $0xc8] sm:$0x1] %vm5921_vm15, %v19604_v42  ;;  %5973 = vst.msk [vmem:[#allocation3 + $0xd4] sm:$0x1] %vm5921_vm15, %v19604_v42  ;;  %v6584_v61 = vshll.u32 %v6548_v34, 16  ;;  %v6572_v47 = vrot.slane %v6571_v7, 4 }
 0x285   : > { %13521 = vmatprep.mubr.bf16.mxu0 %v12156_v45  ;;  %v6582_v45 = vrot.slane %v6581_v10, 4 }
 0x286   : > { %v6586_v18 = vrot.slane %v6584_v61, 5  ;;  %v6577_v54 = vsel %vm15198_vm6, %v6572_v47, %v6576_v44  ;;  %13552 = vmatpush3.bf16.msra.mxu1 %v14582_v11  ;;  %v14583_v47 = vld [vmem:[%s19370_s3] sm:$0xff]  }
 0x287   : > { %13585 = vmatprep.subr.bf16.mxu1 %v14583_v47 }
 0x288   : > { %v6587_v58 = vsel %vm15198_vm6, %v6582_v45, %v6586_v18 }
 0x289   : > { %v12217_v49 = vcombine.low %v6577_v54, %v6587_v58 }
 0x28b   : > { %13553 = vmatprep.mubr.msk.bf16.mxu1 %vm7029_vm0, %v12217_v49 }
 0x28c   : > { %13522 = vmatmul.mubr.bf16.gmra.mrb[8].mxu0 %v19579_v39 }
 0x28d   : > { %13525 = vmatprep.mubr.bf16.mxu0 %v12158_v36 }
 0x294   : > { %13526 = vmatmul.mubr.bf16.gmra.mrb[12].mxu0 %v19582_v17 }
 0x295   : > { %13529 = vmatprep.mubr.bf16.mxu0 %v12160_v29 }
 0x29c   : > { %13530 = vmatmul.mubr.bf16.gmra.mrb[16].mxu0 %v19585_v35 }
 0x29d   : > { %13533 = vmatprep.mubr.bf16.mxu0 %v19588_v46 }
 0x2a4   : > { %13534 = vmatmul.mubr.bf16.gmra.mrb[20].mxu0 %v19591_v38 }
 0x2a5   : > { %13537 = vmatprep.mubr.bf16.mxu0 %v19594_v0 }
 0x2ac   : > { %13538 = vmatmul.mubr.bf16.gmra.mrb[24].mxu0 %v19597_v1 }
 0x2ad   : > { %13541 = vmatprep.mubr.bf16.mxu0 %v19600_v32 }
 0x2b4   : > { %13542 = vmatmul.mubr.bf16.gmra.mrb[28].mxu0 %v19603_v14 }
 0x34f   : > { %v13515_v56 = vpop.f32.mrb[0].mxu0 }
 0x350   : > { %v17016_v59 = vadd.f32 %v13515_v56, %v17013_v43  ;;  %v5497_v36 = vpop.f32.mrb[1].mxu0 }
 0x351   : > { %v17019_v25 = vadd.f32 %v17013_v43, %v5497_v36  ;;  %v13516_v55 = vpop.f32.mrb[2].mxu0 }
 0x352   : > { %v5696_v57 = vsub.f32 0.0, %v17016_v59  ;;  %v17023_v21 = vadd.f32 %v13516_v55, %v17013_v43  ;;  %v5500_v62 = vpop.f32.mrb[3].mxu0 }
 0x353   : > { %v5694_v39 = vsub.f32 0.0, %v17019_v25  ;;  %v17027_v24 = vadd.f32 %v17013_v43, %v5500_v62 }
 0x354   : > { %v5730_v6 = vmul.f32 1.442695, %v5696_v57  ;;  %v5697_v29 = vsub.f32 0.0, %v17023_v21 }
 0x355   : > { %v5726_v41 = vmul.f32 1.442695, %v5694_v39  ;;  %v5695_v53 = vsub.f32 0.0, %v17027_v24 }
 0x356   : > { %14663 = vpow2.f32 %v5730_v6  ;;  %v5732_v17 = vmul.f32 1.442695, %v5697_v29 }
 0x357   : > { %14665 = vpow2.f32 %v5726_v41  ;;  %v5728_v50 = vmul.f32 1.442695, %v5695_v53  ;;  %v13519_v12 = vpop.f32.mrb[4].mxu0 }
 0x358   : > { %14667 = vpow2.f32 %v5732_v17  ;;  %v17032_v35 = vadd.f32 %v13519_v12, %v17013_v43  ;;  %v5513_v19 = vpop.f32.mrb[5].mxu0 }
 0x359   : > { %14669 = vpow2.f32 %v5728_v50  ;;  %v17035_v8 = vadd.f32 %v17013_v43, %v5513_v19  ;;  %v13520_v46 = vpop.f32.mrb[6].mxu0 }
 0x35a   : > { %v5700_v27 = vsub.f32 0.0, %v17032_v35  ;;  %v17039_v51 = vadd.f32 %v13520_v46, %v17013_v43  ;;  %v5516_v38 = vpop.f32.mrb[7].mxu0 }
 0x35b   : > { %v5698_v28 = vsub.f32 0.0, %v17035_v8  ;;  %v17043_v30 = vadd.f32 %v17013_v43, %v5516_v38 }
 0x35c   : > { %v5738_v0 = vmul.f32 1.442695, %v5700_v27  ;;  %v5701_v31 = vsub.f32 0.0, %v17039_v51 }
 0x35d   : > { %v5734_v4 = vmul.f32 1.442695, %v5698_v28  ;;  %v5699_v1 = vsub.f32 0.0, %v17043_v30 }
 0x35e   : > { %14671 = vpow2.f32 %v5738_v0  ;;  %v5740_v2 = vmul.f32 1.442695, %v5701_v31 }
 0x35f   : > { %14673 = vpow2.f32 %v5734_v4  ;;  %v5736_v23 = vmul.f32 1.442695, %v5699_v1  ;;  %v13523_v32 = vpop.f32.mrb[8].mxu0 }
 0x360   : > { %v14664_v20 = vpop.eup %14663  ;;  %14675 = vpow2.f32 %v5740_v2  ;;  %v17048_v63 = vadd.f32 %v13523_v32, %v17013_v43  ;;  %v5529_v14 = vpop.f32.mrb[9].mxu0 }
 0x361   : > { %v14666_v42 = vpop.eup %14665  ;;  %v5792_v13 = vadd.f32 1.0, %v14664_v20  ;;  %14677 = vpow2.f32 %v5736_v23  ;;  %v17051_v37 = vadd.f32 %v17013_v43, %v5529_v14  ;;  %v13524_v40 = vpop.f32.mrb[10].mxu0 }
 0x362   : > { %v14668_v52 = vpop.eup %14667  ;;  %v5790_v16 = vadd.f32 1.0, %v14666_v42  ;;  %v5704_v48 = vsub.f32 0.0, %v17048_v63  ;;  %v17055_v22 = vadd.f32 %v13524_v40, %v17013_v43  ;;  %v5532_v9 = vpop.f32.mrb[11].mxu0 }
 0x363   : > { %v14670_v60 = vpop.eup %14669  ;;  %14679 = vrcp.f32 %v5792_v13  ;;  %v5793_v33 = vadd.f32 1.0, %v14668_v52  ;;  %v5702_v3 = vsub.f32 0.0, %v17051_v37  ;;  %v17059_v44 = vadd.f32 %v17013_v43, %v5532_v9 }
 0x364   : > { %14681 = vrcp.f32 %v5790_v16  ;;  %v5791_v5 = vadd.f32 1.0, %v14670_v60  ;;  %v5746_v34 = vmul.f32 1.442695, %v5704_v48  ;;  %v5705_v7 = vsub.f32 0.0, %v17055_v22 }
 0x365   : > { %14683 = vrcp.f32 %v5793_v33  ;;  %v5742_v10 = vmul.f32 1.442695, %v5702_v3  ;;  %v5703_v61 = vsub.f32 0.0, %v17059_v44 }
 0x366   : > { %14685 = vrcp.f32 %v5791_v5  ;;  %v5748_v11 = vmul.f32 1.442695, %v5705_v7 }
 0x367   : > { %14687 = vpow2.f32 %v5746_v34  ;;  %v5744_v45 = vmul.f32 1.442695, %v5703_v61  ;;  %v13527_v18 = vpop.f32.mrb[12].mxu0 }
 0x368   : > { %v14672_v54 = vpop.eup %14671  ;;  %14689 = vpow2.f32 %v5742_v10  ;;  %v17067_v58 = vadd.f32 %v13527_v18, %v17013_v43  ;;  %v5545_v49 = vpop.f32.mrb[13].mxu0 }
 0x369   : > { %v14674_v56 = vpop.eup %14673  ;;  %v5796_v36 = vadd.f32 1.0, %v14672_v54  ;;  %14691 = vpow2.f32 %v5748_v11  ;;  %v17070_v55 = vadd.f32 %v17013_v43, %v5545_v49  ;;  %v13528_v57 = vpop.f32.mrb[14].mxu0 }
 0x36a   : > { %v14676_v62 = vpop.eup %14675  ;;  %v5794_v39 = vadd.f32 1.0, %v14674_v56  ;;  %14693 = vpow2.f32 %v5744_v45  ;;  %v5708_v6 = vsub.f32 0.0, %v17067_v58  ;;  %v17074_v29 = vadd.f32 %v13528_v57, %v17013_v43  ;;  %v5548_v41 = vpop.f32.mrb[15].mxu0  ;;  %v6402_v56 = vld [vmem:[#allocation3 + $0x18] sm:$0xf] }
 0x36b   : > { %v14678_v53 = vpop.eup %14677  ;;  %14695 = vrcp.f32 %v5796_v36  ;;  %v5797_v17 = vadd.f32 1.0, %v14676_v62  ;;  %v5706_v50 = vsub.f32 0.0, %v17070_v55  ;;  %v17078_v12 = vadd.f32 %v17013_v43, %v5548_v41 }
 0x36c   : > { %14697 = vrcp.f32 %v5794_v39  ;;  %v5795_v19 = vadd.f32 1.0, %v14678_v53  ;;  %v5754_v46 = vmul.f32 1.442695, %v5708_v6  ;;  %v5709_v27 = vsub.f32 0.0, %v17074_v29  ;;  %v6393_v53 = vld [vmem:[#allocation3 + $0xc] sm:$0xf] }
 0x36d   : > { %v14680_v38 = vpop.eup %14679  ;;  %14699 = vrcp.f32 %v5797_v17  ;;  %v5750_v28 = vmul.f32 1.442695, %v5706_v50  ;;  %v5707_v0 = vsub.f32 0.0, %v17078_v12 }
 0x36e   : > { %v14682_v31 = vpop.eup %14681  ;;  %v5888_v4 = vmul.f32 %v14680_v38, %v17016_v59  ;;  %14701 = vrcp.f32 %v5795_v19  ;;  %v5756_v1 = vmul.f32 1.442695, %v5709_v27 }
 0x36f   : > { %v14684_v2 = vpop.eup %14683  ;;  %v5886_v23 = vmul.f32 %v14682_v31, %v17019_v25  ;;  %14703 = vpow2.f32 %v5754_v46  ;;  %v13531_v32 = vpop.f32.mrb[16].mxu0  ;;  %v17085_v13 = vmul.f32 1.442695, %v5707_v0 }
 0x370   : > { %v14686_v20 = vpop.eup %14685  ;;  %v12686_v14 = vpack.c.bf16 %v5888_v4, %v5888_v4  ;;  %v5889_v42 = vmul.f32 %v14684_v2, %v17023_v21  ;;  %14705 = vpow2.f32 %v5750_v28  ;;  %v17087_v40 = vpop.f32.mrb[17].mxu0  ;;  %v17091_v48 = vadd.f32 %v13531_v32, %v17013_v43  ;;  %v6406_v28 = vld [vmem:[#allocation3 + $0x20] sm:$0x1]  ;;  %v6399_v32 = vld [vmem:[#allocation3 + $0x14] sm:$0x1] }
 0x371   : > { %v14688_v52 = vpop.eup %14687  ;;  %v12684_v16 = vpack.c.bf16 %v5886_v23, %v5886_v23  ;;  %v5887_v59 = vmul.f32 %v14686_v20, %v17027_v24  ;;  %14707 = vpow2.f32 %v5756_v1  ;;  %v17093_v25 = vpop.f32.mrb[18].mxu0 }
 0x372   : > { %v14690_v9 = vpop.eup %14689  ;;  %v6088_v60 = vshrl.u32 %v12686_v14, 16  ;;  %v6091_v33 = vshll.u32 %v12686_v14, 16  ;;  %v12687_v3 = vpack.c.bf16 %v5889_v42, %v5889_v42  ;;  %v5800_v21 = vadd.f32 1.0, %v14688_v52  ;;  %v17095_v5 = vpop.f32.mrb[19].mxu0 }
 0x373   : > { %v17097_v34 = vpop.eup %14691  ;;  %v6071_v7 = vshrl.u32 %v12684_v16, 16  ;;  %v6074_v10 = vshll.u32 %v12684_v16, 16  ;;  %v12685_v61 = vpack.c.bf16 %v5887_v59, %v5887_v59  ;;  %v5798_v11 = vadd.f32 1.0, %v14690_v9 }
 0x374   : > { %v14694_v24 = vpop.eup %14693  ;;  %v6090_v47 = vrot.slane %v6088_v60, 7  ;;  %v6096_v45 = vshrl.u32 %v12687_v3, 16  ;;  %v6099_v18 = vshll.u32 %v12687_v3, 16  ;;  %14709 = vrcp.f32 %v5800_v21 }
 0x375   : > { %v14696_v54 = vpop.eup %14695  ;;  %v6073_v36 = vrot.slane %v6071_v7, 7  ;;  %v6079_v57 = vshrl.u32 %v12685_v61, 16  ;;  %v6082_v62 = vshll.u32 %v12685_v61, 16  ;;  %14711 = vrcp.f32 %v5798_v11 }
 0x376   : > { %v14698_v39 = vpop.eup %14697  ;;  %v6093_v6 = vor.u32 %v6091_v33, %v6090_v47  ;;  %v6094_v41 = vrot.slane %v6090_v47, 4  ;;  %v6098_v17 = vrot.slane %v6096_v45, 7  ;;  %v5892_v50 = vmul.f32 %v14696_v54, %v17032_v35 }
 0x377   : > { %v14700_v19 = vpop.eup %14699  ;;  %v6076_v46 = vor.u32 %v6074_v10, %v6073_v36  ;;  %v6077_v27 = vrot.slane %v6073_v36, 4  ;;  %v6081_v0 = vrot.slane %v6079_v57, 7  ;;  %v5890_v31 = vmul.f32 %v14698_v39, %v17035_v8  ;;  %v17113_v4 = vpop.f32.mrb[20].mxu0 }
 0x378   : > { %v14702_v1 = vpop.eup %14701  ;;  %v6403_v2 = vsel %vm17101_vm1, %v6093_v6, %v6402_v56  ;;  %v6101_v35 = vor.u32 %v6099_v18, %v6098_v17  ;;  %v6103_v23 = vrot.slane %v6098_v17, 4  ;;  %v12690_v20 = vpack.c.bf16 %v5892_v50, %v5892_v50  ;;  %v17117_v14 = vpop.f32.mrb[21].mxu0 }
 0x379   : > { %v14704_v42 = vpop.eup %14703  ;;  %6404 = vst [vmem:[#allocation3 + $0x18] sm:$0xf] %v6403_v2  ;;  %v6394_v52 = vsel %vm17101_vm1, %v6076_v46, %v6393_v53  ;;  %v6084_v16 = vor.u32 %v6082_v62, %v6081_v0  ;;  %v6086_v59 = vrot.slane %v6081_v0, 4  ;;  %v12688_v8 = vpack.c.bf16 %v5890_v31, %v5890_v31  ;;  %v17121_v9 = vpop.f32.mrb[22].mxu0  ;;  %v6416_v62 = vld [vmem:[#allocation3 + $0x30] sm:$0xf] }
 0x37a   : > { %v14706_v60 = vpop.eup %14705  ;;  %6395 = vst [vmem:[#allocation3 + $0xc] sm:$0xf] %v6394_v52  ;;  %v6102_v3 = vsel %vm15223_vm10, %v6094_v41, %v6101_v35  ;;  %v6407_v21 = vsel %vm17108_vm2, %v6103_v23, %v6406_v28  ;;  %v6122_v7 = vshrl.u32 %v12690_v20, 16  ;;  %v17129_v10 = vadd.f32 %v17013_v43, %v17087_v40  ;;  %v17131_v61 = vpop.f32.mrb[23].mxu0  ;;  %v6409_v46 = vld [vmem:[#allocation3 + $0x24] sm:$0xf] }
 0x37b   : > { %v14708_v11 = vpop.eup %14707  ;;  %6405 = vst.msk [vmem:[#allocation3 + $0x1c] sm:$0xf] %vm5918_vm14, %v6102_v3  ;;  %6408 = vst [vmem:[#allocation3 + $0x20] sm:$0x1] %v6407_v21  ;;  %v6085_v47 = vsel %vm15223_vm10, %v6077_v27, %v6084_v16  ;;  %v6400_v45 = vsel %vm17108_vm2, %v6086_v59, %v6399_v32  ;;  %v6125_v18 = vshll.u32 %v12690_v20, 16  ;;  %v6105_v54 = vshrl.u32 %v12688_v8, 16 }
 0x37c   : > { %6396 = vst.msk [vmem:[#allocation3 + $0x10] sm:$0xf] %vm5918_vm14, %v6085_v47  ;;  %6401 = vst [vmem:[#allocation3 + $0x14] sm:$0x1] %v6400_v45  ;;  %v6124_v56 = vrot.slane %v6122_v7, 7  ;;  %v5893_v40 = vmul.f32 %v14700_v19, %v17039_v51  ;;  %v5891_v36 = vmul.f32 %v14702_v1, %v17043_v30  ;;  %v5801_v57 = vadd.f32 1.0, %v17097_v34 }
 0x37d   : > { %v6107_v39 = vrot.slane %v6105_v54, 7  ;;  %v6108_v6 = vshll.u32 %v12688_v8, 16  ;;  %v5799_v41 = vadd.f32 1.0, %v14694_v24  ;;  %v5804_v53 = vadd.f32 1.0, %v14704_v42  ;;  %v6420_v3 = vld [vmem:[#allocation3 + $0x38] sm:$0x1] }
 0x37e   : > { %v14710_v17 = vpop.eup %14709  ;;  %v6127_v50 = vor.u32 %v6125_v18, %v6124_v56  ;;  %v12691_v27 = vpack.c.bf16 %v5893_v40, %v5893_v40  ;;  %v12689_v28 = vpack.c.bf16 %v5891_v36, %v5891_v36  ;;  %v5802_v0 = vadd.f32 1.0, %v14706_v60  ;;  %v6413_v21 = vld [vmem:[#allocation3 + $0x2c] sm:$0x1] }
 0x37f   : > { %v14712_v31 = vpop.eup %14711  ;;  %v6128_v2 = vrot.slane %v6124_v56, 4  ;;  %v6110_v35 = vor.u32 %v6108_v6, %v6107_v39  ;;  %v5896_v51 = vmul.f32 %v14710_v17, %v17048_v63  ;;  %14713 = vrcp.f32 %v5801_v57  ;;  %v17143_v30 = vpop.f32.mrb[24].mxu0 }
 0x380   : > { %v6417_v34 = vsel %vm17101_vm1, %v6127_v50, %v6416_v62  ;;  %v6111_v19 = vrot.slane %v6107_v39, 4  ;;  %v6130_v24 = vshrl.u32 %v12691_v27, 16  ;;  %v6113_v1 = vshrl.u32 %v12689_v28, 16  ;;  %v17147_v23 = vpop.f32.mrb[25].mxu0 }
 0x381   : > { %6418 = vst [vmem:[#allocation3 + $0x30] sm:$0xf] %v6417_v34  ;;  %v6410_v32 = vsel %vm17101_vm1, %v6110_v35, %v6409_v46  ;;  %v6133_v20 = vshll.u32 %v12691_v27, 16  ;;  %v12694_v42 = vpack.c.bf16 %v5896_v51, %v5896_v51  ;;  %v5894_v52 = vmul.f32 %v14712_v31, %v17051_v37  ;;  %v17152_v63 = vpop.f32.mrb[26].mxu0  ;;  %v6430_v37 = vld [vmem:[#allocation3 + $0x48] sm:$0xf] }
 0x382   : > { %6411 = vst [vmem:[#allocation3 + $0x24] sm:$0xf] %v6410_v32  ;;  %v6132_v16 = vrot.slane %v6130_v24, 7  ;;  %v6115_v59 = vrot.slane %v6113_v1, 7  ;;  %v6116_v8 = vshll.u32 %v12689_v28, 16  ;;  %14715 = vrcp.f32 %v5799_v41  ;;  %v17154_v60 = vpop.f32.mrb[27].mxu0 }
 0x383   : > { %v6156_v7 = vshrl.u32 %v12694_v42, 16  ;;  %v12692_v47 = vpack.c.bf16 %v5894_v52, %v5894_v52  ;;  %14717 = vrcp.f32 %v5804_v53  ;;  %v5805_v45 = vadd.f32 1.0, %v14708_v11  ;;  %v6423_v27 = vld [vmem:[#allocation3 + $0x3c] sm:$0xf] }
 0x384   : > { %v6135_v18 = vor.u32 %v6133_v20, %v6132_v16  ;;  %v6137_v54 = vrot.slane %v6132_v16, 4  ;;  %v6118_v56 = vor.u32 %v6116_v8, %v6115_v59  ;;  %v6120_v40 = vrot.slane %v6115_v59, 4 }
 0x385   : > { %v17156_v36 = vrot.slane %v6156_v7, 7  ;;  %v6159_v57 = vshll.u32 %v12694_v42, 16  ;;  %v6139_v62 = vshrl.u32 %v12692_v47, 16  ;;  %14719 = vrcp.f32 %v5802_v0 }
 0x386   : > { %v6136_v39 = vsel %vm15223_vm10, %v6128_v2, %v6135_v18  ;;  %v6421_v6 = vsel %vm17108_vm2, %v6137_v54, %v6420_v3  ;;  %v6119_v41 = vsel %vm15223_vm10, %v6111_v19, %v6118_v56  ;;  %v6414_v11 = vsel %vm17108_vm2, %v6120_v40, %v6413_v21 }
 0x387   : > { %6419 = vst.msk [vmem:[#allocation3 + $0x34] sm:$0xf] %vm5918_vm14, %v6136_v39  ;;  %6422 = vst [vmem:[#allocation3 + $0x38] sm:$0x1] %v6421_v6  ;;  %v6161_v53 = vor.u32 %v6159_v57, %v17156_v36  ;;  %v17169_v17 = vrot.slane %v6139_v62, 7  ;;  %v6142_v50 = vshll.u32 %v12692_v47, 16  ;;  %14721 = vrcp.f32 %v5805_v45 }
 0x388   : > { %6412 = vst.msk [vmem:[#allocation3 + $0x28] sm:$0xf] %vm5918_vm14, %v6119_v41  ;;  %6415 = vst [vmem:[#allocation3 + $0x2c] sm:$0x1] %v6414_v11  ;;  %v17171_v46 = vpop.f32.mrb[28].mxu0  ;;  %14723 = vpow2.f32 %v17085_v13  ;;  %v5712_v28 = vsub.f32 0.0, %v17091_v48  ;;  %v17178_v31 = vadd.f32 %v17093_v25, %v17013_v43  ;;  %v17188_v13 = vadd.f32 %v17013_v43, %v17095_v5 }
 0x389   : > { %v5710_v0 = vsub.f32 0.0, %v17129_v10  ;;  %v17180_v2 = vpop.f32.mrb[29].mxu0  ;;  %v14714_v35 = vpop.eup %14713  ;;  %v6162_v51 = vrot.slane %v17156_v36, 4  ;;  %v6431_v34 = vsel %vm17101_vm1, %v6161_v53, %v6430_v37  ;;  %v6144_v19 = vor.u32 %v6142_v50, %v17169_v17  ;;  %v6434_v41 = vld [vmem:[#allocation3 + $0x50] sm:$0x1] }
 0x38a   : > { %v17190_v24 = vpop.f32.mrb[30].mxu0  ;;  %6432 = vst [vmem:[#allocation3 + $0x48] sm:$0xf] %v6431_v34  ;;  %v5897_v25 = vmul.f32 %v14714_v35, %v17055_v22  ;;  %v5762_v1 = vmul.f32 1.442695, %v5712_v28  ;;  %v5713_v20 = vsub.f32 0.0, %v17178_v31  ;;  %v17201_v5 = vadd.f32 %v17113_v4, %v17013_v43 }
 0x38b   : > { %v5758_v32 = vmul.f32 1.442695, %v5710_v0  ;;  %v17194_v42 = vpop.f32.mrb[31].mxu0  ;;  %v6424_v52 = vsel %vm17101_vm1, %v6144_v19, %v6423_v27  ;;  %v5711_v16 = vsub.f32 0.0, %v17188_v13  ;;  %v17205_v59 = vadd.f32 %v17013_v43, %v17117_v14  ;;  %v6427_v35 = vld [vmem:[#allocation3 + $0x44] sm:$0x1] }
 0x38c   : > { %v14716_v22 = vpop.eup %14715  ;;  %v6145_v8 = vrot.slane %v17169_v17, 4  ;;  %6425 = vst [vmem:[#allocation3 + $0x3c] sm:$0xf] %v6424_v52  ;;  %v12695_v3 = vpack.c.bf16 %v5897_v25, %v5897_v25  ;;  %14725 = vpow2.f32 %v5762_v1  ;;  %v5764_v21 = vmul.f32 1.442695, %v5713_v20 }
 0x38d   : > { %v14718_v7 = vpop.eup %14717  ;;  %v5895_v47 = vmul.f32 %v14716_v22, %v17059_v44  ;;  %14727 = vpow2.f32 %v5758_v32  ;;  %v5760_v45 = vmul.f32 1.442695, %v5711_v16  ;;  %v5716_v18 = vsub.f32 0.0, %v17201_v5  ;;  %v6444_v16 = vld [vmem:[#allocation3 + $0x60] sm:$0xf] }
 0x38e   : > { %v6164_v4 = vshrl.u32 %v12695_v3, 16  ;;  %v5900_v54 = vmul.f32 %v14718_v7, %v17067_v58  ;;  %14729 = vpow2.f32 %v5764_v21  ;;  %v17213_v14 = vadd.f32 %v17121_v9, %v17013_v43 }
 0x38f   : > { %v14720_v56 = vpop.eup %14719  ;;  %v12693_v40 = vpack.c.bf16 %v5895_v47, %v5895_v47  ;;  %14731 = vpow2.f32 %v5760_v45  ;;  %v5770_v37 = vmul.f32 1.442695, %v5716_v18  ;;  %v5714_v36 = vsub.f32 0.0, %v17205_v59 }
 0x390   : > { %v6166_v57 = vrot.slane %v6164_v4, 7  ;;  %v6167_v44 = vshll.u32 %v12695_v3, 16  ;;  %v12698_v62 = vpack.c.bf16 %v5900_v54, %v5900_v54  ;;  %v5898_v39 = vmul.f32 %v14720_v56, %v17070_v55 }
 0x391   : > { %v14722_v6 = vpop.eup %14721  ;;  %v6147_v11 = vshrl.u32 %v12693_v40, 16  ;;  %v6150_v58 = vshll.u32 %v12693_v40, 16  ;;  %14733 = vpow2.f32 %v5770_v37  ;;  %v5766_v53 = vmul.f32 1.442695, %v5714_v36  ;;  %v6437_v36 = vld [vmem:[#allocation3 + $0x54] sm:$0xf] }
 0x392   : > { %v14724_v17 = vpop.eup %14723  ;;  %v6169_v9 = vor.u32 %v6167_v44, %v6166_v57  ;;  %v6171_v50 = vrot.slane %v6166_v57, 4  ;;  %v6190_v27 = vshrl.u32 %v12698_v62, 16  ;;  %v6193_v28 = vshll.u32 %v12698_v62, 16 }
 0x393   : > { %v6149_v0 = vrot.slane %v6147_v11, 7  ;;  %v12696_v34 = vpack.c.bf16 %v5898_v39, %v5898_v39  ;;  %v5901_v19 = vmul.f32 %v14722_v6, %v17074_v29  ;;  %v5803_v25 = vadd.f32 1.0, %v14724_v17 }
 0x394   : > { %v6170_v55 = vsel %vm15223_vm10, %v6162_v51, %v6169_v9  ;;  %v6435_v1 = vsel %vm17108_vm2, %v6171_v50, %v6434_v41  ;;  %v6192_v32 = vrot.slane %v6190_v27, 7  ;;  %14735 = vpow2.f32 %v5766_v53  ;;  %v6448_v9 = vld [vmem:[#allocation3 + $0x68] sm:$0x1] }
 0x395   : > { %6433 = vst.msk [vmem:[#allocation3 + $0x4c] sm:$0xf] %vm5918_vm14, %v6170_v55  ;;  %6436 = vst [vmem:[#allocation3 + $0x50] sm:$0x1] %v6435_v1  ;;  %v6152_v20 = vor.u32 %v6150_v58, %v6149_v0  ;;  %v6154_v52 = vrot.slane %v6149_v0, 4  ;;  %v6173_v22 = vshrl.u32 %v12696_v34, 16  ;;  %v12699_v47 = vpack.c.bf16 %v5901_v19, %v5901_v19 }
 0x396   : > { %v5717_v3 = vsub.f32 0.0, %v17213_v14  ;;  %v14726_v21 = vpop.eup %14725  ;;  %v6195_v29 = vor.u32 %v6193_v28, %v6192_v32  ;;  %v6176_v7 = vshll.u32 %v12696_v34, 16  ;;  %14737 = vrcp.f32 %v5803_v25 }
 0x397   : > { %v14728_v51 = vpop.eup %14727  ;;  %v6153_v45 = vsel %vm15223_vm10, %v6145_v8, %v6152_v20  ;;  %v6428_v18 = vsel %vm17108_vm2, %v6154_v52, %v6427_v35  ;;  %v17228_v4 = vrot.slane %v6173_v22, 7  ;;  %v5808_v54 = vadd.f32 1.0, %v14726_v21 }
 0x398   : > { %v14730_v56 = vpop.eup %14729  ;;  %6426 = vst.msk [vmem:[#allocation3 + $0x40] sm:$0xf] %vm5918_vm14, %v6153_v45  ;;  %6429 = vst [vmem:[#allocation3 + $0x44] sm:$0x1] %v6428_v18  ;;  %v6196_v40 = vrot.slane %v6192_v32, 4  ;;  %v6445_v37 = vsel %vm17101_vm1, %v6195_v29, %v6444_v16  ;;  %v6198_v57 = vshrl.u32 %v12699_v47, 16  ;;  %v17238_v50 = vadd.f32 %v17013_v43, %v17131_v61 }
 0x399   : > { %v5806_v44 = vadd.f32 1.0, %v14728_v51  ;;  %v14732_v62 = vpop.eup %14731  ;;  %6446 = vst [vmem:[#allocation3 + $0x60] sm:$0xf] %v6445_v37  ;;  %v6178_v8 = vor.u32 %v6176_v7, %v17228_v4  ;;  %v6201_v39 = vshll.u32 %v12699_v47, 16  ;;  %14739 = vrcp.f32 %v5808_v54 }
 0x39a   : > { %v5809_v6 = vadd.f32 1.0, %v14730_v56  ;;  %v6200_v41 = vrot.slane %v6198_v57, 7  ;;  %v5807_v11 = vadd.f32 1.0, %v14732_v62  ;;  %v5772_v58 = vmul.f32 1.442695, %v5717_v3 }
 0x39b   : > { %14741 = vrcp.f32 %v5806_v44  ;;  %v14734_v53 = vpop.eup %14733  ;;  %v6438_v17 = vsel %vm17101_vm1, %v6178_v8, %v6437_v36  ;;  %v17242_v27 = vadd.f32 %v17143_v30, %v17013_v43  ;;  %v5715_v34 = vsub.f32 0.0, %v17238_v50 }
 0x39c   : > { %14743 = vrcp.f32 %v5809_v6  ;;  %6439 = vst [vmem:[#allocation3 + $0x54] sm:$0xf] %v6438_v17  ;;  %v6203_v28 = vor.u32 %v6201_v39, %v6200_v41  ;;  %v6205_v0 = vrot.slane %v6200_v41, 4  ;;  %v5812_v35 = vadd.f32 1.0, %v14734_v53  ;;  %v6441_v6 = vld [vmem:[#allocation3 + $0x5c] sm:$0x1] }
 0x39d   : > { %14745 = vrcp.f32 %v5807_v11  ;;  %v5720_v19 = vsub.f32 0.0, %v17242_v27  ;;  %v17248_v25 = vadd.f32 %v17013_v43, %v17147_v23  ;;  %v17256_v1 = vadd.f32 %v17152_v63, %v17013_v43 }
 0x39e   : > { %14747 = vpow2.f32 %v5772_v58  ;;  %v14736_v61 = vpop.eup %14735  ;;  %v6204_v55 = vsel %vm15223_vm10, %v6196_v40, %v6203_v28  ;;  %v6449_v30 = vsel %vm17108_vm2, %v6205_v0, %v6448_v9  ;;  %v5768_v20 = vmul.f32 1.442695, %v5715_v34 }
 0x39f   : > { %14749 = vrcp.f32 %v5812_v35  ;;  %6447 = vst.msk [vmem:[#allocation3 + $0x64] sm:$0xf] %vm5918_vm14, %v6204_v55  ;;  %6450 = vst [vmem:[#allocation3 + $0x68] sm:$0x1] %v6449_v30  ;;  %v5810_v32 = vadd.f32 1.0, %v14736_v61  ;;  %v5718_v23 = vsub.f32 0.0, %v17248_v25  ;;  %v17263_v3 = vadd.f32 %v17013_v43, %v17154_v60 }
 0x3a0   : > { %v5778_v52 = vmul.f32 1.442695, %v5720_v19  ;;  %v14738_v16 = vpop.eup %14737  ;;  %v5721_v22 = vsub.f32 0.0, %v17256_v1  ;;  %v17267_v21 = vadd.f32 %v17171_v46, %v17013_v43  ;;  %v17272_v7 = vadd.f32 %v17013_v43, %v17180_v2  ;;  %v10077_v15 = vld [vmem:[#allocation3 + $0x60] sm:$0xf] }
 0x3a1   : > { %v5899_v63 = vmul.f32 %v14738_v16, %v17078_v12  ;;  %14751 = vrcp.f32 %v5810_v32  ;;  %v5774_v29 = vmul.f32 1.442695, %v5718_v23  ;;  %v5719_v51 = vsub.f32 0.0, %v17263_v3  ;;  %v6458_v32 = vld [vmem:[#allocation3 + $0x78] sm:$0xf] }
 0x3a2   : > { %14753 = vpow2.f32 %v5768_v20  ;;  %v5780_v47 = vmul.f32 1.442695, %v5721_v22  ;;  %v5724_v45 = vsub.f32 0.0, %v17267_v21  ;;  %v6179_v18 = vrot.slane %v17228_v4, 4 }
 0x3a3   : > { %v14740_v60 = vpop.eup %14739  ;;  %v12697_v54 = vpack.c.bf16 %v5899_v63, %v5899_v63  ;;  %14755 = vpow2.f32 %v5778_v52  ;;  %v17279_v12 = vadd.f32 %v17190_v24, %v17013_v43  ;;  %v5776_v2 = vmul.f32 1.442695, %v5719_v51  ;;  %v6451_v63 = vld [vmem:[#allocation3 + $0x6c] sm:$0xf] }
 0x3a4   : > { %v5904_v56 = vmul.f32 %v14740_v60, %v17091_v48  ;;  %14757 = vpow2.f32 %v5774_v29  ;;  %v5786_v40 = vmul.f32 1.442695, %v5724_v45  ;;  %v5722_v44 = vsub.f32 0.0, %v17272_v7 }
 0x3a5   : > { %v14742_v46 = vpop.eup %14741  ;;  %v6181_v36 = vshrl.u32 %v12697_v54, 16  ;;  %14759 = vpow2.f32 %v5780_v47  ;;  %v6184_v62 = vshll.u32 %v12697_v54, 16 }
 0x3a6   : > { %v14744_v37 = vpop.eup %14743  ;;  %v5902_v57 = vmul.f32 %v14742_v46, %v17129_v10  ;;  %v12702_v8 = vpack.c.bf16 %v5904_v56, %v5904_v56  ;;  %14761 = vpow2.f32 %v5776_v2 }
 0x3a7   : > { %v14746_v4 = vpop.eup %14745  ;;  %v5905_v39 = vmul.f32 %v14744_v37, %v17178_v31  ;;  %v6183_v24 = vrot.slane %v6181_v36, 7  ;;  %14763 = vpow2.f32 %v5786_v40 }
 0x3a8   : > { %v14748_v43 = vpop.eup %14747  ;;  %v12700_v48 = vpack.c.bf16 %v5902_v57, %v5902_v57  ;;  %v5903_v41 = vmul.f32 %v14746_v4, %v17188_v13  ;;  %v6224_v58 = vshrl.u32 %v12702_v8, 16  ;;  %v6227_v53 = vshll.u32 %v12702_v8, 16  ;;  %v6455_v4 = vld [vmem:[#allocation3 + $0x74] sm:$0x1] }
 0x3a9   : > { %v14750_v11 = vpop.eup %14749  ;;  %v12703_v10 = vpack.c.bf16 %v5905_v39, %v5905_v39  ;;  %v5813_v17 = vadd.f32 1.0, %v14748_v43  ;;  %v6186_v9 = vor.u32 %v6184_v62, %v6183_v24  ;;  %v6188_v28 = vrot.slane %v6183_v24, 4 }
 0x3aa   : > { %v6207_v0 = vshrl.u32 %v12700_v48, 16  ;;  %v6210_v35 = vshll.u32 %v12700_v48, 16  ;;  %v6226_v34 = vrot.slane %v6224_v58, 7  ;;  %v12701_v61 = vpack.c.bf16 %v5903_v41, %v5903_v41 }
 0x3ab   : > { %v6232_v19 = vshrl.u32 %v12703_v10, 16  ;;  %v6235_v31 = vshll.u32 %v12703_v10, 16  ;;  %v14752_v55 = vpop.eup %14751  ;;  %v6187_v30 = vsel %vm15223_vm10, %v6179_v18, %v6186_v9  ;;  %v6442_v13 = vsel %vm17108_vm2, %v6188_v28, %v6441_v6  ;;  %v6462_v18 = vld [vmem:[#allocation3 + $0x80] sm:$0x1]  ;;  %v6472_v28 = vld [vmem:[#allocation3 + $0x90] sm:$0xf] }
 0x3ac   : > { %v6209_v20 = vrot.slane %v6207_v0, 7  ;;  %v5908_v52 = vmul.f32 %v14750_v11, %v17201_v5  ;;  %v14754_v23 = vpop.eup %14753  ;;  %6440 = vst.msk [vmem:[#allocation3 + $0x58] sm:$0xf] %vm5918_vm14, %v6187_v30  ;;  %6443 = vst [vmem:[#allocation3 + $0x5c] sm:$0x1] %v6442_v13  ;;  %v6229_v16 = vor.u32 %v6227_v53, %v6226_v34  ;;  %v6230_v22 = vrot.slane %v6226_v34, 4 }
 0x3ad   : > { %v6234_v29 = vrot.slane %v6232_v19, 7  ;;  %v6215_v47 = vshrl.u32 %v12701_v61, 16  ;;  %v14756_v51 = vpop.eup %14755  ;;  %v6218_v54 = vshll.u32 %v12701_v61, 16  ;;  %v5906_v39 = vmul.f32 %v14752_v55, %v17205_v59  ;;  %v6510_v61 = vld [vmem:[#allocation3 + $0xc] sm:$0xf] }
 0x3ae   : > { %v6212_v45 = vor.u32 %v6210_v35, %v6209_v20  ;;  %v6213_v60 = vrot.slane %v6209_v20, 4  ;;  %v12706_v46 = vpack.c.bf16 %v5908_v52, %v5908_v52  ;;  %v14758_v56 = vpop.eup %14757  ;;  %v6459_v2 = vsel %vm17101_vm1, %v6229_v16, %v6458_v32  ;;  %v6511_v32 = vld [vmem:[#allocation3 + $0x10] sm:$0xf]  ;;  %v6465_v16 = vld [vmem:[#allocation3 + $0x84] sm:$0xf] }
 0x3af   : > { %v6237_v5 = vor.u32 %v6235_v31, %v6234_v29  ;;  %v6239_v40 = vrot.slane %v6234_v29, 4  ;;  %v6217_v37 = vrot.slane %v6215_v47, 7  ;;  %v14760_v36 = vpop.eup %14759  ;;  %6460 = vst [vmem:[#allocation3 + $0x78] sm:$0xf] %v6459_v2  ;;  %v12704_v53 = vpack.c.bf16 %v5906_v39, %v5906_v39 }
 0x3b0   : > { %v6452_v57 = vsel %vm17101_vm1, %v6212_v45, %v6451_v63  ;;  %v6258_v62 = vshrl.u32 %v12706_v46, 16  ;;  %v6261_v8 = vshll.u32 %v12706_v46, 16  ;;  %v14762_v43 = vpop.eup %14761  ;;  %14765 = vrcp.f32 %v5813_v17  ;;  %v6549_v45 = vld [vmem:[#allocation3 + $0x14] sm:$0x1] }
 0x3b1   : > { %6453 = vst [vmem:[#allocation3 + $0x6c] sm:$0xf] %v6452_v57  ;;  %v6238_v24 = vsel %vm15223_vm10, %v6230_v22, %v6237_v5  ;;  %v6463_v6 = vsel %vm17108_vm2, %v6239_v40, %v6462_v18  ;;  %v6220_v48 = vor.u32 %v6218_v54, %v6217_v37  ;;  %v6222_v41 = vrot.slane %v6217_v37, 4  ;;  %v14764_v11 = vpop.eup %14763  ;;  %v17327_v5 = vld [vmem:[#allocation3 + $0x18] sm:$0xf] }
 0x3b2   : > { %6461 = vst.msk [vmem:[#allocation3 + $0x7c] sm:$0xf] %vm5918_vm14, %v6238_v24  ;;  %6464 = vst [vmem:[#allocation3 + $0x80] sm:$0x1] %v6463_v6  ;;  %v17302_v58 = vrot.slane %v6258_v62, 7  ;;  %v5811_v10 = vadd.f32 1.0, %v14754_v23 }
 0x3b3   : > { %v6221_v59 = vsel %vm15223_vm10, %v6213_v60, %v6220_v48  ;;  %v6456_v9 = vsel %vm17108_vm2, %v6222_v41, %v6455_v4  ;;  %v5816_v0 = vadd.f32 1.0, %v14756_v51  ;;  %v5814_v35 = vadd.f32 1.0, %v14758_v56  ;;  %v17329_v57 = vld [vmem:[#allocation3 + $0x1c] sm:$0xf] }
 0x3b4   : > { %6454 = vst.msk [vmem:[#allocation3 + $0x70] sm:$0xf] %vm5918_vm14, %v6221_v59  ;;  %6457 = vst [vmem:[#allocation3 + $0x74] sm:$0x1] %v6456_v9  ;;  %v6263_v34 = vor.u32 %v6261_v8, %v17302_v58  ;;  %v6241_v19 = vshrl.u32 %v12704_v53, 16  ;;  %v5725_v17 = vsub.f32 0.0, %v17279_v12  ;;  %14767 = vrcp.f32 %v5811_v10 }
 0x3b5   : > { %v5782_v31 = vmul.f32 1.442695, %v5722_v44  ;;  %v6244_v55 = vshll.u32 %v12704_v53, 16  ;;  %v5817_v30 = vadd.f32 1.0, %v14760_v36  ;;  %v5815_v13 = vadd.f32 1.0, %v14762_v43 }
 0x3b6   : > { %v6473_v20 = vsel %vm17101_vm1, %v6263_v34, %v6472_v28  ;;  %v17315_v52 = vrot.slane %v6241_v19, 7  ;;  %14769 = vrcp.f32 %v5816_v0  ;;  %v5820_v23 = vadd.f32 1.0, %v14764_v11  ;;  %v14946_v44 = vld [vmem:[%s19369_s2] ss:$0 sm:$0xff]  ;;  %v17333_v43 = vld [vmem:[#allocation3 + $0x20] sm:$0x1] }
 0x3b7   : > { %6474 = vst [vmem:[#allocation3 + $0x90] sm:$0xf] %v6473_v20  ;;  %14771 = vrcp.f32 %v5814_v35  ;;  %v17321_v22 = vadd.f32 %v14946_v44, %v17194_v42  ;;  %v6589_v63 = vshrl.u32 %v6510_v61, 16  ;;  %v6592_v29 = vshll.u32 %v6510_v61, 16 }
 0x3b8   : > { %v6246_v47 = vor.u32 %v6244_v55, %v17315_v52  ;;  %14773 = vrcp.f32 %v5817_v30  ;;  %v5788_v51 = vmul.f32 1.442695, %v5725_v17  ;;  %v6598_v60 = vshll.u32 %v6511_v32, 16 }
 0x3b9   : > { %14775 = vrcp.f32 %v5815_v13  ;;  %v5723_v18 = vsub.f32 0.0, %v17321_v22  ;;  %v6591_v54 = vrot.slane %v6589_v63, 4  ;;  %v6594_v46 = vrot.slane %v6592_v29, 5 }
 0x3ba   : > { %v6466_v56 = vsel %vm17101_vm1, %v6246_v47, %v6465_v16  ;;  %14777 = vrcp.f32 %v5820_v23  ;;  %v6600_v2 = vrot.slane %v6598_v60, 5  ;;  %v6602_v42 = vshrl.u32 %v6511_v32, 16  ;;  %v14766_v4 = vpop.eup %14765  ;;  %v6476_v60 = vld [vmem:[#allocation3 + $0x98] sm:$0x1] }
 0x3bb   : > { %6467 = vst [vmem:[#allocation3 + $0x84] sm:$0xf] %v6466_v56  ;;  %14779 = vpow2.f32 %v5782_v31  ;;  %v5784_v40 = vmul.f32 1.442695, %v5723_v18  ;;  %v6595_v37 = vor.u32 %v6594_v46, %v6591_v54  ;;  %v6608_v36 = vshll.u32 %v6549_v45, 16 }
 0x3bc   : > { %v6264_v62 = vrot.slane %v17302_v58, 4  ;;  %v6247_v8 = vrot.slane %v17315_v52, 4  ;;  %14781 = vpow2.f32 %v5788_v51  ;;  %v6604_v39 = vrot.slane %v6602_v42, 4  ;;  %v14586_v52 = vld [vmem:[%s19370_s3 + $0x18] sm:$0xff]  }
 0x3bd   : > { %v5909_v24 = vmul.f32 %v14766_v4, %v17213_v14  ;;  %14783 = vpow2.f32 %v5784_v40  ;;  %v6596_v6 = vrot.slane %v6595_v37, 4  ;;  %v6610_v48 = vrot.slane %v6608_v36, 5 }
 0x3be   : > { %v6605_v41 = vor.u32 %v6604_v39, %v6600_v2  ;;  %v6613_v11 = vshrl.u32 %v17327_v5, 16  ;;  %v6616_v53 = vshll.u32 %v17327_v5, 16  ;;  %v6622_v10 = vshll.u32 %v17329_v57, 16  ;;  %v14768_v59 = vpop.eup %14767 }
 0x3bf   : > { %v12707_v58 = vpack.c.bf16 %v5909_v24, %v5909_v24  ;;  %v6601_v9 = vsel %vm15198_vm6, %v6596_v6, %v6600_v2  ;;  %v6626_v28 = vshrl.u32 %v17329_v57, 16  ;;  %v6632_v0 = vshll.u32 %v17333_v43, 16  ;;  %v14947_v6 = vld [vmem:[%s19370_s3] sm:$0xff]  }
 0x3c0   : > { %v14770_v14 = vpop.eup %14769  ;;  %v5907_v35 = vmul.f32 %v14768_v59, %v17238_v50  ;;  %v6606_v34 = vrot.slane %v6605_v41, 4  ;;  %v17344_v19 = vrot.slane %v6613_v11, 4  ;;  %v17346_v31 = vrot.slane %v6616_v53, 5  ;;  %v6469_v11 = vld [vmem:[#allocation3 + $0x8c] sm:$0x1]  ;;  %v14585_v59 = vld [vmem:[%s19370_s3 + $0x10] sm:$0xff]  }
 0x3c1   : > { %v14772_v17 = vpop.eup %14771  ;;  %v6266_v61 = vshrl.u32 %v12707_v58, 16  ;;  %v6269_v55 = vshll.u32 %v12707_v58, 16  ;;  %v5912_v30 = vmul.f32 %v14770_v14, %v17242_v27  ;;  %v17349_v13 = vrot.slane %v6622_v10, 5  ;;  %v14584_v27 = vld [vmem:[%s19370_s3 + $0x8] sm:$0xff]   ;;  %v6486_v14 = vld [vmem:[#allocation3 + $0xa8] sm:$0xf] }
 0x3c2   : > { %v14774_v32 = vpop.eup %14773  ;;  %v12705_v20 = vpack.c.bf16 %v5907_v35, %v5907_v35  ;;  %v5910_v23 = vmul.f32 %v14772_v17, %v17248_v25  ;;  %v6611_v16 = vsel %vm15198_vm6, %v6606_v34, %v6610_v48  ;;  %v6619_v50 = vor.u32 %v17346_v31, %v17344_v19  ;;  %v17408_v19 = vld [vmem:[%s19370_s3 + $0x40] sm:$0xff]  }
 0x3c3   : > { %v14776_v44 = vpop.eup %14775  ;;  %v6268_v63 = vrot.slane %v6266_v61, 7  ;;  %v12710_v29 = vpack.c.bf16 %v5912_v30, %v5912_v30  ;;  %v5913_v47 = vmul.f32 %v14774_v32, %v17256_v1  ;;  %v12218_v51 = vcombine.low %v6601_v9, %v6611_v16  ;;  %v6479_v61 = vld [vmem:[#allocation3 + $0x9c] sm:$0xf] }
 0x3c4   : > { %v14778_v45 = vpop.eup %14777  ;;  %v6249_v18 = vshrl.u32 %v12705_v20, 16  ;;  %v6252_v25 = vshll.u32 %v12705_v20, 16  ;;  %v12708_v54 = vpack.c.bf16 %v5910_v23, %v5910_v23  ;;  %v5911_v46 = vmul.f32 %v14776_v44, %v17263_v3 }
 0x3c5   : > { %v14780_v56 = vpop.eup %14779  ;;  %v6271_v2 = vor.u32 %v6269_v55, %v6268_v63  ;;  %v6273_v42 = vrot.slane %v6268_v63, 4  ;;  %v6292_v40 = vshrl.u32 %v12710_v29, 16  ;;  %v6295_v37 = vshll.u32 %v12710_v29, 16  ;;  %13554 = vmatmul.mubr.msk.bf16.vlgmr.msra.gmra.mrb[0].mxu1 %vm7029_vm0, %v12218_v51  ;;  %v6490_v29 = vld [vmem:[#allocation3 + $0xb0] sm:$0x1] }
 0x3c6   : > { %v14782_v1 = vpop.eup %14781  ;;  %v6251_v36 = vrot.slane %v6249_v18, 7  ;;  %v6275_v4 = vshrl.u32 %v12708_v54, 16  ;;  %v6278_v39 = vshll.u32 %v12708_v54, 16  ;;  %v12711_v24 = vpack.c.bf16 %v5913_v47, %v5913_v47  ;;  %13586 = vmatpush3.bf16.msra.mxu1 %v14947_v6 }
 0x3c7   : > { %v14784_v48 = vpop.eup %14783  ;;  %v6272_v3 = vsel %vm15223_vm10, %v6264_v62, %v6271_v2  ;;  %v6477_v41 = vsel %vm17108_vm2, %v6273_v42, %v6476_v60  ;;  %v6294_v53 = vrot.slane %v6292_v40, 7  ;;  %v12709_v10 = vpack.c.bf16 %v5911_v46, %v5911_v46  ;;  %13587 = vmatprep.subr.bf16.mxu1 %v14584_v27 }
 0x3c8   : > { %6475 = vst.msk [vmem:[#allocation3 + $0x94] sm:$0xf] %vm5918_vm14, %v6272_v3  ;;  %6478 = vst [vmem:[#allocation3 + $0x98] sm:$0x1] %v6477_v41  ;;  %v6254_v58 = vor.u32 %v6252_v25, %v6251_v36  ;;  %v6256_v9 = vrot.slane %v6251_v36, 4  ;;  %v6277_v35 = vrot.slane %v6275_v4, 7  ;;  %v5916_v60 = vmul.f32 %v14778_v45, %v17267_v21 }
 0x3c9   : > { %v6300_v34 = vshrl.u32 %v12711_v24, 16  ;;  %v6297_v62 = vor.u32 %v6295_v37, %v6294_v53  ;;  %v6298_v17 = vrot.slane %v6294_v53, 4  ;;  %v6303_v55 = vshll.u32 %v12711_v24, 16  ;;  %v17391_v4 = vld [vmem:[#allocation3 + $0x24] sm:$0xf] }
 0x3ca   : > { %v6283_v30 = vshrl.u32 %v12709_v10, 16  ;;  %v6255_v32 = vsel %vm15223_vm10, %v6247_v8, %v6254_v58  ;;  %v6470_v20 = vsel %vm17108_vm2, %v6256_v9, %v6469_v11  ;;  %v6280_v23 = vor.u32 %v6278_v39, %v6277_v35  ;;  %13588 = vmatpush3.bf16.msra.mxu1 %v14584_v27  ;;  %v6483_v27 = vld [vmem:[#allocation3 + $0xa4] sm:$0x1]  ;;  %v17401_v39 = vld [vmem:[#allocation3 + $0x28] sm:$0xf] }
 0x3cb   : > { %v6281_v16 = vrot.slane %v6277_v35, 4  ;;  %6468 = vst.msk [vmem:[#allocation3 + $0x88] sm:$0xf] %vm5918_vm14, %v6255_v32  ;;  %6471 = vst [vmem:[#allocation3 + $0x8c] sm:$0x1] %v6470_v20  ;;  %v6487_v44 = vsel %vm17101_vm1, %v6297_v62, %v6486_v14  ;;  %v6302_v63 = vrot.slane %v6300_v34, 7  ;;  %13589 = vmatprep.subr.bf16.mxu1 %v14585_v59  ;;  %v12714_v40 = vpack.c.bf16 %v5916_v60, %v5916_v60 }
 0x3cc   : > { %v6285_v47 = vrot.slane %v6283_v30, 7  ;;  %v6286_v51 = vshll.u32 %v12709_v10, 16  ;;  %6488 = vst [vmem:[#allocation3 + $0xa8] sm:$0xf] %v6487_v44  ;;  %v6480_v8 = vsel %vm17101_vm1, %v6280_v23, %v6479_v61  ;;  %v5818_v18 = vadd.f32 1.0, %v14780_v56 }
 0x3cd   : > { %v5821_v25 = vadd.f32 1.0, %v14782_v1  ;;  %6481 = vst [vmem:[#allocation3 + $0x9c] sm:$0xf] %v6480_v8  ;;  %v6305_v54 = vor.u32 %v6303_v55, %v6302_v63  ;;  %v6307_v46 = vrot.slane %v6302_v63, 4  ;;  %v5819_v37 = vadd.f32 1.0, %v14784_v48 }
 0x3ce   : > { %v6288_v2 = vor.u32 %v6286_v51, %v6285_v47  ;;  %v6290_v42 = vrot.slane %v6285_v47, 4  ;;  %14785 = vrcp.f32 %v5818_v18  ;;  %v6620_v36 = vrot.slane %v6619_v50, 4  ;;  %13590 = vmatpush3.bf16.msra.mxu1 %v14585_v59  ;;  %v17403_v24 = vld [vmem:[#allocation3 + $0x30] sm:$0xf]  ;;  %v6551_v48 = vld [vmem:[#allocation3 + $0x2c] sm:$0x1] }
 0x3cf   : > { %v6306_v21 = vsel %vm15223_vm10, %v6298_v17, %v6305_v54  ;;  %v6491_v45 = vsel %vm17108_vm2, %v6307_v46, %v6490_v29  ;;  %13591 = vmatprep.subr.bf16.mxu1 %v14586_v52  ;;  %v6326_v31 = vshrl.u32 %v12714_v40, 16  ;;  %v6329_v50 = vshll.u32 %v12714_v40, 16  ;;  %v6500_v10 = vld [vmem:[#allocation3 + $0xc0] sm:$0xf]  ;;  %v17432_v55 = vld [vmem:[#allocation3 + $0x38] sm:$0x1] }
 0x3d0   : > { %v6289_v56 = vsel %vm15223_vm10, %v6281_v16, %v6288_v2  ;;  %v6484_v1 = vsel %vm17108_vm2, %v6290_v42, %v6483_v27  ;;  %6489 = vst.msk [vmem:[#allocation3 + $0xac] sm:$0xf] %vm5918_vm14, %v6306_v21  ;;  %6492 = vst [vmem:[#allocation3 + $0xb0] sm:$0x1] %v6491_v45  ;;  %14787 = vrcp.f32 %v5821_v25  ;;  %v6625_v6 = vsel %vm15198_vm6, %v6620_v36, %v17349_v13  ;;  %v17442_v8 = vld [vmem:[#allocation3 + $0x3c] sm:$0xf] }
 0x3d1   : > { %6482 = vst.msk [vmem:[#allocation3 + $0xa0] sm:$0xf] %vm5918_vm14, %v6289_v56  ;;  %6485 = vst [vmem:[#allocation3 + $0xa4] sm:$0x1] %v6484_v1  ;;  %14789 = vrcp.f32 %v5819_v37  ;;  %v6628_v3 = vrot.slane %v6626_v28, 4  ;;  %v6634_v41 = vrot.slane %v6632_v0, 5 }
 0x3d2   : > { %v6637_v11 = vshrl.u32 %v17391_v4, 16  ;;  %v17420_v53 = vrot.slane %v6326_v31, 7  ;;  %v6640_v59 = vshll.u32 %v17391_v4, 16  ;;  %v6646_v58 = vshll.u32 %v17401_v39, 16  ;;  %13592 = vmatpush3.bf16.msra.mxu1 %v14586_v52  ;;  %v17426_v28 = vld [vmem:[#allocation3 + $0x34] sm:$0xf] }
 0x3d3   : > { %v6650_v9 = vshrl.u32 %v17401_v39, 16  ;;  %v6629_v14 = vor.u32 %v6628_v3, %v17349_v13  ;;  %v6656_v34 = vshll.u32 %v6551_v48, 16  ;;  %v6661_v43 = vshrl.u32 %v17403_v24, 16  ;;  %13625 = vmatprep.subr.bf16.mxu1 %v17408_v19  ;;  %19610 = vst [vmem:[#allocation17_spill] sm:$0xff] %v17432_v55  ;;  %v17448_v45 = vld [vmem:[#allocation3 + $0x40] sm:$0xf] }
 0x3d4   : > { %v6639_v35 = vrot.slane %v6637_v11, 4  ;;  %v6331_v0 = vor.u32 %v6329_v50, %v17420_v53  ;;  %v6332_v62 = vrot.slane %v17420_v53, 4  ;;  %v6642_v17 = vrot.slane %v6640_v59, 5 }
 0x3d5   : > { %v6648_v61 = vrot.slane %v6646_v58, 5  ;;  %v6630_v30 = vrot.slane %v6629_v14, 4  ;;  %v6652_v32 = vrot.slane %v6650_v9, 4  ;;  %v6658_v20 = vrot.slane %v6656_v34, 5 }
 0x3d6   : > { %v6663_v13 = vrot.slane %v6661_v43, 4  ;;  %v6501_v23 = vsel %vm17101_vm1, %v6331_v0, %v6500_v10  ;;  %v6643_v16 = vor.u32 %v6642_v17, %v6639_v35  ;;  %v6664_v44 = vshll.u32 %v17403_v24, 16 }
 0x3d7   : > { %v6670_v63 = vshll.u32 %v17426_v28, 16  ;;  %6502 = vst [vmem:[#allocation3 + $0xc0] sm:$0xf] %v6501_v23  ;;  %v6635_v29 = vsel %vm15198_vm6, %v6630_v30, %v6634_v41  ;;  %v6653_v47 = vor.u32 %v6652_v32, %v6648_v61  ;;  %v6674_v51 = vshrl.u32 %v17426_v28, 16  ;;  %v17462_v30 = vld [vmem:[#allocation3 + $0x44] sm:$0x1] }
 0x3d8   : > { %v6680_v52 = vshll.u32 %v17432_v55, 16  ;;  %v14786_v27 = vpop.eup %14785  ;;  %v12219_v60 = vcombine.low %v6625_v6, %v6635_v29  ;;  %v6644_v18 = vrot.slane %v6643_v16, 4  ;;  %v6666_v25 = vrot.slane %v6664_v44, 5  ;;  %v6493_v32 = vld [vmem:[#allocation3 + $0xb4] sm:$0xf] }
 0x3d9   : > { %v6672_v54 = vrot.slane %v6670_v63, 5  ;;  %v5914_v46 = vmul.f32 %v14786_v27, %v17272_v7  ;;  %v6654_v2 = vrot.slane %v6653_v47, 4  ;;  %v6676_v42 = vrot.slane %v6674_v51, 4  ;;  %v17464_v44 = vld [vmem:[#allocation3 + $0x48] sm:$0xf] }
 0x3da   : > { %v6682_v40 = vrot.slane %v6680_v52, 5  ;;  %v14788_v37 = vpop.eup %14787  ;;  %13557 = vmatprep.mubr.msk.bf16.mxu1 %vm7029_vm0, %v12219_v60  ;;  %v6649_v36 = vsel %vm15198_vm6, %v6644_v18, %v6648_v61  ;;  %v6667_v21 = vor.u32 %v6666_v25, %v6663_v13  ;;  %v6685_v56 = vshrl.u32 %v17442_v8, 16  ;;  %v6504_v52 = vld [vmem:[#allocation3 + $0xc8] sm:$0x1] }
 0x3db   : > { %v6688_v1 = vshll.u32 %v17442_v8, 16  ;;  %v14790_v31 = vpop.eup %14789  ;;  %v12712_v50 = vpack.c.bf16 %v5914_v46, %v5914_v46  ;;  %v5917_v7 = vmul.f32 %v14788_v37, %v17279_v12  ;;  %v6659_v6 = vsel %vm15198_vm6, %v6654_v2, %v6658_v20 }
 0x3dc   : > { %v6677_v48 = vor.u32 %v6676_v42, %v6672_v54  ;;  %v5915_v3 = vmul.f32 %v14790_v31, %v17321_v22  ;;  %v12220_v41 = vcombine.low %v6649_v36, %v6659_v6  ;;  %v6668_v11 = vrot.slane %v6667_v21, 4  ;;  %v6497_v42 = vld [vmem:[#allocation3 + $0xbc] sm:$0x1]  ;;  %v17476_v31 = vld [vmem:[#allocation3 + $0x50] sm:$0x1] }
 0x3dd   : > { %v6687_v10 = vrot.slane %v6685_v56, 4  ;;  %v6309_v59 = vshrl.u32 %v12712_v50, 16  ;;  %v6312_v58 = vshll.u32 %v12712_v50, 16  ;;  %v12715_v9 = vpack.c.bf16 %v5917_v7, %v5917_v7  ;;  %v17478_v50 = vld [vmem:[#allocation3 + $0x54] sm:$0xf] }
 0x3de   : > { %v6678_v14 = vrot.slane %v6677_v48, 4  ;;  %v12713_v35 = vpack.c.bf16 %v5915_v3, %v5915_v3  ;;  %13558 = vmatmul.mubr.msk.bf16.gmra.mrb[4].mxu1 %vm7029_vm0, %v12220_v41  ;;  %v6673_v34 = vsel %vm15198_vm6, %v6668_v11, %v6672_v54  ;;  %v6690_v12 = vrot.slane %v6688_v1, 5  ;;  %v17486_v3 = vld [vmem:[#allocation3 + $0x58] sm:$0xf] }
 0x3df   : > { %v6694_v43 = vshll.u32 %v17448_v45, 16  ;;  %v6311_v0 = vrot.slane %v6309_v59, 7  ;;  %v6334_v17 = vshrl.u32 %v12715_v9, 16  ;;  %v6337_v61 = vshll.u32 %v12715_v9, 16 }
 0x3e0   : > { %v6683_v22 = vsel %vm15198_vm6, %v6678_v14, %v6682_v40  ;;  %v6317_v20 = vshrl.u32 %v12713_v35, 16  ;;  %v6320_v13 = vshll.u32 %v12713_v35, 16  ;;  %v6691_v16 = vor.u32 %v6690_v12, %v6687_v10  ;;  %v17471_v40 = vld [vmem:[#allocation3 + $0x4c] sm:$0xf]  ;;  %v17499_v35 = vld [vmem:[#allocation3 + $0x5c] sm:$0x1] }
 0x3e1   : > { %v12221_v23 = vcombine.low %v6673_v34, %v6683_v22  ;;  %v6314_v63 = vor.u32 %v6312_v58, %v6311_v0  ;;  %v6315_v29 = vrot.slane %v6311_v0, 4  ;;  %v6336_v47 = vrot.slane %v6334_v17, 7 }
 0x3e2   : > { %v6696_v51 = vrot.slane %v6694_v43, 5  ;;  %v6319_v27 = vrot.slane %v6317_v20, 7  ;;  %v6692_v60 = vrot.slane %v6691_v16, 4  ;;  %v6698_v18 = vshrl.u32 %v17448_v45, 16 }
 0x3e3   : > { %13561 = vmatprep.mubr.msk.bf16.mxu1 %vm7029_vm0, %v12221_v23  ;;  %v6704_v25 = vshll.u32 %v17462_v30, 16  ;;  %v6494_v54 = vsel %vm17101_vm1, %v6314_v63, %v6493_v32  ;;  %v6339_v46 = vor.u32 %v6337_v61, %v6336_v47  ;;  %v6341_v2 = vrot.slane %v6336_v47, 4  ;;  %v17503_v61 = vld [vmem:[#allocation3 + $0x60] sm:$0xf]  ;;  %v17507_v23 = vld [vmem:[#allocation3 + $0x64] sm:$0xf] }
 0x3e4   : > { %v6709_v37 = vshrl.u32 %v17464_v44, 16  ;;  %6495 = vst [vmem:[#allocation3 + $0xb4] sm:$0xf] %v6494_v54  ;;  %v6322_v36 = vor.u32 %v6320_v13, %v6319_v27  ;;  %v6324_v21 = vrot.slane %v6319_v27, 4  ;;  %v6697_v56 = vsel %vm15198_vm6, %v6692_v60, %v6696_v51 }
 0x3e5   : > { %v6700_v1 = vrot.slane %v6698_v18, 4  ;;  %v6340_v49 = vsel %vm15223_vm10, %v6332_v62, %v6339_v46  ;;  %v6505_v7 = vsel %vm17108_vm2, %v6341_v2, %v6504_v52  ;;  %v6706_v6 = vrot.slane %v6704_v25, 5 }
 0x3e6   : > { %v6711_v48 = vrot.slane %v6709_v37, 4  ;;  %6503 = vst.msk [vmem:[#allocation3 + $0xc4] sm:$0xf] %vm5918_vm14, %v6340_v49  ;;  %6506 = vst [vmem:[#allocation3 + $0xc8] sm:$0x1] %v6505_v7  ;;  %v6323_v41 = vsel %vm15223_vm10, %v6315_v29, %v6322_v36  ;;  %v6498_v11 = vsel %vm17108_vm2, %v6324_v21, %v6497_v42  ;;  %v6712_v10 = vshll.u32 %v17464_v44, 16 }
 0x3e7   : > { %v6701_v53 = vor.u32 %v6700_v1, %v6696_v51  ;;  %6496 = vst.msk [vmem:[#allocation3 + $0xb8] sm:$0xf] %vm5918_vm14, %v6323_v41  ;;  %6499 = vst [vmem:[#allocation3 + $0xbc] sm:$0x1] %v6498_v11  ;;  %v6718_v62 = vshll.u32 %v17471_v40, 16  ;;  %v6722_v59 = vshrl.u32 %v17471_v40, 16 }
 0x3e8   : > { %v6728_v58 = vshll.u32 %v17476_v31, 16  ;;  %v6733_v9 = vshrl.u32 %v17478_v50, 16  ;;  %v6714_v33 = vrot.slane %v6712_v10, 5  ;;  %v6736_v38 = vshll.u32 %v17478_v50, 16  ;;  %v17511_v51 = vld [vmem:[#allocation3 + $0x68] sm:$0x1] }
 0x3e9   : > { %v6702_v14 = vrot.slane %v6701_v53, 4  ;;  %v6742_v34 = vshll.u32 %v17486_v3, 16  ;;  %v6720_v12 = vrot.slane %v6718_v62, 5  ;;  %v6724_v43 = vrot.slane %v6722_v59, 4 }
 0x3ea   : > { %v6730_v0 = vrot.slane %v6728_v58, 5  ;;  %v6735_v17 = vrot.slane %v6733_v9, 4  ;;  %v6715_v32 = vor.u32 %v6714_v33, %v6711_v48  ;;  %v6738_v20 = vrot.slane %v6736_v38, 5  ;;  %v17524_v48 = vld [vmem:[#allocation3 + $0x70] sm:$0xf] }
 0x3eb   : > { %v6707_v22 = vsel %vm15198_vm6, %v6702_v14, %v6706_v6  ;;  %v6744_v13 = vrot.slane %v6742_v34, 5  ;;  %v6725_v63 = vor.u32 %v6724_v43, %v6720_v12  ;;  %v6746_v29 = vshrl.u32 %v17486_v3, 16  ;;  %v17531_v14 = vld [vmem:[#allocation3 + $0x78] sm:$0xf]  ;;  %v17534_v34 = vld [vmem:[#allocation3 + $0x74] sm:$0x1] }
 0x3ec   : > { %v12222_v16 = vcombine.low %v6697_v56, %v6707_v22  ;;  %v6752_v47 = vshll.u32 %v17499_v35, 16  ;;  %v6716_v52 = vrot.slane %v6715_v32, 4  ;;  %v6739_v27 = vor.u32 %v6738_v20, %v6735_v17  ;;  %v17519_v56 = vld [vmem:[#allocation3 + $0x6c] sm:$0xf]  ;;  %v17540_v20 = vld [vmem:[#allocation3 + $0x7c] sm:$0xf] }
 0x3ed   : > { %v6757_v60 = vshrl.u32 %v17503_v61, 16  ;;  %v6760_v18 = vshll.u32 %v17503_v61, 16  ;;  %v6726_v25 = vrot.slane %v6725_v63, 4  ;;  %v6748_v54 = vrot.slane %v6746_v29, 4 }
 0x3ee   : > { %13562 = vmatmul.mubr.msk.bf16.gmra.mrb[8].mxu1 %vm7029_vm0, %v12222_v16  ;;  %v6754_v46 = vrot.slane %v6752_v47, 5  ;;  %v6766_v2 = vshll.u32 %v17507_v23, 16  ;;  %v6721_v42 = vsel %vm15198_vm6, %v6716_v52, %v6720_v12  ;;  %v6740_v37 = vrot.slane %v6739_v27, 4  ;;  %v17544_v47 = vld [vmem:[#allocation3 + $0x80] sm:$0x1] }
 0x3ef   : > { %v6759_v36 = vrot.slane %v6757_v60, 4  ;;  %v6762_v21 = vrot.slane %v6760_v18, 5  ;;  %v6731_v1 = vsel %vm15198_vm6, %v6726_v25, %v6730_v0  ;;  %v6749_v49 = vor.u32 %v6748_v54, %v6744_v13  ;;  %v17546_v52 = vld [vmem:[#allocation3 + $0x84] sm:$0xf]  ;;  %v17550_v54 = vld [vmem:[#allocation3 + $0x88] sm:$0xf] }
 0x3f0   : > { %v6768_v7 = vrot.slane %v6766_v2, 5  ;;  %v6770_v6 = vshrl.u32 %v17507_v23, 16  ;;  %v12223_v41 = vcombine.low %v6721_v42, %v6731_v1  ;;  %v6745_v11 = vsel %vm15198_vm6, %v6740_v37, %v6744_v13 }
 0x3f1   : > { %v6763_v53 = vor.u32 %v6762_v21, %v6759_v36  ;;  %v6776_v10 = vshll.u32 %v17511_v51, 16  ;;  %v6750_v62 = vrot.slane %v6749_v49, 4  ;;  %v6781_v58 = vshrl.u32 %v17519_v56, 16 }
 0x3f2   : > { %v6772_v59 = vrot.slane %v6770_v6, 4  ;;  %v6784_v9 = vshll.u32 %v17519_v56, 16  ;;  %13565 = vmatprep.mubr.msk.bf16.mxu1 %vm7029_vm0, %v12223_v41  ;;  %v6790_v12 = vshll.u32 %v17524_v48, 16  ;;  %v6794_v43 = vshrl.u32 %v17524_v48, 16 }
 0x3f3   : > { %v6764_v33 = vrot.slane %v6763_v53, 4  ;;  %v6778_v38 = vrot.slane %v6776_v10, 5  ;;  %v6755_v0 = vsel %vm15198_vm6, %v6750_v62, %v6754_v46  ;;  %v6783_v22 = vrot.slane %v6781_v58, 4  ;;  %v17558_v53 = vld [vmem:[#allocation3 + $0x8c] sm:$0x1] }
 0x3f4   : > { %v6773_v17 = vor.u32 %v6772_v59, %v6768_v7  ;;  %v6786_v32 = vrot.slane %v6784_v9, 5  ;;  %v12224_v13 = vcombine.low %v6745_v11, %v6755_v0  ;;  %v6792_v63 = vrot.slane %v6790_v12, 5  ;;  %v17560_v10 = vld [vmem:[#allocation3 + $0x90] sm:$0xf] }
 0x3f5   : > { %v6769_v16 = vsel %vm15198_vm6, %v6764_v33, %v6768_v7  ;;  %v6796_v29 = vrot.slane %v6794_v43, 4  ;;  %v6800_v18 = vshll.u32 %v17534_v34, 16  ;;  %v6805_v25 = vshrl.u32 %v17531_v14, 16  ;;  %v17566_v33 = vld [vmem:[#allocation3 + $0x94] sm:$0xf] }
 0x3f6   : > { %v6774_v27 = vrot.slane %v6773_v17, 4  ;;  %v6787_v60 = vor.u32 %v6786_v32, %v6783_v22  ;;  %13566 = vmatmul.mubr.msk.bf16.gmra.mrb[12].mxu1 %vm7029_vm0, %v12224_v13  ;;  %v6808_v2 = vshll.u32 %v17531_v14, 16  ;;  %v6814_v42 = vshll.u32 %v17540_v20, 16 }
 0x3f7   : > { %v6797_v46 = vor.u32 %v6796_v29, %v6792_v63  ;;  %v6818_v37 = vshrl.u32 %v17540_v20, 16  ;;  %v6802_v1 = vrot.slane %v6800_v18, 5  ;;  %v6807_v49 = vrot.slane %v6805_v25, 4  ;;  %v17575_v25 = vld [vmem:[#allocation3 + $0x98] sm:$0x1] }
 0x3f8   : > { %v6779_v36 = vsel %vm15198_vm6, %v6774_v27, %v6778_v38  ;;  %v6788_v21 = vrot.slane %v6787_v60, 4  ;;  %v6810_v41 = vrot.slane %v6808_v2, 5  ;;  %v6816_v11 = vrot.slane %v6814_v42, 5 }
 0x3f9   : > { %v12225_v7 = vcombine.low %v6769_v16, %v6779_v36  ;;  %v6798_v6 = vrot.slane %v6797_v46, 4  ;;  %v6820_v59 = vrot.slane %v6818_v37, 4  ;;  %v6824_v58 = vshll.u32 %v17544_v47, 16 }
 0x3fa   : > { %v6793_v62 = vsel %vm15198_vm6, %v6788_v21, %v6792_v63  ;;  %v6829_v9 = vshrl.u32 %v17546_v52, 16  ;;  %v6811_v12 = vor.u32 %v6810_v41, %v6807_v49  ;;  %v6832_v43 = vshll.u32 %v17546_v52, 16 }
 0x3fb   : > { %13569 = vmatprep.mubr.msk.bf16.mxu1 %vm7029_vm0, %v12225_v7  ;;  %v6803_v38 = vsel %vm15198_vm6, %v6798_v6, %v6802_v1  ;;  %v6838_v0 = vshll.u32 %v17550_v54, 16  ;;  %v6821_v22 = vor.u32 %v6820_v59, %v6816_v11  ;;  %v6826_v32 = vrot.slane %v6824_v58, 5  ;;  %v17583_v1 = vld [vmem:[#allocation3 + $0x9c] sm:$0xf] }
 0x3fc   : > { %v12226_v17 = vcombine.low %v6793_v62, %v6803_v38  ;;  %v6831_v13 = vrot.slane %v6829_v9, 4  ;;  %v6812_v16 = vrot.slane %v6811_v12, 4  ;;  %v6834_v63 = vrot.slane %v6832_v43, 5  ;;  %v17587_v62 = vld [vmem:[#allocation3 + $0xa0] sm:$0xf] }
 0x3fd   : > { %v6840_v29 = vrot.slane %v6838_v0, 5  ;;  %v6842_v27 = vshrl.u32 %v17550_v54, 16  ;;  %v6822_v60 = vrot.slane %v6821_v22, 4  ;;  %v6848_v18 = vshll.u32 %v17558_v53, 16 }
 0x3fe   : > { %v6853_v46 = vshrl.u32 %v17560_v10, 16  ;;  %v6856_v2 = vshll.u32 %v17560_v10, 16  ;;  %13570 = vmatmul.mubr.msk.bf16.gmra.mrb[16].mxu1 %vm7029_vm0, %v12226_v17  ;;  %v6817_v42 = vsel %vm15198_vm6, %v6812_v16, %v6816_v11  ;;  %v6835_v37 = vor.u32 %v6834_v63, %v6831_v13 }
 0x3ff   : > { %v6844_v36 = vrot.slane %v6842_v27, 4  ;;  %v6862_v21 = vshll.u32 %v17566_v33, 16  ;;  %v6827_v49 = vsel %vm15198_vm6, %v6822_v60, %v6826_v32  ;;  %v6850_v7 = vrot.slane %v6848_v18, 5  ;;  %v17595_v32 = vld [vmem:[#allocation3 + $0xa4] sm:$0x1] }
 0x400   : > { %v6855_v6 = vrot.slane %v6853_v46, 4  ;;  %v6858_v41 = vrot.slane %v6856_v2, 5  ;;  %v12227_v59 = vcombine.low %v6817_v42, %v6827_v49  ;;  %v6836_v58 = vrot.slane %v6835_v37, 4  ;;  %v17599_v46 = vld [vmem:[#allocation3 + $0xa8] sm:$0xf] }
 0x401   : > { %v6845_v9 = vor.u32 %v6844_v36, %v6840_v29  ;;  %v6864_v38 = vrot.slane %v6862_v21, 5  ;;  %v6866_v11 = vshrl.u32 %v17566_v33, 16  ;;  %v6872_v43 = vshll.u32 %v17575_v25, 16  ;;  %v17604_v36 = vld [vmem:[#allocation3 + $0xac] sm:$0xf] }
 0x402   : > { %v6859_v12 = vor.u32 %v6858_v41, %v6855_v6  ;;  %v6877_v0 = vshrl.u32 %v17583_v1, 16  ;;  %13573 = vmatprep.mubr.msk.bf16.mxu1 %vm7029_vm0, %v12227_v59  ;;  %v6841_v17 = vsel %vm15198_vm6, %v6836_v58, %v6840_v29  ;;  %v6880_v13 = vshll.u32 %v17583_v1, 16 }
 0x403   : > { %v6846_v22 = vrot.slane %v6845_v9, 4  ;;  %v6886_v16 = vshll.u32 %v17587_v62, 16  ;;  %v6868_v27 = vrot.slane %v6866_v11, 4  ;;  %v6874_v60 = vrot.slane %v6872_v43, 5  ;;  %v17609_v9 = vld [vmem:[#allocation3 + $0xb0] sm:$0x1] }
 0x404   : > { %v6860_v63 = vrot.slane %v6859_v12, 4  ;;  %v6879_v18 = vrot.slane %v6877_v0, 4  ;;  %v6882_v42 = vrot.slane %v6880_v13, 5  ;;  %v6890_v29 = vshrl.u32 %v17587_v62, 16  ;;  %19611 = vst [vmem:[#allocation12_spill] sm:$0xff] %v17609_v9 }
 0x405   : > { %v6851_v2 = vsel %vm15198_vm6, %v6846_v22, %v6850_v7  ;;  %v6888_v37 = vrot.slane %v6886_v16, 5  ;;  %v6869_v6 = vor.u32 %v6868_v27, %v6864_v38  ;;  %v6896_v41 = vshll.u32 %v17595_v32, 16 }
 0x406   : > { %v12228_v21 = vcombine.low %v6841_v17, %v6851_v2  ;;  %v6865_v49 = vsel %vm15198_vm6, %v6860_v63, %v6864_v38  ;;  %v6883_v59 = vor.u32 %v6882_v42, %v6879_v18  ;;  %v6892_v58 = vrot.slane %v6890_v29, 4  ;;  %v17616_v63 = vld [vmem:[#allocation3 + $0xb4] sm:$0xf]  ;;  %v17621_v29 = vld [vmem:[#allocation3 + $0xb8] sm:$0xf] }
 0x407   : > { %v6901_v12 = vshrl.u32 %v17599_v46, 16  ;;  %v6904_v7 = vshll.u32 %v17599_v46, 16  ;;  %v6870_v11 = vrot.slane %v6869_v6, 4  ;;  %v6898_v43 = vrot.slane %v6896_v41, 5 }
 0x408   : > { %13574 = vmatmul.mubr.msk.bf16.gmra.mrb[20].mxu1 %vm7029_vm0, %v12228_v21  ;;  %v6910_v0 = vshll.u32 %v17604_v36, 16  ;;  %v6914_v17 = vshrl.u32 %v17604_v36, 16  ;;  %v6884_v22 = vrot.slane %v6883_v59, 4  ;;  %v6893_v38 = vor.u32 %v6892_v58, %v6888_v37 }
 0x409   : > { %v6903_v13 = vrot.slane %v6901_v12, 4  ;;  %v6906_v16 = vrot.slane %v6904_v7, 5  ;;  %v6875_v27 = vsel %vm15198_vm6, %v6870_v11, %v6874_v60  ;;  %v6920_v42 = vshll.u32 %v17609_v9, 16  ;;  %v17625_v7 = vld [vmem:[#allocation3 + $0xbc] sm:$0x1] }
 0x40a   : > { %v6912_v18 = vrot.slane %v6910_v0, 5  ;;  %v6916_v2 = vrot.slane %v6914_v17, 4  ;;  %v12229_v21 = vcombine.low %v6865_v49, %v6875_v27  ;;  %v6889_v6 = vsel %vm15198_vm6, %v6884_v22, %v6888_v37 }
 0x40b   : > { %v6894_v41 = vrot.slane %v6893_v38, 4  ;;  %v6907_v59 = vor.u32 %v6906_v16, %v6903_v13  ;;  %v6922_v12 = vrot.slane %v6920_v42, 5  ;;  %v6925_v55 = vshrl.u32 %v17616_v63, 16 }
 0x40c   : > { %v6917_v58 = vor.u32 %v6916_v2, %v6912_v18  ;;  %v6928_v60 = vshll.u32 %v17616_v63, 16  ;;  %13577 = vmatprep.mubr.msk.bf16.mxu1 %vm7029_vm0, %v12229_v21  ;;  %v6934_v49 = vshll.u32 %v17621_v29, 16  ;;  %v6938_v37 = vshrl.u32 %v17621_v29, 16 }
 0x40d   : > { %v6899_v11 = vsel %vm15198_vm6, %v6894_v41, %v6898_v43  ;;  %v6908_v0 = vrot.slane %v6907_v59, 4  ;;  %v6927_v38 = vrot.slane %v6925_v55, 4  ;;  %v6944_v2 = vshll.u32 %v17625_v7, 16  ;;  %v17640_v55 = vld [vmem:[#allocation3 + $0x4] sm:$0xf] }
 0x40e   : > { %v12230_v17 = vcombine.low %v6889_v6, %v6899_v11  ;;  %v6918_v22 = vrot.slane %v6917_v58, 4  ;;  %v6930_v13 = vrot.slane %v6928_v60, 5  ;;  %v6936_v16 = vrot.slane %v6934_v49, 5  ;;  %v14948_v58 = vld [vmem:[#allocation3] sm:$0xf] }
 0x40f   : > { %v6940_v27 = vrot.slane %v6938_v37, 4  ;;  %v6913_v42 = vsel %vm15198_vm6, %v6908_v0, %v6912_v18  ;;  %v6946_v6 = vrot.slane %v6944_v2, 5  ;;  %v12253_v60 = vcombine.low %v14948_v58, %v17640_v55  ;;  %v7564_v0 = vld [vmem:[#allocation3 + $0x90] sm:$0xe] }
 0x410   : > { %13578 = vmatmul.mubr.msk.bf16.gmra.mrb[24].mxu1 %vm7029_vm0, %v12230_v17  ;;  %v6923_v43 = vsel %vm15198_vm6, %v6918_v22, %v6922_v12  ;;  %v6931_v21 = vor.u32 %v6930_v13, %v6927_v38  ;;  %v12258_v11 = vcombine.low %v17442_v8, %v17448_v45  ;;  %v12259_v18 = vcombine.low %v17464_v44, %v17471_v40  ;;  %v9185_v8 = vld [vmem:[#allocation3 + $0x90] sm:$0xe] }
 0x411   : > { %v12231_v41 = vcombine.low %v6913_v42, %v6923_v43  ;;  %v6941_v59 = vor.u32 %v6940_v27, %v6936_v16  ;;  %v7557_v43 = vld [vmem:[#allocation3 + $0x3c] sm:$0xe]  ;;  %v7559_v42 = vld [vmem:[#allocation3 + $0x54] sm:$0xe]  ;;  %v7560_v27 = vld [vmem:[#allocation3 + $0x60] sm:$0xe] }
 0x412   : > { %v6932_v9 = vrot.slane %v6931_v21, 4  ;;  %v7558_v21 = vld [vmem:[#allocation3 + $0x48] sm:$0xe]  ;;  %v7647_v22 = vrot.slane %v17476_v31, 5  ;;  %v14599_v31 = vld [vmem:[%s19370_s3 + $0x50] sm:$0xff]   ;;  %v7675_v17 = vrot.slane %v17544_v47, 5 }
 0x413   : > { %13581 = vmatprep.mubr.msk.bf16.mxu1 %vm7029_vm0, %v12231_v41  ;;  %v6942_v49 = vrot.slane %v6941_v59, 4  ;;  %v7637_v41 = vrot.slane %v17448_v45, 5  ;;  %v14950_v59 = vld [vmem:[#allocation3 + $0xc] sm:$0xf]  ;;  %v12295_v2 = vrot.slane %v7558_v21, 9  ;;  %v7696_v12 = vrot.slane %v17595_v32, 5 }
 0x414   : > { %v6937_v37 = vsel %vm15198_vm6, %v6932_v9, %v6936_v16  ;;  %v7640_v9 = vrot.slane %v17462_v30, 5  ;;  %v7651_v30 = vrot.slane %v17486_v3, 5  ;;  %v7566_v47 = vld [vmem:[#allocation3 + $0xa8] sm:$0xe]  ;;  %v7707_v32 = vrot.slane %v17621_v29, 5 }
 0x415   : > { %v6947_v13 = vsel %vm15198_vm6, %v6942_v49, %v6946_v6  ;;  %v17673_v6 = vld [vmem:[#allocation3 + $0x10] sm:$0xf] }
 0x416   : > { %v12232_v16 = vcombine.low %v6937_v37, %v6947_v13  ;;  %v12254_v58 = vcombine.low %v14950_v59, %v17673_v6  ;;  %v14594_v49 = vld [vmem:[%s19370_s3 + $0x48] sm:$0xff]   ;;  %v12294_v37 = vrot.slane %v7557_v43, 9  ;;  %v7644_v13 = vrot.slane %v17471_v40, 5 }
 0x417   : > { %v12256_v59 = vcombine.low %v17391_v4, %v17401_v39  ;;  %v12296_v4 = vrot.slane %v7559_v42, 9  ;;  %v19613_v40 = vcombine.low %v17478_v50, %v17486_v3  ;;  %v19617_v50 = vcombine.low %v17546_v52, %v17550_v54 }
 0x418   : > { %13582 = vmatmul.mubr.msk.bf16.gmra.mrb[28].mxu1 %vm7029_vm0, %v12232_v16  ;;  %v7639_v16 = vrot.slane %v7637_v41, 4  ;;  %v17688_v38 = vsel %vm15605_vm13, %v12294_v37, %v7637_v41  ;;  %v7646_v43 = vrot.slane %v7644_v13, 4  ;;  %v7658_v41 = vrot.slane %v17507_v23, 5 }
 0x419   : > { %13593 = vmatprep.mubr.msk.bf16.mxu1 %vm7029_vm0, %v12253_v60  ;;  %v12255_v60 = vcombine.low %v17327_v5, %v17329_v57  ;;  %v17699_v57 = vsel %vm15605_vm13, %v12295_v2, %v7644_v13  ;;  %v7561_v2 = vld [vmem:[#allocation3 + $0x6c] sm:$0xe]  ;;  %v7653_v37 = vrot.slane %v7651_v30, 4  ;;  %v7654_v13 = vrot.slane %v17499_v35, 5 }
 0x41a   : > { %v17695_v5 = vsel %vm15605_vm13, %v7639_v16, %v7640_v9  ;;  %v12297_v9 = vrot.slane %v7560_v27, 9  ;;  %v7661_v27 = vrot.slane %v17511_v51, 5  ;;  %v7672_v35 = vrot.slane %v17540_v20, 5 }
 0x41b   : > { %v17727_v42 = vsel %vm15605_vm13, %v7653_v37, %v7654_v13  ;;  %v7563_v13 = vld [vmem:[#allocation3 + $0x84] sm:$0xe]  ;;  %v19618_v3 = vcombine.low %v17560_v10, %v17566_v33  ;;  %v7609_v10 = vrot.slane %v17673_v6, 5 }
 0x41c   : > { %v17721_v16 = vsel %vm15605_vm13, %v12297_v9, %v7658_v41  ;;  %v14604_v9 = vld [vmem:[%s19370_s3 + $0x58] sm:$0xff]   ;;  %v7674_v21 = vrot.slane %v7672_v35, 4 }
 0x420   : > { %13594 = vmatmul.mubr.msk.bf16.vlgmr.msra.gmra.mrb[0].mxu1 %vm7029_vm0, %v12254_v58  ;;  %v17716_v58 = vsel %vm15605_vm13, %v12296_v4, %v7651_v30  ;;  %v12298_v4 = vrot.slane %v7561_v2, 9  ;;  %v7668_v30 = vrot.slane %v17534_v34, 5  ;;  %v12257_v34 = vcombine.low %v17403_v24, %v17426_v28 }
 0x421   : > { %13597 = vmatprep.mubr.msk.bf16.mxu1 %vm7029_vm0, %v12255_v60  ;;  %13626 = vmatpush3.bf16.msra.mxu1 %v17408_v19  ;;  %v17709_v19 = vsel %vm15605_vm13, %v7646_v43, %v7647_v22  ;;  %v7562_v60 = vld [vmem:[#allocation3 + $0x78] sm:$0xe]  ;;  %v7660_v22 = vrot.slane %v7658_v41, 4  ;;  %v7665_v43 = vrot.slane %v17524_v48, 5 }
 0x422   : > { %13627 = vmatprep.subr.bf16.mxu1 %v14594_v49  ;;  %v12299_v37 = vrot.slane %v7562_v60, 9 }
 0x423   : > { %v7667_v41 = vrot.slane %v7665_v43, 4  ;;  %v17748_v51 = vsel %vm15605_vm13, %v12298_v4, %v7665_v43  ;;  %v7686_v43 = vrot.slane %v17566_v33, 5  ;;  %v7565_v4 = vld [vmem:[#allocation3 + $0x9c] sm:$0xe] }
 0x424   : > { %v17756_v24 = vsel %vm15605_vm13, %v12299_v37, %v7672_v35  ;;  %v12301_v37 = vrot.slane %v7564_v0, 9  ;;  %v7700_v0 = vrot.slane %v17604_v36, 5  ;;  %v14953_v33 = vld [vmem:[#allocation3 + $0x1c] sm:$0xf] }
 0x425   : > { %13628 = vmatpush3.bf16.msra.mxu1 %v14594_v49  ;;  %v17738_v49 = vsel %vm15605_vm13, %v7660_v22, %v7661_v27  ;;  %v17752_v60 = vsel %vm15605_vm13, %v7667_v41, %v7668_v30  ;;  %v7679_v22 = vrot.slane %v17550_v54, 5  ;;  %v12300_v27 = vrot.slane %v7563_v13, 9  ;;  %v17770_v30 = vld [vmem:[%s19370_s3 + $0x60] sm:$0xff]  }
 0x426   : > { %13629 = vmatprep.subr.bf16.mxu1 %v14599_v31  ;;  %v7682_v41 = vrot.slane %v17558_v53, 5  ;;  %v7689_v13 = vrot.slane %v17575_v25, 5  ;;  %v12302_v53 = vrot.slane %v7565_v4, 9  ;;  %v7702_v4 = vrot.slane %v7700_v0, 4 }
 0x427   : > { %v7681_v35 = vrot.slane %v7679_v22, 4 }
 0x428   : > { %13598 = vmatmul.mubr.msk.bf16.gmra.mrb[4].mxu1 %vm7029_vm0, %v12256_v59  ;;  %v17764_v59 = vsel %vm15605_vm13, %v7674_v21, %v7675_v17  ;;  %v17777_v17 = vsel %vm15605_vm13, %v12300_v27, %v7679_v22  ;;  %v7688_v21 = vrot.slane %v7686_v43, 4 }
 0x429   : > { %13601 = vmatprep.mubr.msk.bf16.mxu1 %vm7029_vm0, %v12257_v34  ;;  %13630 = vmatpush3.bf16.msra.mxu1 %v14599_v31  ;;  %v7693_v34 = vrot.slane %v17587_v62, 5  ;;  %v17783_v2 = vsel %vm15605_vm13, %v7681_v35, %v7682_v41  ;;  %v17787_v31 = vsel %vm15605_vm13, %v12301_v37, %v7686_v43  ;;  %v12303_v35 = vrot.slane %v7566_v47, 9  ;;  %v19612_v41 = vld [vmem:[#allocation12_spill] sm:$0xff]  ;;  %v18072_v47 = vld [vmem:[#allocation3 + $0xac] sm:$0xf] }
 0x42a   : > { %13631 = vmatprep.subr.bf16.mxu1 %v14604_v9  ;;  %v17794_v25 = vsel %vm15605_vm13, %v7688_v21, %v7689_v13  ;;  %v7703_v37 = vrot.slane %v19612_v41, 5  ;;  %v9186_v43 = vld [vmem:[#allocation3 + $0x9c] sm:$0xe] }
 0x42b   : > { %v7695_v27 = vrot.slane %v7693_v34, 4  ;;  %v17803_v22 = vsel %vm15605_vm13, %v12302_v53, %v7693_v34  ;;  %v17818_v13 = vsel %vm15605_vm13, %v12303_v35, %v7700_v0 }
 0x42c   : > { %v17822_v34 = vsel %vm15605_vm13, %v7702_v4, %v7703_v37  ;;  %v7611_v37 = vrot.slane %v7609_v10, 4 }
 0x42d   : > { %13632 = vmatpush3.bf16.msra.mxu1 %v14604_v9  ;;  %v7567_v9 = vld [vmem:[#allocation3 + $0xb4] sm:$0xe]  ;;  %v17807_v21 = vsel %vm15605_vm13, %v7695_v27, %v7696_v12  ;;  %v7710_v12 = vrot.slane %v17625_v7, 5  ;;  %v19615_v7 = vcombine.low %v17519_v56, %v17524_v48  ;;  %v19616_v27 = vcombine.low %v17531_v14, %v17540_v20  ;;  %v14952_v56 = vld [vmem:[#allocation3 + $0x8] sm:$0x1] }
 0x42e   : > { %13665 = vmatprep.subr.bf16.mxu1 %v17770_v30  ;;  %v12304_v45 = vrot.slane %v7567_v9, 9  ;;  %v7605_v48 = vrot.slane %v14952_v56, 5  ;;  %v19619_v14 = vcombine.low %v17583_v1, %v17587_v62  ;;  %v19620_v20 = vcombine.low %v17599_v46, %v17604_v36  ;;  %v7553_v62 = vld [vmem:[#allocation3 + $0xc] sm:$0xe]  ;;  %v14954_v36 = vld [vmem:[#allocation3 + $0x14] sm:$0x1] }
 0x42f   : > { %v19621_v1 = vcombine.low %v17616_v63, %v17621_v29  ;;  %v7612_v9 = vrot.slane %v14954_v36, 5  ;;  %v7630_v29 = vrot.slane %v17426_v28, 5  ;;  %v14956_v28 = vld [vmem:[#allocation3 + $0x2c] sm:$0x1]  ;;  %v19624_v36 = vcombine.low %v17699_v57, %v17709_v19  ;;  %v17944_v57 = vld [vmem:[#allocation3 + $0x40] sm:$0xf] }
 0x430   : > { %13602 = vmatmul.mubr.msk.bf16.gmra.mrb[8].mxu1 %vm7029_vm0, %v12258_v11  ;;  %v7709_v11 = vrot.slane %v7707_v32, 4  ;;  %v17833_v53 = vsel %vm15605_vm13, %v12304_v45, %v7707_v32  ;;  %v7554_v32 = vld [vmem:[#allocation3 + $0x18] sm:$0xe]  ;;  %v14955_v45 = vld [vmem:[#allocation3 + $0x20] sm:$0x1] }
 0x431   : > { %13605 = vmatprep.mubr.msk.bf16.mxu1 %vm7029_vm0, %v12259_v18  ;;  %v19614_v18 = vcombine.low %v17503_v61, %v17507_v23  ;;  %v7602_v61 = vrot.slane %v17640_v55, 5  ;;  %v7552_v23 = vld [vmem:[#allocation3] sm:$0xe]  ;;  %v7616_v55 = vrot.slane %v14953_v33, 5  ;;  %v7613_v6 = vsel %vm15605_vm13, %v7611_v37, %v7612_v9  ;;  %v17931_v9 = vld [vmem:[#allocation3 + $0x28] sm:$0xf] }
 0x432   : > { %v17837_v0 = vsel %vm15605_vm13, %v7709_v11, %v7710_v12  ;;  %v12289_v35 = vrot.slane %v7552_v23, 9  ;;  %v7619_v11 = vrot.slane %v14955_v45, 5  ;;  %v12290_v12 = vrot.slane %v7553_v62, 9  ;;  %v14610_v37 = vld [vmem:[%s19370_s3 + $0x78] sm:$0xff]   ;;  %v17920_v62 = vld [vmem:[%s19370_s3 + $0x80] sm:$0xff]  }
 0x433   : > { %v7604_v4 = vrot.slane %v7602_v61, 4  ;;  %v7618_v46 = vrot.slane %v7616_v55, 4  ;;  %v7632_v56 = vrot.slane %v7630_v29, 4  ;;  %v9176_v45 = vld [vmem:[#allocation3 + $0x24] sm:$0xe] }
 0x434   : > { %v7603_v52 = vsel %vm15605_vm13, %v12289_v35, %v7602_v61  ;;  %v7556_v35 = vld [vmem:[#allocation3 + $0x30] sm:$0xe]  ;;  %v9178_v19 = vld [vmem:[#allocation3 + $0x3c] sm:$0xe] }
 0x435   : > { %v7606_v54 = vsel %vm15605_vm13, %v7604_v4, %v7605_v48  ;;  %v7620_v63 = vsel %vm15605_vm13, %v7618_v46, %v7619_v11  ;;  %v7626_v48 = vrot.slane %v14956_v28, 5  ;;  %v19622_v4 = vld [vmem:[#allocation17_spill] sm:$0xff]  ;;  %v19623_v46 = vcombine.low %v17688_v38, %v17695_v5  ;;  %v17935_v11 = vld [vmem:[#allocation3 + $0x34] sm:$0xf]  ;;  %v17942_v5 = vld [vmem:[#allocation3 + $0x38] sm:$0x1] }
 0x436   : > { %v12313_v41 = vcombine.low %v7603_v52, %v7606_v54  ;;  %v19625_v38 = vcombine.low %v17716_v58, %v17727_v42  ;;  %v17955_v42 = vld [vmem:[#allocation3 + $0x50] sm:$0x1] }
 0x438   : > { %13606 = vmatmul.mubr.msk.bf16.gmra.mrb[12].mxu1 %vm7029_vm0, %v19613_v40  ;;  %v7623_v40 = vrot.slane %v17401_v39, 5  ;;  %v7555_v39 = vld [vmem:[#allocation3 + $0x24] sm:$0xe] }
 0x439   : > { %13609 = vmatprep.mubr.msk.bf16.mxu1 %vm7029_vm0, %v19614_v18  ;;  %v12291_v18 = vrot.slane %v7554_v32, 9  ;;  %v12292_v52 = vrot.slane %v7555_v39, 9  ;;  %v17933_v32 = vld [vmem:[#allocation3 + $0x2c] sm:$0x1]  ;;  %v9179_v39 = vld [vmem:[#allocation3 + $0x48] sm:$0xe] }
 0x43a   : > { %v7625_v23 = vrot.slane %v7623_v40, 4 }
 0x43c   : > { %v7627_v54 = vsel %vm15605_vm13, %v7625_v23, %v7626_v48  ;;  %v9268_v23 = vrot.slane %v17944_v57, 5 }
 0x440   : > { %13610 = vmatmul.mubr.msk.bf16.gmra.mrb[16].mxu1 %vm7029_vm0, %v19615_v7  ;;  %v7610_v7 = vsel %vm15605_vm13, %v12290_v12, %v7609_v10  ;;  %v12293_v10 = vrot.slane %v7556_v35, 9  ;;  %v9254_v12 = vrot.slane %v17931_v9, 5 }
 0x441   : > { %13613 = vmatprep.mubr.msk.bf16.mxu1 %vm7029_vm0, %v19616_v27  ;;  %v12314_v27 = vcombine.low %v7610_v7, %v7613_v6  ;;  %v9177_v6 = vld [vmem:[#allocation3 + $0x30] sm:$0xe]  ;;  %v9257_v7 = vrot.slane %v17933_v32, 5 }
 0x442   : > { %v12440_v58 = vrot.slane %v9177_v6, 9 }
 0x448   : > { %13614 = vmatmul.mubr.msk.bf16.gmra.mrb[20].mxu1 %vm7029_vm0, %v19617_v50  ;;  %v7617_v50 = vsel %vm15605_vm13, %v12291_v18, %v7616_v55  ;;  %v17950_v18 = vld [vmem:[#allocation3 + $0x44] sm:$0x1] }
 0x449   : > { %13617 = vmatprep.mubr.msk.bf16.mxu1 %vm7029_vm0, %v19618_v3  ;;  %v14608_v3 = vld [vmem:[%s19370_s3 + $0x68] sm:$0xff]   ;;  %v12315_v61 = vcombine.low %v7617_v50, %v7620_v63  ;;  %v12439_v63 = vrot.slane %v9176_v45, 9  ;;  %v9261_v50 = vrot.slane %v17935_v11, 5 }
 0x44b   : > { %v17975_v48 = vsel %vm15605_vm13, %v12440_v58, %v9261_v50  ;;  %v9263_v35 = vrot.slane %v9261_v50, 4 }
 0x44c   : > { %19629 = vst [vmem:[#allocation20_spill] sm:$0xff] %v17975_v48 }
 0x450   : > { %13618 = vmatmul.mubr.msk.bf16.gmra.mrb[24].mxu1 %vm7029_vm0, %v19619_v14  ;;  %v7633_v14 = vrot.slane %v19622_v4, 5  ;;  %v9264_v4 = vrot.slane %v17942_v5, 5 }
 0x451   : > { %13621 = vmatprep.mubr.msk.bf16.mxu1 %vm7029_vm0, %v19620_v20  ;;  %v14609_v20 = vld [vmem:[%s19370_s3 + $0x70] sm:$0xff]  }
 0x452   : > { %v7634_v33 = vsel %vm15605_vm13, %v7632_v56, %v7633_v14  ;;  %v17969_v56 = vld [vmem:[#allocation3 + $0x64] sm:$0xf]  ;;  %v9180_v14 = vld [vmem:[#allocation3 + $0x54] sm:$0xe] }
 0x453   : > { %v12443_v6 = vrot.slane %v9180_v14, 9  ;;  %v18032_v14 = vld [vmem:[#allocation3 + $0x88] sm:$0xf] }
 0x458   : > { %13622 = vmatmul.mubr.msk.bf16.gmra.mrb[28].mxu1 %vm7029_vm0, %v19621_v1 }
 0x459   : > { %13633 = vmatprep.mubr.msk.bf16.mxu1 %vm7029_vm0, %v12313_v41  ;;  %v7631_v41 = vsel %vm15605_vm13, %v12293_v10, %v7630_v29  ;;  %v9256_v29 = vrot.slane %v9254_v12, 4  ;;  %v9271_v10 = vrot.slane %v17950_v18, 5 }
 0x45a   : > { %v12317_v1 = vcombine.low %v7631_v41, %v7634_v33  ;;  %v9278_v41 = vrot.slane %v17955_v42, 5 }
 0x460   : > { %13634 = vmatmul.mubr.msk.bf16.vlgmr.msra.gmra.mrb[0].mxu1 %vm7029_vm0, %v12314_v27  ;;  %v17953_v27 = vld [vmem:[#allocation3 + $0x4c] sm:$0xf] }
 0x461   : > { %13637 = vmatprep.mubr.msk.bf16.mxu1 %vm7029_vm0, %v12315_v61  ;;  %13666 = vmatpush3.bf16.msra.mxu1 %v17770_v30  ;;  %v7624_v30 = vsel %vm15605_vm13, %v12292_v52, %v7623_v40  ;;  %v19626_v40 = vcombine.low %v17721_v16, %v17738_v49  ;;  %v17962_v16 = vsel %vm15605_vm13, %v12439_v63, %v9254_v12  ;;  %v12441_v61 = vrot.slane %v9178_v19, 9  ;;  %v18006_v63 = vld [vmem:[#allocation3 + $0x74] sm:$0x1] }
 0x462   : > { %13667 = vmatprep.subr.bf16.mxu1 %v14608_v3  ;;  %v12316_v55 = vcombine.low %v7624_v30, %v7627_v54  ;;  %19627 = vst [vmem:[#allocation24_spill] sm:$0xff] %v17962_v16  ;;  %v17966_v49 = vsel %vm15605_vm13, %v9256_v29, %v9257_v7  ;;  %v9270_v54 = vrot.slane %v9268_v23, 4  ;;  %v9275_v33 = vrot.slane %v17953_v27, 5 }
 0x463   : > { %19628 = vst [vmem:[#allocation25_spill] sm:$0xff] %v17966_v49  ;;  %v17982_v52 = vsel %vm15605_vm13, %v12441_v61, %v9268_v23  ;;  %v17988_v30 = vsel %vm15605_vm13, %v9263_v35, %v9264_v4  ;;  %v19633_v19 = vcombine.low %v17748_v51, %v17752_v60  ;;  %v19635_v61 = vcombine.low %v17756_v24, %v17764_v59  ;;  %v18019_v51 = vld [vmem:[#allocation3 + $0x7c] sm:$0xf]  ;;  %v18021_v60 = vld [vmem:[#allocation3 + $0x80] sm:$0x1] }
 0x464   : > { %19630 = vst [vmem:[#allocation21_spill] sm:$0xff] %v17982_v52  ;;  %19631 = vst [vmem:[#allocation8_spill] sm:$0xff] %v17988_v30  ;;  %v17998_v45 = vsel %vm15605_vm13, %v9270_v54, %v9271_v10  ;;  %v9277_v12 = vrot.slane %v9275_v33, 4  ;;  %v9289_v4 = vrot.slane %v17969_v56, 5  ;;  %v9306_v24 = vrot.slane %v18021_v60, 5 }
 0x465   : > { %13668 = vmatpush3.bf16.msra.mxu1 %v14608_v3  ;;  %v17958_v3 = vld [vmem:[#allocation3 + $0x58] sm:$0xf]  ;;  %19632 = vst [vmem:[#allocation9_spill] sm:$0xff] %v17998_v45  ;;  %v9310_v29 = vrot.slane %v18032_v14, 5 }
 0x466   : > { %13669 = vmatprep.subr.bf16.mxu1 %v14609_v20  ;;  %v18025_v23 = vsel %vm15605_vm13, %v9277_v12, %v9278_v41  ;;  %v8455_v41 = vld [vmem:[#allocation3 + $0x98] sm:$0x1] }
 0x467   : > { %19636 = vst [vmem:[#allocation11_spill] sm:$0xff] %v18025_v23  ;;  %v14620_v23 = vld [vmem:[#allocation3 + $0x60] sm:$0xff]  }
 0x468   : > { %13638 = vmatmul.mubr.msk.bf16.gmra.mrb[4].mxu1 %vm7029_vm0, %v12316_v55  ;;  %v12442_v55 = vrot.slane %v9179_v39, 9 }
 0x469   : > { %13641 = vmatprep.mubr.msk.bf16.mxu1 %vm7029_vm0, %v12317_v1  ;;  %13670 = vmatpush3.bf16.msra.mxu1 %v14609_v20  ;;  %v17978_v20 = vld [vmem:[#allocation3 + $0x5c] sm:$0x1]  ;;  %v9181_v1 = vld [vmem:[#allocation3 + $0x60] sm:$0xe] }
 0x46a   : > { %13671 = vmatprep.subr.bf16.mxu1 %v14610_v37  ;;  %v18012_v7 = vsel %vm15605_vm13, %v12442_v55, %v9275_v33  ;;  %v9285_v50 = vrot.slane %v17978_v20, 5  ;;  %v12444_v35 = vrot.slane %v9181_v1, 9  ;;  %v9183_v33 = vld [vmem:[#allocation3 + $0x78] sm:$0xe]  ;;  %v18041_v55 = vld [vmem:[#allocation3 + $0x8c] sm:$0x1] }
 0x46b   : > { %19634 = vst [vmem:[#allocation10_spill] sm:$0xff] %v18012_v7  ;;  %v9291_v1 = vrot.slane %v9289_v4, 4 }
 0x46d   : > { %13672 = vmatpush3.bf16.msra.mxu1 %v14610_v37  ;;  %v9282_v37 = vrot.slane %v17958_v3, 5 }
 0x46e   : > { %13705 = vmatprep.subr.bf16.mxu1 %v17920_v62 }
 0x46f   : > { %v9284_v58 = vrot.slane %v9282_v37, 4  ;;  %v18029_v39 = vsel %vm15605_vm13, %v12443_v6, %v9282_v37  ;;  %v18047_v37 = vsel %vm15605_vm13, %v12444_v35, %v9289_v4  ;;  %v9184_v6 = vld [vmem:[#allocation3 + $0x84] sm:$0xe]  ;;  %v12446_v4 = vrot.slane %v9183_v33, 9 }
 0x470   : > { %13642 = vmatmul.mubr.msk.bf16.gmra.mrb[8].mxu1 %vm7029_vm0, %v19623_v46  ;;  %v17992_v46 = vld [vmem:[#allocation3 + $0x70] sm:$0xf]  ;;  %19637 = vst [vmem:[#allocation13_spill] sm:$0xff] %v18029_v39  ;;  %19639 = vst [vmem:[#allocation15_spill] sm:$0xff] %v18047_v37  ;;  %v12447_v44 = vrot.slane %v9184_v6, 9 }
 0x471   : > { %13645 = vmatprep.mubr.msk.bf16.mxu1 %vm7029_vm0, %v19624_v36  ;;  %v18038_v59 = vsel %vm15605_vm13, %v9284_v58, %v9285_v50  ;;  %v9296_v10 = vrot.slane %v17992_v46, 5  ;;  %v9299_v50 = vrot.slane %v18006_v63, 5  ;;  %v18064_v36 = vld [vmem:[#allocation3 + $0xa0] sm:$0xf]  ;;  %v8432_v39 = vld [vmem:[#allocation3 + $0x3c] sm:$0xf] }
 0x472   : > { %19638 = vst [vmem:[#allocation14_spill] sm:$0xff] %v18038_v59  ;;  %v19643_v59 = vcombine.low %v17777_v17, %v17783_v2  ;;  %v18093_v33 = vsel %vm15605_vm13, %v12447_v44, %v9310_v29  ;;  %v19647_v2 = vcombine.low %v17787_v31, %v17794_v25  ;;  %v18100_v17 = vld [vmem:[#allocation3 + $0xb8] sm:$0xf]  ;;  %v9324_v44 = vrot.slane %v18064_v36, 5 }
 0x473   : > { %v9298_v58 = vrot.slane %v9296_v10, 4  ;;  %19646 = vst [vmem:[#allocation26_spill] sm:$0xff] %v18093_v33  ;;  %v9320_v25 = vrot.slane %v8455_v41, 5  ;;  %v8565_v7 = vshrl.u32 %v8432_v39, 16 }
 0x478   : > { %13646 = vmatmul.mubr.msk.bf16.gmra.mrb[12].mxu1 %vm7029_vm0, %v19625_v38  ;;  %v9182_v38 = vld [vmem:[#allocation3 + $0x6c] sm:$0xe] }
 0x479   : > { %13649 = vmatprep.mubr.msk.bf16.mxu1 %vm7029_vm0, %v19626_v40  ;;  %v18004_v40 = vld [vmem:[#allocation3 + $0x68] sm:$0x1]  ;;  %v12445_v54 = vrot.slane %v9182_v38, 9 }
 0x47a   : > { %v9292_v12 = vrot.slane %v18004_v40, 5 }
 0x47b   : > { %v18054_v38 = vsel %vm15605_vm13, %v12445_v54, %v9296_v10  ;;  %v18070_v10 = vsel %vm15605_vm13, %v9298_v58, %v9299_v50  ;;  %v18081_v54 = vld [vmem:[#allocation3 + $0xa4] sm:$0x1]  ;;  %v8461_v58 = vld [vmem:[#allocation3 + $0xb0] sm:$0x1] }
 0x47c   : > { %19640 = vst [vmem:[#allocation16_spill] sm:$0xff] %v18054_v38  ;;  %v18060_v35 = vsel %vm15605_vm13, %v9291_v1, %v9292_v12  ;;  %19642 = vst [vmem:[#allocation19_spill] sm:$0xff] %v18070_v10  ;;  %v9312_v1 = vrot.slane %v9310_v29, 4  ;;  %v9313_v12 = vrot.slane %v18041_v55, 5  ;;  %v9187_v29 = vld [vmem:[#allocation3 + $0xa8] sm:$0xe] }
 0x47d   : > { %19641 = vst [vmem:[#allocation18_spill] sm:$0xff] %v18060_v35  ;;  %v9334_v35 = vrot.slane %v8461_v58, 5  ;;  %v19655_v58 = vcombine.low %v17803_v22, %v17807_v21  ;;  %v18205_v22 = vld [vmem:[#allocation3 + $0x14] sm:$0x1] }
 0x480   : > { %13650 = vmatmul.mubr.msk.bf16.gmra.mrb[16].mxu1 %vm7029_vm0, %v19633_v19  ;;  %v18050_v19 = vld [vmem:[#allocation3 + $0x94] sm:$0xf] }
 0x481   : > { %13653 = vmatprep.mubr.msk.bf16.mxu1 %vm7029_vm0, %v19635_v61  ;;  %v9303_v61 = vrot.slane %v18019_v51, 5  ;;  %v9317_v10 = vrot.slane %v18050_v19, 5 }
 0x483   : > { %v9305_v28 = vrot.slane %v9303_v61, 4  ;;  %v18085_v6 = vsel %vm15605_vm13, %v12446_v4, %v9303_v61  ;;  %v8464_v61 = vld [vmem:[#allocation3 + $0xbc] sm:$0x1]  ;;  %v9319_v31 = vrot.slane %v9317_v10, 4 }
 0x484   : > { %19644 = vst [vmem:[#allocation22_spill] sm:$0xff] %v18085_v6 }
 0x485   : > { %v18089_v50 = vsel %vm15605_vm13, %v9305_v28, %v9306_v24  ;;  %v18106_v28 = vsel %vm15605_vm13, %v9312_v1, %v9313_v12  ;;  %v12448_v24 = vrot.slane %v9185_v8, 9  ;;  %v9331_v1 = vrot.slane %v18072_v47, 5  ;;  %v9188_v8 = vld [vmem:[#allocation3 + $0xb4] sm:$0xe]  ;;  %v18117_v12 = vld [vmem:[#allocation3 + $0xc4] sm:$0xf] }
 0x486   : > { %19645 = vst [vmem:[#allocation23_spill] sm:$0xff] %v18089_v50  ;;  %19648 = vst [vmem:[#allocation27_spill] sm:$0xff] %v18106_v28  ;;  %v9327_v50 = vrot.slane %v18081_v54, 5  ;;  %v18121_v6 = vsel %vm15605_vm13, %v9319_v31, %v9320_v25  ;;  %v12451_v25 = vrot.slane %v9188_v8, 9 }
 0x487   : > { %v18113_v38 = vsel %vm15605_vm13, %v12448_v24, %v9317_v10  ;;  %19650 = vst [vmem:[#allocation29_spill] sm:$0xff] %v18121_v6  ;;  %v9338_v10 = vrot.slane %v18100_v17, 5  ;;  %v8467_v24 = vld [vmem:[#allocation3 + $0xc8] sm:$0x1]  ;;  %v9333_v33 = vrot.slane %v9331_v1, 4 }
 0x488   : > { %13654 = vmatmul.mubr.msk.bf16.gmra.mrb[20].mxu1 %vm7029_vm0, %v19643_v59  ;;  %19649 = vst [vmem:[#allocation28_spill] sm:$0xff] %v18113_v38  ;;  %v9326_v59 = vrot.slane %v9324_v44, 4  ;;  %v9348_v8 = vrot.slane %v8467_v24, 5  ;;  %v14612_v24 = vld [vmem:[#allocation3 + $0x18] sm:$0xff]  }
 0x489   : > { %13657 = vmatprep.mubr.msk.bf16.mxu1 %vm7029_vm0, %v19647_v2  ;;  %v12449_v2 = vrot.slane %v9186_v43, 9  ;;  %v12450_v43 = vrot.slane %v9187_v29, 9  ;;  %v9340_v37 = vrot.slane %v9338_v10, 4  ;;  %v18142_v4 = vsel %vm15605_vm13, %v9333_v33, %v9334_v35 }
 0x48a   : > { %v18132_v28 = vsel %vm15605_vm13, %v9326_v59, %v9327_v50  ;;  %19654 = vst [vmem:[#allocation30_spill] sm:$0xff] %v18142_v4  ;;  %v9345_v50 = vrot.slane %v18117_v12, 5  ;;  %v19658_v35 = vcombine.low %v17818_v13, %v17822_v34  ;;  %v14611_v13 = vld [vmem:[#allocation3 + $0xc] sm:$0xff]   ;;  %v19661_v34 = vcombine.low %v17833_v53, %v17837_v0  ;;  %v14623_v53 = vld [vmem:[%s19370_s3 + $0x90] sm:$0xff]  }
 0x48b   : > { %v18125_v41 = vsel %vm15605_vm13, %v12449_v2, %v9324_v44  ;;  %19652 = vst [vmem:[#allocation12_spill] sm:$0xff] %v18132_v28  ;;  %v9341_v44 = vrot.slane %v8464_v61, 5  ;;  %v9189_v2 = vld [vmem:[#allocation3 + $0xc0] sm:$0xe]  ;;  %v18138_v29 = vsel %vm15605_vm13, %v12450_v43, %v9331_v1  ;;  %v18153_v61 = vsel %vm15605_vm13, %v12451_v25, %v9338_v10  ;;  %v14618_v25 = vld [vmem:[%s19370_s3 + $0x88] sm:$0xff]   ;;  %v14617_v59 = vld [vmem:[#allocation3 + $0x48] sm:$0xff]  }
 0x48c   : > { %19651 = vst [vmem:[#allocation7_spill] sm:$0xff] %v18125_v41  ;;  %19653 = vst [vmem:[#allocation17_spill] sm:$0xff] %v18138_v29  ;;  %v12452_v21 = vrot.slane %v9189_v2, 9  ;;  %v9347_v33 = vrot.slane %v9345_v50, 4  ;;  %v8420_v0 = vld [vmem:[#allocation3 + $0xc] sm:$0xf] }
 0x48d   : > { %19656 = vst [vmem:[#allocation31_spill] sm:$0xff] %v18153_v61  ;;  %v18157_v1 = vsel %vm15605_vm13, %v9340_v37, %v9341_v44  ;;  %v14614_v44 = vld [vmem:[#allocation3 + $0x24] sm:$0xff]   ;;  %v18189_v2 = vld [vmem:[#allocation3 + $0x10] sm:$0xf]  ;;  %v18203_v37 = vld [vmem:[#allocation3 + $0x1c] sm:$0xf] }
 0x48e   : > { %19657 = vst [vmem:[#allocation32_spill] sm:$0xff] %v18157_v1  ;;  %v18167_v43 = vsel %vm15605_vm13, %v12452_v21, %v9345_v50  ;;  %v18171_v10 = vsel %vm15605_vm13, %v9347_v33, %v9348_v8  ;;  %v8469_v50 = vshrl.u32 %v8420_v0, 16  ;;  %v14628_v21 = vld [vmem:[%s19370_s3 + $0x98] sm:$0xff]   ;;  %v8423_v33 = vld [vmem:[#allocation3 + $0x18] sm:$0xf]  ;;  %v8530_v4 = vshrl.u32 %v17931_v9, 16 }
 0x48f   : > { %19659 = vst [vmem:[#allocation33_spill] sm:$0xff] %v18167_v43  ;;  %19660 = vst [vmem:[#allocation34_spill] sm:$0xff] %v18171_v10  ;;  %v14616_v8 = vld [vmem:[#allocation3 + $0x3c] sm:$0xff]   ;;  %v8506_v10 = vshrl.u32 %v18203_v37, 16  ;;  %v14619_v1 = vld [vmem:[#allocation3 + $0x54] sm:$0xff]  }
 0x490   : > { %13658 = vmatmul.mubr.msk.bf16.gmra.mrb[24].mxu1 %vm7029_vm0, %v19655_v58  ;;  %v8472_v58 = vshll.u32 %v8420_v0, 16  ;;  %v18201_v0 = vld [vmem:[%s19370_s3 + $0xa0] sm:$0xff]  }
 0x491   : > { %13661 = vmatprep.mubr.msk.bf16.mxu1 %vm7029_vm0, %v19658_v35  ;;  %v14615_v35 = vld [vmem:[#allocation3 + $0x30] sm:$0xff]  }
 0x498   : > { %13662 = vmatmul.mubr.msk.bf16.gmra.mrb[28].mxu1 %vm7029_vm0, %v19661_v34  ;;  %v8474_v34 = vrot.slane %v8472_v58, 5 }
 0x499   : > { %13673 = vmatprep.mubr.msk.bf16.mxu1 %vm7029_vm0, %v14611_v13  ;;  %v8471_v13 = vrot.slane %v8469_v50, 4 }
 0x4a0   : > { %13674 = vmatmul.mubr.msk.bf16.vlgmr.msra.gmra.mrb[0].mxu1 %vm7029_vm0, %v14612_v24  ;;  %v8482_v24 = vshrl.u32 %v18189_v2, 16 }
 0x4a1   : > { %13677 = vmatprep.mubr.msk.bf16.mxu1 %vm7029_vm0, %v14614_v44  ;;  %13706 = vmatpush3.bf16.msra.mxu1 %v17920_v62  ;;  %v8478_v62 = vshll.u32 %v18189_v2, 16  ;;  %v8496_v44 = vshll.u32 %v8423_v33, 16 }
 0x4a2   : > { %13707 = vmatprep.subr.bf16.mxu1 %v14618_v25  ;;  %v8484_v50 = vrot.slane %v8482_v24, 4  ;;  %v8488_v24 = vshll.u32 %v18205_v22, 16 }
 0x4a3   : > { %v8498_v31 = vrot.slane %v8496_v44, 5 }
 0x4a5   : > { %13708 = vmatpush3.bf16.msra.mxu1 %v14618_v25  ;;  %v8493_v25 = vshrl.u32 %v8423_v33, 16  ;;  %v8502_v33 = vshll.u32 %v18203_v37, 16 }
 0x4a6   : > { %13709 = vmatprep.subr.bf16.mxu1 %v14623_v53 }
 0x4a7   : > { %v8495_v58 = vrot.slane %v8493_v25, 4  ;;  %v18220_v25 = vld [vmem:[#allocation3 + $0x20] sm:$0x1]  ;;  %v18222_v29 = vrot.slane %v8502_v33, 5 }
 0x4a8   : > { %13678 = vmatmul.mubr.msk.bf16.gmra.mrb[4].mxu1 %vm7029_vm0, %v14615_v35  ;;  %v8426_v35 = vld [vmem:[#allocation3 + $0x24] sm:$0xf] }
 0x4a9   : > { %13681 = vmatprep.mubr.msk.bf16.mxu1 %vm7029_vm0, %v14616_v8  ;;  %13710 = vmatpush3.bf16.msra.mxu1 %v14623_v53  ;;  %v8475_v8 = vor.u32 %v8474_v34, %v8471_v13  ;;  %v18207_v53 = vrot.slane %v8478_v62, 5  ;;  %v8517_v43 = vshrl.u32 %v8426_v35, 16  ;;  %v8520_v61 = vshll.u32 %v8426_v35, 16  ;;  %v8429_v62 = vld [vmem:[#allocation3 + $0x30] sm:$0xf] }
 0x4aa   : > { %13711 = vmatprep.subr.bf16.mxu1 %v14628_v21  ;;  %v8499_v44 = vor.u32 %v8498_v31, %v8495_v58  ;;  %v8508_v35 = vrot.slane %v8506_v10, 4  ;;  %v8541_v6 = vshrl.u32 %v8429_v62, 16  ;;  %v8544_v38 = vshll.u32 %v8429_v62, 16  ;;  %v14621_v10 = vld [vmem:[#allocation3 + $0x6c] sm:$0xff]  }
 0x4ab   : > { %v18216_v13 = vrot.slane %v8475_v8, 4  ;;  %v8485_v34 = vor.u32 %v8484_v50, %v18207_v53  ;;  %v8519_v28 = vrot.slane %v8517_v43, 4  ;;  %v8522_v41 = vrot.slane %v8520_v61, 5 }
 0x4ac   : > { %v18228_v8 = vrot.slane %v8488_v24, 5  ;;  %v8512_v50 = vshll.u32 %v18220_v25, 16  ;;  %v18235_v43 = vrot.slane %v8499_v44, 4  ;;  %v8509_v61 = vor.u32 %v8508_v35, %v18222_v29 }
 0x4ad   : > { %13712 = vmatpush3.bf16.msra.mxu1 %v14628_v21  ;;  %v8526_v21 = vshll.u32 %v17931_v9, 16  ;;  %v8523_v58 = vor.u32 %v8522_v41, %v8519_v28  ;;  %v8550_v62 = vshll.u32 %v17935_v11, 16  ;;  %v8554_v24 = vshrl.u32 %v17935_v11, 16 }
 0x4ae   : > { %13745 = vmatprep.subr.bf16.mxu1 %v18201_v0  ;;  %v8568_v31 = vshll.u32 %v8432_v39, 16  ;;  %v8514_v28 = vrot.slane %v8512_v50, 5  ;;  %v8574_v41 = vshll.u32 %v17944_v57, 16  ;;  %v8510_v11 = vrot.slane %v8509_v61, 4  ;;  %v14622_v61 = vld [vmem:[#allocation3 + $0x78] sm:$0xff]  }
 0x4af   : > { %v18224_v9 = vrot.slane %v8526_v21, 5  ;;  %v8543_v21 = vrot.slane %v8541_v6, 4  ;;  %v8578_v6 = vshrl.u32 %v17944_v57, 16  ;;  %v8598_v39 = vshll.u32 %v17953_v27, 16 }
 0x4b0   : > { %13682 = vmatmul.mubr.msk.bf16.gmra.mrb[8].mxu1 %vm7029_vm0, %v14617_v59  ;;  %v8532_v59 = vrot.slane %v8530_v4, 4  ;;  %v8536_v4 = vshll.u32 %v17933_v32, 16  ;;  %v8602_v44 = vshrl.u32 %v17953_v27, 16  ;;  %v8524_v35 = vrot.slane %v8523_v58, 4 }
 0x4b1   : > { %13685 = vmatprep.mubr.msk.bf16.mxu1 %vm7029_vm0, %v14619_v1  ;;  %v18226_v1 = vrot.slane %v8485_v34, 4  ;;  %v8546_v34 = vrot.slane %v8544_v38, 5  ;;  %v8435_v38 = vld [vmem:[#allocation3 + $0x48] sm:$0xf]  ;;  %v8556_v45 = vrot.slane %v8554_v24, 4  ;;  %v8567_v57 = vrot.slane %v8565_v7, 4 }
 0x4b2   : > { %v8533_v33 = vor.u32 %v8532_v59, %v18224_v9  ;;  %v8570_v52 = vrot.slane %v8568_v31, 5  ;;  %v18258_v30 = vrot.slane %v8574_v41, 5  ;;  %v8580_v48 = vrot.slane %v8578_v6, 4 }
 0x4b3   : > { %v8491_v32 = vsel %vm15198_vm6, %v18226_v1, %v18228_v8  ;;  %v18256_v1 = vrot.slane %v8550_v62, 5  ;;  %v8438_v8 = vld [vmem:[#allocation3 + $0x54] sm:$0xf]  ;;  %v8547_v50 = vor.u32 %v8546_v34, %v8543_v21  ;;  %v18260_v49 = vrot.slane %v8598_v39, 5 }
 0x4b4   : > { %v8534_v59 = vrot.slane %v8533_v33, 4  ;;  %v8604_v16 = vrot.slane %v8602_v44, 4  ;;  %v8613_v27 = vshrl.u32 %v8438_v8, 16  ;;  %v8616_v58 = vshll.u32 %v8438_v8, 16  ;;  %v14624_v33 = vld [vmem:[#allocation3 + $0x84] sm:$0xff]  }
 0x4b5   : > { %v8560_v21 = vshll.u32 %v17942_v5, 16  ;;  %v8622_v7 = vshll.u32 %v17958_v3, 16  ;;  %v8626_v31 = vshrl.u32 %v17958_v3, 16  ;;  %v8529_v62 = vsel %vm15198_vm6, %v8524_v35, %v18224_v9 }
 0x4b6   : > { %v8557_v24 = vor.u32 %v8556_v45, %v18256_v1  ;;  %v8584_v41 = vshll.u32 %v17950_v18, 16  ;;  %v8548_v5 = vrot.slane %v8547_v50, 4  ;;  %v8571_v6 = vor.u32 %v8570_v52, %v8567_v57 }
 0x4b7   : > { %v8605_v39 = vor.u32 %v8604_v16, %v18260_v49  ;;  %v8615_v44 = vrot.slane %v8613_v27, 4  ;;  %v8618_v9 = vrot.slane %v8616_v58, 5  ;;  %v18278_v35 = vrot.slane %v8622_v7, 5  ;;  %v14625_v27 = vld [vmem:[#allocation3 + $0x90] sm:$0xff]  }
 0x4b8   : > { %13686 = vmatmul.mubr.msk.bf16.gmra.mrb[12].mxu1 %vm7029_vm0, %v14620_v23  ;;  %v8505_v23 = vsel %vm15198_vm6, %v18235_v43, %v18222_v29  ;;  %v8589_v29 = vshrl.u32 %v8435_v38, 16  ;;  %v8592_v43 = vshll.u32 %v8435_v38, 16  ;;  %v8581_v38 = vor.u32 %v8580_v48, %v18258_v30 }
 0x4b9   : > { %13689 = vmatprep.mubr.msk.bf16.mxu1 %vm7029_vm0, %v14621_v10  ;;  %v8538_v10 = vrot.slane %v8536_v4, 5  ;;  %v8515_v4 = vsel %vm15198_vm6, %v8510_v11, %v8514_v28  ;;  %v8441_v28 = vld [vmem:[#allocation3 + $0x60] sm:$0xf]  ;;  %v19662_v18 = vsel %vm15198_vm6, %v18216_v13, %v18207_v53  ;;  %v8562_v48 = vrot.slane %v8560_v21, 5 }
 0x4ba   : > { %v8591_v11 = vrot.slane %v8589_v29, 4  ;;  %v8594_v3 = vrot.slane %v8592_v43, 5  ;;  %v8640_v45 = vshll.u32 %v8441_v28, 16  ;;  %v18285_v8 = vcombine.low %v19662_v18, %v8491_v32  ;;  %v14626_v32 = vld [vmem:[#allocation3 + $0x9c] sm:$0xff]  }
 0x4bb   : > { %v8539_v34 = vsel %vm15198_vm6, %v8534_v59, %v8538_v10  ;;  %v8628_v59 = vrot.slane %v8626_v31, 4  ;;  %v8637_v10 = vshrl.u32 %v8441_v28, 16  ;;  %v18287_v52 = vcombine.low %v8505_v23, %v8515_v4 }
 0x4bc   : > { %v18289_v50 = vcombine.low %v8529_v62, %v8539_v34  ;;  %v8558_v16 = vrot.slane %v8557_v24, 4  ;;  %v8586_v57 = vrot.slane %v8584_v41, 5  ;;  %v8595_v29 = vor.u32 %v8594_v3, %v8591_v11 }
 0x4bd   : > { %v8608_v43 = vshll.u32 %v17955_v42, 16  ;;  %v8553_v58 = vsel %vm15198_vm6, %v8548_v5, %v18256_v1  ;;  %v8582_v53 = vrot.slane %v8581_v38, 4  ;;  %v8606_v13 = vrot.slane %v8605_v39, 4 }
 0x4be   : > { %v8619_v23 = vor.u32 %v8618_v9, %v8615_v44  ;;  %v8629_v4 = vor.u32 %v8628_v59, %v18278_v35  ;;  %v8639_v7 = vrot.slane %v8637_v10, 4  ;;  %v8642_v21 = vrot.slane %v8640_v45, 5  ;;  %v18326_v45 = vld [vmem:[#allocation3 + $0x1c] sm:$0xf] }
 0x4bf   : > { %v8646_v31 = vshll.u32 %v17969_v56, 16  ;;  %v8650_v42 = vshrl.u32 %v17969_v56, 16  ;;  %v8563_v1 = vsel %vm15198_vm6, %v8558_v16, %v8562_v48  ;;  %v8596_v24 = vrot.slane %v8595_v29, 4  ;;  %19663 = vst [vmem:[#allocation35_spill] sm:$0xff] %v18326_v45  ;;  %v18337_v29 = vld [vmem:[#allocation3 + $0x20] sm:$0x1] }
 0x4c0   : > { %13690 = vmatmul.mubr.msk.bf16.gmra.mrb[16].mxu1 %vm7029_vm0, %v14622_v61  ;;  %v8444_v61 = vld [vmem:[#allocation3 + $0x6c] sm:$0xf]  ;;  %v8610_v41 = vrot.slane %v8608_v43, 5  ;;  %v8632_v28 = vshll.u32 %v17978_v20, 16  ;;  %v8670_v56 = vshll.u32 %v17992_v46, 16  ;;  %v8674_v11 = vshrl.u32 %v17992_v46, 16 }
 0x4c1   : > { %13693 = vmatprep.mubr.msk.bf16.mxu1 %vm7029_vm0, %v14624_v33  ;;  %v8572_v33 = vrot.slane %v8571_v6, 4  ;;  %v8661_v62 = vshrl.u32 %v8444_v61, 16  ;;  %v8664_v34 = vshll.u32 %v8444_v61, 16  ;;  %v8587_v6 = vsel %vm15198_vm6, %v8582_v53, %v8586_v57  ;;  %v18316_v20 = vld [vmem:[#allocation3 + $0x78] sm:$0xf]  ;;  %v14627_v46 = vld [vmem:[#allocation3 + $0xa8] sm:$0xff]  }
 0x4c2   : > { %v8611_v3 = vsel %vm15198_vm6, %v8606_v13, %v8610_v41  ;;  %v18312_v38 = vrot.slane %v8619_v23, 4  ;;  %v18314_v39 = vrot.slane %v8629_v4, 4  ;;  %v8643_v44 = vor.u32 %v8642_v21, %v8639_v7  ;;  %19664 = vst [vmem:[#allocation36_spill] sm:$0xff] %v18337_v29  ;;  %v10813_v43 = vld [vmem:[#allocation3 + $0x18] sm:$0xe] }
 0x4c3   : > { %v8577_v5 = vsel %vm15198_vm6, %v8572_v33, %v18258_v30  ;;  %v18318_v9 = vrot.slane %v8646_v31, 5  ;;  %v18320_v30 = vrot.slane %v8650_v42, 4  ;;  %v18322_v59 = vrot.slane %v8661_v62, 4  ;;  %v14629_v61 = vld [vmem:[#allocation3 + $0xb4] sm:$0xff]   ;;  %v18358_v4 = vld [vmem:[#allocation3 + $0x28] sm:$0xf] }
 0x4c4   : > { %v18324_v10 = vrot.slane %v8664_v34, 5  ;;  %v18328_v18 = vcombine.low %v8553_v58, %v8563_v1  ;;  %v18330_v48 = vcombine.low %v8577_v5, %v8587_v6  ;;  %v8601_v16 = vsel %vm15198_vm6, %v8596_v24, %v18260_v49  ;;  %v18346_v13 = vld [vmem:[#allocation3 + $0x34] sm:$0xf]  ;;  %19666 = vst [vmem:[#allocation38_spill] sm:$0xff] %v18358_v4  ;;  %v18360_v7 = vld [vmem:[#allocation3 + $0x2c] sm:$0x1] }
 0x4c5   : > { %v18335_v57 = vrot.slane %v8632_v28, 5  ;;  %v18342_v53 = vrot.slane %v8670_v56, 5  ;;  %v18344_v58 = vrot.slane %v8674_v11, 4  ;;  %19665 = vst [vmem:[#allocation37_spill] sm:$0xff] %v18346_v13  ;;  %v18356_v23 = vrot.slane %v8643_v44, 4  ;;  %19667 = vst [vmem:[#allocation39_spill] sm:$0xff] %v18360_v7 }
 0x4c6   : > { %v10879_v21 = vrot.slane %v18326_v45, 5  ;;  %v18370_v1 = vld [vmem:[#allocation3 + $0x38] sm:$0x1]  ;;  %v10814_v24 = vld [vmem:[#allocation3 + $0x24] sm:$0xe]  ;;  %v8694_v41 = vshll.u32 %v18019_v51, 16 }
 0x4c7   : > { %19668 = vst [vmem:[#allocation40_spill] sm:$0xff] %v18370_v1  ;;  %v12585_v28 = vrot.slane %v10813_v43, 9  ;;  %v10882_v6 = vrot.slane %v18337_v29, 5  ;;  %v10815_v56 = vld [vmem:[#allocation3 + $0x30] sm:$0xe]  ;;  %v12586_v49 = vrot.slane %v10814_v24, 9 }
 0x4c8   : > { %13694 = vmatmul.mubr.msk.bf16.gmra.mrb[20].mxu1 %vm7029_vm0, %v14625_v27  ;;  %v18339_v27 = vcombine.low %v8601_v16, %v8611_v3  ;;  %v10881_v5 = vrot.slane %v10879_v21, 4  ;;  %v18381_v16 = vld [vmem:[#allocation3 + $0x4c] sm:$0xf]  ;;  %v18384_v62 = vld [vmem:[#allocation3 + $0x44] sm:$0x1]  ;;  %v10889_v34 = vrot.slane %v18360_v7, 5 }
 0x4c9   : > { %13697 = vmatprep.mubr.msk.bf16.mxu1 %vm7029_vm0, %v14626_v32  ;;  %19670 = vst [vmem:[#allocation42_spill] sm:$0xff] %v18381_v16  ;;  %19671 = vst [vmem:[#allocation43_spill] sm:$0xff] %v18384_v62  ;;  %v18388_v43 = vsel %vm15605_vm13, %v12585_v28, %v10879_v21  ;;  %v10893_v32 = vrot.slane %v18346_v13, 5  ;;  %v10816_v11 = vld [vmem:[#allocation3 + $0x3c] sm:$0xe]  ;;  %v12587_v44 = vrot.slane %v10815_v56, 9 }
 0x4ca   : > { %19672 = vst [vmem:[#allocation44_spill] sm:$0xff] %v18388_v43  ;;  %v18392_v33 = vsel %vm15605_vm13, %v10881_v5, %v10882_v6  ;;  %v18395_v42 = vld [vmem:[#allocation3 + $0x50] sm:$0x1]  ;;  %v14630_v29 = vld [vmem:[#allocation3 + $0xc0] sm:$0xff]   ;;  %v18400_v21 = vrot.slane %v8694_v41, 5  ;;  %v10896_v6 = vrot.slane %v18370_v1, 5 }
 0x4cb   : > { %19673 = vst [vmem:[#allocation45_spill] sm:$0xff] %v18392_v33  ;;  %19674 = vst [vmem:[#allocation46_spill] sm:$0xff] %v18395_v42  ;;  %v18402_v28 = vld [vmem:[#allocation3 + $0x64] sm:$0xf]  ;;  %v10895_v5 = vrot.slane %v10893_v32, 4  ;;  %v18417_v41 = vsel %vm15605_vm13, %v12587_v44, %v10893_v32  ;;  %v12588_v56 = vrot.slane %v10816_v11, 9 }
 0x4cc   : > { %19675 = vst [vmem:[#allocation47_spill] sm:$0xff] %v18402_v28  ;;  %v10817_v13 = vld [vmem:[#allocation3 + $0x48] sm:$0xe]  ;;  %19679 = vst [vmem:[#allocation51_spill] sm:$0xff] %v18417_v41  ;;  %v10818_v43 = vld [vmem:[#allocation3 + $0x54] sm:$0xe] }
 0x4cd   : > { %v18428_v7 = vsel %vm15605_vm13, %v10895_v5, %v10896_v6  ;;  %v10907_v32 = vrot.slane %v18381_v16, 5  ;;  %v12589_v44 = vrot.slane %v10817_v13, 9  ;;  %v10819_v45 = vld [vmem:[#allocation3 + $0x60] sm:$0xe]  ;;  %v18438_v1 = vld [vmem:[#allocation3 + $0x7c] sm:$0xf] }
 0x4ce   : > { %19682 = vst [vmem:[#allocation54_spill] sm:$0xff] %v18428_v7  ;;  %19683 = vst [vmem:[#allocation55_spill] sm:$0xff] %v18438_v1  ;;  %v10921_v7 = vrot.slane %v18402_v28, 5  ;;  %v18474_v41 = vld [vmem:[#allocation3 + $0x88] sm:$0xf] }
 0x4cf   : > { %v10909_v6 = vrot.slane %v10907_v32, 4  ;;  %v18453_v11 = vsel %vm15605_vm13, %v12589_v44, %v10907_v32  ;;  %19692 = vst [vmem:[#allocation64_spill] sm:$0xff] %v18474_v41  ;;  %v10096_v16 = vld [vmem:[#allocation3 + $0xac] sm:$0xf] }
 0x4d0   : > { %13698 = vmatmul.mubr.msk.bf16.gmra.mrb[24].mxu1 %vm7029_vm0, %v14627_v46  ;;  %v18379_v46 = vld [vmem:[#allocation3 + $0x40] sm:$0xf]  ;;  %19687 = vst [vmem:[#allocation59_spill] sm:$0xff] %v18453_v11  ;;  %v10091_v11 = vld [vmem:[#allocation3 + $0x98] sm:$0x1] }
 0x4d1   : > { %13701 = vmatprep.mubr.msk.bf16.mxu1 %vm7029_vm0, %v14629_v61  ;;  %19669 = vst [vmem:[#allocation41_spill] sm:$0xff] %v18379_v46  ;;  %v10886_v61 = vrot.slane %v18358_v4, 5  ;;  %v18409_v4 = vld [vmem:[#allocation3 + $0x58] sm:$0xf]  ;;  %v10900_v33 = vrot.slane %v18379_v46, 5  ;;  %v10910_v46 = vrot.slane %v18395_v42, 5 }
 0x4d2   : > { %19677 = vst [vmem:[#allocation49_spill] sm:$0xff] %v18409_v4 }
 0x4d3   : > { %v10888_v3 = vrot.slane %v10886_v61, 4  ;;  %v18406_v24 = vsel %vm15605_vm13, %v12586_v49, %v10886_v61  ;;  %v18420_v49 = vld [vmem:[#allocation3 + $0x5c] sm:$0x1]  ;;  %v18422_v61 = vld [vmem:[#allocation3 + $0x68] sm:$0x1]  ;;  %v18442_v5 = vsel %vm15605_vm13, %v12588_v56, %v10900_v33  ;;  %v18463_v42 = vsel %vm15605_vm13, %v10909_v6, %v10910_v46 }
 0x4d4   : > { %19676 = vst [vmem:[#allocation48_spill] sm:$0xff] %v18406_v24  ;;  %19680 = vst [vmem:[#allocation52_spill] sm:$0xff] %v18420_v49  ;;  %v18445_v24 = vld [vmem:[#allocation3 + $0x70] sm:$0xf]  ;;  %v18457_v56 = vld [vmem:[#allocation3 + $0x74] sm:$0x1] }
 0x4d5   : > { %v18413_v31 = vsel %vm15605_vm13, %v10888_v3, %v10889_v34  ;;  %19681 = vst [vmem:[#allocation53_spill] sm:$0xff] %v18422_v61  ;;  %v10903_v34 = vrot.slane %v18384_v62, 5  ;;  %v10902_v3 = vrot.slane %v10900_v33, 4  ;;  %19684 = vst [vmem:[#allocation56_spill] sm:$0xff] %v18442_v5  ;;  %v10820_v33 = vld [vmem:[#allocation3 + $0x6c] sm:$0xe] }
 0x4d6   : > { %19678 = vst [vmem:[#allocation50_spill] sm:$0xff] %v18413_v31  ;;  %v12590_v31 = vrot.slane %v10818_v43, 9  ;;  %19685 = vst [vmem:[#allocation57_spill] sm:$0xff] %v18445_v24  ;;  %v10085_v43 = vld [vmem:[#allocation3 + $0x80] sm:$0x1]  ;;  %v10924_v28 = vrot.slane %v18422_v61, 5 }
 0x4d7   : > { %v18449_v13 = vsel %vm15605_vm13, %v10902_v3, %v10903_v34  ;;  %19688 = vst [vmem:[#allocation60_spill] sm:$0xff] %v18457_v56  ;;  %19689 = vst [vmem:[#allocation61_spill] sm:$0xff] %v18463_v42  ;;  %v12591_v3 = vrot.slane %v10819_v45, 9  ;;  %v18465_v62 = vld [vmem:[#allocation3 + $0x94] sm:$0xf]  ;;  %v12592_v6 = vrot.slane %v10820_v33, 9 }
 0x4d8   : > { %13702 = vmatmul.mubr.msk.bf16.gmra.mrb[28].mxu1 %vm7029_vm0, %v14630_v29  ;;  %v10914_v29 = vrot.slane %v18409_v4, 5  ;;  %19686 = vst [vmem:[#allocation58_spill] sm:$0xff] %v18449_v13  ;;  %19690 = vst [vmem:[#allocation62_spill] sm:$0xff] %v18465_v62  ;;  %v10821_v4 = vld [vmem:[#allocation3 + $0x78] sm:$0xe]  ;;  %v10928_v32 = vrot.slane %v18445_v24, 5 }
 0x4d9   : > { %13713 = vmatprep.mubr.msk.bf16.mxu1 %vm7029_vm0, %v18285_v8  ;;  %v10917_v8 = vrot.slane %v18420_v49, 5  ;;  %v10923_v49 = vrot.slane %v10921_v7, 4  ;;  %v18482_v45 = vsel %vm15605_vm13, %v12591_v3, %v10921_v7  ;;  %v10822_v42 = vld [vmem:[#allocation3 + $0x84] sm:$0xe]  ;;  %v10931_v7 = vrot.slane %v18457_v56, 5 }
 0x4da   : > { %v10916_v34 = vrot.slane %v10914_v29, 4  ;;  %v18471_v44 = vsel %vm15605_vm13, %v12590_v31, %v10914_v29  ;;  %19694 = vst [vmem:[#allocation66_spill] sm:$0xff] %v18482_v45  ;;  %v14632_v31 = vld [vmem:[%s19370_s3 + $0xa8] sm:$0xff]   ;;  %v10088_v29 = vld [vmem:[#allocation3 + $0x8c] sm:$0x1]  ;;  %v10935_v33 = vrot.slane %v18438_v1, 5  ;;  %v18502_v13 = vsel %vm15605_vm13, %v12592_v6, %v10928_v32 }
 0x4db   : > { %19691 = vst [vmem:[#allocation63_spill] sm:$0xff] %v18471_v44  ;;  %v10930_v3 = vrot.slane %v10928_v32, 4  ;;  %v12593_v5 = vrot.slane %v10821_v4, 9  ;;  %v10938_v61 = vrot.slane %v10085_v43, 5  ;;  %v10823_v24 = vld [vmem:[#allocation3 + $0x90] sm:$0xe] }
 0x4dc   : > { %v18478_v46 = vsel %vm15605_vm13, %v10916_v34, %v10917_v8  ;;  %v18492_v8 = vsel %vm15605_vm13, %v10923_v49, %v10924_v28  ;;  %v10937_v28 = vrot.slane %v10935_v33, 4  ;;  %v12594_v49 = vrot.slane %v10822_v42, 9  ;;  %v10093_v4 = vld [vmem:[#allocation3 + $0xa0] sm:$0xf]  ;;  %v10094_v43 = vld [vmem:[#allocation3 + $0xa4] sm:$0x1] }
 0x4dd   : > { %19693 = vst [vmem:[#allocation65_spill] sm:$0xff] %v18478_v46  ;;  %19695 = vst [vmem:[#allocation67_spill] sm:$0xff] %v18492_v8  ;;  %v10942_v46 = vrot.slane %v18474_v41, 5  ;;  %v18510_v34 = vsel %vm15605_vm13, %v10930_v3, %v10931_v7  ;;  %v10945_v32 = vrot.slane %v10088_v29, 5  ;;  %v10949_v42 = vrot.slane %v18465_v62, 5  ;;  %v19777_v26 = vld [vmem:[#allocation56_spill] sm:$0xff] }
 0x4de   : > { %v10097_v6 = vld [vmem:[#allocation3 + $0xb0] sm:$0x1]  ;;  %v18524_v7 = vsel %vm15605_vm13, %v10937_v28, %v10938_v61  ;;  %v12595_v8 = vrot.slane %v10823_v24, 9  ;;  %v19696_v29 = vshrl.u32 %v18019_v51, 16  ;;  %v10952_v62 = vrot.slane %v10091_v11, 5 }
 0x4df   : > { %v10944_v3 = vrot.slane %v10942_v46, 4  ;;  %v10951_v44 = vrot.slane %v10949_v42, 4  ;;  %v10825_v41 = vld [vmem:[#allocation3 + $0xa8] sm:$0xe]  ;;  %v10099_v56 = vld [vmem:[#allocation3 + $0xb8] sm:$0xf] }
 0x4e0   : > { %13714 = vmatmul.mubr.msk.bf16.vlgmr.msra.gmra.mrb[0].mxu1 %vm7029_vm0, %v18287_v52  ;;  %v18514_v52 = vsel %vm15605_vm13, %v12593_v5, %v10935_v33  ;;  %v10824_v5 = vld [vmem:[#allocation3 + $0x9c] sm:$0xe]  ;;  %v18528_v33 = vrot.slane %v19696_v29, 4  ;;  %v10102_v1 = vld [vmem:[#allocation3 + $0xc4] sm:$0xf]  ;;  %v18542_v51 = vsel %vm15605_vm13, %v12595_v8, %v10949_v42  ;;  %v10956_v61 = vrot.slane %v10093_v4, 5 }
 0x4e1   : > { %13717 = vmatprep.mubr.msk.bf16.mxu1 %vm7029_vm0, %v18289_v50  ;;  %13746 = vmatpush3.bf16.msra.mxu1 %v18201_v0  ;;  %v14633_v50 = vld [vmem:[%s19370_s3 + $0xb0] sm:$0xff]   ;;  %v18534_v0 = vsel %vm15605_vm13, %v12594_v49, %v10942_v46  ;;  %v18538_v24 = vsel %vm15605_vm13, %v10944_v3, %v10945_v32  ;;  %v18548_v29 = vsel %vm15605_vm13, %v10951_v44, %v10952_v62  ;;  %v12596_v46 = vrot.slane %v10824_v5, 9  ;;  %v10826_v45 = vld [vmem:[#allocation3 + $0xb4] sm:$0xe]  ;;  %v14634_v32 = vld [vmem:[%s19370_s3 + $0xb8] sm:$0xff]  }
 0x4e2   : > { %13747 = vmatprep.subr.bf16.mxu1 %v14632_v31  ;;  %19697 = vst [vmem:[#allocation68_spill] sm:$0xff] %v18538_v24  ;;  %v10100_v28 = vld [vmem:[#allocation3 + $0xbc] sm:$0x1]  ;;  %v10963_v49 = vrot.slane %v10096_v16, 5  ;;  %v10103_v8 = vld [vmem:[#allocation3 + $0xc8] sm:$0x1] }
 0x4e3   : > { %v10958_v4 = vrot.slane %v10956_v61, 4  ;;  %v10959_v42 = vrot.slane %v10094_v43, 5  ;;  %v12597_v3 = vrot.slane %v10825_v41, 9  ;;  %v18557_v11 = vsel %vm15605_vm13, %v12596_v46, %v10956_v61  ;;  %v10827_v5 = vld [vmem:[#allocation3 + $0xc0] sm:$0xe] }
 0x4e4   : > { %v10965_v62 = vrot.slane %v10963_v49, 4  ;;  %v10966_v44 = vrot.slane %v10097_v6, 5  ;;  %v10970_v16 = vrot.slane %v10099_v56, 5  ;;  %v12598_v41 = vrot.slane %v10826_v45, 9  ;;  %v8450_v46 = vld [vmem:[#allocation3 + $0x84] sm:$0xf] }
 0x4e5   : > { %13748 = vmatpush3.bf16.msra.mxu1 %v14632_v31  ;;  %v18563_v24 = vsel %vm15605_vm13, %v10958_v4, %v10959_v42  ;;  %v18567_v31 = vsel %vm15605_vm13, %v12597_v3, %v10963_v49  ;;  %v10977_v43 = vrot.slane %v10102_v1, 5  ;;  %v10973_v61 = vrot.slane %v10100_v28, 5  ;;  %v18580_v45 = vld [vmem:[%s19370_s3 + $0xc0] sm:$0xff]  }
 0x4e6   : > { %13749 = vmatprep.subr.bf16.mxu1 %v14633_v50  ;;  %v10972_v6 = vrot.slane %v10970_v16, 4  ;;  %v12599_v1 = vrot.slane %v10827_v5, 9  ;;  %v10980_v49 = vrot.slane %v10103_v8, 5  ;;  %v19698_v4 = vshrl.u32 %v18316_v20, 16 }
 0x4e7   : > { %v8718_v3 = vshll.u32 %v18032_v14, 16  ;;  %v18589_v28 = vsel %vm15605_vm13, %v12598_v41, %v10970_v16  ;;  %v19699_v16 = vshll.u32 %v18316_v20, 16  ;;  %v8712_v56 = vshll.u32 %v8450_v46, 16 }
 0x4e8   : > { %13718 = vmatmul.mubr.msk.bf16.gmra.mrb[4].mxu1 %vm7029_vm0, %v18328_v18  ;;  %v18575_v18 = vsel %vm15605_vm13, %v10965_v62, %v10966_v44  ;;  %v8687_v42 = vrot.slane %v19698_v4, 4  ;;  %v18593_v62 = vsel %vm15605_vm13, %v10972_v6, %v10973_v61  ;;  %v8722_v44 = vshrl.u32 %v18032_v14, 16 }
 0x4e9   : > { %13721 = vmatprep.mubr.msk.bf16.mxu1 %vm7029_vm0, %v18330_v48  ;;  %13750 = vmatpush3.bf16.msra.mxu1 %v14633_v50  ;;  %v10979_v50 = vrot.slane %v10977_v43, 4  ;;  %v12622_v5 = vcombine.low %v18589_v28, %v18593_v62  ;;  %v18600_v8 = vsel %vm15605_vm13, %v12599_v1, %v10977_v43  ;;  %v8690_v41 = vrot.slane %v19699_v16, 5 }
 0x4ea   : > { %13751 = vmatprep.subr.bf16.mxu1 %v14634_v32  ;;  %v8709_v48 = vshrl.u32 %v8450_v46, 16  ;;  %v19700_v6 = vor.u32 %v18320_v30, %v18318_v9  ;;  %v19701_v43 = vor.u32 %v18324_v10, %v18322_v59  ;;  %v8701_v20 = vor.u32 %v18528_v33, %v18400_v21 }
 0x4eb   : > { %v18604_v4 = vsel %vm15605_vm13, %v10979_v50, %v10980_v49  ;;  %v19702_v50 = vor.u32 %v18344_v58, %v18342_v53  ;;  %v19704_v30 = vsel %vm15198_vm6, %v18312_v38, %v18278_v35  ;;  %v19705_v10 = vshll.u32 %v18004_v40, 16 }
 0x4ec   : > { %v12623_v14 = vcombine.low %v18600_v8, %v18604_v4  ;;  %v8654_v61 = vrot.slane %v19700_v6, 4  ;;  %v8668_v1 = vrot.slane %v19701_v43, 4  ;;  %v19706_v33 = vshll.u32 %v18006_v63, 16 }
 0x4ed   : > { %13752 = vmatpush3.bf16.msra.mxu1 %v14634_v32  ;;  %v8678_v49 = vrot.slane %v19702_v50, 4  ;;  %v19703_v32 = vsel %vm15198_vm6, %v18314_v39, %v18335_v57  ;;  %v8658_v58 = vrot.slane %v19705_v10, 5  ;;  %v8704_v16 = vshll.u32 %v18021_v60, 16  ;;  %v8453_v57 = vld [vmem:[#allocation3 + $0x90] sm:$0xf] }
 0x4ee   : > { %13785 = vmatprep.subr.bf16.mxu1 %v18580_v45  ;;  %v12407_v59 = vcombine.low %v19704_v30, %v19703_v32  ;;  %v8682_v46 = vrot.slane %v19706_v33, 5  ;;  %v18639_v6 = vrot.slane %v8718_v3, 5  ;;  %v8724_v39 = vrot.slane %v8722_v44, 4 }
 0x4ef   : > { %v8649_v40 = vsel %vm15198_vm6, %v18356_v23, %v18318_v9  ;;  %v8691_v35 = vor.u32 %v8690_v41, %v8687_v42  ;;  %v8711_v38 = vrot.slane %v8709_v48, 4  ;;  %v8714_v43 = vrot.slane %v8712_v56, 5  ;;  %v8456_v23 = vld [vmem:[#allocation3 + $0x9c] sm:$0xf] }
 0x4f0   : > { %13722 = vmatmul.mubr.msk.bf16.gmra.mrb[8].mxu1 %vm7029_vm0, %v18339_v27  ;;  %v8659_v63 = vsel %vm15198_vm6, %v8654_v61, %v8658_v58  ;;  %v8673_v60 = vsel %vm15198_vm6, %v8668_v1, %v18342_v53  ;;  %v8683_v27 = vsel %vm15198_vm6, %v8678_v49, %v8682_v46  ;;  %v8702_v3 = vrot.slane %v8701_v20, 4 }
 0x4f1   : > { %13725 = vmatprep.mubr.msk.bf16.mxu1 %vm7029_vm0, %v12407_v59  ;;  %v8733_v44 = vshrl.u32 %v8453_v57, 16  ;;  %v8736_v50 = vshll.u32 %v8453_v57, 16  ;;  %v8742_v32 = vshll.u32 %v18050_v19, 16  ;;  %v8746_v9 = vshrl.u32 %v18050_v19, 16 }
 0x4f2   : > { %v8706_v48 = vrot.slane %v8704_v16, 5  ;;  %v8725_v56 = vor.u32 %v8724_v39, %v18639_v6  ;;  %v8766_v42 = vshll.u32 %v18064_v36, 16  ;;  %v8770_v41 = vshrl.u32 %v18064_v36, 16 }
 0x4f3   : > { %v12408_v61 = vcombine.low %v8649_v40, %v8659_v63  ;;  %v12409_v53 = vcombine.low %v8673_v60, %v8683_v27  ;;  %v8692_v1 = vrot.slane %v8691_v35, 4  ;;  %v8715_v30 = vor.u32 %v8714_v43, %v8711_v38  ;;  %v8459_v63 = vld [vmem:[#allocation3 + $0xa8] sm:$0xf] }
 0x4f4   : > { %v8707_v49 = vsel %vm15198_vm6, %v8702_v3, %v8706_v48  ;;  %v8728_v20 = vshll.u32 %v18041_v55, 16  ;;  %v8757_v59 = vshrl.u32 %v8456_v23, 16  ;;  %v8760_v10 = vshll.u32 %v8456_v23, 16 }
 0x4f5   : > { %v8735_v19 = vrot.slane %v8733_v44, 4  ;;  %v8738_v58 = vrot.slane %v8736_v50, 5  ;;  %v18661_v33 = vrot.slane %v8742_v32, 5  ;;  %v8748_v46 = vrot.slane %v8746_v9, 4  ;;  %v8462_v50 = vld [vmem:[#allocation3 + $0xb4] sm:$0xf] }
 0x4f6   : > { %v8726_v16 = vrot.slane %v8725_v56, 4  ;;  %v18664_v36 = vrot.slane %v8766_v42, 5  ;;  %v8772_v39 = vrot.slane %v8770_v41, 4  ;;  %v8697_v57 = vsel %vm15198_vm6, %v8692_v1, %v18400_v21  ;;  %v14957_v56 = vld [vmem:[#allocation3 + $0x98] sm:$0x1] }
 0x4f7   : > { %v8716_v55 = vrot.slane %v8715_v30, 4  ;;  %v12410_v40 = vcombine.low %v8697_v57, %v8707_v49  ;;  %v8730_v35 = vrot.slane %v8728_v20, 5  ;;  %v8759_v38 = vrot.slane %v8757_v59, 4 }
 0x4f8   : > { %13726 = vmatmul.mubr.msk.bf16.gmra.mrb[12].mxu1 %vm7029_vm0, %v12408_v61  ;;  %v8762_v43 = vrot.slane %v8760_v10, 5  ;;  %v8739_v60 = vor.u32 %v8738_v58, %v8735_v19  ;;  %v8749_v27 = vor.u32 %v8748_v46, %v18661_v33  ;;  %v8790_v3 = vshll.u32 %v18072_v47, 16 }
 0x4f9   : > { %13729 = vmatprep.mubr.msk.bf16.mxu1 %vm7029_vm0, %v12409_v53  ;;  %v8794_v44 = vshrl.u32 %v18072_v47, 16  ;;  %v8731_v32 = vsel %vm15198_vm6, %v8726_v16, %v8730_v35  ;;  %v8773_v9 = vor.u32 %v8772_v39, %v18664_v36  ;;  %v8814_v21 = vshll.u32 %v18100_v17, 16 }
 0x4fa   : > { %v8818_v23 = vshrl.u32 %v18100_v17, 16  ;;  %v8721_v48 = vsel %vm15198_vm6, %v8716_v55, %v18639_v6  ;;  %v8752_v42 = vshll.u32 %v14957_v56, 16  ;;  %v8781_v41 = vshrl.u32 %v8459_v63, 16 }
 0x4fb   : > { %v8784_v61 = vshll.u32 %v8459_v63, 16  ;;  %v8763_v53 = vor.u32 %v8762_v43, %v8759_v38  ;;  %v8776_v47 = vshll.u32 %v18081_v54, 16  ;;  %v8805_v1 = vshrl.u32 %v8462_v50, 16  ;;  %v8465_v38 = vld [vmem:[#allocation3 + $0xc0] sm:$0xf] }
 0x4fc   : > { %v8808_v30 = vshll.u32 %v8462_v50, 16  ;;  %v12411_v49 = vcombine.low %v8721_v48, %v8731_v32  ;;  %v8750_v20 = vrot.slane %v8749_v27, 4  ;;  %v8792_v59 = vrot.slane %v8790_v3, 5  ;;  %v14958_v32 = vld [vmem:[#allocation3 + $0xb0] sm:$0x1] }
 0x4fd   : > { %v8796_v10 = vrot.slane %v8794_v44, 4  ;;  %v8740_v17 = vrot.slane %v8739_v60, 4  ;;  %v8774_v19 = vrot.slane %v8773_v9, 4  ;;  %v8816_v58 = vrot.slane %v8814_v21, 5 }
 0x4fe   : > { %v8820_v46 = vrot.slane %v8818_v23, 4  ;;  %v8754_v6 = vrot.slane %v8752_v42, 5  ;;  %v8783_v16 = vrot.slane %v8781_v41, 4  ;;  %v8786_v39 = vrot.slane %v8784_v61, 5 }
 0x4ff   : > { %v8764_v57 = vrot.slane %v8763_v53, 4  ;;  %v8778_v55 = vrot.slane %v8776_v47, 5  ;;  %v8807_v54 = vrot.slane %v8805_v1, 4  ;;  %v8810_v35 = vrot.slane %v8808_v30, 5 }
 0x500   : > { %13730 = vmatmul.mubr.msk.bf16.gmra.mrb[16].mxu1 %vm7029_vm0, %v12410_v40  ;;  %v8755_v43 = vsel %vm15198_vm6, %v8750_v20, %v8754_v6  ;;  %v8797_v63 = vor.u32 %v8796_v10, %v8792_v59  ;;  %v8838_v40 = vshll.u32 %v18117_v12, 16  ;;  %v8842_v60 = vshrl.u32 %v18117_v12, 16  ;;  %v14959_v12 = vld [vmem:[#allocation3 + $0xbc] sm:$0x1] }
 0x501   : > { %13733 = vmatprep.mubr.msk.bf16.mxu1 %vm7029_vm0, %v12411_v49  ;;  %v8745_v27 = vsel %vm15198_vm6, %v8740_v17, %v18661_v33  ;;  %v8779_v3 = vsel %vm15198_vm6, %v8774_v19, %v8778_v55  ;;  %v8821_v44 = vor.u32 %v8820_v46, %v8816_v58  ;;  %v8787_v50 = vor.u32 %v8786_v39, %v8783_v16  ;;  %v14960_v55 = vld [vmem:[#allocation3 + $0xc8] sm:$0x1] }
 0x502   : > { %v8800_v9 = vshll.u32 %v14958_v32, 16  ;;  %v8829_v21 = vshrl.u32 %v8465_v38, 16  ;;  %v8832_v23 = vshll.u32 %v8465_v38, 16  ;;  %v12412_v48 = vcombine.low %v8745_v27, %v8755_v43 }
 0x503   : > { %v8769_v56 = vsel %vm15198_vm6, %v8764_v57, %v18664_v36  ;;  %v8811_v42 = vor.u32 %v8810_v35, %v8807_v54  ;;  %v8824_v41 = vshll.u32 %v14959_v12, 16  ;;  %v8798_v53 = vrot.slane %v8797_v63, 4 }
 0x504   : > { %v12413_v61 = vcombine.low %v8769_v56, %v8779_v3  ;;  %v8840_v33 = vrot.slane %v8838_v40, 5  ;;  %v8844_v47 = vrot.slane %v8842_v60, 4  ;;  %v8822_v1 = vrot.slane %v8821_v44, 4 }
 0x505   : > { %v8788_v30 = vrot.slane %v8787_v50, 4  ;;  %v8802_v49 = vrot.slane %v8800_v9, 5  ;;  %v8831_v20 = vrot.slane %v8829_v21, 4  ;;  %v8834_v10 = vrot.slane %v8832_v23, 5 }
 0x506   : > { %v8812_v17 = vrot.slane %v8811_v42, 4  ;;  %v8826_v19 = vrot.slane %v8824_v41, 5  ;;  %v8845_v46 = vor.u32 %v8844_v47, %v8840_v33  ;;  %v9240_v16 = vrot.slane %v18189_v2, 5  ;;  %v9174_v2 = vld [vmem:[#allocation3 + $0xc] sm:$0xe] }
 0x507   : > { %v8803_v36 = vsel %vm15198_vm6, %v8798_v53, %v8802_v49  ;;  %v8793_v39 = vsel %vm15198_vm6, %v8788_v30, %v8792_v59  ;;  %v8835_v57 = vor.u32 %v8834_v10, %v8831_v20  ;;  %v8848_v54 = vshll.u32 %v14960_v55, 16  ;;  %v19707_v53 = vld [vmem:[#allocation24_spill] sm:$0xff]  ;;  %v19713_v10 = vld [vmem:[#allocation21_spill] sm:$0xff]  ;;  %v19722_v55 = vld [vmem:[#allocation15_spill] sm:$0xff] }
 0x508   : > { %13734 = vmatmul.mubr.msk.bf16.gmra.mrb[20].mxu1 %vm7029_vm0, %v12412_v48  ;;  %v8827_v6 = vsel %vm15198_vm6, %v8822_v1, %v8826_v19  ;;  %v12414_v35 = vcombine.low %v8793_v39, %v8803_v36  ;;  %v8817_v38 = vsel %vm15198_vm6, %v8812_v17, %v8816_v58  ;;  %v8846_v63 = vrot.slane %v8845_v46, 4  ;;  %v14638_v1 = vld [vmem:[%s19370_s3 + $0xd8] sm:$0xff]   ;;  %v19714_v17 = vld [vmem:[#allocation9_spill] sm:$0xff]  ;;  %v19716_v36 = vld [vmem:[#allocation10_spill] sm:$0xff] }
 0x509   : > { %13737 = vmatprep.mubr.msk.bf16.mxu1 %vm7029_vm0, %v12413_v61  ;;  %v12415_v43 = vcombine.low %v8817_v38, %v8827_v6  ;;  %v9242_v40 = vrot.slane %v9240_v16, 4  ;;  %v8836_v60 = vrot.slane %v8835_v57, 4  ;;  %v8850_v27 = vrot.slane %v8848_v54, 5  ;;  %v14636_v61 = vld [vmem:[%s19370_s3 + $0xc8] sm:$0xff]   ;;  %v19710_v30 = vld [vmem:[#allocation20_spill] sm:$0xff]  ;;  %v19717_v46 = vld [vmem:[#allocation11_spill] sm:$0xff] }
 0x50a   : > { %v9243_v3 = vrot.slane %v18205_v22, 5  ;;  %v9247_v44 = vrot.slane %v18203_v37, 5  ;;  %v12437_v50 = vrot.slane %v9174_v2, 9  ;;  %v9175_v22 = vld [vmem:[#allocation3 + $0x18] sm:$0xe]  ;;  %v9250_v37 = vrot.slane %v18220_v25, 5 }
 0x50b   : > { %v8851_v59 = vsel %vm15198_vm6, %v8846_v63, %v8850_v27  ;;  %v8841_v32 = vsel %vm15198_vm6, %v8836_v60, %v8840_v33  ;;  %v12438_v56 = vrot.slane %v9175_v22, 9  ;;  %v19708_v33 = vld [vmem:[#allocation25_spill] sm:$0xff]  ;;  %v14637_v25 = vld [vmem:[%s19370_s3 + $0xd0] sm:$0xff]   ;;  %v19711_v49 = vld [vmem:[#allocation8_spill] sm:$0xff]  ;;  %v19715_v19 = vcombine.low %v19713_v10, %v19714_v17 }
 0x50c   : > { %v9244_v58 = vsel %vm15605_vm13, %v9242_v40, %v9243_v3  ;;  %v12416_v9 = vcombine.low %v8841_v32, %v8851_v59  ;;  %v9241_v21 = vsel %vm15605_vm13, %v12437_v50, %v9240_v16  ;;  %v9249_v48 = vrot.slane %v9247_v44, 4  ;;  %v19719_v16 = vld [vmem:[#allocation13_spill] sm:$0xff]  ;;  %v19720_v39 = vld [vmem:[#allocation14_spill] sm:$0xff]  ;;  %v19725_v38 = vld [vmem:[#allocation16_spill] sm:$0xff] }
 0x50d   : > { %v12461_v23 = vcombine.low %v9241_v21, %v9244_v58  ;;  %v9248_v12 = vsel %vm15605_vm13, %v12438_v56, %v9247_v44  ;;  %v19709_v47 = vcombine.low %v19707_v53, %v19708_v33  ;;  %v19712_v20 = vcombine.low %v19710_v30, %v19711_v49  ;;  %v19723_v54 = vld [vmem:[#allocation18_spill] sm:$0xff]  ;;  %v19729_v60 = vld [vmem:[#allocation23_spill] sm:$0xff]  ;;  %v19734_v44 = vld [vmem:[#allocation28_spill] sm:$0xff] }
 0x50e   : > { %v9251_v42 = vsel %vm15605_vm13, %v9249_v48, %v9250_v37  ;;  %v19718_v6 = vcombine.low %v19716_v36, %v19717_v46  ;;  %v19721_v57 = vcombine.low %v19719_v16, %v19720_v39  ;;  %v19728_v40 = vld [vmem:[#allocation22_spill] sm:$0xff]  ;;  %v19732_v3 = vld [vmem:[#allocation27_spill] sm:$0xff]  ;;  %v19735_v50 = vld [vmem:[#allocation29_spill] sm:$0xff] }
 0x50f   : > { %v12462_v41 = vcombine.low %v9248_v12, %v9251_v42  ;;  %v19730_v27 = vcombine.low %v19728_v40, %v19729_v60  ;;  %v19731_v2 = vld [vmem:[#allocation26_spill] sm:$0xff]  ;;  %v19736_v58 = vcombine.low %v19734_v44, %v19735_v50  ;;  %v19737_v32 = vld [vmem:[#allocation7_spill] sm:$0xff]  ;;  %v19744_v56 = vld [vmem:[#allocation32_spill] sm:$0xff] }
 0x510   : > { %13738 = vmatmul.mubr.msk.bf16.gmra.mrb[24].mxu1 %vm7029_vm0, %v12414_v35  ;;  %v19724_v35 = vcombine.low %v19722_v55, %v19723_v54  ;;  %v19733_v59 = vcombine.low %v19731_v2, %v19732_v3  ;;  %v19741_v48 = vld [vmem:[#allocation30_spill] sm:$0xff]  ;;  %v19743_v37 = vld [vmem:[#allocation31_spill] sm:$0xff]  ;;  %v14640_v33 = vld [vmem:[#allocation3 + $0x24] sm:$0xff]  }
 0x511   : > { %13741 = vmatprep.mubr.msk.bf16.mxu1 %vm7029_vm0, %v12415_v43  ;;  %v19726_v43 = vld [vmem:[#allocation19_spill] sm:$0xff]  ;;  %v19745_v42 = vcombine.low %v19743_v37, %v19744_v56  ;;  %v14656_v49 = vld [vmem:[%s19370_s3 + $0xf8] sm:$0xff]   ;;  %v18813_v10 = vld [vmem:[%s19370_s3 + $0x100] sm:$0xff]  }
 0x512   : > { %v19727_v63 = vcombine.low %v19725_v38, %v19726_v43  ;;  %v14639_v12 = vld [vmem:[#allocation3 + $0x18] sm:$0xff]   ;;  %v10062_v38 = vld [vmem:[#allocation3 + $0x24] sm:$0xf]  ;;  %v19750_v3 = vld [vmem:[#allocation38_spill] sm:$0xff] }
 0x513   : > { %v14643_v30 = vld [vmem:[#allocation3 + $0x3c] sm:$0xff]   ;;  %v14645_v17 = vld [vmem:[#allocation3 + $0x54] sm:$0xff]   ;;  %v10135_v2 = vshll.u32 %v10062_v38, 16  ;;  %v10145_v44 = vshrl.u32 %v19750_v3, 16  ;;  %v14654_v37 = vld [vmem:[#allocation3 + $0xa8] sm:$0xff]  }
 0x514   : > { %v14649_v36 = vld [vmem:[#allocation3 + $0x78] sm:$0xff]  }
 0x515   : > { %v10059_v46 = vld [vmem:[#allocation3 + $0x18] sm:$0xf] }
 0x516   : > { %v10108_v55 = vshrl.u32 %v10059_v46, 16  ;;  %v10111_v54 = vshll.u32 %v10059_v46, 16 }
 0x518   : > { %13742 = vmatmul.mubr.msk.bf16.gmra.mrb[28].mxu1 %vm7029_vm0, %v12416_v9  ;;  %v19738_v9 = vld [vmem:[#allocation12_spill] sm:$0xff]  ;;  %v10110_v40 = vrot.slane %v10108_v55, 4  ;;  %v10113_v60 = vrot.slane %v10111_v54, 5 }
 0x519   : > { %13753 = vmatprep.mubr.msk.bf16.mxu1 %vm7029_vm0, %v12461_v23  ;;  %v19739_v21 = vcombine.low %v19737_v32, %v19738_v9  ;;  %v19740_v23 = vld [vmem:[#allocation17_spill] sm:$0xff]  ;;  %v14653_v32 = vld [vmem:[#allocation3 + $0x9c] sm:$0xff]  }
 0x51a   : > { %v19742_v22 = vcombine.low %v19740_v23, %v19741_v48  ;;  %v10114_v9 = vor.u32 %v10113_v60, %v10110_v40 }
 0x520   : > { %13754 = vmatmul.mubr.msk.bf16.vlgmr.msra.gmra.mrb[0].mxu1 %vm7029_vm0, %v12462_v41  ;;  %v19746_v41 = vld [vmem:[#allocation33_spill] sm:$0xff] }
 0x521   : > { %13757 = vmatprep.mubr.msk.bf16.mxu1 %vm7029_vm0, %v19709_v47  ;;  %13786 = vmatpush3.bf16.msra.mxu1 %v18580_v45  ;;  %v14641_v45 = vld [vmem:[%s19370_s3 + $0xe0] sm:$0xff]   ;;  %v14646_v47 = vld [vmem:[%s19370_s3 + $0xe8] sm:$0xff]  }
 0x522   : > { %13787 = vmatprep.subr.bf16.mxu1 %v14636_v61 }
 0x525   : > { %13788 = vmatpush3.bf16.msra.mxu1 %v14636_v61  ;;  %v19747_v61 = vld [vmem:[#allocation34_spill] sm:$0xff] }
 0x526   : > { %13789 = vmatprep.subr.bf16.mxu1 %v14637_v25  ;;  %v19748_v53 = vcombine.low %v19746_v41, %v19747_v61 }
 0x528   : > { %13758 = vmatmul.mubr.msk.bf16.gmra.mrb[4].mxu1 %vm7029_vm0, %v19712_v20  ;;  %v14644_v20 = vld [vmem:[#allocation3 + $0x48] sm:$0xff]  }
 0x529   : > { %13761 = vmatprep.mubr.msk.bf16.mxu1 %vm7029_vm0, %v19715_v19  ;;  %13790 = vmatpush3.bf16.msra.mxu1 %v14637_v25  ;;  %v14642_v25 = vld [vmem:[#allocation3 + $0x30] sm:$0xff]   ;;  %v14647_v19 = vld [vmem:[#allocation3 + $0x60] sm:$0xff]  }
 0x52a   : > { %13791 = vmatprep.subr.bf16.mxu1 %v14638_v1 }
 0x52d   : > { %13792 = vmatpush3.bf16.msra.mxu1 %v14638_v1  ;;  %v14651_v1 = vld [vmem:[%s19370_s3 + $0xf0] sm:$0xff]  }
 0x52e   : > { %13825 = vmatprep.subr.bf16.mxu1 %v14641_v45 }
 0x530   : > { %13762 = vmatmul.mubr.msk.bf16.gmra.mrb[8].mxu1 %vm7029_vm0, %v19718_v6  ;;  %v19749_v6 = vld [vmem:[#allocation35_spill] sm:$0xff] }
 0x531   : > { %13765 = vmatprep.mubr.msk.bf16.mxu1 %vm7029_vm0, %v19721_v57  ;;  %v10117_v16 = vshll.u32 %v19749_v6, 16  ;;  %v10121_v39 = vshrl.u32 %v19749_v6, 16  ;;  %v14650_v57 = vld [vmem:[#allocation3 + $0x84] sm:$0xff]  }
 0x533   : > { %v10119_v43 = vrot.slane %v10117_v16, 5 }
 0x538   : > { %13766 = vmatmul.mubr.msk.bf16.gmra.mrb[12].mxu1 %vm7029_vm0, %v19724_v35  ;;  %v14652_v35 = vld [vmem:[#allocation3 + $0x90] sm:$0xff]  }
 0x539   : > { %13769 = vmatprep.mubr.msk.bf16.mxu1 %vm7029_vm0, %v19727_v63  ;;  %v10123_v63 = vrot.slane %v10121_v39, 4 }
 0x53b   : > { %v10124_v50 = vor.u32 %v10123_v63, %v10119_v43  ;;  %v14657_v63 = vld [vmem:[#allocation3 + $0xc0] sm:$0xff]  }
 0x540   : > { %13770 = vmatmul.mubr.msk.bf16.gmra.mrb[16].mxu1 %vm7029_vm0, %v19730_v27  ;;  %v10132_v27 = vshrl.u32 %v10062_v38, 16 }
 0x541   : > { %13773 = vmatprep.mubr.msk.bf16.mxu1 %vm7029_vm0, %v19733_v59  ;;  %v10141_v59 = vshll.u32 %v19750_v3, 16  ;;  %v19755_v3 = vld [vmem:[#allocation41_spill] sm:$0xff] }
 0x542   : > { %v10134_v48 = vrot.slane %v10132_v27, 4  ;;  %v19754_v27 = vld [vmem:[#allocation40_spill] sm:$0xff] }
 0x543   : > { %v18827_v56 = vrot.slane %v10141_v59, 5  ;;  %v10189_v59 = vshll.u32 %v19755_v3, 16 }
 0x548   : > { %13774 = vmatmul.mubr.msk.bf16.gmra.mrb[20].mxu1 %vm7029_vm0, %v19736_v58  ;;  %v10065_v58 = vld [vmem:[#allocation3 + $0x30] sm:$0xf] }
 0x549   : > { %13777 = vmatprep.mubr.msk.bf16.mxu1 %vm7029_vm0, %v19739_v21  ;;  %v19751_v21 = vld [vmem:[#allocation36_spill] sm:$0xff] }
 0x54a   : > { %v10127_v23 = vshll.u32 %v19751_v21, 16  ;;  %v18847_v21 = vld [vmem:[#allocation3 + $0xd0] sm:$0xf] }
 0x550   : > { %13778 = vmatmul.mubr.msk.bf16.gmra.mrb[24].mxu1 %vm7029_vm0, %v19742_v22  ;;  %v10137_v22 = vrot.slane %v10135_v2, 5  ;;  %v10175_v2 = vshll.u32 %v19754_v27, 16 }
 0x551   : > { %13781 = vmatprep.mubr.msk.bf16.mxu1 %vm7029_vm0, %v19745_v42  ;;  %v10147_v42 = vrot.slane %v10145_v44, 4  ;;  %v10071_v44 = vld [vmem:[#allocation3 + $0x48] sm:$0xf] }
 0x558   : > { %13782 = vmatmul.mubr.msk.bf16.gmra.mrb[28].mxu1 %vm7029_vm0, %v19748_v53  ;;  %v10156_v53 = vshrl.u32 %v10065_v58, 16 }
 0x559   : > { %13793 = vmatprep.mubr.msk.bf16.mxu1 %vm7029_vm0, %v14639_v12  ;;  %v19752_v12 = vld [vmem:[#allocation37_spill] sm:$0xff] }
 0x55a   : > { %v10165_v41 = vshll.u32 %v19752_v12, 16  ;;  %v10169_v61 = vshrl.u32 %v19752_v12, 16  ;;  %v10158_v46 = vrot.slane %v10156_v53, 4  ;;  %v19757_v53 = vld [vmem:[#allocation49_spill] sm:$0xff] }
 0x560   : > { %13794 = vmatmul.mubr.msk.bf16.vlgmr.msra.gmra.mrb[0].mxu1 %vm7029_vm0, %v14640_v33  ;;  %v10159_v33 = vshll.u32 %v10065_v58, 16 }
 0x561   : > { %13797 = vmatprep.mubr.msk.bf16.mxu1 %vm7029_vm0, %v14642_v25  ;;  %13826 = vmatpush3.bf16.msra.mxu1 %v14641_v45  ;;  %v14648_v45 = vld [vmem:[#allocation3 + $0x6c] sm:$0xff]   ;;  %v10115_v25 = vrot.slane %v10114_v9, 4 }
 0x562   : > { %13827 = vmatprep.subr.bf16.mxu1 %v14646_v47  ;;  %v10161_v6 = vrot.slane %v10159_v33, 5  ;;  %v19756_v9 = vld [vmem:[#allocation42_spill] sm:$0xff]  ;;  %v10237_v33 = vshll.u32 %v19757_v53, 16 }
 0x563   : > { %v10120_v55 = vsel %vm15198_vm6, %v10115_v25, %v10119_v43  ;;  %v10213_v43 = vshll.u32 %v19756_v9, 16 }
 0x564   : > { %v10162_v58 = vor.u32 %v10161_v6, %v10158_v46 }
 0x565   : > { %13828 = vmatpush3.bf16.msra.mxu1 %v14646_v47  ;;  %v10125_v47 = vrot.slane %v10124_v50, 4  ;;  %v18859_v46 = vrot.slane %v10213_v43, 5 }
 0x566   : > { %13829 = vmatprep.subr.bf16.mxu1 %v14651_v1 }
 0x568   : > { %13798 = vmatmul.mubr.msk.bf16.gmra.mrb[4].mxu1 %vm7029_vm0, %v14643_v30  ;;  %v19753_v30 = vld [vmem:[#allocation39_spill] sm:$0xff] }
 0x569   : > { %13801 = vmatprep.mubr.msk.bf16.mxu1 %vm7029_vm0, %v14644_v20  ;;  %13830 = vmatpush3.bf16.msra.mxu1 %v14651_v1  ;;  %v10138_v1 = vor.u32 %v10137_v22, %v10134_v48  ;;  %v10068_v20 = vld [vmem:[#allocation3 + $0x3c] sm:$0xf]  ;;  %v10217_v22 = vshrl.u32 %v19756_v9, 16 }
 0x56a   : > { %13831 = vmatprep.subr.bf16.mxu1 %v14656_v49  ;;  %v10180_v39 = vshrl.u32 %v10068_v20, 16  ;;  %v10183_v38 = vshll.u32 %v10068_v20, 16 }
 0x56b   : > { %v10139_v54 = vrot.slane %v10138_v1, 4 }
 0x56c   : > { %v10182_v48 = vrot.slane %v10180_v39, 4 }
 0x56d   : > { %13832 = vmatpush3.bf16.msra.mxu1 %v14656_v49  ;;  %v10151_v49 = vshll.u32 %v19753_v30, 16  ;;  %v18857_v30 = vrot.slane %v10189_v59, 5 }
 0x56e   : > { %13865 = vmatprep.subr.bf16.mxu1 %v18813_v10 }
 0x570   : > { %13802 = vmatmul.mubr.msk.bf16.gmra.mrb[8].mxu1 %vm7029_vm0, %v14645_v17  ;;  %v10129_v17 = vrot.slane %v10127_v23, 5  ;;  %v18849_v23 = vld [vmem:[#allocation3 + $0xd4] sm:$0x1] }
 0x571   : > { %13805 = vmatprep.mubr.msk.bf16.mxu1 %vm7029_vm0, %v14647_v19  ;;  %v10148_v19 = vor.u32 %v10147_v42, %v18827_v56  ;;  %v10984_v42 = vrot.slane %v18847_v21, 5  ;;  %v10987_v12 = vrot.slane %v18849_v23, 5 }
 0x572   : > { %v10130_v16 = vsel %vm15198_vm6, %v10125_v47, %v10129_v17  ;;  %v10241_v47 = vshrl.u32 %v19757_v53, 16  ;;  %v14658_v17 = vld [vmem:[#allocation3 + $0xcc] sm:$0xff]  }
 0x573   : > { %v10149_v40 = vrot.slane %v10148_v19, 4  ;;  %v12549_v50 = vcombine.low %v10120_v55, %v10130_v16  ;;  %v10986_v20 = vrot.slane %v10984_v42, 4  ;;  %v10219_v16 = vrot.slane %v10217_v22, 4 }
 0x575   : > { %v18867_v55 = vsel %vm15605_vm13, %v10986_v20, %v10987_v12  ;;  %v10252_v12 = vshrl.u32 %v10077_v15, 16 }
 0x578   : > { %13806 = vmatmul.mubr.msk.bf16.gmra.mrb[12].mxu1 %vm7029_vm0, %v14648_v45  ;;  %v18835_v45 = vrot.slane %v10165_v41, 5  ;;  %v10185_v41 = vrot.slane %v10183_v38, 5  ;;  %v10177_v38 = vrot.slane %v10175_v2, 5 }
 0x579   : > { %13809 = vmatprep.mubr.msk.bf16.mxu1 %vm7029_vm0, %v14649_v36  ;;  %v10171_v36 = vrot.slane %v10169_v61, 4  ;;  %v10074_v61 = vld [vmem:[#allocation3 + $0x54] sm:$0xf] }
 0x57a   : > { %v10228_v39 = vshrl.u32 %v10074_v61, 16  ;;  %v10186_v43 = vor.u32 %v10185_v41, %v10182_v48  ;;  %v19759_v48 = vld [vmem:[#allocation46_spill] sm:$0xff] }
 0x57b   : > { %v10172_v60 = vor.u32 %v10171_v36, %v18835_v45  ;;  %v10207_v36 = vshll.u32 %v10071_v44, 16  ;;  %v10223_v41 = vshll.u32 %v19759_v48, 16 }
 0x57d   : > { %v10173_v1 = vrot.slane %v10172_v60, 4  ;;  %v10243_v60 = vrot.slane %v10241_v47, 4 }
 0x57f   : > { %v10178_v2 = vsel %vm15198_vm6, %v10173_v1, %v10177_v38 }
 0x580   : > { %13810 = vmatmul.mubr.msk.bf16.gmra.mrb[16].mxu1 %vm7029_vm0, %v14650_v57  ;;  %v14655_v57 = vld [vmem:[#allocation3 + $0xb4] sm:$0xff]  }
 0x581   : > { %13813 = vmatprep.mubr.msk.bf16.mxu1 %vm7029_vm0, %v14652_v35  ;;  %v10153_v35 = vrot.slane %v10151_v49, 5  ;;  %v10204_v49 = vshrl.u32 %v10071_v44, 16  ;;  %v10163_v44 = vrot.slane %v10162_v58, 4 }
 0x583   : > { %v10154_v59 = vsel %vm15198_vm6, %v10149_v40, %v10153_v35  ;;  %v10168_v53 = vsel %vm15198_vm6, %v10163_v44, %v18835_v45  ;;  %v14660_v45 = vld [vmem:[%s19370_s3 + $0x108] sm:$0xff]   ;;  %v10225_v44 = vrot.slane %v10223_v41, 5 }
 0x584   : > { %v12551_v1 = vcombine.low %v10168_v53, %v10178_v2 }
 0x588   : > { %13814 = vmatmul.mubr.msk.bf16.gmra.mrb[20].mxu1 %vm7029_vm0, %v14653_v32  ;;  %v10193_v32 = vshrl.u32 %v19755_v3, 16  ;;  %v10144_v3 = vsel %vm15198_vm6, %v10139_v54, %v18827_v56  ;;  %v10220_v56 = vor.u32 %v10219_v16, %v18859_v46  ;;  %v10230_v54 = vrot.slane %v10228_v39, 4 }
 0x589   : > { %13817 = vmatprep.mubr.msk.bf16.mxu1 %vm7029_vm0, %v14654_v37  ;;  %v10828_v37 = vld [vmem:[#allocation3 + $0xcc] sm:$0xe]  ;;  %v12550_v40 = vcombine.low %v10144_v3, %v10154_v59 }
 0x58a   : > { %v12600_v25 = vrot.slane %v10828_v37, 9  ;;  %v10195_v19 = vrot.slane %v10193_v32, 4  ;;  %v19758_v32 = vld [vmem:[#allocation43_spill] sm:$0xff]  ;;  %v10206_v37 = vrot.slane %v10204_v49, 4  ;;  %v10187_v49 = vrot.slane %v10186_v43, 4 }
 0x58b   : > { %v10199_v9 = vshll.u32 %v19758_v32, 16  ;;  %v10221_v39 = vrot.slane %v10220_v56, 4  ;;  %v10083_v56 = vld [vmem:[#allocation3 + $0x78] sm:$0xf] }
 0x58c   : > { %v18863_v6 = vsel %vm15605_vm13, %v12600_v25, %v10984_v42  ;;  %v10196_v22 = vor.u32 %v10195_v19, %v18857_v30  ;;  %v10209_v42 = vrot.slane %v10207_v36, 5  ;;  %v10080_v25 = vld [vmem:[#allocation3 + $0x6c] sm:$0xf] }
 0x58d   : > { %v12624_v27 = vcombine.low %v18863_v6, %v18867_v55  ;;  %v10201_v20 = vrot.slane %v10199_v9, 5  ;;  %v10276_v59 = vshrl.u32 %v10080_v25, 16  ;;  %v10279_v2 = vshll.u32 %v10080_v25, 16 }
 0x58e   : > { %v10197_v36 = vrot.slane %v10196_v22, 4  ;;  %v10210_v16 = vor.u32 %v10209_v42, %v10206_v37  ;;  %v10192_v9 = vsel %vm15198_vm6, %v10187_v49, %v18857_v30  ;;  %v19762_v22 = vld [vmem:[#allocation57_spill] sm:$0xff]  ;;  %v19764_v49 = vld [vmem:[#allocation55_spill] sm:$0xff] }
 0x58f   : > { %v10285_v37 = vshll.u32 %v19762_v22, 16  ;;  %v10289_v42 = vshrl.u32 %v19762_v22, 16  ;;  %v10278_v48 = vrot.slane %v10276_v59, 4  ;;  %v14662_v59 = vld [vmem:[%s19370_s3 + $0x118] sm:$0xff]  }
 0x590   : > { %13818 = vmatmul.mubr.msk.bf16.gmra.mrb[24].mxu1 %vm7029_vm0, %v14655_v57  ;;  %v10231_v57 = vshll.u32 %v10074_v61, 16  ;;  %v10255_v61 = vshll.u32 %v10077_v15, 16 }
 0x591   : > { %13821 = vmatprep.mubr.msk.bf16.mxu1 %vm7029_vm0, %v14657_v63  ;;  %v18869_v63 = vrot.slane %v10237_v33, 5  ;;  %v19760_v33 = vld [vmem:[#allocation47_spill] sm:$0xff]  ;;  %v18917_v25 = vrot.slane %v10285_v37, 5 }
 0x592   : > { %v10233_v35 = vrot.slane %v10231_v57, 5  ;;  %v10261_v47 = vshll.u32 %v19760_v33, 16  ;;  %v10257_v3 = vrot.slane %v10255_v61, 5  ;;  %v19763_v61 = vld [vmem:[#allocation53_spill] sm:$0xff] }
 0x593   : > { %v10244_v58 = vor.u32 %v10243_v60, %v18869_v63  ;;  %v10254_v60 = vrot.slane %v10252_v12, 4  ;;  %v10271_v53 = vshll.u32 %v19763_v61, 16 }
 0x594   : > { %v10234_v57 = vor.u32 %v10233_v35, %v10230_v54  ;;  %v18896_v32 = vrot.slane %v10261_v47, 5  ;;  %v10202_v54 = vsel %vm15198_vm6, %v10197_v36, %v10201_v20  ;;  %v10211_v35 = vrot.slane %v10210_v16, 4 }
 0x595   : > { %v10245_v38 = vrot.slane %v10244_v58, 4  ;;  %v10258_v12 = vor.u32 %v10257_v3, %v10254_v60  ;;  %v10300_v47 = vshrl.u32 %v10083_v56, 16  ;;  %v10309_v20 = vshll.u32 %v19764_v49, 16  ;;  %v10086_v3 = vld [vmem:[#allocation3 + $0x84] sm:$0xf] }
 0x596   : > { %v10235_v58 = vrot.slane %v10234_v57, 4  ;;  %v10216_v36 = vsel %vm15198_vm6, %v10211_v35, %v18859_v46  ;;  %v10273_v60 = vrot.slane %v10271_v53, 5 }
 0x597   : > { %v18933_v22 = vrot.slane %v10309_v20, 5 }
 0x598   : > { %13822 = vmatmul.mubr.msk.bf16.gmra.mrb[28].mxu1 %vm7029_vm0, %v14658_v17  ;;  %v19761_v17 = vld [vmem:[#allocation52_spill] sm:$0xff]  ;;  %v10240_v16 = vsel %vm15198_vm6, %v10235_v58, %v18869_v63 }
 0x599   : > { %13833 = vmatprep.mubr.msk.bf16.mxu1 %vm7029_vm0, %v12549_v50  ;;  %v10265_v50 = vshrl.u32 %v19760_v33, 16  ;;  %v10247_v19 = vshll.u32 %v19761_v17, 16  ;;  %v10281_v33 = vrot.slane %v10279_v2, 5  ;;  %v10313_v17 = vshrl.u32 %v19764_v49, 16  ;;  %v14961_v49 = vld [vmem:[#allocation3 + $0x80] sm:$0x1] }
 0x59a   : > { %v10319_v20 = vshll.u32 %v14961_v49, 16 }
 0x59b   : > { %v10267_v15 = vrot.slane %v10265_v50, 4  ;;  %v10249_v43 = vrot.slane %v10247_v19, 5  ;;  %v10303_v50 = vshll.u32 %v10083_v56, 16  ;;  %v12552_v19 = vcombine.low %v10192_v9, %v10202_v54  ;;  %v19766_v54 = vld [vmem:[#allocation64_spill] sm:$0xff] }
 0x59c   : > { %v10302_v9 = vrot.slane %v10300_v47, 4  ;;  %v10315_v37 = vrot.slane %v10313_v17, 4  ;;  %v10327_v56 = vshll.u32 %v10086_v3, 16  ;;  %v10333_v35 = vshll.u32 %v19766_v54, 16 }
 0x59d   : > { %v10250_v30 = vsel %vm15198_vm6, %v10245_v38, %v10249_v43  ;;  %v10268_v41 = vor.u32 %v10267_v15, %v18896_v32  ;;  %v10259_v38 = vrot.slane %v10258_v12, 4  ;;  %v19765_v15 = vld [vmem:[#allocation60_spill] sm:$0xff]  ;;  %v10305_v46 = vrot.slane %v10303_v50, 5  ;;  %v10089_v43 = vld [vmem:[#allocation3 + $0x90] sm:$0xf] }
 0x59e   : > { %v12554_v57 = vcombine.low %v10240_v16, %v10250_v30  ;;  %v10295_v2 = vshll.u32 %v19765_v15, 16  ;;  %v10348_v58 = vshrl.u32 %v10089_v43, 16  ;;  %v10351_v30 = vshll.u32 %v10089_v43, 16  ;;  %v19767_v12 = vld [vmem:[#allocation62_spill] sm:$0xff] }
 0x59f   : > { %v10269_v63 = vrot.slane %v10268_v41, 4  ;;  %v10357_v61 = vshll.u32 %v19767_v12, 16  ;;  %v10361_v53 = vshrl.u32 %v19767_v12, 16  ;;  %v10306_v47 = vor.u32 %v10305_v46, %v10302_v9  ;;  %v10095_v12 = vld [vmem:[#allocation3 + $0xa8] sm:$0xf] }
 0x5a0   : > { %13834 = vmatmul.mubr.msk.bf16.vlgmr.msra.gmra.mrb[0].mxu1 %vm7029_vm0, %v12550_v40  ;;  %v10226_v40 = vsel %vm15198_vm6, %v10221_v39, %v10225_v44  ;;  %v10282_v44 = vor.u32 %v10281_v33, %v10278_v48  ;;  %v10264_v48 = vsel %vm15198_vm6, %v10259_v38, %v18896_v32  ;;  %v10297_v33 = vrot.slane %v10295_v2, 5 }
 0x5a1   : > { %13837 = vmatprep.mubr.msk.bf16.mxu1 %vm7029_vm0, %v12551_v1  ;;  %13866 = vmatpush3.bf16.msra.mxu1 %v18813_v10  ;;  %v14661_v10 = vld [vmem:[%s19370_s3 + $0x110] sm:$0xff]   ;;  %v10291_v1 = vrot.slane %v10289_v42, 4  ;;  %v12553_v39 = vcombine.low %v10216_v36, %v10226_v40  ;;  %v10324_v42 = vshrl.u32 %v10086_v3, 16  ;;  %v10337_v40 = vshrl.u32 %v19766_v54, 16 }
 0x5a2   : > { %13867 = vmatprep.subr.bf16.mxu1 %v14660_v45  ;;  %v10283_v41 = vrot.slane %v10282_v44, 4  ;;  %v10274_v50 = vsel %vm15198_vm6, %v10269_v63, %v10273_v60  ;;  %v18946_v36 = vrot.slane %v10333_v35, 5  ;;  %v10353_v3 = vrot.slane %v10351_v30, 5  ;;  %v10092_v44 = vld [vmem:[#allocation3 + $0x9c] sm:$0xf] }
 0x5a3   : > { %v10326_v17 = vrot.slane %v10324_v42, 4  ;;  %v10339_v16 = vrot.slane %v10337_v40, 4  ;;  %v18948_v32 = vrot.slane %v10357_v61, 5  ;;  %v10363_v38 = vrot.slane %v10361_v53, 4  ;;  %v14962_v42 = vld [vmem:[#allocation3 + $0x8c] sm:$0x1] }
 0x5a4   : > { %v12555_v15 = vcombine.low %v10264_v48, %v10274_v50  ;;  %v10307_v2 = vrot.slane %v10306_v47, 4  ;;  %v10288_v60 = vsel %vm15198_vm6, %v10283_v41, %v18917_v25  ;;  %v10372_v63 = vshrl.u32 %v10092_v44, 16  ;;  %v14963_v40 = vld [vmem:[#allocation3 + $0xa0] sm:$0xf]  ;;  %v14964_v53 = vld [vmem:[#allocation3 + $0x98] sm:$0x1] }
 0x5a5   : > { %13868 = vmatpush3.bf16.msra.mxu1 %v14660_v45  ;;  %v10292_v45 = vor.u32 %v10291_v1, %v18917_v25  ;;  %v10340_v43 = vor.u32 %v10339_v16, %v18946_v36  ;;  %v10385_v30 = vshrl.u32 %v14963_v40, 16  ;;  %v10367_v48 = vshll.u32 %v14964_v53, 16  ;;  %v14965_v41 = vld [vmem:[#allocation3 + $0xac] sm:$0xf] }
 0x5a6   : > { %13869 = vmatprep.subr.bf16.mxu1 %v14661_v10  ;;  %v10312_v25 = vsel %vm15198_vm6, %v10307_v2, %v18933_v22  ;;  %v10409_v47 = vshrl.u32 %v14965_v41, 16 }
 0x5a7   : > { %v10293_v1 = vrot.slane %v10292_v45, 4  ;;  %v10375_v45 = vshll.u32 %v10092_v44, 16  ;;  %v10369_v44 = vrot.slane %v10367_v48, 5 }
 0x5a8   : > { %13838 = vmatmul.mubr.msk.bf16.gmra.mrb[4].mxu1 %vm7029_vm0, %v12552_v19  ;;  %v10329_v19 = vrot.slane %v10327_v56, 5  ;;  %v10343_v56 = vshll.u32 %v14962_v42, 16  ;;  %v10411_v2 = vrot.slane %v10409_v47, 4 }
 0x5a9   : > { %13841 = vmatprep.mubr.msk.bf16.mxu1 %vm7029_vm0, %v12553_v39  ;;  %13870 = vmatpush3.bf16.msra.mxu1 %v14661_v10  ;;  %v10316_v10 = vor.u32 %v10315_v37, %v18933_v22  ;;  %v10350_v39 = vrot.slane %v10348_v58, 4  ;;  %v10298_v9 = vsel %vm15198_vm6, %v10293_v1, %v10297_v33  ;;  %v10321_v37 = vrot.slane %v10319_v20, 5 }
 0x5aa   : > { %13871 = vmatprep.subr.bf16.mxu1 %v14662_v59  ;;  %v12556_v35 = vcombine.low %v10288_v60, %v10298_v9  ;;  %v10381_v58 = vshll.u32 %v14963_v40, 16  ;;  %v10405_v33 = vshll.u32 %v14965_v41, 16  ;;  %v10341_v1 = vrot.slane %v10340_v43, 4  ;;  %v10098_v60 = vld [vmem:[#allocation3 + $0xb4] sm:$0xf] }
 0x5ab   : > { %v10317_v46 = vrot.slane %v10316_v10, 4  ;;  %v10354_v54 = vor.u32 %v10353_v3, %v10350_v39  ;;  %v10374_v10 = vrot.slane %v10372_v63, 4  ;;  %v10377_v49 = vrot.slane %v10375_v45, 5  ;;  %v14966_v43 = vld [vmem:[#allocation3 + $0xa4] sm:$0x1] }
 0x5ac   : > { %v10399_v22 = vshll.u32 %v10095_v12, 16  ;;  %v10345_v39 = vrot.slane %v10343_v56, 5  ;;  %v18964_v3 = vrot.slane %v10381_v58, 5  ;;  %v10391_v63 = vshll.u32 %v14966_v43, 16  ;;  %v10101_v40 = vld [vmem:[#allocation3 + $0xc0] sm:$0xf] }
 0x5ad   : > { %13872 = vmatpush3.bf16.msra.mxu1 %v14662_v59  ;;  %v10330_v59 = vor.u32 %v10329_v19, %v10326_v17  ;;  %v10322_v61 = vsel %vm15198_vm6, %v10317_v46, %v10321_v37  ;;  %v10355_v20 = vrot.slane %v10354_v54, 4  ;;  %v10396_v19 = vshrl.u32 %v10095_v12, 16  ;;  %v14968_v12 = vld [vmem:[#allocation3 + $0xc4] sm:$0xf] }
 0x5ae   : > { %v12557_v16 = vcombine.low %v10312_v25, %v10322_v61  ;;  %v10346_v46 = vsel %vm15198_vm6, %v10341_v1, %v10345_v39  ;;  %v10401_v56 = vrot.slane %v10399_v22, 5  ;;  %v10453_v61 = vshll.u32 %v14968_v12, 16 }
 0x5af   : > { %v10331_v50 = vrot.slane %v10330_v59, 4  ;;  %v10378_v59 = vor.u32 %v10377_v49, %v10374_v10  ;;  %v10360_v45 = vsel %vm15198_vm6, %v10355_v20, %v18948_v32  ;;  %v10398_v42 = vrot.slane %v10396_v19, 4  ;;  %v10104_v20 = vld [vmem:[#allocation3 + $0xcc] sm:$0xf] }
 0x5b0   : > { %13842 = vmatmul.mubr.msk.bf16.gmra.mrb[8].mxu1 %vm7029_vm0, %v12554_v57  ;;  %v10364_v57 = vor.u32 %v10363_v38, %v18948_v32  ;;  %v10387_v38 = vrot.slane %v10385_v30, 4  ;;  %v10423_v30 = vshll.u32 %v10098_v60, 16  ;;  %v10457_v53 = vshrl.u32 %v14968_v12, 16 }
 0x5b1   : > { %13845 = vmatprep.mubr.msk.bf16.mxu1 %vm7029_vm0, %v12555_v15  ;;  %v18967_v15 = vrot.slane %v10405_v33, 5  ;;  %v10336_v9 = vsel %vm15198_vm6, %v10331_v50, %v18946_v36  ;;  %v10379_v41 = vrot.slane %v10378_v59, 4  ;;  %v10393_v33 = vrot.slane %v10391_v63, 5  ;;  %v14969_v50 = vld [vmem:[#allocation3 + $0xb0] sm:$0x1] }
 0x5b2   : > { %v10365_v17 = vrot.slane %v10364_v57, 4  ;;  %v10388_v54 = vor.u32 %v10387_v38, %v18964_v3  ;;  %v10420_v57 = vshrl.u32 %v10098_v60, 16  ;;  %v12558_v48 = vcombine.low %v10336_v9, %v10346_v46 }
 0x5b3   : > { %v10412_v58 = vor.u32 %v10411_v2, %v18967_v15  ;;  %v10402_v47 = vor.u32 %v10401_v56, %v10398_v42  ;;  %v10415_v1 = vshll.u32 %v14969_v50, 16  ;;  %v10444_v10 = vshrl.u32 %v10101_v40, 16 }
 0x5b4   : > { %v10370_v37 = vsel %vm15198_vm6, %v10365_v17, %v10369_v44  ;;  %v10447_v49 = vshll.u32 %v10101_v40, 16  ;;  %v10389_v17 = vrot.slane %v10388_v54, 4  ;;  %v10422_v19 = vrot.slane %v10420_v57, 4 }
 0x5b5   : > { %v12559_v32 = vcombine.low %v10360_v45, %v10370_v37  ;;  %v10413_v39 = vrot.slane %v10412_v58, 4  ;;  %v10425_v38 = vrot.slane %v10423_v30, 5  ;;  %v10455_v44 = vrot.slane %v10453_v61, 5 }
 0x5b6   : > { %v10459_v2 = vrot.slane %v10457_v53, 4  ;;  %v10468_v60 = vshrl.u32 %v10104_v20, 16  ;;  %v10471_v9 = vshll.u32 %v10104_v20, 16  ;;  %v10477_v46 = vshll.u32 %v18847_v21, 16 }
 0x5b7   : > { %v10481_v59 = vshrl.u32 %v18847_v21, 16  ;;  %v10403_v43 = vrot.slane %v10402_v47, 4  ;;  %v10417_v63 = vrot.slane %v10415_v1, 5  ;;  %v10446_v45 = vrot.slane %v10444_v10, 4 }
 0x5b8   : > { %13846 = vmatmul.mubr.msk.bf16.gmra.mrb[12].mxu1 %vm7029_vm0, %v12556_v35  ;;  %v14967_v35 = vld [vmem:[#allocation3 + $0xb8] sm:$0xf]  ;;  %v10449_v37 = vrot.slane %v10447_v49, 5  ;;  %v10384_v42 = vsel %vm15198_vm6, %v10379_v41, %v18964_v3  ;;  %v10394_v56 = vsel %vm15198_vm6, %v10389_v17, %v10393_v33  ;;  %v10460_v40 = vor.u32 %v10459_v2, %v10455_v44 }
 0x5b9   : > { %13849 = vmatprep.mubr.msk.bf16.mxu1 %vm7029_vm0, %v12557_v16  ;;  %v10429_v36 = vshll.u32 %v14967_v35, 16  ;;  %v10433_v25 = vshrl.u32 %v14967_v35, 16  ;;  %v10418_v57 = vsel %vm15198_vm6, %v10413_v39, %v10417_v63  ;;  %v10426_v35 = vor.u32 %v10425_v38, %v10422_v19 }
 0x5ba   : > { %v10470_v21 = vrot.slane %v10468_v60, 4  ;;  %v10473_v58 = vrot.slane %v10471_v9, 5  ;;  %v10479_v30 = vrot.slane %v10477_v46, 5  ;;  %v10483_v12 = vrot.slane %v10481_v59, 4 }
 0x5bb   : > { %v10431_v22 = vrot.slane %v10429_v36, 5  ;;  %v10435_v16 = vrot.slane %v10433_v25, 4  ;;  %v14970_v36 = vld [vmem:[#allocation3 + $0xbc] sm:$0x1]  ;;  %v12560_v61 = vcombine.low %v10384_v42, %v10394_v56  ;;  %v10408_v3 = vsel %vm15198_vm6, %v10403_v43, %v18967_v15  ;;  %v19772_v42 = vld [vmem:[#allocation50_spill] sm:$0xff] }
 0x5bc   : > { %v10439_v25 = vshll.u32 %v14970_v36, 16  ;;  %v10450_v53 = vor.u32 %v10449_v37, %v10446_v45  ;;  %v12561_v41 = vcombine.low %v10408_v3, %v10418_v57  ;;  %v10461_v50 = vrot.slane %v10460_v40, 4  ;;  %v19769_v45 = vld [vmem:[#allocation45_spill] sm:$0xff]  ;;  %v19775_v57 = vld [vmem:[#allocation54_spill] sm:$0xff]  ;;  %v19780_v40 = vld [vmem:[#allocation59_spill] sm:$0xff] }
 0x5bd   : > { %v10436_v54 = vor.u32 %v10435_v16, %v10431_v22  ;;  %v10427_v1 = vrot.slane %v10426_v35, 4  ;;  %v10474_v10 = vor.u32 %v10473_v58, %v10470_v21  ;;  %v10484_v49 = vor.u32 %v10483_v12, %v10479_v30  ;;  %v19778_v36 = vld [vmem:[#allocation58_spill] sm:$0xff]  ;;  %v19781_v21 = vld [vmem:[#allocation61_spill] sm:$0xff] }
 0x5be   : > { %v10441_v47 = vrot.slane %v10439_v25, 5  ;;  %v10487_v20 = vshll.u32 %v18849_v23, 16  ;;  %v10451_v17 = vrot.slane %v10450_v53, 4  ;;  %v19779_v25 = vcombine.low %v19777_v26, %v19778_v36  ;;  %v19784_v12 = vld [vmem:[#allocation65_spill] sm:$0xff]  ;;  %v19786_v3 = vld [vmem:[#allocation66_spill] sm:$0xff]  ;;  %v19787_v53 = vld [vmem:[#allocation67_spill] sm:$0xff] }
 0x5bf   : > { %v10437_v33 = vrot.slane %v10436_v54, 4  ;;  %v10432_v39 = vsel %vm15198_vm6, %v10427_v1, %v10431_v22  ;;  %v10475_v38 = vrot.slane %v10474_v10, 4  ;;  %v10485_v2 = vrot.slane %v10484_v49, 4  ;;  %v19768_v22 = vld [vmem:[#allocation44_spill] sm:$0xff]  ;;  %v19774_v54 = vld [vmem:[#allocation51_spill] sm:$0xff] }
 0x5c0   : > { %13850 = vmatmul.mubr.msk.bf16.gmra.mrb[16].mxu1 %vm7029_vm0, %v12558_v48  ;;  %v14971_v48 = vld [vmem:[#allocation3 + $0xc8] sm:$0x1]  ;;  %v10489_v60 = vrot.slane %v10487_v20, 5  ;;  %v10456_v46 = vsel %vm15198_vm6, %v10451_v17, %v10455_v44  ;;  %v19770_v37 = vcombine.low %v19768_v22, %v19769_v45  ;;  %v19771_v44 = vld [vmem:[#allocation48_spill] sm:$0xff]  ;;  %v19776_v35 = vcombine.low %v19774_v54, %v19775_v57 }
 0x5c1   : > { %13853 = vmatprep.mubr.msk.bf16.mxu1 %vm7029_vm0, %v12559_v32  ;;  %v10463_v32 = vshll.u32 %v14971_v48, 16  ;;  %v10442_v15 = vsel %vm15198_vm6, %v10437_v33, %v10441_v47  ;;  %v10480_v23 = vsel %vm15198_vm6, %v10475_v38, %v10479_v30  ;;  %v19773_v56 = vcombine.low %v19771_v44, %v19772_v42  ;;  %v19783_v30 = vld [vmem:[#allocation63_spill] sm:$0xff]  ;;  %v19791_v33 = vld [vmem:[#allocation68_spill] sm:$0xff] }
 0x5c2   : > { %v12562_v9 = vcombine.low %v10432_v39, %v10442_v15  ;;  %v10490_v43 = vsel %vm15198_vm6, %v10485_v2, %v10489_v60  ;;  %v19782_v58 = vcombine.low %v19780_v40, %v19781_v21  ;;  %v19788_v48 = vcombine.low %v19786_v3, %v19787_v53 }
 0x5c3   : > { %v10465_v19 = vrot.slane %v10463_v32, 5  ;;  %v12564_v63 = vcombine.low %v10480_v23, %v10490_v43  ;;  %v19789_v32 = vcombine.low %v18502_v13, %v18510_v34  ;;  %v19792_v47 = vcombine.low %v18534_v0, %v19791_v33 }
 0x5c4   : > { %v19794_v13 = vcombine.low %v18557_v11, %v18563_v24  ;;  %v19795_v34 = vcombine.low %v18567_v31, %v18575_v18 }
 0x5c5   : > { %v10466_v16 = vsel %vm15198_vm6, %v10461_v50, %v10465_v19  ;;  %v19793_v50 = vcombine.low %v18542_v51, %v18548_v29 }
 0x5c6   : > { %v12563_v59 = vcombine.low %v10456_v46, %v10466_v16 }
 0x5c8   : > { %13854 = vmatmul.mubr.msk.bf16.gmra.mrb[20].mxu1 %vm7029_vm0, %v12560_v61  ;;  %v19785_v61 = vcombine.low %v19783_v30, %v19784_v12 }
 0x5c9   : > { %13857 = vmatprep.mubr.msk.bf16.mxu1 %vm7029_vm0, %v12561_v41  ;;  %v19790_v41 = vcombine.low %v18514_v52, %v18524_v7  ;;  %v19081_v52 = vld [vmem:[%s19371_s4] ss:$0 sm:$0xff] }
 0x5d0   : > { %13858 = vmatmul.mubr.msk.bf16.gmra.mrb[24].mxu1 %vm7029_vm0, %v12562_v9 }
 0x5d1   : > { %13861 = vmatprep.mubr.msk.bf16.mxu1 %vm7029_vm0, %v12563_v59 }
 0x5d8   : > { %13862 = vmatmul.mubr.msk.bf16.gmra.mrb[28].mxu1 %vm7029_vm0, %v12564_v63 }
 0x5d9   : > { %13873 = vmatprep.mubr.msk.bf16.mxu1 %vm7029_vm0, %v19770_v37 }
 0x5e0   : > { %13874 = vmatmul.mubr.msk.bf16.vlgmr.msra.gmra.mrb[0].mxu1 %vm7029_vm0, %v19773_v56 }
 0x5e1   : > { %13877 = vmatprep.mubr.msk.bf16.mxu1 %vm7029_vm0, %v19776_v35 }
 0x5e8   : > { %13878 = vmatmul.mubr.msk.bf16.gmra.mrb[4].mxu1 %vm7029_vm0, %v19779_v25 }
 0x5e9   : > { %13881 = vmatprep.mubr.msk.bf16.mxu1 %vm7029_vm0, %v19782_v58 }
 0x5f0   : > { %13882 = vmatmul.mubr.msk.bf16.gmra.mrb[8].mxu1 %vm7029_vm0, %v19785_v61 }
 0x5f1   : > { %13885 = vmatprep.mubr.msk.bf16.mxu1 %vm7029_vm0, %v19788_v48 }
 0x5f8   : > { %13886 = vmatmul.mubr.msk.bf16.gmra.mrb[12].mxu1 %vm7029_vm0, %v19789_v32 }
 0x5f9   : > { %13889 = vmatprep.mubr.msk.bf16.mxu1 %vm7029_vm0, %v19790_v41 }
 0x600   : > { %13890 = vmatmul.mubr.msk.bf16.gmra.mrb[16].mxu1 %vm7029_vm0, %v19792_v47 }
 0x601   : > { %13893 = vmatprep.mubr.msk.bf16.mxu1 %vm7029_vm0, %v19793_v50 }
 0x608   : > { %13894 = vmatmul.mubr.msk.bf16.gmra.mrb[20].mxu1 %vm7029_vm0, %v19794_v13 }
 0x609   : > { %13897 = vmatprep.mubr.msk.bf16.mxu1 %vm7029_vm0, %v19795_v34 }
 0x610   : > { %13898 = vmatmul.mubr.msk.bf16.gmra.mrb[24].mxu1 %vm7029_vm0, %v12622_v5 }
 0x611   : > { %13901 = vmatprep.mubr.msk.bf16.mxu1 %vm7029_vm0, %v12623_v14 }
 0x618   : > { %13902 = vmatmul.mubr.msk.bf16.gmra.mrb[28].mxu1 %vm7029_vm0, %v12624_v27 }
 0x6b3   : > { %v13875_v0 = vpop.f32.mrb[0].mxu1 }
 0x6b4   : > { %v19084_v7 = vadd.f32 %v13875_v0, %v19081_v52  ;;  %v11152_v24 = vpop.f32.mrb[1].mxu1 }
 0x6b5   : > { %v19087_v51 = vadd.f32 %v19081_v52, %v11152_v24  ;;  %v13876_v11 = vpop.f32.mrb[2].mxu1 }
 0x6b6   : > { %v11351_v29 = vsub.f32 0.0, %v19084_v7  ;;  %v19091_v31 = vadd.f32 %v13876_v11, %v19081_v52  ;;  %v11155_v18 = vpop.f32.mrb[3].mxu1 }
 0x6b7   : > { %v11349_v28 = vsub.f32 0.0, %v19087_v51  ;;  %v19095_v62 = vadd.f32 %v19081_v52, %v11155_v18 }
 0x6b8   : > { %v11385_v5 = vmul.f32 1.442695, %v11351_v29  ;;  %v11352_v8 = vsub.f32 0.0, %v19091_v31 }
 0x6b9   : > { %v11381_v4 = vmul.f32 1.442695, %v11349_v28  ;;  %v11350_v14 = vsub.f32 0.0, %v19095_v62 }
 0x6ba   : > { %14791 = vpow2.f32 %v11385_v5  ;;  %v11387_v6 = vmul.f32 1.442695, %v11352_v8 }
 0x6bb   : > { %14793 = vpow2.f32 %v11381_v4  ;;  %v11383_v55 = vmul.f32 1.442695, %v11350_v14  ;;  %v13879_v27 = vpop.f32.mrb[4].mxu1 }
 0x6bc   : > { %14795 = vpow2.f32 %v11387_v6  ;;  %v19100_v1 = vadd.f32 %v13879_v27, %v19081_v52  ;;  %v11168_v10 = vpop.f32.mrb[5].mxu1 }
 0x6bd   : > { %14797 = vpow2.f32 %v11383_v55  ;;  %v19103_v49 = vadd.f32 %v19081_v52, %v11168_v10  ;;  %v13880_v20 = vpop.f32.mrb[6].mxu1 }
 0x6be   : > { %v11355_v17 = vsub.f32 0.0, %v19100_v1  ;;  %v19107_v19 = vadd.f32 %v13880_v20, %v19081_v52  ;;  %v11171_v15 = vpop.f32.mrb[7].mxu1  ;;  %v11575_v20 = vld [vmem:[%s15189_s17 + $0x10] sm:$0xff] }
 0x6bf   : > { %v11353_v16 = vsub.f32 0.0, %v19103_v49  ;;  %v19111_v39 = vadd.f32 %v19081_v52, %v11171_v15 }
 0x6c0   : > { %v11393_v38 = vmul.f32 1.442695, %v11355_v17  ;;  %v11356_v2 = vsub.f32 0.0, %v19107_v19 }
 0x6c1   : > { %v11389_v60 = vmul.f32 1.442695, %v11353_v16  ;;  %v11354_v9 = vsub.f32 0.0, %v19111_v39 }
 0x6c2   : > { %14799 = vpow2.f32 %v11393_v38  ;;  %v11395_v46 = vmul.f32 1.442695, %v11356_v2  ;;  %v11573_v2 = vld [vmem:[%s15189_s17] sm:$0xff] }
 0x6c3   : > { %14801 = vpow2.f32 %v11389_v60  ;;  %v11391_v59 = vmul.f32 1.442695, %v11354_v9  ;;  %v13883_v23 = vpop.f32.mrb[8].mxu1 }
 0x6c4   : > { %v14792_v43 = vpop.eup %14791  ;;  %14803 = vpow2.f32 %v11395_v46  ;;  %v19116_v63 = vadd.f32 %v13883_v23, %v19081_v52  ;;  %v11184_v22 = vpop.f32.mrb[9].mxu1 }
 0x6c5   : > { %v14794_v45 = vpop.eup %14793  ;;  %v11447_v37 = vadd.f32 1.0, %v14792_v43  ;;  %14805 = vpow2.f32 %v11391_v59  ;;  %v19119_v44 = vadd.f32 %v19081_v52, %v11184_v22  ;;  %v13884_v42 = vpop.f32.mrb[10].mxu1  ;;  %v11576_v59 = vld [vmem:[%s15189_s17 + $0x18] sm:$0xff] }
 0x6c6   : > { %v14796_v56 = vpop.eup %14795  ;;  %v11445_v54 = vadd.f32 1.0, %v14794_v45  ;;  %v11359_v57 = vsub.f32 0.0, %v19116_v63  ;;  %v19123_v35 = vadd.f32 %v13884_v42, %v19081_v52  ;;  %v11187_v26 = vpop.f32.mrb[11].mxu1  ;;  %v11574_v42 = vld [vmem:[%s15189_s17 + $0x8] sm:$0xff] }
 0x6c7   : > { %v14798_v36 = vpop.eup %14797  ;;  %14807 = vrcp.f32 %v11447_v37  ;;  %v11448_v25 = vadd.f32 1.0, %v14796_v56  ;;  %v11357_v40 = vsub.f32 0.0, %v19119_v44  ;;  %v19127_v21 = vadd.f32 %v19081_v52, %v11187_v26 }
 0x6c8   : > { %14809 = vrcp.f32 %v11445_v54  ;;  %v11446_v58 = vadd.f32 1.0, %v14798_v36  ;;  %v11401_v30 = vmul.f32 1.442695, %v11359_v57  ;;  %v11360_v12 = vsub.f32 0.0, %v19123_v35 }
 0x6c9   : > { %14811 = vrcp.f32 %v11448_v25  ;;  %v11397_v61 = vmul.f32 1.442695, %v11357_v40  ;;  %v11358_v3 = vsub.f32 0.0, %v19127_v21 }
 0x6ca   : > { %14813 = vrcp.f32 %v11446_v58  ;;  %v11403_v53 = vmul.f32 1.442695, %v11360_v12 }
 0x6cb   : > { %14815 = vpow2.f32 %v11401_v30  ;;  %v11399_v48 = vmul.f32 1.442695, %v11358_v3  ;;  %v13887_v32 = vpop.f32.mrb[12].mxu1 }
 0x6cc   : > { %v14800_v41 = vpop.eup %14799  ;;  %14817 = vpow2.f32 %v11397_v61  ;;  %v19132_v33 = vadd.f32 %v13887_v32, %v19081_v52  ;;  %v11200_v47 = vpop.f32.mrb[13].mxu1 }
 0x6cd   : > { %v14802_v50 = vpop.eup %14801  ;;  %v11451_v13 = vadd.f32 1.0, %v14800_v41  ;;  %14819 = vpow2.f32 %v11403_v53  ;;  %v19136_v34 = vadd.f32 %v19081_v52, %v11200_v47  ;;  %v13888_v0 = vpop.f32.mrb[14].mxu1 }
 0x6ce   : > { %v14804_v24 = vpop.eup %14803  ;;  %v11449_v11 = vadd.f32 1.0, %v14802_v50  ;;  %14821 = vpow2.f32 %v11399_v48  ;;  %v11363_v29 = vsub.f32 0.0, %v19132_v33  ;;  %v19140_v18 = vadd.f32 %v13888_v0, %v19081_v52  ;;  %v11203_v28 = vpop.f32.mrb[15].mxu1 }
 0x6cf   : > { %v14806_v5 = vpop.eup %14805  ;;  %14823 = vrcp.f32 %v11451_v13  ;;  %v11452_v8 = vadd.f32 1.0, %v14804_v24  ;;  %v11361_v4 = vsub.f32 0.0, %v19136_v34  ;;  %v19144_v14 = vadd.f32 %v19081_v52, %v11203_v28  ;;  %v11579_v13 = vld [vmem:[%s15189_s17 + $0x30] sm:$0xff] }
 0x6d0   : > { %14825 = vrcp.f32 %v11449_v11  ;;  %v11450_v6 = vadd.f32 1.0, %v14806_v5  ;;  %v11409_v55 = vmul.f32 1.442695, %v11363_v29  ;;  %v11364_v27 = vsub.f32 0.0, %v19140_v18  ;;  %v11577_v5 = vld [vmem:[%s15189_s17 + $0x20] sm:$0xff] }
 0x6d1   : > { %v14808_v10 = vpop.eup %14807  ;;  %14827 = vrcp.f32 %v11452_v8  ;;  %v11405_v17 = vmul.f32 1.442695, %v11361_v4  ;;  %v11362_v15 = vsub.f32 0.0, %v19144_v14 }
 0x6d2   : > { %v14810_v16 = vpop.eup %14809  ;;  %v11543_v38 = vmul.f32 %v14808_v10, %v19084_v7  ;;  %14829 = vrcp.f32 %v11450_v6  ;;  %v11411_v60 = vmul.f32 1.442695, %v11364_v27 }
 0x6d3   : > { %v14812_v9 = vpop.eup %14811  ;;  %v11541_v46 = vmul.f32 %v14810_v16, %v19087_v51  ;;  %14831 = vpow2.f32 %v11409_v55  ;;  %v11407_v23 = vmul.f32 1.442695, %v11362_v15  ;;  %v13891_v43 = vpop.f32.mrb[16].mxu1  ;;  %v11580_v55 = vld [vmem:[%s15189_s17 + $0x38] sm:$0xff]  ;;  %v11578_v16 = vld [vmem:[%s15189_s17 + $0x28] sm:$0xff] }
 0x6d4   : > { %v14814_v22 = vpop.eup %14813  ;;  %v11607_v45 = vadd.f32 %v11575_v20, %v11543_v38  ;;  %v11544_v37 = vmul.f32 %v14812_v9, %v19091_v31  ;;  %14833 = vpow2.f32 %v11405_v17  ;;  %v19160_v56 = vadd.f32 %v13891_v43, %v19081_v52  ;;  %v11216_v7 = vpop.f32.mrb[17].mxu1 }
 0x6d5   : > { %v14816_v54 = vpop.eup %14815  ;;  %v11605_v57 = vadd.f32 %v11573_v2, %v11541_v46  ;;  %v11542_v26 = vmul.f32 %v14814_v22, %v19095_v62  ;;  %14835 = vpow2.f32 %v11411_v60  ;;  %v19164_v51 = vadd.f32 %v19081_v52, %v11216_v7  ;;  %v13892_v36 = vpop.f32.mrb[18].mxu1 }
 0x6d6   : > { %v14818_v25 = vpop.eup %14817  ;;  %11639 = vst [vmem:[%s19167_s10 + $0x10] sm:$0xff] %v11607_v45  ;;  %v11608_v31 = vadd.f32 %v11576_v59, %v11544_v37  ;;  %v11455_v40 = vadd.f32 1.0, %v14816_v54  ;;  %14837 = vpow2.f32 %v11407_v23  ;;  %v11367_v58 = vsub.f32 0.0, %v19160_v56  ;;  %v11219_v62 = vpop.f32.mrb[19].mxu1 }
 0x6d7   : > { %v14820_v30 = vpop.eup %14819  ;;  %11637 = vst [vmem:[%s19167_s10] sm:$0xff] %v11605_v57  ;;  %v11606_v12 = vadd.f32 %v11574_v42, %v11542_v26  ;;  %v11453_v61 = vadd.f32 1.0, %v14818_v25  ;;  %v11365_v3 = vsub.f32 0.0, %v19164_v51  ;;  %v19174_v53 = vadd.f32 %v13892_v36, %v19081_v52 }
 0x6d8   : > { %v14822_v48 = vpop.eup %14821  ;;  %11640 = vst [vmem:[%s19167_s10 + $0x18] sm:$0xff] %v11608_v31  ;;  %14839 = vrcp.f32 %v11455_v40  ;;  %v11456_v32 = vadd.f32 1.0, %v14820_v30  ;;  %v11417_v41 = vmul.f32 1.442695, %v11367_v58  ;;  %v19178_v47 = vadd.f32 %v19081_v52, %v11219_v62  ;;  %v11583_v58 = vld [vmem:[%s15189_s17 + $0x50] sm:$0xff] }
 0x6d9   : > { %v14824_v50 = vpop.eup %14823  ;;  %11638 = vst [vmem:[%s19167_s10 + $0x8] sm:$0xff] %v11606_v12  ;;  %14841 = vrcp.f32 %v11453_v61  ;;  %v11454_v0 = vadd.f32 1.0, %v14822_v48  ;;  %v11413_v24 = vmul.f32 1.442695, %v11365_v3  ;;  %v11368_v11 = vsub.f32 0.0, %v19174_v53  ;;  %v11581_v3 = vld [vmem:[%s15189_s17 + $0x40] sm:$0xff] }
 0x6da   : > { %v14826_v29 = vpop.eup %14825  ;;  %v11547_v28 = vmul.f32 %v14824_v50, %v19100_v1  ;;  %14843 = vrcp.f32 %v11456_v32  ;;  %v11366_v8 = vsub.f32 0.0, %v19178_v47 }
 0x6db   : > { %v14828_v4 = vpop.eup %14827  ;;  %v11545_v6 = vmul.f32 %v14826_v29, %v19103_v49  ;;  %14845 = vrcp.f32 %v11454_v0  ;;  %v11419_v27 = vmul.f32 1.442695, %v11368_v11  ;;  %v13895_v10 = vpop.f32.mrb[20].mxu1 }
 0x6dc   : > { %v14830_v20 = vpop.eup %14829  ;;  %v11611_v17 = vadd.f32 %v11579_v13, %v11547_v28  ;;  %v11548_v15 = vmul.f32 %v14828_v4, %v19107_v19  ;;  %14847 = vpow2.f32 %v11417_v41  ;;  %v11415_v38 = vmul.f32 1.442695, %v11366_v8  ;;  %v11232_v1 = vpop.f32.mrb[21].mxu1  ;;  %v11584_v13 = vld [vmem:[%s15189_s17 + $0x58] sm:$0xff] }
 0x6dd   : > { %v14832_v2 = vpop.eup %14831  ;;  %v11609_v60 = vadd.f32 %v11577_v5, %v11545_v6  ;;  %v11546_v9 = vmul.f32 %v14830_v20, %v19111_v39  ;;  %14849 = vpow2.f32 %v11413_v24  ;;  %v19192_v49 = vadd.f32 %v13895_v10, %v19081_v52  ;;  %v13896_v46 = vpop.f32.mrb[22].mxu1  ;;  %v11582_v5 = vld [vmem:[%s15189_s17 + $0x48] sm:$0xff] }
 0x6de   : > { %v14834_v59 = vpop.eup %14833  ;;  %11643 = vst [vmem:[%s19167_s10 + $0x30] sm:$0xff] %v11611_v17  ;;  %v11612_v23 = vadd.f32 %v11580_v55, %v11548_v15  ;;  %v11459_v43 = vadd.f32 1.0, %v14832_v2  ;;  %14851 = vpow2.f32 %v11419_v27  ;;  %v19196_v19 = vadd.f32 %v19081_v52, %v11232_v1  ;;  %v11235_v22 = vpop.f32.mrb[23].mxu1 }
 0x6df   : > { %v14836_v45 = vpop.eup %14835  ;;  %11641 = vst [vmem:[%s19167_s10 + $0x20] sm:$0xff] %v11609_v60  ;;  %v11610_v37 = vadd.f32 %v11578_v16, %v11546_v9  ;;  %v11457_v39 = vadd.f32 1.0, %v14834_v59  ;;  %14853 = vpow2.f32 %v11415_v38  ;;  %v11371_v42 = vsub.f32 0.0, %v19192_v49 }
 0x6e0   : > { %v14838_v7 = vpop.eup %14837  ;;  %11644 = vst [vmem:[%s19167_s10 + $0x38] sm:$0xff] %v11612_v23  ;;  %14855 = vrcp.f32 %v11459_v43  ;;  %v11460_v54 = vadd.f32 1.0, %v14836_v45  ;;  %v11369_v57 = vsub.f32 0.0, %v19196_v19  ;;  %v19203_v26 = vadd.f32 %v13896_v46, %v19081_v52  ;;  %v11587_v43 = vld [vmem:[%s15189_s17 + $0x70] sm:$0xff] }
 0x6e1   : > { %11642 = vst [vmem:[%s19167_s10 + $0x28] sm:$0xff] %v11610_v37  ;;  %14857 = vrcp.f32 %v11457_v39  ;;  %v11458_v36 = vadd.f32 1.0, %v14838_v7  ;;  %v11425_v25 = vmul.f32 1.442695, %v11371_v42  ;;  %v19207_v31 = vadd.f32 %v19081_v52, %v11235_v22  ;;  %v11585_v42 = vld [vmem:[%s15189_s17 + $0x60] sm:$0xff] }
 0x6e2   : > { %v14840_v40 = vpop.eup %14839  ;;  %14859 = vrcp.f32 %v11460_v54  ;;  %v11421_v62 = vmul.f32 1.442695, %v11369_v57  ;;  %v11372_v30 = vsub.f32 0.0, %v19203_v26 }
 0x6e3   : > { %v14842_v12 = vpop.eup %14841  ;;  %v11551_v61 = vmul.f32 %v14840_v40, %v19116_v63  ;;  %14861 = vrcp.f32 %v11458_v36  ;;  %v11370_v48 = vsub.f32 0.0, %v19207_v31  ;;  %v13899_v32 = vpop.f32.mrb[24].mxu1  ;;  %v11588_v40 = vld [vmem:[%s15189_s17 + $0x78] sm:$0xff] }
 0x6e4   : > { %v14844_v41 = vpop.eup %14843  ;;  %v11549_v50 = vmul.f32 %v14842_v12, %v19119_v44  ;;  %14863 = vpow2.f32 %v11425_v25  ;;  %v11427_v0 = vmul.f32 1.442695, %v11372_v30  ;;  %v19217_v24 = vadd.f32 %v13899_v32, %v19081_v52  ;;  %v11248_v11 = vpop.f32.mrb[25].mxu1 }
 0x6e5   : > { %v14846_v29 = vpop.eup %14845  ;;  %v11615_v28 = vadd.f32 %v11583_v58, %v11551_v61  ;;  %v11552_v63 = vmul.f32 %v14844_v41, %v19123_v35  ;;  %14865 = vpow2.f32 %v11421_v62  ;;  %v11423_v8 = vmul.f32 1.442695, %v11370_v48  ;;  %v13900_v4 = vpop.f32.mrb[26].mxu1 }
 0x6e6   : > { %v14848_v6 = vpop.eup %14847  ;;  %v11613_v55 = vadd.f32 %v11581_v3, %v11549_v50  ;;  %v11550_v44 = vmul.f32 %v14846_v29, %v19127_v21  ;;  %14867 = vpow2.f32 %v11427_v0  ;;  %v11375_v27 = vsub.f32 0.0, %v19217_v24  ;;  %v11251_v10 = vpop.f32.mrb[27].mxu1  ;;  %v11586_v3 = vld [vmem:[%s15189_s17 + $0x68] sm:$0xff] }
 0x6e7   : > { %v14850_v20 = vpop.eup %14849  ;;  %11647 = vst [vmem:[%s19167_s10 + $0x50] sm:$0xff] %v11615_v28  ;;  %v11616_v17 = vadd.f32 %v11584_v13, %v11552_v63  ;;  %v11463_v15 = vadd.f32 1.0, %v14848_v6  ;;  %14869 = vpow2.f32 %v11423_v8  ;;  %v19225_v35 = vadd.f32 %v19081_v52, %v11248_v11 }
 0x6e8   : > { %v14852_v16 = vpop.eup %14851  ;;  %11645 = vst [vmem:[%s19167_s10 + $0x40] sm:$0xff] %v11613_v55  ;;  %v11614_v38 = vadd.f32 %v11582_v5, %v11550_v44  ;;  %v11461_v1 = vadd.f32 1.0, %v14850_v20  ;;  %v11433_v21 = vmul.f32 1.442695, %v11375_v27  ;;  %v19229_v2 = vadd.f32 %v13900_v4, %v19081_v52 }
 0x6e9   : > { %v14854_v60 = vpop.eup %14853  ;;  %11648 = vst [vmem:[%s19167_s10 + $0x58] sm:$0xff] %v11616_v17  ;;  %14871 = vrcp.f32 %v11463_v15  ;;  %v11464_v9 = vadd.f32 1.0, %v14852_v16  ;;  %v11373_v46 = vsub.f32 0.0, %v19225_v35  ;;  %v19234_v59 = vadd.f32 %v19081_v52, %v11251_v10  ;;  %v11591_v17 = vld [vmem:[%s15189_s17 + $0x90] sm:$0xff] }
 0x6ea   : > { %v14856_v23 = vpop.eup %14855  ;;  %11646 = vst [vmem:[%s19167_s10 + $0x48] sm:$0xff] %v11614_v38  ;;  %14873 = vrcp.f32 %v11461_v1  ;;  %v11462_v22 = vadd.f32 1.0, %v14854_v60  ;;  %v11376_v45 = vsub.f32 0.0, %v19229_v2 }
 0x6eb   : > { %v14858_v37 = vpop.eup %14857  ;;  %v11555_v39 = vmul.f32 %v14856_v23, %v19132_v33  ;;  %14875 = vrcp.f32 %v11464_v9  ;;  %v11429_v7 = vmul.f32 1.442695, %v11373_v46  ;;  %v11374_v54 = vsub.f32 0.0, %v19234_v59  ;;  %v13903_v57 = vpop.f32.mrb[28].mxu1 }
 0x6ec   : > { %v14860_v36 = vpop.eup %14859  ;;  %v11553_v25 = vmul.f32 %v14858_v37, %v19136_v34  ;;  %14877 = vrcp.f32 %v11462_v22  ;;  %v11435_v58 = vmul.f32 1.442695, %v11376_v45  ;;  %v19245_v62 = vadd.f32 %v13903_v57, %v19081_v52  ;;  %v11264_v30 = vpop.f32.mrb[29].mxu1  ;;  %v11590_v37 = vld [vmem:[%s15189_s17 + $0x88] sm:$0xff] }
 0x6ed   : > { %v14862_v12 = vpop.eup %14861  ;;  %v11619_v33 = vadd.f32 %v11587_v43, %v11555_v39  ;;  %v11556_v61 = vmul.f32 %v14860_v36, %v19140_v18  ;;  %14879 = vpow2.f32 %v11433_v21  ;;  %v11431_v48 = vmul.f32 1.442695, %v11374_v54  ;;  %v13904_v32 = vpop.f32.mrb[30].mxu1  ;;  %v11589_v21 = vld [vmem:[%s15189_s17 + $0x80] sm:$0xff] }
 0x6ee   : > { %v14864_v41 = vpop.eup %14863  ;;  %v11617_v50 = vadd.f32 %v11585_v42, %v11553_v25  ;;  %v11554_v34 = vmul.f32 %v14862_v12, %v19144_v14  ;;  %14881 = vpow2.f32 %v11429_v7  ;;  %v11379_v13 = vsub.f32 0.0, %v19245_v62  ;;  %v11267_v0 = vpop.f32.mrb[31].mxu1 }
 0x6ef   : > { %v14866_v11 = vpop.eup %14865  ;;  %11651 = vst [vmem:[%s19167_s10 + $0x70] sm:$0xff] %v11619_v33  ;;  %v11620_v29 = vadd.f32 %v11588_v40, %v11556_v61  ;;  %v11467_v28 = vadd.f32 1.0, %v14864_v41  ;;  %14883 = vpow2.f32 %v11435_v58  ;;  %v19253_v18 = vadd.f32 %v19081_v52, %v11264_v30  ;;  %v11596_v41 = vld [vmem:[%s15189_s17 + $0xb8] sm:$0xff] }
 0x6f0   : > { %v14868_v63 = vpop.eup %14867  ;;  %11649 = vst [vmem:[%s19167_s10 + $0x60] sm:$0xff] %v11617_v50  ;;  %v11618_v5 = vadd.f32 %v11586_v3, %v11554_v34  ;;  %v11465_v8 = vadd.f32 1.0, %v14866_v11  ;;  %14885 = vpow2.f32 %v11431_v48  ;;  %v11441_v14 = vmul.f32 1.442695, %v11379_v13  ;;  %v11593_v3 = vld [vmem:[%s15189_s17 + $0xa0] sm:$0xff] }
 0x6f1   : > { %v14870_v4 = vpop.eup %14869  ;;  %11652 = vst [vmem:[%s19167_s10 + $0x78] sm:$0xff] %v11620_v29  ;;  %14887 = vrcp.f32 %v11467_v28  ;;  %v11468_v6 = vadd.f32 1.0, %v14868_v63  ;;  %v11377_v55 = vsub.f32 0.0, %v19253_v18  ;;  %v19259_v44 = vadd.f32 %v13904_v32, %v19081_v52 }
 0x6f2   : > { %11650 = vst [vmem:[%s19167_s10 + $0x68] sm:$0xff] %v11618_v5  ;;  %14889 = vrcp.f32 %v11465_v8  ;;  %v11466_v27 = vadd.f32 1.0, %v14870_v4  ;;  %v19263_v10 = vadd.f32 %v19081_v52, %v11267_v0  ;;  %v11592_v52 = vld [vmem:[%s15189_s17 + $0x98] sm:$0xff]  ;;  %v11594_v0 = vld [vmem:[%s15189_s17 + $0xa8] sm:$0xff] }
 0x6f3   : > { %v14872_v20 = vpop.eup %14871  ;;  %14891 = vrcp.f32 %v11468_v6  ;;  %v11437_v15 = vmul.f32 1.442695, %v11377_v55  ;;  %v11380_v16 = vsub.f32 0.0, %v19259_v44  ;;  %v11599_v55 = vld [vmem:[%s15189_s17 + $0xd0] sm:$0xff] }
 0x6f4   : > { %v14874_v38 = vpop.eup %14873  ;;  %v11559_v1 = vmul.f32 %v14872_v20, %v19160_v56  ;;  %14893 = vrcp.f32 %v11466_v27  ;;  %v11378_v60 = vsub.f32 0.0, %v19263_v10 }
 0x6f5   : > { %v14876_v9 = vpop.eup %14875  ;;  %v11557_v46 = vmul.f32 %v14874_v38, %v19164_v51  ;;  %14895 = vpow2.f32 %v11441_v14  ;;  %v11443_v23 = vmul.f32 1.442695, %v11380_v16  ;;  %v11600_v38 = vld [vmem:[%s15189_s17 + $0xd8] sm:$0xff] }
 0x6f6   : > { %v14878_v43 = vpop.eup %14877  ;;  %v11623_v22 = vadd.f32 %v11591_v17, %v11559_v1  ;;  %v11560_v45 = vmul.f32 %v14876_v9, %v19174_v53  ;;  %14897 = vpow2.f32 %v11437_v15  ;;  %v11439_v56 = vmul.f32 1.442695, %v11378_v60  ;;  %v11597_v17 = vld [vmem:[%s15189_s17 + $0xc0] sm:$0xff]  ;;  %v11598_v9 = vld [vmem:[%s15189_s17 + $0xc8] sm:$0xff] }
 0x6f7   : > { %v14880_v39 = vpop.eup %14879  ;;  %v11621_v42 = vadd.f32 %v11589_v21, %v11557_v46  ;;  %v11558_v7 = vmul.f32 %v14878_v43, %v19178_v47  ;;  %14899 = vpow2.f32 %v11443_v23  ;;  %v11595_v47 = vld [vmem:[%s15189_s17 + $0xb0] sm:$0xff] }
 0x6f8   : > { %v14882_v51 = vpop.eup %14881  ;;  %11655 = vst [vmem:[%s19167_s10 + $0x90] sm:$0xff] %v11623_v22  ;;  %v11624_v54 = vadd.f32 %v11592_v52, %v11560_v45  ;;  %v11471_v57 = vadd.f32 1.0, %v14880_v39  ;;  %14901 = vpow2.f32 %v11439_v56  ;;  %v11603_v43 = vld [vmem:[%s15189_s17 + $0xf0] sm:$0xff]  ;;  %v11601_v45 = vld [vmem:[%s15189_s17 + $0xe0] sm:$0xff] }
 0x6f9   : > { %v14884_v36 = vpop.eup %14883  ;;  %11653 = vst [vmem:[%s19167_s10 + $0x80] sm:$0xff] %v11621_v42  ;;  %v11622_v53 = vadd.f32 %v11590_v37, %v11558_v7  ;;  %v11469_v25 = vadd.f32 1.0, %v14882_v51  ;;  %v11602_v51 = vld [vmem:[%s15189_s17 + $0xe8] sm:$0xff] }
 0x6fa   : > { %v14886_v40 = vpop.eup %14885  ;;  %11656 = vst [vmem:[%s19167_s10 + $0x98] sm:$0xff] %v11624_v54  ;;  %14903 = vrcp.f32 %v11471_v57  ;;  %v11472_v58 = vadd.f32 1.0, %v14884_v36 }
 0x6fb   : > { %v14888_v30 = vpop.eup %14887  ;;  %11654 = vst [vmem:[%s19167_s10 + $0x88] sm:$0xff] %v11622_v53  ;;  %14905 = vrcp.f32 %v11469_v25  ;;  %v11470_v12 = vadd.f32 1.0, %v14886_v40 }
 0x6fc   : > { %v14890_v33 = vpop.eup %14889  ;;  %v11563_v61 = vmul.f32 %v14888_v30, %v19192_v49  ;;  %14907 = vrcp.f32 %v11472_v58 }
 0x6fd   : > { %v14892_v48 = vpop.eup %14891  ;;  %v11561_v32 = vmul.f32 %v14890_v33, %v19196_v19  ;;  %14909 = vrcp.f32 %v11470_v12 }
 0x6fe   : > { %v14894_v50 = vpop.eup %14893  ;;  %v11627_v34 = vadd.f32 %v11595_v47, %v11563_v61  ;;  %v11564_v13 = vmul.f32 %v14892_v48, %v19203_v26 }
 0x6ff   : > { %v14896_v11 = vpop.eup %14895  ;;  %v11625_v29 = vadd.f32 %v11593_v3, %v11561_v32  ;;  %v11562_v28 = vmul.f32 %v14894_v50, %v19207_v31 }
 0x700   : > { %v14898_v49 = vpop.eup %14897  ;;  %11659 = vst [vmem:[%s19167_s10 + $0xb0] sm:$0xff] %v11627_v34  ;;  %v11628_v63 = vadd.f32 %v11596_v41, %v11564_v13  ;;  %v11475_v5 = vadd.f32 1.0, %v14896_v11 }
 0x701   : > { %v14900_v8 = vpop.eup %14899  ;;  %11657 = vst [vmem:[%s19167_s10 + $0xa0] sm:$0xff] %v11625_v29  ;;  %v11626_v19 = vadd.f32 %v11594_v0, %v11562_v28  ;;  %v11473_v14 = vadd.f32 1.0, %v14898_v49 }
 0x702   : > { %v14902_v4 = vpop.eup %14901  ;;  %11660 = vst [vmem:[%s19167_s10 + $0xb8] sm:$0xff] %v11628_v63  ;;  %14911 = vrcp.f32 %v11475_v5  ;;  %v11476_v26 = vadd.f32 1.0, %v14900_v8 }
 0x703   : > { %11658 = vst [vmem:[%s19167_s10 + $0xa8] sm:$0xff] %v11626_v19  ;;  %14913 = vrcp.f32 %v11473_v14  ;;  %v11474_v6 = vadd.f32 1.0, %v14902_v4 }
 0x704   : > { %v14904_v31 = vpop.eup %14903  ;;  %14915 = vrcp.f32 %v11476_v26 }
 0x705   : > { %v14906_v27 = vpop.eup %14905  ;;  %v11567_v20 = vmul.f32 %v14904_v31, %v19217_v24  ;;  %14917 = vrcp.f32 %v11474_v6 }
 0x706   : > { %v14908_v15 = vpop.eup %14907  ;;  %v11565_v16 = vmul.f32 %v14906_v27, %v19225_v35 }
 0x707   : > { %v14910_v1 = vpop.eup %14909  ;;  %v11631_v21 = vadd.f32 %v11599_v55, %v11567_v20  ;;  %v11568_v60 = vmul.f32 %v14908_v15, %v19229_v2 }
 0x708   : > { %v11629_v46 = vadd.f32 %v11597_v17, %v11565_v16  ;;  %v11566_v24 = vmul.f32 %v14910_v1, %v19234_v59  ;;  %v11604_v59 = vld [vmem:[%s15189_s17 + $0xf8] sm:$0xff]  ;;  %s14972_s17 = scalar_lea.vmem %s19319_s12, 4096 }
 0x709   : > { %11663 = vst [vmem:[%s19167_s10 + $0xd0] sm:$0xff] %v11631_v21  ;;  %v11632_v52 = vadd.f32 %v11600_v38, %v11568_v60  ;;  %p14973_p11 = scmp.ne.s32.totalorder %s19319_s12, %s14972_s17  ;;  %p14980_p1 = scmp.lt.s32.totalorder %s14978_s25, %s14972_s17 }
 0x70a   : > { %11661 = vst [vmem:[%s19167_s10 + $0xc0] sm:$0xff] %v11629_v46  ;;  %v11630_v23 = vadd.f32 %v11598_v9, %v11566_v24 }
 0x70b   : > { %11664 = vst [vmem:[%s19167_s10 + $0xd8] sm:$0xff] %v11632_v52  ;;  %p14974_p12 = pnand %p14973_p11, %p15108_p5  ;;  %p14981_p2 = por %p14980_p1, %p14979_p0 }
 0x70c   : > { %v14912_v35 = vpop.eup %14911  ;;  %11662 = vst [vmem:[%s19167_s10 + $0xc8] sm:$0xff] %v11630_v23 }
 0x70d   : > { %v14914_v22 = vpop.eup %14913  ;;  %v11571_v2 = vmul.f32 %v14912_v35, %v19245_v62  ;;  %p14975_p13 = pneg %p14974_p12 }
 0x70e   : > { %v14916_v37 = vpop.eup %14915  ;;  %v11569_v56 = vmul.f32 %v14914_v22, %v19253_v18 }
 0x70f   : > { %v14918_v39 = vpop.eup %14917  ;;  %v11635_v42 = vadd.f32 %v11603_v43, %v11571_v2  ;;  %v11572_v7 = vmul.f32 %v14916_v37, %v19259_v44  ;;  %p14982_p3 = pnand %p14981_p2, %p14975_p13 }
 0x710   : > { %v11633_v54 = vadd.f32 %v11601_v45, %v11569_v56  ;;  %v11570_v62 = vmul.f32 %v14918_v39, %v19263_v10 }
 0x711   : > { %11667 = vst [vmem:[%s19167_s10 + $0xf0] sm:$0xff] %v11635_v42  ;;  %v11636_v57 = vadd.f32 %v11604_v59, %v11572_v7 }
 0x712   : > { %11665 = vst [vmem:[%s19167_s10 + $0xe0] sm:$0xff] %v11633_v54  ;;  %v11634_v18 = vadd.f32 %v11602_v51, %v11570_v62 }
 0x713   : > { %11668 = vst [vmem:[%s19167_s10 + $0xf8] sm:$0xff] %v11636_v57 }
 0x714   : > { %11666 = vst [vmem:[%s19167_s10 + $0xe8] sm:$0xff] %v11634_v18 }
 0x715   : > { %14985 = shalt.err (!%p14982_p3)
}
 0x716   : > { %s14986_s26 = scalar_lea.hbm %s19317_s15, 4096  ;;  %s14990_s7 = scalar_lea.hbm %s19372_s5, 8192 }
 0x717   : > { %p14987_p4 = scmp.ne.s32.totalorder %s19317_s15, %s14986_s26  ;;  %p14991_p9 = scmp.lt.u32.totalorder %s19317_s15, %s19372_s5 }
 0x718   : > { %p14992_p10 = scmp.lt.u32.totalorder %s14990_s7, %s14986_s26  ;;  %p14994_p12 = scmp.lt.u32.totalorder %s14986_s26, %s19317_s15 }
 0x719   : > { %p14988_p7 = pnand %p14987_p4, %p15108_p5 }
 0x71a   : > { %p14993_p11 = por %p14992_p10, %p14991_p9 }
 0x71b   : > { %p14989_p8 = pneg %p14988_p7 }
 0x71c   : > { %p14995_p13 = por %p14994_p12, %p14993_p11 }
 0x71e   : > { %p14996_p0 = pnand %p14995_p13, %p14989_p8 }
 0x720   : > { %14999 = shalt.err (!%p14996_p0)
}
 0x721   : > { %s15038_s10 = smov 128   ;;  %s15039_s11 = smov 8  }
 0x722   : > { %14417 = dma.vmem_to_hbm [thread:$0]  (%p15108_p5), %s19319_s12, 4096, %s19317_s15, %s19326_s22, %s15038_s10, %s15038_s10, %s15039_s11  }
 0x723 PF: > { %p14423_p1 = scmp.ge.s32.totalorder %s15034_s21, 2  ;;  %s11698_s13 = sand.u32 1, %s15022_s18  }
 0x724   : > { %s11699_s14 = scalar_lea.sflag [#allocation5], %s11698_s13 }
 0x725   : > { %p14420_p2 = pnand %p14423_p1, %p15112_p6 }
 0x727   : > { %15017 = dma.done.wait (!%p14420_p2), %s11699_s14, 4096  }
 0x728   : > { %15019 = vsyncadd (!%p14420_p2), %s11699_s14, 4294963200  ;;  %p15_p3 = scmp.ge.s32.totalorder %s15095_s24, 4   ;;  %s19796_s18 = smov %s15026_s19 }
 0x729   : > { %s19797_s19 = smov %s15030_s20  ;;  %s19798_s20 = smov %s15106_s27 }
 0x72a   : > { %s19799_s21 = smov %s15095_s24  ;;  %17 = sbr.rel (!%p15_p3) target bundleno = 3 (0x3), region = 95 }
 0x731   :  { %11704 = vsyncpa [#allocation5], 1 }
 0x732   :  { %11706 = vsyncpa [#allocation5 + $0x1], 1 }

</bundles_post_ra>
